<compile_context>
chip_gen: v7x
topology: tpu7x:2x2x1
jax: 0.10.0
libtpu: 0.0.40
codegen_flags: <defaults>
</compile_context>

<pallas_src>
import functools

import jax
import jax.numpy as jnp
from jax import lax
from jax.experimental import pallas as pl
from jax.experimental.pallas import tpu as pltpu

EPS = 1e-5  # PyTorch InstanceNorm2d default eps


def _residule_block_kernel(x_ref, w1_ref, w2_ref, o_ref, pad_ref,
                           *, H, W, C, Wp, mxu_dtype):
    """One image, fully fused ResiduleBlock.

    x_ref  : (1, H, W, C)   VMEM (NHWC block), activation dtype
    w1_ref : (3, 3, C, C)   VMEM (HWIO), MXU dtype
    w2_ref : (3, 3, C, C)   VMEM (HWIO), MXU dtype
    o_ref  : (1, H, W, C)   VMEM
    pad_ref: ((H+3)*Wp, C)  VMEM scratch, activation dtype: the reflection
                            padded image flattened row-major with an ALIGNED
                            row stride Wp >= W+2.  Columns W+2..Wp-1 and the
                            tail row are zero / only ever reach accumulator
                            rows that are discarded.
    """
    n_out = H * Wp
    cdt = pad_ref.dtype

    def write_reflect_pad(img):
        # img: (H, W, C) in the scratch dtype.  Build the whole padded slab as
        # one value, then store it with a single aligned full-width store.
        rows = jnp.concatenate(
            [img[1:2], img, img[H - 2:H - 1], jnp.zeros((1, W, C), cdt)],
            axis=0)                                                 # (H+3, W, C)
        pieces = [rows[:, 1:2, :], rows, rows[:, W - 2:W - 1, :]]   # left|x|right
        if Wp > W + 2:
            pieces.append(jnp.zeros((H + 3, Wp - (W + 2), C), cdt))
        padded = jnp.concatenate(pieces, axis=1)                    # (H+3, Wp, C)
        # Wp is a multiple of the sublane tile -> this reshape is layout-free.
        pad_ref[...] = padded.reshape((H + 3) * Wp, C)

    def conv3x3(w_ref):
        # 3x3 VALID conv over the padded image held flat in pad_ref.
        # One aligned slab load per ky; kx shifts are value slices; one MXU
        # matmul per tap with f32 accumulation (acc initialized from tap 0).
        acc = None
        for ky in range(3):
            base = ky * Wp                       # multiple of the sublane tile
            slab = pad_ref[base:base + n_out + 2, :]
            for kx in range(3):
                opnd = slab[kx:kx + n_out, :].astype(mxu_dtype)
                t = jnp.dot(opnd, w_ref[ky, kx],
                            preferred_element_type=jnp.float32)
                acc = t if acc is None else acc + t
        # acc row r = i*Wp + j ; keep the W valid columns (aligned extraction).
        return acc.reshape(H, Wp, C)[:, :W, :]

    def instance_norm(a, relu):
        # InstanceNorm2d(affine=False): one-pass sum/sumsq stats, biased var.
        inv_n = 1.0 / (H * W)
        s = jnp.sum(jnp.sum(a, axis=0, keepdims=True), axis=1, keepdims=True)
        ss = jnp.sum(jnp.sum(a * a, axis=0, keepdims=True), axis=1, keepdims=True)
        mean = s * inv_n
        var = jnp.maximum(ss * inv_n - mean * mean, 0.0)
        y = (a - mean) * lax.rsqrt(var + EPS)
        return jnp.maximum(y, 0.0) if relu else y

    # conv1 (bias=False) -> InstanceNorm -> ReLU   (h never leaves VMEM)
    write_reflect_pad(x_ref[0])
    h = instance_norm(conv3x3(w1_ref), relu=True)

    # conv2 -> InstanceNorm   (conv2's bias is cancelled by the norm; skipped)
    write_reflect_pad(h.astype(cdt))
    y = instance_norm(conv3x3(w2_ref), relu=False)

    # residual add (x re-read here so it is not live across the whole kernel)
    o_ref[0] = (y + x_ref[0].astype(jnp.float32)).astype(o_ref.dtype)


def _round_up(n, m):
    return (n + m - 1) // m * m


def _sublane(dtype):
    # Sublane tile rows: 8 for 4-byte dtypes, 16 for 2-byte, 32 for 1-byte.
    return max(8, 32 // jnp.dtype(dtype).itemsize)


def _vmem_limit_bytes():
    # <= ~56 MiB on v7x (64 MiB physical), up to 96 MiB on v5e/v6e (128 MiB).
    try:
        cap = int(pltpu.get_tpu_info().vmem_capacity_bytes)
    except Exception:  # fallback: assume the 128 MiB generations
        cap = 128 * 1024 * 1024
    return min(cap - cap // 8, 96 * 1024 * 1024)


def residule_block_nhwc(x, w1, w2, b2=None, *, mxu_dtype=jnp.bfloat16):
    """Fused ResiduleBlock forward, NHWC activations.

    x : (N, H, W, C);  w1, w2 : (3, 3, Cin, Cout) HWIO.
    b2 is accepted for API parity but unused: a per-channel bias added right
    before InstanceNorm2d(affine=False) is mathematically a no-op.
    mxu_dtype: matmul-operand dtype (bf16 = full-rate MXU on v5e/v6e/v7x);
    accumulation and normalization math are always f32.
    """
    del b2
    N, H, W, C = x.shape
    assert H >= 2 and W >= 2, "ReflectionPad2d(1) needs spatial dims >= 2"
    assert w1.shape == (3, 3, C, C) and w2.shape == (3, 3, C, C), (
        "residual add requires in_dim == out_dim")

    Wp = _round_up(W + 2, _sublane(x.dtype))   # aligned padded-row stride
    kern = functools.partial(_residule_block_kernel, H=H, W=W, C=C, Wp=Wp,
                             mxu_dtype=jnp.dtype(mxu_dtype))

    return pl.pallas_call(
        kern,
        out_shape=jax.ShapeDtypeStruct((N, H, W, C), x.dtype),
        grid=(N,),
        in_specs=[
            pl.BlockSpec((1, H, W, C), lambda n: (n, 0, 0, 0)),
            # Constant index maps -> weight blocks are not re-DMA'd across the
            # batch grid.
            pl.BlockSpec((3, 3, C, C), lambda n: (0, 0, 0, 0)),
            pl.BlockSpec((3, 3, C, C), lambda n: (0, 0, 0, 0)),
        ],
        out_specs=pl.BlockSpec((1, H, W, C), lambda n: (n, 0, 0, 0)),
        scratch_shapes=[pltpu.VMEM(((H + 3) * Wp, C), x.dtype)],
        compiler_params=pltpu.CompilerParams(
            dimension_semantics=("parallel",),
            vmem_limit_bytes=_vmem_limit_bytes()),
    )(x, w1.astype(mxu_dtype), w2.astype(mxu_dtype))


def residule_block(x_nchw, w1, w2, b2=None, *, mxu_dtype=jnp.bfloat16):
    """NCHW (PyTorch-layout) convenience wrapper.  In a full model, keep
    activations NHWC end-to-end and call residule_block_nhwc directly to skip
    these two transpose passes."""
    x = jnp.transpose(x_nchw, (0, 2, 3, 1))
    y = residule_block_nhwc(x, w1, w2, b2, mxu_dtype=mxu_dtype)
    return jnp.transpose(y, (0, 3, 1, 2))


# ----------------------------- pure-JAX reference -----------------------------
def _ref_block(x_nchw, w1, w2, b2):
    def conv(x, w, b):
        out = lax.conv_general_dilated(
            x, w, window_strides=(1, 1), padding="VALID",
            dimension_numbers=("NHWC", "HWIO", "NHWC"))
        return out + b.reshape(1, 1, 1, -1)

    def inorm(x):
        m = jnp.mean(x, axis=(1, 2), keepdims=True)
        v = jnp.mean((x - m) ** 2, axis=(1, 2), keepdims=True)
        return (x - m) / jnp.sqrt(v + EPS)

    x = jnp.transpose(x_nchw, (0, 2, 3, 1))
    xp = jnp.pad(x, ((0, 0), (1, 1), (1, 1), (0, 0)), mode="reflect")
    h = jnp.maximum(inorm(conv(xp, w1, jnp.zeros((w1.shape[-1],)))), 0.0)
    hp = jnp.pad(h, ((0, 0), (1, 1), (1, 1), (0, 0)), mode="reflect")
    y = x + inorm(conv(hp, w2, b2.reshape(-1)))
    return jnp.transpose(y, (0, 3, 1, 2))


if __name__ == "__main__":
    N, C, H, W = 2, 4, 16, 16   # in_dim == out_dim == 4 (required by residual)
    key = jax.random.PRNGKey(0)
    kx_, k1, k2, kb = jax.random.split(key, 4)

    x = jax.random.normal(kx_, (N, C, H, W), jnp.float32)
    # weights stored HWIO (3,3,Cin,Cout); deterministic synthetic init.
    w1 = 0.2 * jax.random.normal(k1, (3, 3, C, C), jnp.float32)
    w2 = 0.2 * jax.random.normal(k2, (3, 3, C, C), jnp.float32)
    b2 = 0.1 * jax.random.normal(kb, (C,), jnp.float32)

    ref = _ref_block(x, w1, w2, b2)

    # Strict check: f32 MXU operands (bit-faithful to the PyTorch math).
    out = jax.jit(functools.partial(residule_block, mxu_dtype=jnp.float32))(
        x, w1, w2, b2)
    out = jax.block_until_ready(out)
    assert out.shape == (N, C, H, W), out.shape
    assert jnp.allclose(out, ref, rtol=1e-3, atol=1e-3), (
        float(jnp.max(jnp.abs(out - ref))))

    # Production default: bf16 MXU operands (full-rate MXU) -- loose smoke check
    # against the f32 reference.
    out_bf16 = jax.block_until_ready(jax.jit(residule_block)(x, w1, w2, b2))
    assert jnp.allclose(out_bf16, ref, rtol=5e-2, atol=5e-2), (
        float(jnp.max(jnp.abs(out_bf16 - ref))))

    print("KERNEL_OK")
</pallas_src>

<mosaic_0001>
module attributes {stable_mosaic.version = 11 : i64} {
  func.func @_residule_block_kernel(%arg0: i32, %arg1: memref<1x16x16x4xf32, #tpu.memory_space<vmem>>, %arg2: memref<3x3x4x4xf32, #tpu.memory_space<vmem>>, %arg3: memref<3x3x4x4xf32, #tpu.memory_space<vmem>>, %arg4: memref<1x16x16x4xf32, #tpu.memory_space<vmem>>, %arg5: memref<456x4xf32, #tpu.memory_space<vmem>>) attributes {dimension_semantics = [#tpu.dimension_semantics<parallel>], iteration_bounds = array<i64: 2>, scalar_prefetch = 0 : i64, scratch_operands = 1 : i64, tpu.core_type = #tpu.core_type<tc>, window_params = [{transform_indices = @transform_0, window_bounds = array<i64: 1, 16, 16, 4>}, {pipeline_mode = #tpu.pipeline_mode<synchronous>, transform_indices = @transform_1, window_bounds = array<i64: 3, 3, 4, 4>}, {pipeline_mode = #tpu.pipeline_mode<synchronous>, transform_indices = @transform_2, window_bounds = array<i64: 3, 3, 4, 4>}, {transform_indices = @transform_3, window_bounds = array<i64: 1, 16, 16, 4>}]} {
    %c0 = arith.constant 0 : index
    %c0_0 = arith.constant 0 : index
    %c0_1 = arith.constant 0 : index
    %c0_2 = arith.constant 0 : index
    %0 = vector.load %arg1[%c0, %c0_0, %c0_1, %c0_2] : memref<1x16x16x4xf32, #tpu.memory_space<vmem>>, vector<1x16x16x4xf32>
    %1 = vector.shape_cast %0 : vector<1x16x16x4xf32> to vector<16x16x4xf32>
    %2 = vector.extract_strided_slice %1 {offsets = [1, 0, 0], sizes = [1, 16, 4], strides = [1, 1, 1]} : vector<16x16x4xf32> to vector<1x16x4xf32>
    %3 = vector.extract_strided_slice %1 {offsets = [14, 0, 0], sizes = [1, 16, 4], strides = [1, 1, 1]} : vector<16x16x4xf32> to vector<1x16x4xf32>
    %cst = arith.constant 0.000000e+00 : f32
    %4 = vector.broadcast %cst : f32 to vector<1x16x4xf32>
    %5 = tpu.concatenate %2, %1, %3, %4 in 0 : vector<1x16x4xf32>, vector<16x16x4xf32>, vector<1x16x4xf32>, vector<1x16x4xf32> -> vector<19x16x4xf32>
    %6 = vector.extract_strided_slice %5 {offsets = [0, 1, 0], sizes = [19, 1, 4], strides = [1, 1, 1]} : vector<19x16x4xf32> to vector<19x1x4xf32>
    %7 = vector.extract_strided_slice %5 {offsets = [0, 14, 0], sizes = [19, 1, 4], strides = [1, 1, 1]} : vector<19x16x4xf32> to vector<19x1x4xf32>
    %cst_3 = arith.constant 0.000000e+00 : f32
    %8 = vector.broadcast %cst_3 : f32 to vector<19x6x4xf32>
    %9 = tpu.concatenate %6, %5, %7, %8 in 1 : vector<19x1x4xf32>, vector<19x16x4xf32>, vector<19x1x4xf32>, vector<19x6x4xf32> -> vector<19x24x4xf32>
    %10 = vector.shape_cast %9 : vector<19x24x4xf32> to vector<456x4xf32>
    %c0_4 = arith.constant 0 : index
    %c0_5 = arith.constant 0 : index
    %11 = vector.load %arg5[%c0_4, %c0_5] : memref<456x4xf32, #tpu.memory_space<vmem>>, vector<456x4xf32>
    tpu.vector_store %arg5[%c0_4, %c0_5], %10 {strides = array<i32>} : memref<456x4xf32, #tpu.memory_space<vmem>>, vector<456x4xf32>,
    %c0_6 = arith.constant 0 : index
    %c0_7 = arith.constant 0 : index
    %12 = vector.load %arg5[%c0_6, %c0_7] : memref<456x4xf32, #tpu.memory_space<vmem>>, vector<386x4xf32>
    %13 = vector.extract_strided_slice %12 {offsets = [0, 0], sizes = [384, 4], strides = [1, 1]} : vector<386x4xf32> to vector<384x4xf32>
    %c0_8 = arith.constant 0 : index
    %c0_9 = arith.constant 0 : index
    %c0_10 = arith.constant 0 : index
    %c0_11 = arith.constant 0 : index
    %14 = vector.load %arg2[%c0_8, %c0_9, %c0_10, %c0_11] : memref<3x3x4x4xf32, #tpu.memory_space<vmem>>, vector<1x1x4x4xf32>
    %15 = vector.shape_cast %14 : vector<1x1x4x4xf32> to vector<4x4xf32>
    %cst_12 = arith.constant dense<0.000000e+00> : vector<384x4xf32>
    %16 = tpu.matmul %13, %15, %cst_12 {dimension_numbers = #tpu.dot_dimension_numbers<[1], [0], [0], [1], [0, 0, 1, 1], [], []>} : vector<384x4xf32>, vector<4x4xf32>, vector<384x4xf32> -> vector<384x4xf32>
    %17 = vector.extract_strided_slice %12 {offsets = [1, 0], sizes = [384, 4], strides = [1, 1]} : vector<386x4xf32> to vector<384x4xf32>
    %c0_13 = arith.constant 0 : index
    %c1 = arith.constant 1 : index
    %c0_14 = arith.constant 0 : index
    %c0_15 = arith.constant 0 : index
    %18 = vector.load %arg2[%c0_13, %c1, %c0_14, %c0_15] : memref<3x3x4x4xf32, #tpu.memory_space<vmem>>, vector<1x1x4x4xf32>
    %19 = vector.shape_cast %18 : vector<1x1x4x4xf32> to vector<4x4xf32>
    %cst_16 = arith.constant dense<0.000000e+00> : vector<384x4xf32>
    %20 = tpu.matmul %17, %19, %cst_16 {dimension_numbers = #tpu.dot_dimension_numbers<[1], [0], [0], [1], [0, 0, 1, 1], [], []>} : vector<384x4xf32>, vector<4x4xf32>, vector<384x4xf32> -> vector<384x4xf32>
    %21 = arith.addf %16, %20 : vector<384x4xf32>
    %22 = vector.extract_strided_slice %12 {offsets = [2, 0], sizes = [384, 4], strides = [1, 1]} : vector<386x4xf32> to vector<384x4xf32>
    %c0_17 = arith.constant 0 : index
    %c2 = arith.constant 2 : index
    %c0_18 = arith.constant 0 : index
    %c0_19 = arith.constant 0 : index
    %23 = vector.load %arg2[%c0_17, %c2, %c0_18, %c0_19] : memref<3x3x4x4xf32, #tpu.memory_space<vmem>>, vector<1x1x4x4xf32>
    %24 = vector.shape_cast %23 : vector<1x1x4x4xf32> to vector<4x4xf32>
    %cst_20 = arith.constant dense<0.000000e+00> : vector<384x4xf32>
    %25 = tpu.matmul %22, %24, %cst_20 {dimension_numbers = #tpu.dot_dimension_numbers<[1], [0], [0], [1], [0, 0, 1, 1], [], []>} : vector<384x4xf32>, vector<4x4xf32>, vector<384x4xf32> -> vector<384x4xf32>
    %26 = arith.addf %21, %25 : vector<384x4xf32>
    %c24 = arith.constant 24 : index
    %c0_21 = arith.constant 0 : index
    %27 = vector.load %arg5[%c24, %c0_21] : memref<456x4xf32, #tpu.memory_space<vmem>>, vector<386x4xf32>
    %28 = vector.extract_strided_slice %27 {offsets = [0, 0], sizes = [384, 4], strides = [1, 1]} : vector<386x4xf32> to vector<384x4xf32>
    %c1_22 = arith.constant 1 : index
    %c0_23 = arith.constant 0 : index
    %c0_24 = arith.constant 0 : index
    %c0_25 = arith.constant 0 : index
    %29 = vector.load %arg2[%c1_22, %c0_23, %c0_24, %c0_25] : memref<3x3x4x4xf32, #tpu.memory_space<vmem>>, vector<1x1x4x4xf32>
    %30 = vector.shape_cast %29 : vector<1x1x4x4xf32> to vector<4x4xf32>
    %cst_26 = arith.constant dense<0.000000e+00> : vector<384x4xf32>
    %31 = tpu.matmul %28, %30, %cst_26 {dimension_numbers = #tpu.dot_dimension_numbers<[1], [0], [0], [1], [0, 0, 1, 1], [], []>} : vector<384x4xf32>, vector<4x4xf32>, vector<384x4xf32> -> vector<384x4xf32>
    %32 = arith.addf %26, %31 : vector<384x4xf32>
    %33 = vector.extract_strided_slice %27 {offsets = [1, 0], sizes = [384, 4], strides = [1, 1]} : vector<386x4xf32> to vector<384x4xf32>
    %c1_27 = arith.constant 1 : index
    %c1_28 = arith.constant 1 : index
    %c0_29 = arith.constant 0 : index
    %c0_30 = arith.constant 0 : index
    %34 = vector.load %arg2[%c1_27, %c1_28, %c0_29, %c0_30] : memref<3x3x4x4xf32, #tpu.memory_space<vmem>>, vector<1x1x4x4xf32>
    %35 = vector.shape_cast %34 : vector<1x1x4x4xf32> to vector<4x4xf32>
    %cst_31 = arith.constant dense<0.000000e+00> : vector<384x4xf32>
    %36 = tpu.matmul %33, %35, %cst_31 {dimension_numbers = #tpu.dot_dimension_numbers<[1], [0], [0], [1], [0, 0, 1, 1], [], []>} : vector<384x4xf32>, vector<4x4xf32>, vector<384x4xf32> -> vector<384x4xf32>
    %37 = arith.addf %32, %36 : vector<384x4xf32>
    %38 = vector.extract_strided_slice %27 {offsets = [2, 0], sizes = [384, 4], strides = [1, 1]} : vector<386x4xf32> to vector<384x4xf32>
    %c1_32 = arith.constant 1 : index
    %c2_33 = arith.constant 2 : index
    %c0_34 = arith.constant 0 : index
    %c0_35 = arith.constant 0 : index
    %39 = vector.load %arg2[%c1_32, %c2_33, %c0_34, %c0_35] : memref<3x3x4x4xf32, #tpu.memory_space<vmem>>, vector<1x1x4x4xf32>
    %40 = vector.shape_cast %39 : vector<1x1x4x4xf32> to vector<4x4xf32>
    %cst_36 = arith.constant dense<0.000000e+00> : vector<384x4xf32>
    %41 = tpu.matmul %38, %40, %cst_36 {dimension_numbers = #tpu.dot_dimension_numbers<[1], [0], [0], [1], [0, 0, 1, 1], [], []>} : vector<384x4xf32>, vector<4x4xf32>, vector<384x4xf32> -> vector<384x4xf32>
    %42 = arith.addf %37, %41 : vector<384x4xf32>
    %c48 = arith.constant 48 : index
    %c0_37 = arith.constant 0 : index
    %43 = vector.load %arg5[%c48, %c0_37] : memref<456x4xf32, #tpu.memory_space<vmem>>, vector<386x4xf32>
    %44 = vector.extract_strided_slice %43 {offsets = [0, 0], sizes = [384, 4], strides = [1, 1]} : vector<386x4xf32> to vector<384x4xf32>
    %c2_38 = arith.constant 2 : index
    %c0_39 = arith.constant 0 : index
    %c0_40 = arith.constant 0 : index
    %c0_41 = arith.constant 0 : index
    %45 = vector.load %arg2[%c2_38, %c0_39, %c0_40, %c0_41] : memref<3x3x4x4xf32, #tpu.memory_space<vmem>>, vector<1x1x4x4xf32>
    %46 = vector.shape_cast %45 : vector<1x1x4x4xf32> to vector<4x4xf32>
    %cst_42 = arith.constant dense<0.000000e+00> : vector<384x4xf32>
    %47 = tpu.matmul %44, %46, %cst_42 {dimension_numbers = #tpu.dot_dimension_numbers<[1], [0], [0], [1], [0, 0, 1, 1], [], []>} : vector<384x4xf32>, vector<4x4xf32>, vector<384x4xf32> -> vector<384x4xf32>
    %48 = arith.addf %42, %47 : vector<384x4xf32>
    %49 = vector.extract_strided_slice %43 {offsets = [1, 0], sizes = [384, 4], strides = [1, 1]} : vector<386x4xf32> to vector<384x4xf32>
    %c2_43 = arith.constant 2 : index
    %c1_44 = arith.constant 1 : index
    %c0_45 = arith.constant 0 : index
    %c0_46 = arith.constant 0 : index
    %50 = vector.load %arg2[%c2_43, %c1_44, %c0_45, %c0_46] : memref<3x3x4x4xf32, #tpu.memory_space<vmem>>, vector<1x1x4x4xf32>
    %51 = vector.shape_cast %50 : vector<1x1x4x4xf32> to vector<4x4xf32>
    %cst_47 = arith.constant dense<0.000000e+00> : vector<384x4xf32>
    %52 = tpu.matmul %49, %51, %cst_47 {dimension_numbers = #tpu.dot_dimension_numbers<[1], [0], [0], [1], [0, 0, 1, 1], [], []>} : vector<384x4xf32>, vector<4x4xf32>, vector<384x4xf32> -> vector<384x4xf32>
    %53 = arith.addf %48, %52 : vector<384x4xf32>
    %54 = vector.extract_strided_slice %43 {offsets = [2, 0], sizes = [384, 4], strides = [1, 1]} : vector<386x4xf32> to vector<384x4xf32>
    %c2_48 = arith.constant 2 : index
    %c2_49 = arith.constant 2 : index
    %c0_50 = arith.constant 0 : index
    %c0_51 = arith.constant 0 : index
    %55 = vector.load %arg2[%c2_48, %c2_49, %c0_50, %c0_51] : memref<3x3x4x4xf32, #tpu.memory_space<vmem>>, vector<1x1x4x4xf32>
    %56 = vector.shape_cast %55 : vector<1x1x4x4xf32> to vector<4x4xf32>
    %cst_52 = arith.constant dense<0.000000e+00> : vector<384x4xf32>
    %57 = tpu.matmul %54, %56, %cst_52 {dimension_numbers = #tpu.dot_dimension_numbers<[1], [0], [0], [1], [0, 0, 1, 1], [], []>} : vector<384x4xf32>, vector<4x4xf32>, vector<384x4xf32> -> vector<384x4xf32>
    %58 = arith.addf %53, %57 : vector<384x4xf32>
    %59 = vector.shape_cast %58 : vector<384x4xf32> to vector<16x24x4xf32>
    %60 = vector.extract_strided_slice %59 {offsets = [0, 0, 0], sizes = [16, 16, 4], strides = [1, 1, 1]} : vector<16x24x4xf32> to vector<16x16x4xf32>
    %cst_53 = arith.constant dense<0.000000e+00> : vector<16x4xf32>
    %61 = vector.multi_reduction <add>, %60, %cst_53 [0] : vector<16x16x4xf32> to vector<16x4xf32>
    %62 = vector.shape_cast %61 : vector<16x4xf32> to vector<1x16x4xf32>
    %cst_54 = arith.constant dense<0.000000e+00> : vector<1x4xf32>
    %63 = vector.multi_reduction <add>, %62, %cst_54 [1] : vector<1x16x4xf32> to vector<1x4xf32>
    %64 = vector.shape_cast %63 : vector<1x4xf32> to vector<1x1x4xf32>
    %65 = arith.mulf %60, %60 : vector<16x16x4xf32>
    %cst_55 = arith.constant dense<0.000000e+00> : vector<16x4xf32>
    %66 = vector.multi_reduction <add>, %65, %cst_55 [0] : vector<16x16x4xf32> to vector<16x4xf32>
    %67 = vector.shape_cast %66 : vector<16x4xf32> to vector<1x16x4xf32>
    %cst_56 = arith.constant dense<0.000000e+00> : vector<1x4xf32>
    %68 = vector.multi_reduction <add>, %67, %cst_56 [1] : vector<1x16x4xf32> to vector<1x4xf32>
    %69 = vector.shape_cast %68 : vector<1x4xf32> to vector<1x1x4xf32>
    %cst_57 = arith.constant 3.906250e-03 : f32
    %70 = vector.broadcast %cst_57 : f32 to vector<1x1x4xf32>
    %71 = arith.mulf %64, %70 : vector<1x1x4xf32>
    %cst_58 = arith.constant 3.906250e-03 : f32
    %72 = vector.broadcast %cst_58 : f32 to vector<1x1x4xf32>
    %73 = arith.mulf %69, %72 : vector<1x1x4xf32>
    %74 = arith.mulf %71, %71 : vector<1x1x4xf32>
    %75 = arith.subf %73, %74 : vector<1x1x4xf32>
    %cst_59 = arith.constant 0.000000e+00 : f32
    %76 = vector.broadcast %cst_59 : f32 to vector<1x1x4xf32>
    %77 = arith.maximumf %75, %76 : vector<1x1x4xf32>
    %78 = vector.broadcast %71 : vector<1x1x4xf32> to vector<16x16x4xf32>
    %79 = arith.subf %60, %78 : vector<16x16x4xf32>
    %cst_60 = arith.constant 9.99999974E-6 : f32
    %80 = vector.broadcast %cst_60 : f32 to vector<1x1x4xf32>
    %81 = arith.addf %77, %80 : vector<1x1x4xf32>
    %82 = math.rsqrt %81 : vector<1x1x4xf32>
    %83 = vector.broadcast %82 : vector<1x1x4xf32> to vector<16x16x4xf32>
    %84 = arith.mulf %79, %83 : vector<16x16x4xf32>
    %cst_61 = arith.constant 0.000000e+00 : f32
    %85 = vector.broadcast %cst_61 : f32 to vector<16x16x4xf32>
    %86 = arith.maximumf %84, %85 : vector<16x16x4xf32>
    %87 = vector.extract_strided_slice %86 {offsets = [1, 0, 0], sizes = [1, 16, 4], strides = [1, 1, 1]} : vector<16x16x4xf32> to vector<1x16x4xf32>
    %88 = vector.extract_strided_slice %86 {offsets = [14, 0, 0], sizes = [1, 16, 4], strides = [1, 1, 1]} : vector<16x16x4xf32> to vector<1x16x4xf32>
    %cst_62 = arith.constant 0.000000e+00 : f32
    %89 = vector.broadcast %cst_62 : f32 to vector<1x16x4xf32>
    %90 = tpu.concatenate %87, %86, %88, %89 in 0 : vector<1x16x4xf32>, vector<16x16x4xf32>, vector<1x16x4xf32>, vector<1x16x4xf32> -> vector<19x16x4xf32>
    %91 = vector.extract_strided_slice %90 {offsets = [0, 1, 0], sizes = [19, 1, 4], strides = [1, 1, 1]} : vector<19x16x4xf32> to vector<19x1x4xf32>
    %92 = vector.extract_strided_slice %90 {offsets = [0, 14, 0], sizes = [19, 1, 4], strides = [1, 1, 1]} : vector<19x16x4xf32> to vector<19x1x4xf32>
    %cst_63 = arith.constant 0.000000e+00 : f32
    %93 = vector.broadcast %cst_63 : f32 to vector<19x6x4xf32>
    %94 = tpu.concatenate %91, %90, %92, %93 in 1 : vector<19x1x4xf32>, vector<19x16x4xf32>, vector<19x1x4xf32>, vector<19x6x4xf32> -> vector<19x24x4xf32>
    %95 = vector.shape_cast %94 : vector<19x24x4xf32> to vector<456x4xf32>
    %c0_64 = arith.constant 0 : index
    %c0_65 = arith.constant 0 : index
    %96 = vector.load %arg5[%c0_64, %c0_65] : memref<456x4xf32, #tpu.memory_space<vmem>>, vector<456x4xf32>
    tpu.vector_store %arg5[%c0_64, %c0_65], %95 {strides = array<i32>} : memref<456x4xf32, #tpu.memory_space<vmem>>, vector<456x4xf32>,
    %c0_66 = arith.constant 0 : index
    %c0_67 = arith.constant 0 : index
    %97 = vector.load %arg5[%c0_66, %c0_67] : memref<456x4xf32, #tpu.memory_space<vmem>>, vector<386x4xf32>
    %98 = vector.extract_strided_slice %97 {offsets = [0, 0], sizes = [384, 4], strides = [1, 1]} : vector<386x4xf32> to vector<384x4xf32>
    %c0_68 = arith.constant 0 : index
    %c0_69 = arith.constant 0 : index
    %c0_70 = arith.constant 0 : index
    %c0_71 = arith.constant 0 : index
    %99 = vector.load %arg3[%c0_68, %c0_69, %c0_70, %c0_71] : memref<3x3x4x4xf32, #tpu.memory_space<vmem>>, vector<1x1x4x4xf32>
    %100 = vector.shape_cast %99 : vector<1x1x4x4xf32> to vector<4x4xf32>
    %cst_72 = arith.constant dense<0.000000e+00> : vector<384x4xf32>
    %101 = tpu.matmul %98, %100, %cst_72 {dimension_numbers = #tpu.dot_dimension_numbers<[1], [0], [0], [1], [0, 0, 1, 1], [], []>} : vector<384x4xf32>, vector<4x4xf32>, vector<384x4xf32> -> vector<384x4xf32>
    %102 = vector.extract_strided_slice %97 {offsets = [1, 0], sizes = [384, 4], strides = [1, 1]} : vector<386x4xf32> to vector<384x4xf32>
    %c0_73 = arith.constant 0 : index
    %c1_74 = arith.constant 1 : index
    %c0_75 = arith.constant 0 : index
    %c0_76 = arith.constant 0 : index
    %103 = vector.load %arg3[%c0_73, %c1_74, %c0_75, %c0_76] : memref<3x3x4x4xf32, #tpu.memory_space<vmem>>, vector<1x1x4x4xf32>
    %104 = vector.shape_cast %103 : vector<1x1x4x4xf32> to vector<4x4xf32>
    %cst_77 = arith.constant dense<0.000000e+00> : vector<384x4xf32>
    %105 = tpu.matmul %102, %104, %cst_77 {dimension_numbers = #tpu.dot_dimension_numbers<[1], [0], [0], [1], [0, 0, 1, 1], [], []>} : vector<384x4xf32>, vector<4x4xf32>, vector<384x4xf32> -> vector<384x4xf32>
    %106 = arith.addf %101, %105 : vector<384x4xf32>
    %107 = vector.extract_strided_slice %97 {offsets = [2, 0], sizes = [384, 4], strides = [1, 1]} : vector<386x4xf32> to vector<384x4xf32>
    %c0_78 = arith.constant 0 : index
    %c2_79 = arith.constant 2 : index
    %c0_80 = arith.constant 0 : index
    %c0_81 = arith.constant 0 : index
    %108 = vector.load %arg3[%c0_78, %c2_79, %c0_80, %c0_81] : memref<3x3x4x4xf32, #tpu.memory_space<vmem>>, vector<1x1x4x4xf32>
    %109 = vector.shape_cast %108 : vector<1x1x4x4xf32> to vector<4x4xf32>
    %cst_82 = arith.constant dense<0.000000e+00> : vector<384x4xf32>
    %110 = tpu.matmul %107, %109, %cst_82 {dimension_numbers = #tpu.dot_dimension_numbers<[1], [0], [0], [1], [0, 0, 1, 1], [], []>} : vector<384x4xf32>, vector<4x4xf32>, vector<384x4xf32> -> vector<384x4xf32>
    %111 = arith.addf %106, %110 : vector<384x4xf32>
    %c24_83 = arith.constant 24 : index
    %c0_84 = arith.constant 0 : index
    %112 = vector.load %arg5[%c24_83, %c0_84] : memref<456x4xf32, #tpu.memory_space<vmem>>, vector<386x4xf32>
    %113 = vector.extract_strided_slice %112 {offsets = [0, 0], sizes = [384, 4], strides = [1, 1]} : vector<386x4xf32> to vector<384x4xf32>
    %c1_85 = arith.constant 1 : index
    %c0_86 = arith.constant 0 : index
    %c0_87 = arith.constant 0 : index
    %c0_88 = arith.constant 0 : index
    %114 = vector.load %arg3[%c1_85, %c0_86, %c0_87, %c0_88] : memref<3x3x4x4xf32, #tpu.memory_space<vmem>>, vector<1x1x4x4xf32>
    %115 = vector.shape_cast %114 : vector<1x1x4x4xf32> to vector<4x4xf32>
    %cst_89 = arith.constant dense<0.000000e+00> : vector<384x4xf32>
    %116 = tpu.matmul %113, %115, %cst_89 {dimension_numbers = #tpu.dot_dimension_numbers<[1], [0], [0], [1], [0, 0, 1, 1], [], []>} : vector<384x4xf32>, vector<4x4xf32>, vector<384x4xf32> -> vector<384x4xf32>
    %117 = arith.addf %111, %116 : vector<384x4xf32>
    %118 = vector.extract_strided_slice %112 {offsets = [1, 0], sizes = [384, 4], strides = [1, 1]} : vector<386x4xf32> to vector<384x4xf32>
    %c1_90 = arith.constant 1 : index
    %c1_91 = arith.constant 1 : index
    %c0_92 = arith.constant 0 : index
    %c0_93 = arith.constant 0 : index
    %119 = vector.load %arg3[%c1_90, %c1_91, %c0_92, %c0_93] : memref<3x3x4x4xf32, #tpu.memory_space<vmem>>, vector<1x1x4x4xf32>
    %120 = vector.shape_cast %119 : vector<1x1x4x4xf32> to vector<4x4xf32>
    %cst_94 = arith.constant dense<0.000000e+00> : vector<384x4xf32>
    %121 = tpu.matmul %118, %120, %cst_94 {dimension_numbers = #tpu.dot_dimension_numbers<[1], [0], [0], [1], [0, 0, 1, 1], [], []>} : vector<384x4xf32>, vector<4x4xf32>, vector<384x4xf32> -> vector<384x4xf32>
    %122 = arith.addf %117, %121 : vector<384x4xf32>
    %123 = vector.extract_strided_slice %112 {offsets = [2, 0], sizes = [384, 4], strides = [1, 1]} : vector<386x4xf32> to vector<384x4xf32>
    %c1_95 = arith.constant 1 : index
    %c2_96 = arith.constant 2 : index
    %c0_97 = arith.constant 0 : index
    %c0_98 = arith.constant 0 : index
    %124 = vector.load %arg3[%c1_95, %c2_96, %c0_97, %c0_98] : memref<3x3x4x4xf32, #tpu.memory_space<vmem>>, vector<1x1x4x4xf32>
    %125 = vector.shape_cast %124 : vector<1x1x4x4xf32> to vector<4x4xf32>
    %cst_99 = arith.constant dense<0.000000e+00> : vector<384x4xf32>
    %126 = tpu.matmul %123, %125, %cst_99 {dimension_numbers = #tpu.dot_dimension_numbers<[1], [0], [0], [1], [0, 0, 1, 1], [], []>} : vector<384x4xf32>, vector<4x4xf32>, vector<384x4xf32> -> vector<384x4xf32>
    %127 = arith.addf %122, %126 : vector<384x4xf32>
    %c48_100 = arith.constant 48 : index
    %c0_101 = arith.constant 0 : index
    %128 = vector.load %arg5[%c48_100, %c0_101] : memref<456x4xf32, #tpu.memory_space<vmem>>, vector<386x4xf32>
    %129 = vector.extract_strided_slice %128 {offsets = [0, 0], sizes = [384, 4], strides = [1, 1]} : vector<386x4xf32> to vector<384x4xf32>
    %c2_102 = arith.constant 2 : index
    %c0_103 = arith.constant 0 : index
    %c0_104 = arith.constant 0 : index
    %c0_105 = arith.constant 0 : index
    %130 = vector.load %arg3[%c2_102, %c0_103, %c0_104, %c0_105] : memref<3x3x4x4xf32, #tpu.memory_space<vmem>>, vector<1x1x4x4xf32>
    %131 = vector.shape_cast %130 : vector<1x1x4x4xf32> to vector<4x4xf32>
    %cst_106 = arith.constant dense<0.000000e+00> : vector<384x4xf32>
    %132 = tpu.matmul %129, %131, %cst_106 {dimension_numbers = #tpu.dot_dimension_numbers<[1], [0], [0], [1], [0, 0, 1, 1], [], []>} : vector<384x4xf32>, vector<4x4xf32>, vector<384x4xf32> -> vector<384x4xf32>
    %133 = arith.addf %127, %132 : vector<384x4xf32>
    %134 = vector.extract_strided_slice %128 {offsets = [1, 0], sizes = [384, 4], strides = [1, 1]} : vector<386x4xf32> to vector<384x4xf32>
    %c2_107 = arith.constant 2 : index
    %c1_108 = arith.constant 1 : index
    %c0_109 = arith.constant 0 : index
    %c0_110 = arith.constant 0 : index
    %135 = vector.load %arg3[%c2_107, %c1_108, %c0_109, %c0_110] : memref<3x3x4x4xf32, #tpu.memory_space<vmem>>, vector<1x1x4x4xf32>
    %136 = vector.shape_cast %135 : vector<1x1x4x4xf32> to vector<4x4xf32>
    %cst_111 = arith.constant dense<0.000000e+00> : vector<384x4xf32>
    %137 = tpu.matmul %134, %136, %cst_111 {dimension_numbers = #tpu.dot_dimension_numbers<[1], [0], [0], [1], [0, 0, 1, 1], [], []>} : vector<384x4xf32>, vector<4x4xf32>, vector<384x4xf32> -> vector<384x4xf32>
    %138 = arith.addf %133, %137 : vector<384x4xf32>
    %139 = vector.extract_strided_slice %128 {offsets = [2, 0], sizes = [384, 4], strides = [1, 1]} : vector<386x4xf32> to vector<384x4xf32>
    %c2_112 = arith.constant 2 : index
    %c2_113 = arith.constant 2 : index
    %c0_114 = arith.constant 0 : index
    %c0_115 = arith.constant 0 : index
    %140 = vector.load %arg3[%c2_112, %c2_113, %c0_114, %c0_115] : memref<3x3x4x4xf32, #tpu.memory_space<vmem>>, vector<1x1x4x4xf32>
    %141 = vector.shape_cast %140 : vector<1x1x4x4xf32> to vector<4x4xf32>
    %cst_116 = arith.constant dense<0.000000e+00> : vector<384x4xf32>
    %142 = tpu.matmul %139, %141, %cst_116 {dimension_numbers = #tpu.dot_dimension_numbers<[1], [0], [0], [1], [0, 0, 1, 1], [], []>} : vector<384x4xf32>, vector<4x4xf32>, vector<384x4xf32> -> vector<384x4xf32>
    %143 = arith.addf %138, %142 : vector<384x4xf32>
    %144 = vector.shape_cast %143 : vector<384x4xf32> to vector<16x24x4xf32>
    %145 = vector.extract_strided_slice %144 {offsets = [0, 0, 0], sizes = [16, 16, 4], strides = [1, 1, 1]} : vector<16x24x4xf32> to vector<16x16x4xf32>
    %cst_117 = arith.constant dense<0.000000e+00> : vector<16x4xf32>
    %146 = vector.multi_reduction <add>, %145, %cst_117 [0] : vector<16x16x4xf32> to vector<16x4xf32>
    %147 = vector.shape_cast %146 : vector<16x4xf32> to vector<1x16x4xf32>
    %cst_118 = arith.constant dense<0.000000e+00> : vector<1x4xf32>
    %148 = vector.multi_reduction <add>, %147, %cst_118 [1] : vector<1x16x4xf32> to vector<1x4xf32>
    %149 = vector.shape_cast %148 : vector<1x4xf32> to vector<1x1x4xf32>
    %150 = arith.mulf %145, %145 : vector<16x16x4xf32>
    %cst_119 = arith.constant dense<0.000000e+00> : vector<16x4xf32>
    %151 = vector.multi_reduction <add>, %150, %cst_119 [0] : vector<16x16x4xf32> to vector<16x4xf32>
    %152 = vector.shape_cast %151 : vector<16x4xf32> to vector<1x16x4xf32>
    %cst_120 = arith.constant dense<0.000000e+00> : vector<1x4xf32>
    %153 = vector.multi_reduction <add>, %152, %cst_120 [1] : vector<1x16x4xf32> to vector<1x4xf32>
    %154 = vector.shape_cast %153 : vector<1x4xf32> to vector<1x1x4xf32>
    %cst_121 = arith.constant 3.906250e-03 : f32
    %155 = vector.broadcast %cst_121 : f32 to vector<1x1x4xf32>
    %156 = arith.mulf %149, %155 : vector<1x1x4xf32>
    %cst_122 = arith.constant 3.906250e-03 : f32
    %157 = vector.broadcast %cst_122 : f32 to vector<1x1x4xf32>
    %158 = arith.mulf %154, %157 : vector<1x1x4xf32>
    %159 = arith.mulf %156, %156 : vector<1x1x4xf32>
    %160 = arith.subf %158, %159 : vector<1x1x4xf32>
    %cst_123 = arith.constant 0.000000e+00 : f32
    %161 = vector.broadcast %cst_123 : f32 to vector<1x1x4xf32>
    %162 = arith.maximumf %160, %161 : vector<1x1x4xf32>
    %163 = vector.broadcast %156 : vector<1x1x4xf32> to vector<16x16x4xf32>
    %164 = arith.subf %145, %163 : vector<16x16x4xf32>
    %cst_124 = arith.constant 9.99999974E-6 : f32
    %165 = vector.broadcast %cst_124 : f32 to vector<1x1x4xf32>
    %166 = arith.addf %162, %165 : vector<1x1x4xf32>
    %167 = math.rsqrt %166 : vector<1x1x4xf32>
    %168 = vector.broadcast %167 : vector<1x1x4xf32> to vector<16x16x4xf32>
    %169 = arith.mulf %164, %168 : vector<16x16x4xf32>
    %c0_125 = arith.constant 0 : index
    %c0_126 = arith.constant 0 : index
    %c0_127 = arith.constant 0 : index
    %c0_128 = arith.constant 0 : index
    %170 = vector.load %arg1[%c0_125, %c0_126, %c0_127, %c0_128] : memref<1x16x16x4xf32, #tpu.memory_space<vmem>>, vector<1x16x16x4xf32>
    %171 = vector.shape_cast %170 : vector<1x16x16x4xf32> to vector<16x16x4xf32>
    %172 = arith.addf %169, %171 : vector<16x16x4xf32>
    %c0_129 = arith.constant 0 : index
    %c0_130 = arith.constant 0 : index
    %c0_131 = arith.constant 0 : index
    %c0_132 = arith.constant 0 : index
    %173 = vector.load %arg4[%c0_129, %c0_130, %c0_131, %c0_132] : memref<1x16x16x4xf32, #tpu.memory_space<vmem>>, vector<1x16x16x4xf32>
    %174 = vector.shape_cast %173 : vector<1x16x16x4xf32> to vector<16x16x4xf32>
    %175 = vector.shape_cast %172 : vector<16x16x4xf32> to vector<1x16x16x4xf32>
    tpu.vector_store %arg4[%c0_129, %c0_130, %c0_131, %c0_132], %175 {strides = array<i32>} : memref<1x16x16x4xf32, #tpu.memory_space<vmem>>, vector<1x16x16x4xf32>,
    return
  }
  func.func @transform_0(%arg0: i32) -> (i32, i32, i32, i32) {
    %c0_i32 = arith.constant 0 : i32
    %c0_i32_0 = arith.constant 0 : i32
    %c0_i32_1 = arith.constant 0 : i32
    %c0_i32_2 = arith.constant 0 : i32
    return %arg0, %c0_i32, %c0_i32_0, %c0_i32_1 : i32, i32, i32, i32
  }
  func.func @transform_1(%arg0: i32) -> (i32, i32, i32, i32) {
    %c0_i32 = arith.constant 0 : i32
    %c0_i32_0 = arith.constant 0 : i32
    %c0_i32_1 = arith.constant 0 : i32
    %c0_i32_2 = arith.constant 0 : i32
    %c0_i32_3 = arith.constant 0 : i32
    return %c0_i32, %c0_i32_0, %c0_i32_1, %c0_i32_2 : i32, i32, i32, i32
  }
  func.func @transform_2(%arg0: i32) -> (i32, i32, i32, i32) {
    %c0_i32 = arith.constant 0 : i32
    %c0_i32_0 = arith.constant 0 : i32
    %c0_i32_1 = arith.constant 0 : i32
    %c0_i32_2 = arith.constant 0 : i32
    %c0_i32_3 = arith.constant 0 : i32
    return %c0_i32, %c0_i32_0, %c0_i32_1, %c0_i32_2 : i32, i32, i32, i32
  }
  func.func @transform_3(%arg0: i32) -> (i32, i32, i32, i32) {
    %c0_i32 = arith.constant 0 : i32
    %c0_i32_0 = arith.constant 0 : i32
    %c0_i32_1 = arith.constant 0 : i32
    %c0_i32_2 = arith.constant 0 : i32
    return %arg0, %c0_i32, %c0_i32_0, %c0_i32_1 : i32, i32, i32, i32
  }
}

</mosaic_0001>

<bundles_post_ra>
// kernel: residule_block.1
= control target key start
LH: loop header
LB: loop body
LE: loop exit
PB: predicated region body
PF: predicated region fallthrough
CT: control target
= control target key end

     0   :  { %8 = vsyncpa [#allocation4], 0  ;;  %s19753_s0 = inlined_call_operand.hbm [shape: f32[2,16,16,4], index: 0, kind: input, shape index: {}]   ;;  %s19754_s1 = inlined_call_operand.hbm [shape: f32[3,3,4,4], index: 1, kind: input, shape index: {}]   ;;  %s19755_s2 = inlined_call_operand.hbm [shape: f32[3,3,4,4], index: 2, kind: input, shape index: {}]   ;;  %s19756_s3 = inlined_call_operand.hbm [shape: f32[2,16,16,4], index: 3, kind: output, shape index: {}]  }
   0x1   :  { %10 = vsyncpa [#allocation4 + $0x1], 0 }
   0x2   :  { %11 = vsyncpa [#allocation7], 0 }
   0x3   :  { %12 = vsyncpa [#allocation5], 0 }
   0x4   :  { %14 = vsyncpa [#allocation5 + $0x1], 0  ;;  %s14955_s12 = smov 0   ;;  %s14957_s13 = smov 0  }
   0x5   :  { %s14959_s14 = smov 0   ;;  %s14961_s15 = smov 0  }
   0x6 LB: > { %s14976_s16 = sadd.s32 4294967295, %s14922_s15   ;;  %s10804_s17 = sadd.s32 4294967294, %s14922_s15   ;;  %s14922_s15 = sphi %s14961_s15, %s20231_s15   ;;  %s14918_s14 = sphi %s14959_s14, %s20230_s14   ;;  %s14914_s13 = sphi %s14957_s13, %s20229_s13   ;;  %s14910_s12 = sphi %s14955_s12, %s20228_s12  }
   0x7   : > { %p40_p0 = scmp.ne.s32.totalorder %s14914_s13, %s14910_s12  ;;  %p19757_p1 = scmp.eq.s32.totalorder %s14976_s16, 0 }
   0x8   : > { %p112_p3 = scmp.eq.s32.totalorder %s10804_s17, 1  ;;  %p10805_p5 = scmp.ge.s32.totalorder %s14922_s15, 1 }
   0x9   : > { %p14985_p4 = por %p19757_p1, %p40_p0  ;;  %p119_p7 = scmp.lt.s32.totalorder %s14922_s15, 3 }
   0xa   : > { %p14990_p6 = por %p112_p3, %p40_p0  ;;  %s14924_s21 = smov [#allocation6]  }
   0xb   : > { %s19911_s18 = scalar_select %p14985_p4, 1, 0 }
   0xc   : > { %s19912_s19 = scalar_select %p14990_p6, 1, 0 }
   0xd   : > { %p14995_p8 = pnand %p10805_p5, %p119_p7  ;;  %s131_s22 = sshll.u32 %s14924_s21, 4  ;;  %s14999_s22 = int_to_ptr.vmem [resolvable:$true] %s131_s22 }
   0xe   : > { %s14925_s24 = smov [#allocation8]   ;;  %s14766_s28 = scalar_lea.hbm %s19754_s1, 576 }
   0xf   : > { %p14700_p9 = pneg %p14995_p8  ;;  %s144_s25 = sshll.u32 %s14925_s24, 4  ;;  %s15010_s25 = int_to_ptr.vmem [resolvable:$true] %s144_s25 }
  0x10   : > { %p14767_p12 = scmp.ne.s32.totalorder %s19754_s1, %s14766_s28  ;;  %p14773_p5 = scmp.lt.u32.totalorder %s14766_s28, %s19754_s1 }
  0x11   : > { %p15006_p11 = pnand %p14700_p9, %p19757_p1 }
  0x13   : > { %p14768_p13 = pneg %p15006_p11 }
  0x15   : > { %p14769_p0 = pnand %p14768_p13, %p14767_p12 }
  0x17   : > { %p14770_p3 = pneg %p14769_p0 }
  0x19   : > { %p14775_p7 = pnand %p14773_p5, %p14770_p3 }
  0x1b   : > { %14778 = shalt.err (!%p14775_p7)
}
  0x1c   : > { %s14779_s6 = scalar_lea.vmem %s14999_s22, 576  ;;  %p14787_p2 = scmp.lt.s32.totalorder %s14999_s22, %s14999_s22 }
  0x1d   : > { %p14780_p9 = scmp.ne.s32.totalorder %s14999_s22, %s14779_s6  ;;  %p14788_p12 = scmp.lt.s32.totalorder %s14779_s6, %s14779_s6 }
  0x1f   : > { %p14782_p10 = pnand %p14780_p9, %p14768_p13  ;;  %p14789_p0 = por %p14788_p12, %p14787_p2 }
  0x21   : > { %p14783_p1 = pneg %p14782_p10 }
  0x23   : > { %p14790_p6 = pnand %p14789_p0, %p14783_p1 }
  0x25   : > { %14793 = shalt.err (!%p14790_p6)
}
  0x26   : > { %s14926_s7 = smov 64   ;;  %s14927_s8 = smov 4  }
  0x27   : > { %14703 = dma.hbm_to_vmem [thread:$0]  (!%p15006_p11), %s19754_s1, 576, %s14999_s22, [#allocation7], %s14926_s7, %s14926_s7, %s14927_s8  }
  0x28   : > { %s14794_s21 = scalar_lea.hbm %s19755_s2, 576 }
  0x29   : > { %p14795_p2 = scmp.ne.s32.totalorder %s19755_s2, %s14794_s21  ;;  %p14801_p10 = scmp.lt.u32.totalorder %s14794_s21, %s19755_s2 }
  0x2b   : > { %p14797_p1 = pnand %p14795_p2, %p14768_p13 }
  0x2d   : > { %p14798_p6 = pneg %p14797_p1 }
  0x2f   : > { %p14803_p3 = pnand %p14801_p10, %p14798_p6 }
  0x31   : > { %14806 = shalt.err (!%p14803_p3)
}
  0x32   : > { %s14807_s22 = scalar_lea.vmem %s15010_s25, 576  ;;  %p14815_p12 = scmp.lt.s32.totalorder %s15010_s25, %s15010_s25 }
  0x33   : > { %p14808_p5 = scmp.ne.s32.totalorder %s15010_s25, %s14807_s22  ;;  %p14816_p0 = scmp.lt.s32.totalorder %s14807_s22, %s14807_s22 }
  0x35   : > { %p14810_p7 = pnand %p14808_p5, %p14768_p13  ;;  %p14817_p2 = por %p14816_p0, %p14815_p12 }
  0x37   : > { %p14811_p9 = pneg %p14810_p7 }
  0x39   : > { %p14818_p1 = pnand %p14817_p2, %p14811_p9 }
  0x3b   : > { %14821 = shalt.err (!%p14818_p1)
}
  0x3c   : > { %14706 = dma.hbm_to_vmem [thread:$0]  (!%p15006_p11), %s19755_s2, 576, %s15010_s25, [#allocation7], %s14926_s7, %s14926_s7, %s14927_s8  }
  0x3d   : > { %s15065_s4 = sadd.s32 1, %s14922_s15   ;;  %s27_s23 = sadd.s32 1, %s14918_s14 }
  0x3e   : > { %s24_s5 = ssub.s32 %s14922_s15, %s15065_s4  ;;  %p34_p13 = scmp.ne.s32.totalorder %s14918_s14, %s14914_s13 }
  0x3f   : > { %p25_p6 = scmp.eq.s32.totalorder %s24_s5, 0  ;;  %p35_p10 = scmp.eq.s32.totalorder %s14922_s15, 0 }
  0x40   : > { %p19915_p3 = scmp.eq.s32.totalorder %s14976_s16, 1  ;;  %p14717_p7 = scmp.lt.s32.totalorder %s14922_s15, 2 }
  0x41   : > { %s15081_s9 = scalar_select %p25_p6, %s14918_s14, %s27_s23  }
  0x42   : > { %p15075_p5 = por %p19915_p3, %p34_p13  ;;  %p36_p9 = por %p35_p10, %p34_p13 }
  0x43   : > { %s158_s10 = sand.u32 1, %s14918_s14   ;;  %s11704_s25 = sshll.u32 %s14922_s15, 12 }
  0x44   : > { %s19916_s6 = scalar_select %p15075_p5, 1, 0 }
  0x45   : > { %s10809_s11 = sshll.u32 %s158_s10, 8  ;;  %s15088_s17 = scalar_lea.hbm %s19753_s0, %s11704_s25 }
  0x46   : > { %s162_s21 = scalar_lea.vmem [#allocation3], %s10809_s11  ;;  %p15092_p11 = pnand %p14717_p7, %p36_p9 }
  0x47   : > { %s169_s24 = sshll.u32 %s162_s21, 4  ;;  %s15096_s27 = scalar_lea.sflag [#allocation4], %s158_s10  ;;  %s15090_s24 = int_to_ptr.vmem [resolvable:$true] %s169_s24 }
  0x48   : > { %s14822_s28 = scalar_lea.hbm %s15088_s17, 4096  ;;  %p14824_p0 = pneg %p15092_p11 }
  0x49   : > { %p14823_p12 = scmp.ne.s32.totalorder %s15088_s17, %s14822_s28  ;;  %s14827_s30 = scalar_lea.hbm %s19753_s0, 8192 }
  0x4a   : > { %p14828_p13 = scmp.lt.u32.totalorder %s15088_s17, %s19753_s0  ;;  %p14829_p6 = scmp.lt.u32.totalorder %s14827_s30, %s14822_s28 }
  0x4b   : > { %p14825_p2 = pnand %p14824_p0, %p14823_p12  ;;  %p14831_p3 = scmp.lt.u32.totalorder %s14822_s28, %s15088_s17 }
  0x4c   : > { %p14830_p10 = por %p14829_p6, %p14828_p13 }
  0x4d   : > { %p14826_p1 = pneg %p14825_p2 }
  0x4e   : > { %p14832_p7 = por %p14831_p3, %p14830_p10 }
  0x50   : > { %p14833_p9 = pnand %p14832_p7, %p14826_p1 }
  0x52   : > { %14836 = shalt.err (!%p14833_p9)
}
  0x53   : > { %s14837_s10 = scalar_lea.vmem %s15090_s24, 4096  ;;  %s14928_s11 = smov [#allocation3]  }
  0x54   : > { %p14838_p12 = scmp.ne.s32.totalorder %s15090_s24, %s14837_s10  ;;  %s14842_s25 = sshll.u32 %s14928_s11, 4  ;;  %s14843_s25 = int_to_ptr.vmem [resolvable:$false] %s14842_s25 }
  0x55   : > { %s14844_s7 = scalar_lea.vmem %s14843_s25, 8192  ;;  %p14845_p4 = scmp.lt.s32.totalorder %s15090_s24, %s14843_s25 }
  0x56   : > { %p14840_p2 = pnand %p14838_p12, %p14824_p0  ;;  %p14846_p13 = scmp.lt.s32.totalorder %s14844_s7, %s14837_s10 }
  0x58   : > { %p14841_p5 = pneg %p14840_p2  ;;  %p14847_p6 = por %p14846_p13, %p14845_p4 }
  0x5a   : > { %p14848_p10 = pnand %p14847_p6, %p14841_p5 }
  0x5c   : > { %14851 = shalt.err (!%p14848_p10)
}
  0x5d   : > { %s14929_s8 = smov 128   ;;  %s14930_s21 = smov 8  }
  0x5e   : > { %14710 = dma.hbm_to_vmem [thread:$0]  (!%p15092_p11), %s15088_s17, 4096, %s15090_s24, %s15096_s27, %s14929_s8, %s14929_s8, %s14930_s21  }
  0x5f   : > { %181 = sbr.rel (%p14995_p8) target bundleno = 2451 (0x993), region = 32 }
  0x66   : > { %s15127_s28 = sand.u32 1, %s14914_s13   ;;  %p19918_p4 = scmp.ne.s32.totalorder %s19911_s18, 0 }
  0x67   : > { %s10813_s22 = sshll.u32 %s15127_s28, 8  ;;  %s184_s29 = scalar_lea.sflag [#allocation4], %s15127_s28 }
  0x68   : > { %s15133_s30 = scalar_lea.vmem [#allocation3], %s10813_s22 }
  0x69   : > { %14897 = dma.done.wait (%p19918_p4), %s184_s29, 4096  }
  0x6a   : > { %14899 = vsyncadd (%p19918_p4), %s184_s29, 4294963200  ;;  %p19919_p5 = scmp.eq.s32.totalorder %s14976_s16, 0 }
  0x6c   : > { %14901 = dma.done.wait (%p19919_p5), [#allocation7], 1152   ;;  %p19920_p8 = pmov %p19919_p5 }
  0x6d   : > { %vm857_vm0 = vcmask 1043456   ;;  %vm317_vm1 = vcmask 1040384   ;;  %v613_v0 = vld [vmem:[#allocation6 + $0x4] sm:$0xf]  ;;  %v220_v1 = vld [vmem:[%s15133_s30 + $0x10] sm:$0xff]  ;;  %v221_v2 = vld [vmem:[%s15133_s30 + $0x18] sm:$0xff] }
  0x6e   : > { %14903 = vsyncadd (%p19920_p8), [#allocation7], 4294966144  ;;  %vm504_vm2 = vcmask 31744   ;;  %vm486_vm3 = vcmask 1041408   ;;  %12588 = vmatprep.subr.msk.mxu0 %vm857_vm0, %v613_v0  ;;  %v267_v3 = vrot.slane %v220_v1, 1  ;;  %v318_v4 = vrot.slane %v220_v1, 7 }
  0x6f   : > { %v319_v5 = vrot.slane %v221_v2, 7  ;;  %v418_v6 = vrot.slane %v221_v2, 5  ;;  %v15146_v7 = vld [vmem:[#allocation6] sm:$0xf]  ;;  %12589 = vmatpush3.msk.msra.mxu0 %vm857_vm0, %v613_v0  ;;  %v219_v9 = vld [vmem:[%s15133_s30 + $0x8] sm:$0xff]  ;;  %v224_v16 = vld [vmem:[%s15133_s30 + $0x30] sm:$0xff] }
  0x70   : > { %v218_v8 = vld [vmem:[%s15133_s30] sm:$0xff]  ;;  %v452_v12 = vsel %vm317_vm1, %v267_v3, %v318_v4  ;;  %12662 = vmatprep.subr.msk.mxu0 %vm857_vm0, %v15146_v7  ;;  %v223_v15 = vld [vmem:[%s15133_s30 + $0x28] sm:$0xff]  ;;  %v322_v19 = vrot.slane %v219_v9, 7  ;;  %v419_v20 = vrot.slane %v219_v9, 5  ;;  %v225_v25 = vld [vmem:[%s15133_s30 + $0x38] sm:$0xff]  ;;  %v270_v29 = vrot.slane %v224_v16, 1 }
  0x71   : > { %v222_v10 = vld [vmem:[%s15133_s30 + $0x20] sm:$0xff]  ;;  %v320_v11 = vsel %vm317_vm1, %v318_v4, %v319_v5  ;;  %v469_v13 = vsel %vm317_vm1, %v319_v5, %v418_v6  ;;  %v268_v14 = vrot.slane %v218_v8, 1  ;;  %505 = vst.msk [vmem:[#allocation2] sm:$0xff] %vm504_vm2, %v452_v12  ;;  %511 = vst.msk [vmem:[#allocation2 + $0x30] sm:$0xff] %vm504_vm2, %v452_v12  ;;  %v321_v18 = vrot.slane %v218_v8, 7  ;;  %v227_v31 = vld [vmem:[%s15133_s30 + $0x48] sm:$0xff] }
  0x72   : > { %506 = vst.msk [vmem:[#allocation2 + $0x8] sm:$0xff] %vm504_vm2, %v320_v11  ;;  %512 = vst.msk [vmem:[#allocation2 + $0x38] sm:$0xff] %vm504_vm2, %v320_v11  ;;  %v487_v17 = vsel %vm486_vm3, %v469_v13, 0.0  ;;  %v269_v21 = vrot.slane %v222_v10, 1  ;;  %v324_v22 = vrot.slane %v222_v10, 7  ;;  %v325_v23 = vrot.slane %v223_v15, 7 }
  0x73   : > { %507 = vst.msk [vmem:[#allocation2 + $0x10] sm:$0xff] %vm504_vm2, %v487_v17  ;;  %513 = vst.msk [vmem:[#allocation2 + $0x40] sm:$0xff] %vm504_vm2, %v487_v17  ;;  %v420_v24 = vrot.slane %v223_v15, 5  ;;  %v453_v26 = vsel %vm317_vm1, %v268_v14, %v321_v18  ;;  %v323_v27 = vsel %vm317_vm1, %v321_v18, %v322_v19  ;;  %v470_v28 = vsel %vm317_vm1, %v322_v19, %v419_v20  ;;  %v226_v30 = vld [vmem:[%s15133_s30 + $0x40] sm:$0xff]  ;;  %v228_v47 = vld [vmem:[%s15133_s30 + $0x50] sm:$0xff]  ;;  %s19566_s18 = scalar_lea.vmem [#allocation9], %s10813_s22 }
  0x74   : > { %508 = vst.msk [vmem:[#allocation2 + $0x18] sm:$0xff] %vm504_vm2, %v453_v26  ;;  %509 = vst.msk [vmem:[#allocation2 + $0x20] sm:$0xff] %vm504_vm2, %v323_v27  ;;  %v488_v32 = vsel %vm486_vm3, %v470_v28, 0.0  ;;  %v454_v33 = vsel %vm317_vm1, %v269_v21, %v324_v22  ;;  %v326_v34 = vsel %vm317_vm1, %v324_v22, %v325_v23  ;;  %v327_v37 = vrot.slane %v224_v16, 7  ;;  %v229_v57 = vld [vmem:[%s15133_s30 + $0x58] sm:$0xff]  ;;  %v230_v20 = vld [vmem:[%s15133_s30 + $0x60] sm:$0xff] }
  0x75   : > { %v471_v35 = vsel %vm317_vm1, %v325_v23, %v420_v24  ;;  %510 = vst.msk [vmem:[#allocation2 + $0x28] sm:$0xff] %vm504_vm2, %v488_v32  ;;  %514 = vst.msk [vmem:[#allocation2 + $0x48] sm:$0xff] %vm504_vm2, %v454_v33  ;;  %v328_v38 = vrot.slane %v225_v25, 7  ;;  %v421_v39 = vrot.slane %v225_v25, 5  ;;  %v271_v40 = vrot.slane %v226_v30, 1  ;;  %v231_v26 = vld [vmem:[%s15133_s30 + $0x68] sm:$0xff] }
  0x76   : > { %515 = vst.msk [vmem:[#allocation2 + $0x50] sm:$0xff] %vm504_vm2, %v326_v34  ;;  %v489_v36 = vsel %vm486_vm3, %v471_v35, 0.0  ;;  %v330_v41 = vrot.slane %v226_v30, 7  ;;  %v331_v42 = vrot.slane %v227_v31, 7  ;;  %v422_v43 = vrot.slane %v227_v31, 5  ;;  %v232_v27 = vld [vmem:[%s15133_s30 + $0x70] sm:$0xff] }
  0x77   : > { %516 = vst.msk [vmem:[#allocation2 + $0x58] sm:$0xff] %vm504_vm2, %v489_v36  ;;  %vm663_vm4 = vcmask 1046528   ;;  %v455_v44 = vsel %vm317_vm1, %v270_v29, %v327_v37  ;;  %v329_v45 = vsel %vm317_vm1, %v327_v37, %v328_v38  ;;  %v472_v46 = vsel %vm317_vm1, %v328_v38, %v421_v39  ;;  %v15235_v17 = vld [vmem:[#allocation6 + $0x8] sm:$0xf]  ;;  %v233_v31 = vld [vmem:[%s15133_s30 + $0x78] sm:$0xff]  ;;  %v234_v36 = vld [vmem:[%s15133_s30 + $0x80] sm:$0xff] }
  0x78   : > { %v15187_v48 = vld [vmem:[#allocation2] sm:$0xff]  ;;  %517 = vst.msk [vmem:[#allocation2 + $0x60] sm:$0xff] %vm504_vm2, %v455_v44  ;;  %518 = vst.msk [vmem:[#allocation2 + $0x68] sm:$0xff] %vm504_vm2, %v329_v45  ;;  %v490_v50 = vsel %vm486_vm3, %v472_v46, 0.0  ;;  %v456_v51 = vsel %vm317_vm1, %v271_v40, %v330_v41  ;;  %v332_v52 = vsel %vm317_vm1, %v330_v41, %v331_v42  ;;  %v473_v53 = vsel %vm317_vm1, %v331_v42, %v422_v43  ;;  %v15212_v0 = vld [vmem:[#allocation2 + $0x30] sm:$0xff]  ;;  %s11705_s20 = sshll.u32 %s14976_s16, 12 }
  0x79   : > { %v15189_v49 = vld [vmem:[#allocation2 + $0x8] sm:$0xff]  ;;  %v664_v54 = vrot.slane %v15187_v48, 1  ;;  %519 = vst.msk [vmem:[#allocation2 + $0x70] sm:$0xff] %vm504_vm2, %v490_v50  ;;  %520 = vst.msk [vmem:[#allocation2 + $0x78] sm:$0xff] %vm504_vm2, %v456_v51  ;;  %v491_v59 = vsel %vm486_vm3, %v473_v53, 0.0  ;;  %v272_v60 = vrot.slane %v228_v47, 1  ;;  %s19677_s27 = scalar_lea.hbm %s19756_s3, %s11705_s20 }
  0x7a   : > { %v665_v55 = vrot.slane %v15189_v49, 1  ;;  %v15199_v56 = vld [vmem:[#allocation2 + $0x10] sm:$0xff]  ;;  %521 = vst.msk [vmem:[#allocation2 + $0x80] sm:$0xff] %vm504_vm2, %v332_v52  ;;  %522 = vst.msk [vmem:[#allocation2 + $0x88] sm:$0xff] %vm504_vm2, %v491_v59  ;;  %v333_v1 = vrot.slane %v228_v47, 7  ;;  %v15221_v6 = vld [vmem:[#allocation2 + $0x38] sm:$0xff] }
  0x7b   : > { %v667_v58 = vrot.slane %v15199_v56, 1  ;;  %v15208_v62 = vld [vmem:[#allocation2 + $0x18] sm:$0xff]  ;;  %v15210_v63 = vld [vmem:[#allocation2 + $0x20] sm:$0xff]  ;;  %v334_v9 = vrot.slane %v229_v57, 7  ;;  %v423_v11 = vrot.slane %v229_v57, 5  ;;  %v675_v14 = vrot.slane %v15212_v0, 1 }
  0x7c   : > { %v666_v61 = vsel %vm663_vm4, %v664_v54, %v665_v55  ;;  %v669_v3 = vrot.slane %v15208_v62, 1  ;;  %v671_v4 = vrot.slane %v15210_v63, 1  ;;  %v15219_v5 = vld [vmem:[#allocation2 + $0x28] sm:$0xff]  ;;  %v15223_v8 = vld [vmem:[#allocation2 + $0x40] sm:$0xff]  ;;  %v457_v16 = vsel %vm317_vm1, %v272_v60, %v333_v1  ;;  %v235_v45 = vld [vmem:[%s15133_s30 + $0x88] sm:$0xff]  ;;  %s10712_s17 = sshll.u32 %s19566_s18, 4  ;;  %s19681_s17 = int_to_ptr.vmem [resolvable:$true] %s10712_s17 }
  0x7d   : > { %12590 = vmatprep.mubr.msk.f32.mxu0 %vm504_vm2, %v666_v61  ;;  %v668_v2 = vsel %vm663_vm4, %v665_v55, %v667_v58  ;;  %v673_v10 = vrot.slane %v15219_v5, 1  ;;  %v15232_v15 = vld [vmem:[#allocation2 + $0x48] sm:$0xff]  ;;  %v679_v19 = vrot.slane %v15223_v8, 1  ;;  %523 = vst.msk [vmem:[#allocation2 + $0x90] sm:$0xff] %vm504_vm2, %v457_v16  ;;  %v15243_v21 = vld [vmem:[#allocation2 + $0x50] sm:$0xff]  ;;  %v335_v23 = vsel %vm317_vm1, %v333_v1, %v334_v9  ;;  %v236_v53 = vld [vmem:[%s15133_s30 + $0x90] sm:$0xff] }
  0x7e   : > { %12591 = vmatmul.mubr.msk.f32.vlgmr.msra.gmra.mrb[0].mxu0 %vm504_vm2, %v668_v2  ;;  %v670_v12 = vsel %vm663_vm4, %v667_v58, %v669_v3  ;;  %v672_v13 = vsel %vm663_vm4, %v669_v3, %v671_v4  ;;  %v15245_v22 = vld [vmem:[#allocation2 + $0x58] sm:$0xff]  ;;  %v681_v24 = vrot.slane %v15232_v15, 1  ;;  %524 = vst.msk [vmem:[#allocation2 + $0x98] sm:$0xff] %vm504_vm2, %v335_v23  ;;  %v474_v25 = vsel %vm317_vm1, %v334_v9, %v423_v11  ;;  %s10699_s16 = scalar_lea.sflag [#allocation5], %s15127_s28  ;;  %s14852_s23 = scalar_lea.vmem %s19681_s17, 4096 }
  0x7f   : > { %12663 = vmatpush3.msk.msra.mxu0 %vm857_vm0, %v15146_v7  ;;  %12593 = vmatprep.mubr.msk.f32.mxu0 %vm504_vm2, %v670_v12  ;;  %v674_v18 = vsel %vm663_vm4, %v671_v4, %v673_v10  ;;  %v677_v7 = vrot.slane %v15221_v6, 1  ;;  %v676_v28 = vsel %vm663_vm4, %v673_v10, %v675_v14  ;;  %v492_v29 = vsel %vm486_vm3, %v474_v25, 0.0  ;;  %v15270_v46 = vld [vmem:[#allocation2 + $0x60] sm:$0xff]  ;;  %v15282_v59 = vld [vmem:[#allocation2 + $0x68] sm:$0xff]  ;;  %p14853_p11 = scmp.ne.s32.totalorder %s19681_s17, %s14852_s23  ;;  %p20225_p0 = scmp.ne.s32.totalorder %s19916_s6, 0 }
  0x80   : > { %12736 = vmatprep.subr.msk.mxu0 %vm857_vm0, %v15235_v17  ;;  %v273_v30 = vrot.slane %v230_v20, 1  ;;  %v683_v34 = vrot.slane %v15243_v21, 1  ;;  %v685_v35 = vrot.slane %v15245_v22, 1  ;;  %525 = vst.msk [vmem:[#allocation2 + $0xa0] sm:$0xff] %vm504_vm2, %v492_v29  ;;  %v336_v37 = vrot.slane %v230_v20, 7  ;;  %v15284_v60 = vld [vmem:[#allocation2 + $0x70] sm:$0xff] }
  0x81   : > { %v678_v32 = vsel %vm663_vm4, %v675_v14, %v677_v7  ;;  %v680_v33 = vsel %vm663_vm4, %v677_v7, %v679_v19  ;;  %v337_v38 = vrot.slane %v231_v26, 7  ;;  %v424_v39 = vrot.slane %v231_v26, 5  ;;  %v237_v4 = vld [vmem:[%s15133_s30 + $0x98] sm:$0xff]  ;;  %v240_v26 = vld [vmem:[%s15133_s30 + $0xb0] sm:$0xff]  ;;  %p14854_p1 = pnand %p14853_p11, %p20225_p0  ;;  %s14932_s5 = smov [#allocation9]  }
  0x82   : > { %12594 = vmatmul.mubr.msk.f32.gmra.mrb[2].mxu0 %vm504_vm2, %v672_v13  ;;  %v274_v40 = vrot.slane %v232_v27, 1  ;;  %v682_v41 = vsel %vm663_vm4, %v679_v19, %v681_v24  ;;  %v339_v42 = vrot.slane %v232_v27, 7  ;;  %v340_v43 = vrot.slane %v233_v31, 7  ;;  %v238_v13 = vld [vmem:[%s15133_s30 + $0xa0] sm:$0xff]  ;;  %v239_v19 = vld [vmem:[%s15133_s30 + $0xa8] sm:$0xff]  ;;  %v15310_v27 = vld [vmem:[#allocation2 + $0x78] sm:$0xff] }
  0x83   : > { %12596 = vmatprep.mubr.msk.f32.mxu0 %vm504_vm2, %v674_v18  ;;  %v425_v44 = vrot.slane %v233_v31, 5  ;;  %v458_v47 = vsel %vm317_vm1, %v273_v30, %v336_v37  ;;  %v338_v50 = vsel %vm317_vm1, %v336_v37, %v337_v38  ;;  %v475_v51 = vsel %vm317_vm1, %v337_v38, %v424_v39  ;;  %v15321_v37 = vld [vmem:[#allocation2 + $0x80] sm:$0xff]  ;;  %p14855_p3 = pneg %p14854_p1  ;;  %s14856_s10 = sshll.u32 %s14932_s5, 4  ;;  %s14857_s10 = int_to_ptr.vmem [resolvable:$false] %s14856_s10 }
  0x84   : > { %v275_v52 = vrot.slane %v234_v36, 1  ;;  %v684_v54 = vsel %vm663_vm4, %v681_v24, %v683_v34  ;;  %526 = vst.msk [vmem:[#allocation2 + $0xa8] sm:$0xff] %vm504_vm2, %v458_v47  ;;  %527 = vst.msk [vmem:[#allocation2 + $0xb0] sm:$0xff] %vm504_vm2, %v338_v50  ;;  %v493_v55 = vsel %vm486_vm3, %v475_v51, 0.0  ;;  %v459_v57 = vsel %vm317_vm1, %v274_v40, %v339_v42  ;;  %v241_v50 = vld [vmem:[%s15133_s30 + $0xb8] sm:$0xff]  ;;  %s14858_s11 = scalar_lea.vmem %s14857_s10, 8192  ;;  %p14859_p7 = scmp.lt.s32.totalorder %s19681_s17, %s14857_s10 }
  0x85   : > { %v341_v58 = vsel %vm317_vm1, %v339_v42, %v340_v43  ;;  %528 = vst.msk [vmem:[#allocation2 + $0xb8] sm:$0xff] %vm504_vm2, %v493_v55  ;;  %529 = vst.msk [vmem:[#allocation2 + $0xc0] sm:$0xff] %vm504_vm2, %v459_v57  ;;  %v476_v61 = vsel %vm317_vm1, %v340_v43, %v425_v44  ;;  %v342_v1 = vrot.slane %v234_v36, 7  ;;  %v343_v2 = vrot.slane %v235_v45, 7  ;;  %p14860_p9 = scmp.lt.s32.totalorder %s14858_s11, %s14852_s23 }
  0x86   : > { %12597 = vmatmul.mubr.msk.f32.gmra.mrb[4].mxu0 %vm504_vm2, %v676_v28  ;;  %530 = vst.msk [vmem:[#allocation2 + $0xc8] sm:$0xff] %vm504_vm2, %v341_v58  ;;  %v426_v3 = vrot.slane %v235_v45, 5  ;;  %v686_v9 = vsel %vm663_vm4, %v683_v34, %v685_v35  ;;  %v687_v10 = vrot.slane %v15270_v46, 1  ;;  %v494_v11 = vsel %vm486_vm3, %v476_v61, 0.0  ;;  %v15331_v45 = vld [vmem:[#allocation2 + $0x88] sm:$0xff]  ;;  %v15348_v61 = vld [vmem:[#allocation2 + $0x90] sm:$0xff] }
  0x87   : > { %12599 = vmatprep.mubr.msk.f32.mxu0 %vm504_vm2, %v678_v32  ;;  %v276_v12 = vrot.slane %v236_v53, 1  ;;  %531 = vst.msk [vmem:[#allocation2 + $0xd0] sm:$0xff] %vm504_vm2, %v494_v11  ;;  %v460_v14 = vsel %vm317_vm1, %v275_v52, %v342_v1  ;;  %v344_v16 = vsel %vm317_vm1, %v342_v1, %v343_v2  ;;  %v345_v7 = vrot.slane %v236_v53, 7  ;;  %v15350_v1 = vld [vmem:[#allocation2 + $0x98] sm:$0xff]  ;;  %p14861_p12 = por %p14860_p9, %p14859_p7 }
  0x88   : > { %v477_v18 = vsel %vm317_vm1, %v343_v2, %v426_v3  ;;  %v689_v20 = vrot.slane %v15282_v59, 1  ;;  %v691_v23 = vrot.slane %v15284_v60, 1  ;;  %532 = vst.msk [vmem:[#allocation2 + $0xd8] sm:$0xff] %vm504_vm2, %v460_v14  ;;  %533 = vst.msk [vmem:[#allocation2 + $0xe0] sm:$0xff] %vm504_vm2, %v344_v16  ;;  %v346_v25 = vrot.slane %v237_v4, 7 }
  0x89   : > { %v495_v24 = vsel %vm486_vm3, %v477_v18, 0.0  ;;  %v461_v28 = vsel %vm317_vm1, %v276_v12, %v345_v7  ;;  %v427_v29 = vrot.slane %v237_v4, 5  ;;  %v277_v30 = vrot.slane %v238_v13, 1  ;;  %v15355_v12 = vld [vmem:[#allocation2 + $0xa0] sm:$0xff]  ;;  %p14862_p2 = pnand %p14861_p12, %p14855_p3 }
  0x8a   : > { %12600 = vmatmul.mubr.msk.f32.gmra.mrb[6].mxu0 %vm504_vm2, %v680_v33  ;;  %534 = vst.msk [vmem:[#allocation2 + $0xe8] sm:$0xff] %vm504_vm2, %v495_v24  ;;  %v348_v31 = vrot.slane %v238_v13, 7  ;;  %v688_v32 = vsel %vm663_vm4, %v685_v35, %v687_v10  ;;  %535 = vst.msk [vmem:[#allocation2 + $0xf0] sm:$0xff] %vm504_vm2, %v461_v28  ;;  %v347_v33 = vsel %vm317_vm1, %v345_v7, %v346_v25  ;;  %v349_v34 = vrot.slane %v239_v19, 7 }
  0x8b   : > { %12602 = vmatprep.mubr.msk.f32.mxu0 %vm504_vm2, %v682_v41  ;;  %v428_v36 = vrot.slane %v239_v19, 5  ;;  %536 = vst.msk [vmem:[#allocation2 + $0xf8] sm:$0xff] %vm504_vm2, %v347_v33  ;;  %v478_v38 = vsel %vm317_vm1, %v346_v25, %v427_v29  ;;  %v278_v40 = vrot.slane %v240_v26, 1  ;;  %v351_v35 = vrot.slane %v240_v26, 7  ;;  %v244_v19 = vld [vmem:[%s15133_s30 + $0xd0] sm:$0xff]  ;;  %v15372_v28 = vld [vmem:[#allocation2 + $0xa8] sm:$0xff] }
  0x8c   : > { %v462_v39 = vsel %vm317_vm1, %v277_v30, %v348_v31  ;;  %v690_v41 = vsel %vm663_vm4, %v687_v10, %v689_v20  ;;  %v693_v42 = vrot.slane %v15310_v27, 1  ;;  %v496_v43 = vsel %vm486_vm3, %v478_v38, 0.0  ;;  %v243_v10 = vld [vmem:[%s15133_s30 + $0xc8] sm:$0xff] }
  0x8d   : > { %538 = vst.msk [vmem:[#allocation2 + $0x108] sm:$0xff] %vm504_vm2, %v462_v39  ;;  %v350_v44 = vsel %vm317_vm1, %v348_v31, %v349_v34  ;;  %537 = vst.msk [vmem:[#allocation2 + $0x100] sm:$0xff] %vm504_vm2, %v496_v43  ;;  %v479_v47 = vsel %vm317_vm1, %v349_v34, %v428_v36  ;;  %v695_v51 = vrot.slane %v15321_v37, 1  ;;  %v463_v53 = vsel %vm317_vm1, %v278_v40, %v351_v35  ;;  %v246_v34 = vld [vmem:[%s15133_s30 + $0xe0] sm:$0xff]  ;;  %v15381_v39 = vld [vmem:[#allocation2 + $0xb0] sm:$0xff] }
  0x8e   : > { %12603 = vmatmul.mubr.msk.f32.gmra.mrb[8].mxu0 %vm504_vm2, %v684_v54  ;;  %539 = vst.msk [vmem:[#allocation2 + $0x110] sm:$0xff] %vm504_vm2, %v350_v44  ;;  %v497_v52 = vsel %vm486_vm3, %v479_v47, 0.0  ;;  %v242_v54 = vld [vmem:[%s15133_s30 + $0xc0] sm:$0xff]  ;;  %v692_v55 = vsel %vm663_vm4, %v689_v20, %v691_v23  ;;  %541 = vst.msk [vmem:[#allocation2 + $0x120] sm:$0xff] %vm504_vm2, %v463_v53  ;;  %v694_v57 = vsel %vm663_vm4, %v691_v23, %v693_v42  ;;  %v697_v58 = vrot.slane %v15331_v45, 1  ;;  %v245_v20 = vld [vmem:[%s15133_s30 + $0xd8] sm:$0xff] }
  0x8f   : > { %12605 = vmatprep.mubr.msk.f32.mxu0 %vm504_vm2, %v686_v9  ;;  %540 = vst.msk [vmem:[#allocation2 + $0x118] sm:$0xff] %vm504_vm2, %v497_v52  ;;  %v352_v2 = vrot.slane %v241_v50, 7  ;;  %v429_v3 = vrot.slane %v241_v50, 5  ;;  %v279_v4 = vrot.slane %v242_v54, 1  ;;  %v354_v9 = vrot.slane %v242_v54, 7  ;;  %v247_v40 = vld [vmem:[%s15133_s30 + $0xe8] sm:$0xff] }
  0x90   : > { %v696_v11 = vsel %vm663_vm4, %v693_v42, %v695_v51  ;;  %v699_v14 = vrot.slane %v15348_v61, 1  ;;  %v701_v16 = vrot.slane %v15350_v1, 1  ;;  %v698_v23 = vsel %vm663_vm4, %v695_v51, %v697_v58  ;;  %v15392_v47 = vld [vmem:[%s15133_s30 + $0xf0] sm:$0xff] }
  0x91   : > { %v353_v13 = vsel %vm317_vm1, %v351_v35, %v352_v2  ;;  %v480_v18 = vsel %vm317_vm1, %v352_v2, %v429_v3  ;;  %v464_v7 = vsel %vm317_vm1, %v279_v4, %v354_v9  ;;  %v355_v25 = vrot.slane %v243_v10, 7 }
  0x92   : > { %12606 = vmatmul.mubr.msk.f32.gmra.mrb[10].mxu0 %vm504_vm2, %v688_v32  ;;  %542 = vst.msk [vmem:[#allocation2 + $0x128] sm:$0xff] %vm504_vm2, %v353_v13  ;;  %v498_v24 = vsel %vm486_vm3, %v480_v18, 0.0  ;;  %544 = vst.msk [vmem:[#allocation2 + $0x138] sm:$0xff] %vm504_vm2, %v464_v7  ;;  %v15370_v26 = vrot.slane %v15355_v12, 1  ;;  %v430_v29 = vrot.slane %v243_v10, 5  ;;  %v280_v31 = vrot.slane %v244_v19, 1 }
  0x93   : > { %12608 = vmatprep.mubr.msk.f32.mxu0 %vm504_vm2, %v690_v41  ;;  %543 = vst.msk [vmem:[#allocation2 + $0x130] sm:$0xff] %vm504_vm2, %v498_v24  ;;  %v356_v30 = vsel %vm317_vm1, %v354_v9, %v355_v25  ;;  %v357_v32 = vrot.slane %v244_v19, 7  ;;  %v358_v33 = vrot.slane %v245_v20, 7  ;;  %v700_v36 = vsel %vm663_vm4, %v697_v58, %v699_v14  ;;  %v15386_v41 = vld [vmem:[#allocation2 + $0xb8] sm:$0xff]  ;;  %v15416_v18 = vld [vmem:[#allocation2 + $0xc8] sm:$0xff] }
  0x94   : > { %v702_v38 = vsel %vm663_vm4, %v699_v14, %v701_v16  ;;  %545 = vst.msk [vmem:[#allocation2 + $0x140] sm:$0xff] %vm504_vm2, %v356_v30  ;;  %v705_v35 = vrot.slane %v15372_v28, 1  ;;  %v481_v42 = vsel %vm317_vm1, %v355_v25, %v430_v29  ;;  %v704_v50 = vsel %vm663_vm4, %v701_v16, %v15370_v26  ;;  %v15442_v30 = vld [vmem:[#allocation2 + $0xd0] sm:$0xff] }
  0x95   : > { %v465_v43 = vsel %vm317_vm1, %v280_v31, %v357_v32  ;;  %v359_v44 = vsel %vm317_vm1, %v357_v32, %v358_v33  ;;  %v499_v51 = vsel %vm486_vm3, %v481_v42, 0.0  ;;  %v431_v52 = vrot.slane %v245_v20, 5  ;;  %v15444_v31 = vld [vmem:[#allocation2 + $0xd8] sm:$0xff] }
  0x96   : > { %12609 = vmatmul.mubr.msk.f32.gmra.mrb[12].mxu0 %vm504_vm2, %v692_v55  ;;  %547 = vst.msk [vmem:[#allocation2 + $0x150] sm:$0xff] %vm504_vm2, %v465_v43  ;;  %548 = vst.msk [vmem:[#allocation2 + $0x158] sm:$0xff] %vm504_vm2, %v359_v44  ;;  %v281_v53 = vrot.slane %v246_v34, 1  ;;  %v707_v54 = vrot.slane %v15381_v39, 1  ;;  %v360_v55 = vrot.slane %v246_v34, 7  ;;  %v432_v58 = vrot.slane %v247_v40, 5 }
  0x97   : > { %12611 = vmatprep.mubr.msk.f32.mxu0 %vm504_vm2, %v694_v57  ;;  %546 = vst.msk [vmem:[#allocation2 + $0x148] sm:$0xff] %vm504_vm2, %v499_v51  ;;  %v361_v57 = vrot.slane %v247_v40, 7  ;;  %v709_v2 = vrot.slane %v15386_v41, 1  ;;  %v482_v3 = vsel %vm317_vm1, %v358_v33, %v431_v52  ;;  %v282_v4 = vrot.slane %v15392_v47, 1  ;;  %v15460_v40 = vld [vmem:[#allocation2 + $0xe8] sm:$0xff]  ;;  %v15476_v51 = vld [vmem:[#allocation2 + $0xf8] sm:$0xff] }
  0x98   : > { %v19760_v9 = vrot.slane %v15392_v47, 7  ;;  %v15409_v10 = vsel %vm663_vm4, %v15370_v26, %v705_v35  ;;  %v500_v13 = vsel %vm486_vm3, %v482_v3, 0.0  ;;  %v466_v14 = vsel %vm317_vm1, %v281_v53, %v360_v55 }
  0x99   : > { %v362_v16 = vsel %vm317_vm1, %v360_v55, %v361_v57  ;;  %549 = vst.msk [vmem:[#allocation2 + $0x160] sm:$0xff] %vm504_vm2, %v500_v13  ;;  %550 = vst.msk [vmem:[#allocation2 + $0x168] sm:$0xff] %vm504_vm2, %v466_v14  ;;  %v483_v7 = vsel %vm317_vm1, %v361_v57, %v432_v58  ;;  %v15439_v25 = vsel %vm663_vm4, %v707_v54, %v709_v2  ;;  %v713_v29 = vrot.slane %v15416_v18, 1  ;;  %v15490_v57 = vld [vmem:[#allocation2 + $0x100] sm:$0xff]  ;;  %v15492_v58 = vld [vmem:[#allocation2 + $0x108] sm:$0xff] }
  0x9a   : > { %12612 = vmatmul.mubr.msk.f32.gmra.mrb[14].mxu0 %vm504_vm2, %v696_v11  ;;  %v15411_v11 = vld [vmem:[#allocation2 + $0xc0] sm:$0xff]  ;;  %556 = vst.msk [vmem:[#allocation2 + $0x198] sm:$0xff] %vm504_vm2, %v466_v14  ;;  %551 = vst.msk [vmem:[#allocation2 + $0x170] sm:$0xff] %vm504_vm2, %v362_v16  ;;  %v467_v19 = vsel %vm317_vm1, %v282_v4, %v19760_v9  ;;  %v501_v20 = vsel %vm486_vm3, %v483_v7, 0.0  ;;  %v715_v33 = vrot.slane %v15442_v30, 1  ;;  %v721_v44 = vrot.slane %v15460_v40, 1 }
  0x9b   : > { %12614 = vmatprep.mubr.msk.f32.mxu0 %vm504_vm2, %v698_v23  ;;  %557 = vst.msk [vmem:[#allocation2 + $0x1a0] sm:$0xff] %vm504_vm2, %v362_v16  ;;  %553 = vst.msk [vmem:[#allocation2 + $0x180] sm:$0xff] %vm504_vm2, %v467_v19  ;;  %v15433_v23 = vsel %vm663_vm4, %v705_v35, %v707_v54  ;;  %v711_v24 = vrot.slane %v15411_v11, 1  ;;  %v725_v55 = vrot.slane %v15476_v51, 1  ;;  %v727_v3 = vrot.slane %v15490_v57, 1  ;;  %v15506_v14 = vld [vmem:[#allocation2 + $0x110] sm:$0xff] }
  0x9c   : > { %552 = vst.msk [vmem:[#allocation2 + $0x178] sm:$0xff] %vm504_vm2, %v501_v20  ;;  %558 = vst.msk [vmem:[#allocation2 + $0x1a8] sm:$0xff] %vm504_vm2, %v501_v20  ;;  %v15467_v35 = vsel %vm663_vm4, %v713_v29, %v715_v33  ;;  %v729_v13 = vrot.slane %v15492_v58, 1  ;;  %v15508_v16 = vld [vmem:[#allocation2 + $0x118] sm:$0xff]  ;;  %v731_v19 = vrot.slane %v15506_v14, 1  ;;  %vm1540_vm5 = vcmask 1045504  }
  0x9d   : > { %v15451_v32 = vsel %vm663_vm4, %v709_v2, %v711_v24  ;;  %v15455_v34 = vsel %vm663_vm4, %v711_v24, %v713_v29  ;;  %19923 = vst [vmem:[#allocation15_spill] sm:$0xff] %v15467_v35  ;;  %v15515_v7 = vsel %vm663_vm4, %v725_v55, %v727_v3  ;;  %v733_v24 = vrot.slane %v15508_v16, 1  ;;  %v15522_v29 = vld [vmem:[#allocation2 + $0x120] sm:$0xff] }
  0x9e   : > { %12615 = vmatmul.mubr.msk.f32.gmra.mrb[16].mxu0 %vm504_vm2, %v700_v36  ;;  %19921 = vst [vmem:[#allocation13_spill] sm:$0xff] %v15451_v32  ;;  %19922 = vst [vmem:[#allocation14_spill] sm:$0xff] %v15455_v34  ;;  %v717_v36 = vrot.slane %v15444_v31, 1  ;;  %v15519_v20 = vsel %vm663_vm4, %v727_v3, %v729_v13  ;;  %v15540_v3 = vld [vmem:[#allocation2 + $0x138] sm:$0xff] }
  0x9f   : > { %12617 = vmatprep.mubr.msk.f32.mxu0 %vm504_vm2, %v702_v38  ;;  %v15458_v38 = vld [vmem:[#allocation2 + $0xe0] sm:$0xff]  ;;  %19929 = vst [vmem:[#allocation21_spill] sm:$0xff] %v15515_v7  ;;  %19930 = vst [vmem:[#allocation22_spill] sm:$0xff] %v15519_v20 }
  0xa0   : > { %v719_v42 = vrot.slane %v15458_v38, 1  ;;  %v15471_v43 = vsel %vm663_vm4, %v715_v33, %v717_v36  ;;  %v15524_v33 = vld [vmem:[#allocation2 + $0x128] sm:$0xff] }
  0xa1   : > { %19924 = vst [vmem:[#allocation16_spill] sm:$0xff] %v15471_v43 }
  0xa2   : > { %12618 = vmatmul.mubr.msk.f32.gmra.mrb[18].mxu0 %vm504_vm2, %v704_v50  ;;  %v15474_v50 = vld [vmem:[#allocation2 + $0xf0] sm:$0xff]  ;;  %v15483_v52 = vsel %vm663_vm4, %v717_v36, %v719_v42  ;;  %v15487_v54 = vsel %vm663_vm4, %v719_v42, %v721_v44  ;;  %v15531_v36 = vsel %vm663_vm4, %v729_v13, %v731_v19  ;;  %v735_v42 = vrot.slane %v15522_v29, 1 }
  0xa3   : > { %12620 = vmatprep.mubr.msk.f32.mxu0 %vm504_vm2, %v15409_v10  ;;  %19925 = vst [vmem:[#allocation17_spill] sm:$0xff] %v15483_v52  ;;  %v723_v53 = vrot.slane %v15474_v50, 1  ;;  %19926 = vst [vmem:[#allocation18_spill] sm:$0xff] %v15487_v54 }
  0xa4   : > { %19931 = vst [vmem:[#allocation23_spill] sm:$0xff] %v15531_v36  ;;  %v15547_v13 = vsel %vm663_vm4, %v733_v24, %v735_v42 }
  0xa5   : > { %v15499_v2 = vsel %vm663_vm4, %v721_v44, %v723_v53  ;;  %v15503_v4 = vsel %vm663_vm4, %v723_v53, %v725_v55  ;;  %v15535_v44 = vsel %vm663_vm4, %v731_v19, %v733_v24  ;;  %v737_v53 = vrot.slane %v15524_v33, 1  ;;  %v15538_v55 = vld [vmem:[#allocation2 + $0x130] sm:$0xff]  ;;  %19933 = vst [vmem:[#allocation25_spill] sm:$0xff] %v15547_v13 }
  0xa6   : > { %12621 = vmatmul.mubr.msk.f32.gmra.mrb[20].mxu0 %vm504_vm2, %v15433_v23  ;;  %19927 = vst [vmem:[#allocation19_spill] sm:$0xff] %v15499_v2  ;;  %19928 = vst [vmem:[#allocation20_spill] sm:$0xff] %v15503_v4  ;;  %v739_v9 = vrot.slane %v15538_v55, 1 }
  0xa7   : > { %12623 = vmatprep.mubr.msk.f32.mxu0 %vm504_vm2, %v15439_v25  ;;  %19932 = vst [vmem:[#allocation24_spill] sm:$0xff] %v15535_v44  ;;  %v15551_v19 = vsel %vm663_vm4, %v735_v42, %v737_v53 }
  0xa8   : > { %19934 = vst [vmem:[#allocation26_spill] sm:$0xff] %v15551_v19  ;;  %v15563_v24 = vsel %vm663_vm4, %v737_v53, %v739_v9 }
  0xa9   : > { %19935 = vst [vmem:[#allocation27_spill] sm:$0xff] %v15563_v24 }
  0xaa   : > { %12624 = vmatmul.mubr.msk.f32.gmra.mrb[22].mxu0 %vm504_vm2, %v15451_v32  ;;  %v15620_v32 = vld [vmem:[#allocation2 + $0x180] sm:$0x3] }
  0xab   : > { %12626 = vmatprep.mubr.msk.f32.mxu0 %vm504_vm2, %v15455_v34  ;;  %v15604_v34 = vld [vmem:[#allocation2 + $0x178] sm:$0xff] }
  0xae   : > { %12627 = vmatmul.mubr.msk.f32.gmra.mrb[24].mxu0 %vm504_vm2, %v15467_v35  ;;  %v15602_v35 = vld [vmem:[#allocation2 + $0x170] sm:$0xff] }
  0xaf   : > { %12629 = vmatprep.mubr.msk.f32.mxu0 %vm504_vm2, %v15471_v43  ;;  %v15588_v43 = vld [vmem:[#allocation2 + $0x168] sm:$0xff] }
  0xb2   : > { %12630 = vmatmul.mubr.msk.f32.gmra.mrb[26].mxu0 %vm504_vm2, %v15483_v52  ;;  %v15586_v52 = vld [vmem:[#allocation2 + $0x160] sm:$0xff] }
  0xb3   : > { %12632 = vmatprep.mubr.msk.f32.mxu0 %vm504_vm2, %v15487_v54  ;;  %v15572_v54 = vld [vmem:[#allocation2 + $0x158] sm:$0xff] }
  0xb6   : > { %12633 = vmatmul.mubr.msk.f32.gmra.mrb[28].mxu0 %vm504_vm2, %v15499_v2  ;;  %v15570_v2 = vld [vmem:[#allocation2 + $0x150] sm:$0xff] }
  0xb7   : > { %12635 = vmatprep.mubr.msk.f32.mxu0 %vm504_vm2, %v15503_v4  ;;  %v15556_v4 = vld [vmem:[#allocation2 + $0x148] sm:$0xff] }
  0xba   : > { %12636 = vmatmul.mubr.msk.f32.gmra.mrb[30].mxu0 %vm504_vm2, %v15515_v7  ;;  %v15554_v7 = vld [vmem:[#allocation2 + $0x140] sm:$0xff] }
  0xbb   : > { %12638 = vmatprep.mubr.msk.f32.mxu0 %vm504_vm2, %v15519_v20  ;;  %v741_v20 = vrot.slane %v15540_v3, 1 }
  0xbd   : > { %v15567_v42 = vsel %vm663_vm4, %v739_v9, %v741_v20 }
  0xbe   : > { %12639 = vmatmul.mubr.msk.f32.gmra.mrb[32].mxu0 %vm504_vm2, %v15531_v36  ;;  %19936 = vst [vmem:[#allocation28_spill] sm:$0xff] %v15567_v42  ;;  %v745_v36 = vrot.slane %v15556_v4, 1 }
  0xbf   : > { %12641 = vmatprep.mubr.msk.f32.mxu0 %vm504_vm2, %v15535_v44  ;;  %v743_v44 = vrot.slane %v15554_v7, 1 }
  0xc1   : > { %v15579_v53 = vsel %vm663_vm4, %v741_v20, %v743_v44  ;;  %v15583_v9 = vsel %vm663_vm4, %v743_v44, %v745_v36 }
  0xc2   : > { %12642 = vmatmul.mubr.msk.f32.gmra.mrb[34].mxu0 %vm504_vm2, %v15547_v13  ;;  %19937 = vst [vmem:[#allocation29_spill] sm:$0xff] %v15579_v53  ;;  %19938 = vst [vmem:[#allocation30_spill] sm:$0xff] %v15583_v9  ;;  %v749_v13 = vrot.slane %v15572_v54, 1 }
  0xc3   : > { %12644 = vmatprep.mubr.msk.f32.mxu0 %vm504_vm2, %v15551_v19  ;;  %v747_v19 = vrot.slane %v15570_v2, 1 }
  0xc5   : > { %v15595_v20 = vsel %vm663_vm4, %v745_v36, %v747_v19  ;;  %v15599_v44 = vsel %vm663_vm4, %v747_v19, %v749_v13 }
  0xc6   : > { %12645 = vmatmul.mubr.msk.f32.gmra.mrb[36].mxu0 %vm504_vm2, %v15563_v24  ;;  %19939 = vst [vmem:[#allocation31_spill] sm:$0xff] %v15599_v44  ;;  %v753_v24 = vrot.slane %v15588_v43, 1 }
  0xc7   : > { %12647 = vmatprep.mubr.msk.f32.mxu0 %vm504_vm2, %v15567_v42  ;;  %v751_v42 = vrot.slane %v15586_v52, 1 }
  0xc9   : > { %v15611_v36 = vsel %vm663_vm4, %v749_v13, %v751_v42  ;;  %v15615_v19 = vsel %vm663_vm4, %v751_v42, %v753_v24  ;;  %v759_v13 = vrot.slane %v15620_v32, 1 }
  0xca   : > { %12648 = vmatmul.mubr.msk.f32.gmra.mrb[38].mxu0 %vm504_vm2, %v15579_v53  ;;  %19940 = vst [vmem:[#allocation32_spill] sm:$0xff] %v15611_v36  ;;  %19941 = vst [vmem:[#allocation33_spill] sm:$0xff] %v15615_v19  ;;  %v15618_v53 = vrot.slane %v15604_v34, 1 }
  0xcb   : > { %12650 = vmatprep.mubr.msk.f32.mxu0 %vm504_vm2, %v15583_v9  ;;  %v755_v9 = vrot.slane %v15602_v35, 1 }
  0xcc   : > { %19942 = vst [vmem:[#allocation34_spill] sm:$0xff] %v15618_v53 }
  0xcd   : > { %v15632_v42 = vsel %vm663_vm4, %v755_v9, %v15618_v53 }
  0xce   : > { %12651 = vmatmul.mubr.msk.f32.gmra.mrb[40].mxu0 %vm504_vm2, %v15595_v20  ;;  %19944 = vst [vmem:[#allocation36_spill] sm:$0xff] %v15632_v42 }
  0xcf   : > { %12653 = vmatprep.mubr.msk.f32.mxu0 %vm504_vm2, %v15599_v44  ;;  %v15627_v44 = vsel %vm663_vm4, %v753_v24, %v755_v9  ;;  %v15643_v24 = vld [vmem:[#allocation6 + $0xc] sm:$0xf]  ;;  %v1542_v9 = vrot.slane %v15189_v49, 2 }
  0xd0   : > { %19943 = vst [vmem:[#allocation35_spill] sm:$0xff] %v15627_v44 }
  0xd2   : > { %12654 = vmatmul.mubr.msk.f32.gmra.mrb[42].mxu0 %vm504_vm2, %v15611_v36  ;;  %v760_v36 = vsel %vm663_vm4, %v15618_v53, %v759_v13 }
  0xd3   : > { %12656 = vmatprep.mubr.msk.f32.mxu0 %vm504_vm2, %v15615_v19  ;;  %v15753_v19 = vld [vmem:[#allocation6 + $0x10] sm:$0xf] }
  0xd6   : > { %12657 = vmatmul.mubr.msk.f32.gmra.mrb[44].mxu0 %vm504_vm2, %v15627_v44  ;;  %v1550_v44 = vrot.slane %v15219_v5, 2 }
  0xd7   : > { %12659 = vmatprep.mubr.msk.f32.mxu0 %vm504_vm2, %v15632_v42  ;;  %v1546_v42 = vrot.slane %v15208_v62, 2 }
  0xda   : > { %12660 = vmatmul.mubr.msk.f32.gmra.mrb[46].mxu0 %vm504_vm2, %v760_v36  ;;  %v1544_v36 = vrot.slane %v15199_v56, 2 }
  0xdb   : > { %12664 = vmatprep.mubr.msk.f32.mxu0 %vm504_vm2, %v15187_v48 }
  0xdc   : > { %v1547_v53 = vsel %vm1540_vm5, %v1544_v36, %v1546_v42 }
  0xde   : > { %12665 = vmatmul.mubr.msk.f32.vlgmr.msra.gmra.mrb[0].mxu0 %vm504_vm2, %v15189_v49  ;;  %v1548_v49 = vrot.slane %v15210_v63, 2 }
  0xdf   : > { %12737 = vmatpush3.msk.msra.mxu0 %vm857_vm0, %v15235_v17  ;;  %12667 = vmatprep.mubr.msk.f32.mxu0 %vm504_vm2, %v15199_v56  ;;  %v1541_v17 = vrot.slane %v15187_v48, 2  ;;  %v1545_v48 = vsel %vm1540_vm5, %v1542_v9, %v1544_v36  ;;  %v1562_v36 = vrot.slane %v15245_v22, 2 }
  0xe0   : > { %12810 = vmatprep.subr.msk.mxu0 %vm857_vm0, %v15643_v24  ;;  %v1549_v56 = vsel %vm1540_vm5, %v1546_v42, %v1548_v49  ;;  %v1558_v42 = vrot.slane %v15232_v15, 2 }
  0xe1   : > { %v1543_v13 = vsel %vm1540_vm5, %v1541_v17, %v1542_v9  ;;  %v1551_v17 = vsel %vm1540_vm5, %v1548_v49, %v1550_v44  ;;  %v1570_v49 = vrot.slane %v15310_v27, 2 }
  0xe2   : > { %12668 = vmatmul.mubr.msk.f32.gmra.mrb[2].mxu0 %vm504_vm2, %v15208_v62  ;;  %v1552_v62 = vrot.slane %v15212_v0, 2 }
  0xe3   : > { %12670 = vmatprep.mubr.msk.f32.mxu0 %vm504_vm2, %v15210_v63  ;;  %v1554_v63 = vrot.slane %v15221_v6, 2 }
  0xe6   : > { %12671 = vmatmul.mubr.msk.f32.gmra.mrb[4].mxu0 %vm504_vm2, %v15219_v5  ;;  %v1553_v5 = vsel %vm1540_vm5, %v1550_v44, %v1552_v62 }
  0xe7   : > { %12673 = vmatprep.mubr.msk.f32.mxu0 %vm504_vm2, %v15212_v0 }
  0xea   : > { %12674 = vmatmul.mubr.msk.f32.gmra.mrb[6].mxu0 %vm504_vm2, %v15221_v6  ;;  %v1560_v6 = vrot.slane %v15243_v21, 2 }
  0xeb   : > { %12676 = vmatprep.mubr.msk.f32.mxu0 %vm504_vm2, %v15223_v8 }
  0xec   : > { %v1563_v44 = vsel %vm1540_vm5, %v1560_v6, %v1562_v36 }
  0xee   : > { %12677 = vmatmul.mubr.msk.f32.gmra.mrb[8].mxu0 %vm504_vm2, %v15232_v15  ;;  %v1564_v15 = vrot.slane %v15270_v46, 2 }
  0xef   : > { %12679 = vmatprep.mubr.msk.f32.mxu0 %vm504_vm2, %v15243_v21 }
  0xf0   : > { %v1565_v21 = vsel %vm1540_vm5, %v1562_v36, %v1564_v15  ;;  %v1590_v36 = vrot.slane %v15416_v18, 2 }
  0xf2   : > { %12680 = vmatmul.mubr.msk.f32.gmra.mrb[10].mxu0 %vm504_vm2, %v15245_v22  ;;  %v1568_v22 = vrot.slane %v15284_v60, 2 }
  0xf3   : > { %12682 = vmatprep.mubr.msk.f32.mxu0 %vm504_vm2, %v15270_v46 }
  0xf6   : > { %12683 = vmatmul.mubr.msk.f32.gmra.mrb[12].mxu0 %vm504_vm2, %v15282_v59 }
  0xf7   : > { %12685 = vmatprep.mubr.msk.f32.mxu0 %vm504_vm2, %v15284_v60 }
  0xfa   : > { %12686 = vmatmul.mubr.msk.f32.gmra.mrb[14].mxu0 %vm504_vm2, %v15310_v27  ;;  %v1576_v27 = vrot.slane %v15348_v61, 2 }
  0xfb   : > { %12688 = vmatprep.mubr.msk.f32.mxu0 %vm504_vm2, %v15321_v37 }
  0xfe   : > { %12689 = vmatmul.mubr.msk.f32.gmra.mrb[16].mxu0 %vm504_vm2, %v15331_v45 }
  0xff   : > { %12691 = vmatprep.mubr.msk.f32.mxu0 %vm504_vm2, %v15348_v61 }
 0x102   : > { %12692 = vmatmul.mubr.msk.f32.gmra.mrb[18].mxu0 %vm504_vm2, %v15350_v1 }
 0x103   : > { %12694 = vmatprep.mubr.msk.f32.mxu0 %vm504_vm2, %v15355_v12 }
 0x106   : > { %12695 = vmatmul.mubr.msk.f32.gmra.mrb[20].mxu0 %vm504_vm2, %v15372_v28 }
 0x107   : > { %12697 = vmatprep.mubr.msk.f32.mxu0 %vm504_vm2, %v15381_v39 }
 0x10a   : > { %12698 = vmatmul.mubr.msk.f32.gmra.mrb[22].mxu0 %vm504_vm2, %v15386_v41 }
 0x10b   : > { %12700 = vmatprep.mubr.msk.f32.mxu0 %vm504_vm2, %v15411_v11 }
 0x10e   : > { %12701 = vmatmul.mubr.msk.f32.gmra.mrb[24].mxu0 %vm504_vm2, %v15416_v18 }
 0x10f   : > { %12703 = vmatprep.mubr.msk.f32.mxu0 %vm504_vm2, %v15442_v30 }
 0x112   : > { %12704 = vmatmul.mubr.msk.f32.gmra.mrb[26].mxu0 %vm504_vm2, %v15444_v31 }
 0x113   : > { %12706 = vmatprep.mubr.msk.f32.mxu0 %vm504_vm2, %v15458_v38 }
 0x116   : > { %12707 = vmatmul.mubr.msk.f32.gmra.mrb[28].mxu0 %vm504_vm2, %v15460_v40 }
 0x117   : > { %12709 = vmatprep.mubr.msk.f32.mxu0 %vm504_vm2, %v15474_v50 }
 0x11a   : > { %12710 = vmatmul.mubr.msk.f32.gmra.mrb[30].mxu0 %vm504_vm2, %v15476_v51 }
 0x11b   : > { %12712 = vmatprep.mubr.msk.f32.mxu0 %vm504_vm2, %v15490_v57 }
 0x11e   : > { %12713 = vmatmul.mubr.msk.f32.gmra.mrb[32].mxu0 %vm504_vm2, %v15492_v58 }
 0x11f   : > { %12715 = vmatprep.mubr.msk.f32.mxu0 %vm504_vm2, %v15506_v14 }
 0x122   : > { %12716 = vmatmul.mubr.msk.f32.gmra.mrb[34].mxu0 %vm504_vm2, %v15508_v16 }
 0x123   : > { %12718 = vmatprep.mubr.msk.f32.mxu0 %vm504_vm2, %v15522_v29 }
 0x126   : > { %12719 = vmatmul.mubr.msk.f32.gmra.mrb[36].mxu0 %vm504_vm2, %v15524_v33 }
 0x127   : > { %12721 = vmatprep.mubr.msk.f32.mxu0 %vm504_vm2, %v15538_v55 }
 0x12a   : > { %12722 = vmatmul.mubr.msk.f32.gmra.mrb[38].mxu0 %vm504_vm2, %v15540_v3 }
 0x12b   : > { %12724 = vmatprep.mubr.msk.f32.mxu0 %vm504_vm2, %v15554_v7 }
 0x12e   : > { %12725 = vmatmul.mubr.msk.f32.gmra.mrb[40].mxu0 %vm504_vm2, %v15556_v4 }
 0x12f   : > { %12727 = vmatprep.mubr.msk.f32.mxu0 %vm504_vm2, %v15570_v2 }
 0x132   : > { %12728 = vmatmul.mubr.msk.f32.gmra.mrb[42].mxu0 %vm504_vm2, %v15572_v54 }
 0x133   : > { %12730 = vmatprep.mubr.msk.f32.mxu0 %vm504_vm2, %v15586_v52 }
 0x136   : > { %12731 = vmatmul.mubr.msk.f32.gmra.mrb[44].mxu0 %vm504_vm2, %v15588_v43 }
 0x137   : > { %12733 = vmatprep.mubr.msk.f32.mxu0 %vm504_vm2, %v15602_v35 }
 0x13a   : > { %12734 = vmatmul.mubr.msk.f32.gmra.mrb[46].mxu0 %vm504_vm2, %v15604_v34 }
 0x13b   : > { %12738 = vmatprep.mubr.msk.f32.mxu0 %vm504_vm2, %v1543_v13  ;;  %v1566_v13 = vrot.slane %v15282_v59, 2  ;;  %v1572_v59 = vrot.slane %v15321_v37, 2 }
 0x13d   : > { %v1569_v46 = vsel %vm1540_vm5, %v1566_v13, %v1568_v22  ;;  %v1573_v60 = vsel %vm1540_vm5, %v1570_v49, %v1572_v59 }
 0x13e   : > { %12739 = vmatmul.mubr.msk.f32.vlgmr.msra.gmra.mrb[0].mxu0 %vm504_vm2, %v1545_v48  ;;  %v1567_v48 = vsel %vm1540_vm5, %v1564_v15, %v1566_v13  ;;  %v1592_v15 = vrot.slane %v15442_v30, 2  ;;  %v1594_v13 = vrot.slane %v15444_v31, 2 }
 0x13f   : > { %12811 = vmatpush3.msk.msra.mxu0 %vm857_vm0, %v15643_v24  ;;  %12741 = vmatprep.mubr.msk.f32.mxu0 %vm504_vm2, %v1547_v53  ;;  %v1556_v24 = vrot.slane %v15223_v8, 2  ;;  %v1555_v53 = vsel %vm1540_vm5, %v1552_v62, %v1554_v63  ;;  %v1561_v8 = vsel %vm1540_vm5, %v1558_v42, %v1560_v6  ;;  %v1574_v62 = vrot.slane %v15331_v45, 2 }
 0x140   : > { %12884 = vmatprep.subr.msk.mxu0 %vm857_vm0, %v15753_v19  ;;  %v15805_v45 = vrot.slane %v15355_v12, 2  ;;  %v1588_v6 = vrot.slane %v15411_v11, 2 }
 0x141   : > { %v1557_v0 = vsel %vm1540_vm5, %v1554_v63, %v1556_v24  ;;  %v1559_v9 = vsel %vm1540_vm5, %v1556_v24, %v1558_v42  ;;  %v1578_v63 = vrot.slane %v15350_v1, 2  ;;  %v1577_v37 = vsel %vm1540_vm5, %v1574_v62, %v1576_v27 }
 0x142   : > { %12742 = vmatmul.mubr.msk.f32.gmra.mrb[2].mxu0 %vm504_vm2, %v1549_v56  ;;  %v1571_v56 = vsel %vm1540_vm5, %v1568_v22, %v1570_v49  ;;  %v1582_v24 = vrot.slane %v15372_v28, 2  ;;  %v1584_v1 = vrot.slane %v15381_v39, 2  ;;  %v1586_v42 = vrot.slane %v15386_v41, 2 }
 0x143   : > { %12744 = vmatprep.mubr.msk.f32.mxu0 %vm504_vm2, %v1551_v17  ;;  %v1575_v17 = vsel %vm1540_vm5, %v1572_v59, %v1574_v62  ;;  %v1581_v61 = vsel %vm1540_vm5, %v1578_v63, %v15805_v45  ;;  %v1596_v22 = vrot.slane %v15458_v38, 2  ;;  %v1598_v49 = vrot.slane %v15460_v40, 2 }
 0x145   : > { %v15860_v62 = vsel %vm1540_vm5, %v1594_v13, %v1596_v22 }
 0x146   : > { %12745 = vmatmul.mubr.msk.f32.gmra.mrb[4].mxu0 %vm504_vm2, %v1553_v5  ;;  %v1579_v5 = vsel %vm1540_vm5, %v1576_v27, %v1578_v63  ;;  %v15864_v27 = vsel %vm1540_vm5, %v1596_v22, %v1598_v49  ;;  %v19945_v63 = vrot.slane %v15392_v47, 7  ;;  %v1604_v47 = vrot.slane %v15490_v57, 2 }
 0x147   : > { %12747 = vmatprep.mubr.msk.f32.mxu0 %vm504_vm2, %v1555_v53  ;;  %v15816_v53 = vsel %vm1540_vm5, %v15805_v45, %v1582_v24 }
 0x14a   : > { %12748 = vmatmul.mubr.msk.f32.gmra.mrb[6].mxu0 %vm504_vm2, %v1557_v0  ;;  %v15823_v0 = vsel %vm1540_vm5, %v1582_v24, %v1584_v1 }
 0x14b   : > { %12750 = vmatprep.mubr.msk.f32.mxu0 %vm504_vm2, %v1559_v9  ;;  %v15827_v9 = vsel %vm1540_vm5, %v1584_v1, %v1586_v42 }
 0x14e   : > { %12751 = vmatmul.mubr.msk.f32.gmra.mrb[8].mxu0 %vm504_vm2, %v1561_v8  ;;  %v15835_v8 = vsel %vm1540_vm5, %v1586_v42, %v1588_v6  ;;  %v1606_v42 = vrot.slane %v15492_v58, 2 }
 0x14f   : > { %12753 = vmatprep.mubr.msk.f32.mxu0 %vm504_vm2, %v1563_v44  ;;  %v15839_v44 = vsel %vm1540_vm5, %v1588_v6, %v1590_v36 }
 0x152   : > { %12754 = vmatmul.mubr.msk.f32.gmra.mrb[10].mxu0 %vm504_vm2, %v1565_v21  ;;  %v15847_v21 = vsel %vm1540_vm5, %v1590_v36, %v1592_v15  ;;  %v1608_v36 = vrot.slane %v15506_v14, 2 }
 0x153   : > { %12756 = vmatprep.mubr.msk.f32.mxu0 %vm504_vm2, %v1567_v48  ;;  %v15851_v48 = vsel %vm1540_vm5, %v1592_v15, %v1594_v13  ;;  %v15895_v15 = vsel %vm1540_vm5, %v1604_v47, %v1606_v42  ;;  %v1610_v13 = vrot.slane %v15508_v16, 2 }
 0x154   : > { %19946 = vst [vmem:[#allocation37_spill] sm:$0xff] %v15895_v15  ;;  %v15903_v22 = vsel %vm1540_vm5, %v1606_v42, %v1608_v36 }
 0x155   : > { %19947 = vst [vmem:[#allocation38_spill] sm:$0xff] %v15903_v22 }
 0x156   : > { %12757 = vmatmul.mubr.msk.f32.gmra.mrb[12].mxu0 %vm504_vm2, %v1569_v46  ;;  %v249_v46 = vld [vmem:[%s15133_s30 + $0xf8] sm:$0xff] }
 0x157   : > { %12759 = vmatprep.mubr.msk.f32.mxu0 %vm504_vm2, %v1571_v56  ;;  %v364_v59 = vrot.slane %v249_v46, 7  ;;  %v433_v56 = vrot.slane %v249_v46, 5  ;;  %v15907_v46 = vsel %vm1540_vm5, %v1608_v36, %v1610_v13  ;;  %v1624_v36 = vrot.slane %v15570_v2, 2 }
 0x158   : > { %19948 = vst [vmem:[#allocation39_spill] sm:$0xff] %v15907_v46 }
 0x15a   : > { %12760 = vmatmul.mubr.msk.f32.gmra.mrb[14].mxu0 %vm504_vm2, %v1573_v60  ;;  %v1600_v60 = vrot.slane %v15474_v50, 2 }
 0x15b   : > { %12762 = vmatprep.mubr.msk.f32.mxu0 %vm504_vm2, %v1575_v17  ;;  %v1602_v17 = vrot.slane %v15476_v51, 2 }
 0x15d   : > { %v15883_v1 = vsel %vm1540_vm5, %v1600_v60, %v1602_v17  ;;  %v15891_v6 = vsel %vm1540_vm5, %v1602_v17, %v1604_v47  ;;  %v1622_v47 = vrot.slane %v15556_v4, 2 }
 0x15e   : > { %12763 = vmatmul.mubr.msk.f32.gmra.mrb[16].mxu0 %vm504_vm2, %v1577_v37  ;;  %v365_v37 = vsel %vm317_vm1, %v19945_v63, %v364_v59  ;;  %v1618_v63 = vrot.slane %v15540_v3, 2 }
 0x15f   : > { %12765 = vmatprep.mubr.msk.f32.mxu0 %vm504_vm2, %v1579_v5  ;;  %v484_v5 = vsel %vm317_vm1, %v364_v59, %v433_v56  ;;  %554 = vst.msk [vmem:[#allocation2 + $0x188] sm:$0xff] %vm504_vm2, %v365_v37  ;;  %v1614_v59 = vrot.slane %v15524_v33, 2 }
 0x160   : > { %v502_v24 = vsel %vm486_vm3, %v484_v5, 0.0  ;;  %v1620_v5 = vrot.slane %v15554_v7, 2 }
 0x161   : > { %555 = vst.msk [vmem:[#allocation2 + $0x190] sm:$0xff] %vm504_vm2, %v502_v24 }
 0x162   : > { %12766 = vmatmul.mubr.msk.f32.gmra.mrb[18].mxu0 %vm504_vm2, %v1581_v61  ;;  %v15879_v61 = vsel %vm1540_vm5, %v1598_v49, %v1600_v60  ;;  %v1612_v49 = vrot.slane %v15522_v29, 2  ;;  %v1616_v60 = vrot.slane %v15538_v55, 2  ;;  %v15939_v42 = vsel %vm1540_vm5, %v1618_v63, %v1620_v5 }
 0x163   : > { %12768 = vmatprep.mubr.msk.f32.mxu0 %vm504_vm2, %v15816_v53  ;;  %19953 = vst [vmem:[#allocation44_spill] sm:$0xff] %v15939_v42 }
 0x164   : > { %v15915_v56 = vsel %vm1540_vm5, %v1610_v13, %v1612_v49  ;;  %v15919_v17 = vsel %vm1540_vm5, %v1612_v49, %v1614_v59  ;;  %v15927_v37 = vsel %vm1540_vm5, %v1614_v59, %v1616_v60  ;;  %v15931_v24 = vsel %vm1540_vm5, %v1616_v60, %v1618_v63 }
 0x165   : > { %19949 = vst [vmem:[#allocation40_spill] sm:$0xff] %v15915_v56  ;;  %19950 = vst [vmem:[#allocation41_spill] sm:$0xff] %v15919_v17  ;;  %v15943_v13 = vsel %vm1540_vm5, %v1620_v5, %v1622_v47  ;;  %v1626_v49 = vrot.slane %v15572_v54, 2  ;;  %v15951_v59 = vsel %vm1540_vm5, %v1622_v47, %v1624_v36  ;;  %v1628_v60 = vrot.slane %v15586_v52, 2 }
 0x166   : > { %12769 = vmatmul.mubr.msk.f32.gmra.mrb[20].mxu0 %vm504_vm2, %v15823_v0  ;;  %19951 = vst [vmem:[#allocation42_spill] sm:$0xff] %v15927_v37  ;;  %19952 = vst [vmem:[#allocation43_spill] sm:$0xff] %v15931_v24 }
 0x167   : > { %12771 = vmatprep.mubr.msk.f32.mxu0 %vm504_vm2, %v15827_v9  ;;  %19954 = vst [vmem:[#allocation45_spill] sm:$0xff] %v15943_v13  ;;  %19955 = vst [vmem:[#allocation46_spill] sm:$0xff] %v15951_v59  ;;  %v15955_v63 = vsel %vm1540_vm5, %v1624_v36, %v1626_v49  ;;  %v15963_v5 = vsel %vm1540_vm5, %v1626_v49, %v1628_v60  ;;  %v1636_v49 = vrot.slane %v15620_v32, 2  ;;  %v15995_v32 = vld [vmem:[#allocation2 + $0x20] sm:$0xff] }
 0x168   : > { %19956 = vst [vmem:[#allocation47_spill] sm:$0xff] %v15955_v63  ;;  %19957 = vst [vmem:[#allocation48_spill] sm:$0xff] %v15963_v5 }
 0x16a   : > { %12772 = vmatmul.mubr.msk.f32.gmra.mrb[22].mxu0 %vm504_vm2, %v15835_v8 }
 0x16b   : > { %12774 = vmatprep.mubr.msk.f32.mxu0 %vm504_vm2, %v15839_v44 }
 0x16e   : > { %12775 = vmatmul.mubr.msk.f32.gmra.mrb[24].mxu0 %vm504_vm2, %v15847_v21 }
 0x16f   : > { %12777 = vmatprep.mubr.msk.f32.mxu0 %vm504_vm2, %v15851_v48 }
 0x172   : > { %12778 = vmatmul.mubr.msk.f32.gmra.mrb[26].mxu0 %vm504_vm2, %v15860_v62 }
 0x173   : > { %12780 = vmatprep.mubr.msk.f32.mxu0 %vm504_vm2, %v15864_v27 }
 0x176   : > { %12781 = vmatmul.mubr.msk.f32.gmra.mrb[28].mxu0 %vm504_vm2, %v15879_v61 }
 0x177   : > { %12783 = vmatprep.mubr.msk.f32.mxu0 %vm504_vm2, %v15883_v1 }
 0x17a   : > { %12784 = vmatmul.mubr.msk.f32.gmra.mrb[30].mxu0 %vm504_vm2, %v15891_v6 }
 0x17b   : > { %12786 = vmatprep.mubr.msk.f32.mxu0 %vm504_vm2, %v15895_v15  ;;  %v16059_v15 = vld [vmem:[#allocation2 + $0x98] sm:$0xff] }
 0x17e   : > { %12787 = vmatmul.mubr.msk.f32.gmra.mrb[32].mxu0 %vm504_vm2, %v15903_v22  ;;  %v16057_v22 = vld [vmem:[#allocation2 + $0x90] sm:$0xff] }
 0x17f   : > { %12789 = vmatprep.mubr.msk.f32.mxu0 %vm504_vm2, %v15907_v46  ;;  %v16051_v46 = vld [vmem:[#allocation2 + $0x88] sm:$0xff] }
 0x182   : > { %12790 = vmatmul.mubr.msk.f32.gmra.mrb[34].mxu0 %vm504_vm2, %v15915_v56  ;;  %v16049_v56 = vld [vmem:[#allocation2 + $0x80] sm:$0xff] }
 0x183   : > { %12792 = vmatprep.mubr.msk.f32.mxu0 %vm504_vm2, %v15919_v17  ;;  %v16043_v17 = vld [vmem:[#allocation2 + $0x78] sm:$0xff] }
 0x186   : > { %12793 = vmatmul.mubr.msk.f32.gmra.mrb[36].mxu0 %vm504_vm2, %v15927_v37  ;;  %v16041_v37 = vld [vmem:[#allocation2 + $0x70] sm:$0xff] }
 0x187   : > { %12795 = vmatprep.mubr.msk.f32.mxu0 %vm504_vm2, %v15931_v24  ;;  %v1630_v24 = vrot.slane %v15588_v43, 2 }
 0x189   : > { %v15967_v47 = vsel %vm1540_vm5, %v1628_v60, %v1630_v24 }
 0x18a   : > { %12796 = vmatmul.mubr.msk.f32.gmra.mrb[38].mxu0 %vm504_vm2, %v15939_v42  ;;  %19958 = vst [vmem:[#allocation49_spill] sm:$0xff] %v15967_v47  ;;  %v15970_v42 = vrot.slane %v15604_v34, 2 }
 0x18b   : > { %12798 = vmatprep.mubr.msk.f32.mxu0 %vm504_vm2, %v15943_v13  ;;  %v1632_v13 = vrot.slane %v15602_v35, 2 }
 0x18c   : > { %19959 = vst [vmem:[#allocation50_spill] sm:$0xff] %v15970_v42  ;;  %v1637_v60 = vsel %vm1540_vm5, %v15970_v42, %v1636_v49  ;;  %v16007_v49 = vld [vmem:[#allocation2 + $0x30] sm:$0xff] }
 0x18d   : > { %v15977_v36 = vsel %vm1540_vm5, %v1630_v24, %v1632_v13  ;;  %v15997_v24 = vld [vmem:[#allocation2 + $0x28] sm:$0xff] }
 0x18e   : > { %12799 = vmatmul.mubr.msk.f32.gmra.mrb[40].mxu0 %vm504_vm2, %v15951_v59  ;;  %19960 = vst [vmem:[#allocation51_spill] sm:$0xff] %v15977_v36  ;;  %v16035_v59 = vld [vmem:[#allocation2 + $0x68] sm:$0xff] }
 0x18f   : > { %12801 = vmatprep.mubr.msk.f32.mxu0 %vm504_vm2, %v15955_v63  ;;  %v15982_v63 = vsel %vm1540_vm5, %v1632_v13, %v15970_v42  ;;  %v15999_v13 = vld [vmem:[#allocation6 + $0x14] sm:$0xf]  ;;  %v16019_v42 = vld [vmem:[#allocation2 + $0x48] sm:$0xff] }
 0x190   : > { %19961 = vst [vmem:[#allocation52_spill] sm:$0xff] %v15982_v63 }
 0x192   : > { %12802 = vmatmul.mubr.msk.f32.gmra.mrb[42].mxu0 %vm504_vm2, %v15963_v5  ;;  %v15990_v5 = vld [vmem:[#allocation2 + $0x18] sm:$0xff] }
 0x193   : > { %12804 = vmatprep.mubr.msk.f32.mxu0 %vm504_vm2, %v15967_v47  ;;  %v16033_v47 = vld [vmem:[#allocation2 + $0x60] sm:$0xff] }
 0x196   : > { %12805 = vmatmul.mubr.msk.f32.gmra.mrb[44].mxu0 %vm504_vm2, %v15977_v36  ;;  %v16027_v36 = vld [vmem:[#allocation2 + $0x58] sm:$0xff] }
 0x197   : > { %12807 = vmatprep.mubr.msk.f32.mxu0 %vm504_vm2, %v15982_v63  ;;  %v16017_v63 = vld [vmem:[#allocation2 + $0x40] sm:$0xff] }
 0x19a   : > { %12808 = vmatmul.mubr.msk.f32.gmra.mrb[46].mxu0 %vm504_vm2, %v1637_v60  ;;  %v16009_v60 = vld [vmem:[#allocation2 + $0x38] sm:$0xff] }
 0x19b   : > { %12812 = vmatprep.mubr.msk.f32.mxu0 %vm504_vm2, %v15990_v5 }
 0x19e   : > { %12813 = vmatmul.mubr.msk.f32.vlgmr.msra.gmra.mrb[0].mxu0 %vm504_vm2, %v15995_v32 }
 0x19f   : > { %12885 = vmatpush3.msk.msra.mxu0 %vm857_vm0, %v15753_v19  ;;  %12815 = vmatprep.mubr.msk.f32.mxu0 %vm504_vm2, %v15997_v24  ;;  %v16025_v19 = vld [vmem:[#allocation2 + $0x50] sm:$0xff] }
 0x1a0   : > { %12958 = vmatprep.subr.msk.mxu0 %vm857_vm0, %v15999_v13 }
 0x1a2   : > { %12816 = vmatmul.mubr.msk.f32.gmra.mrb[2].mxu0 %vm504_vm2, %v16007_v49 }
 0x1a3   : > { %12818 = vmatprep.mubr.msk.f32.mxu0 %vm504_vm2, %v16009_v60 }
 0x1a6   : > { %12819 = vmatmul.mubr.msk.f32.gmra.mrb[4].mxu0 %vm504_vm2, %v16017_v63 }
 0x1a7   : > { %12821 = vmatprep.mubr.msk.f32.mxu0 %vm504_vm2, %v16019_v42 }
 0x1aa   : > { %12822 = vmatmul.mubr.msk.f32.gmra.mrb[6].mxu0 %vm504_vm2, %v16025_v19 }
 0x1ab   : > { %12824 = vmatprep.mubr.msk.f32.mxu0 %vm504_vm2, %v16027_v36 }
 0x1ae   : > { %12825 = vmatmul.mubr.msk.f32.gmra.mrb[8].mxu0 %vm504_vm2, %v16033_v47 }
 0x1af   : > { %12827 = vmatprep.mubr.msk.f32.mxu0 %vm504_vm2, %v16035_v59 }
 0x1b2   : > { %12828 = vmatmul.mubr.msk.f32.gmra.mrb[10].mxu0 %vm504_vm2, %v16041_v37 }
 0x1b3   : > { %12830 = vmatprep.mubr.msk.f32.mxu0 %vm504_vm2, %v16043_v17 }
 0x1b6   : > { %12831 = vmatmul.mubr.msk.f32.gmra.mrb[12].mxu0 %vm504_vm2, %v16049_v56 }
 0x1b7   : > { %12833 = vmatprep.mubr.msk.f32.mxu0 %vm504_vm2, %v16051_v46 }
 0x1ba   : > { %12834 = vmatmul.mubr.msk.f32.gmra.mrb[14].mxu0 %vm504_vm2, %v16057_v22 }
 0x1bb   : > { %12836 = vmatprep.mubr.msk.f32.mxu0 %vm504_vm2, %v16059_v15 }
 0x1be   : > { %12837 = vmatmul.mubr.msk.f32.gmra.mrb[16].mxu0 %vm504_vm2, %v15355_v12  ;;  %v16121_v12 = vld [vmem:[#allocation2 + $0x180] sm:$0xff] }
 0x1bf   : > { %12839 = vmatprep.mubr.msk.f32.mxu0 %vm504_vm2, %v15372_v28  ;;  %v2580_v28 = vrot.slane %v15990_v5, 1 }
 0x1c2   : > { %12840 = vmatmul.mubr.msk.f32.gmra.mrb[18].mxu0 %vm504_vm2, %v15381_v39  ;;  %v16124_v39 = vld [vmem:[#allocation2 + $0x188] sm:$0xff] }
 0x1c3   : > { %12842 = vmatprep.mubr.msk.f32.mxu0 %vm504_vm2, %v15386_v41  ;;  %v2581_v41 = vrot.slane %v15995_v32, 1 }
 0x1c6   : > { %12843 = vmatmul.mubr.msk.f32.gmra.mrb[20].mxu0 %vm504_vm2, %v15411_v11  ;;  %v2583_v11 = vrot.slane %v15997_v24, 1 }
 0x1c7   : > { %12845 = vmatprep.mubr.msk.f32.mxu0 %vm504_vm2, %v15416_v18  ;;  %v16132_v18 = vld [vmem:[#allocation2 + $0x190] sm:$0xff] }
 0x1ca   : > { %12846 = vmatmul.mubr.msk.f32.gmra.mrb[22].mxu0 %vm504_vm2, %v15442_v30  ;;  %v2585_v30 = vrot.slane %v16007_v49, 1 }
 0x1cb   : > { %12848 = vmatprep.mubr.msk.f32.mxu0 %vm504_vm2, %v15444_v31  ;;  %v2582_v31 = vsel %vm663_vm4, %v2580_v28, %v2581_v41  ;;  %v2607_v28 = vrot.slane %v16051_v46, 1 }
 0x1ce   : > { %12849 = vmatmul.mubr.msk.f32.gmra.mrb[24].mxu0 %vm504_vm2, %v15458_v38  ;;  %v2584_v38 = vsel %vm663_vm4, %v2581_v41, %v2583_v11 }
 0x1cf   : > { %12851 = vmatprep.mubr.msk.f32.mxu0 %vm504_vm2, %v15460_v40  ;;  %v2589_v40 = vrot.slane %v16017_v63, 1 }
 0x1d2   : > { %12852 = vmatmul.mubr.msk.f32.gmra.mrb[26].mxu0 %vm504_vm2, %v15474_v50  ;;  %v2591_v50 = vrot.slane %v16019_v42, 1 }
 0x1d3   : > { %12854 = vmatprep.mubr.msk.f32.mxu0 %vm504_vm2, %v15476_v51 }
 0x1d6   : > { %12855 = vmatmul.mubr.msk.f32.gmra.mrb[28].mxu0 %vm504_vm2, %v15490_v57  ;;  %v2595_v57 = vrot.slane %v16027_v36, 1 }
 0x1d7   : > { %12857 = vmatprep.mubr.msk.f32.mxu0 %vm504_vm2, %v15492_v58  ;;  %v16165_v58 = vsel %vm663_vm4, %v2589_v40, %v2591_v50 }
 0x1da   : > { %12858 = vmatmul.mubr.msk.f32.gmra.mrb[30].mxu0 %vm504_vm2, %v15506_v14  ;;  %v2599_v14 = vrot.slane %v16035_v59, 1 }
 0x1db   : > { %12860 = vmatprep.mubr.msk.f32.mxu0 %vm504_vm2, %v15508_v16 }
 0x1de   : > { %12861 = vmatmul.mubr.msk.f32.gmra.mrb[32].mxu0 %vm504_vm2, %v15522_v29 }
 0x1df   : > { %12863 = vmatprep.mubr.msk.f32.mxu0 %vm504_vm2, %v15524_v33  ;;  %v2603_v33 = vrot.slane %v16043_v17, 1 }
 0x1e2   : > { %12864 = vmatmul.mubr.msk.f32.gmra.mrb[34].mxu0 %vm504_vm2, %v15538_v55 }
 0x1e3   : > { %12866 = vmatprep.mubr.msk.f32.mxu0 %vm504_vm2, %v15540_v3  ;;  %v2605_v3 = vrot.slane %v16049_v56, 1 }
 0x1e6   : > { %12867 = vmatmul.mubr.msk.f32.gmra.mrb[36].mxu0 %vm504_vm2, %v15554_v7  ;;  %v2601_v7 = vrot.slane %v16041_v37, 1 }
 0x1e7   : > { %12869 = vmatprep.mubr.msk.f32.mxu0 %vm504_vm2, %v15556_v4 }
 0x1e8   : > { %v16201_v41 = vsel %vm663_vm4, %v2601_v7, %v2603_v33 }
 0x1ea   : > { %12870 = vmatmul.mubr.msk.f32.gmra.mrb[38].mxu0 %vm504_vm2, %v15570_v2  ;;  %v2597_v2 = vrot.slane %v16033_v47, 1 }
 0x1eb   : > { %12872 = vmatprep.mubr.msk.f32.mxu0 %vm504_vm2, %v15572_v54 }
 0x1ec   : > { %v16181_v29 = vsel %vm663_vm4, %v2595_v57, %v2597_v2  ;;  %v16189_v55 = vsel %vm663_vm4, %v2597_v2, %v2599_v14  ;;  %v19966_v2 = vld [vmem:[#allocation17_spill] sm:$0xff] }
 0x1ee   : > { %12873 = vmatmul.mubr.msk.f32.gmra.mrb[40].mxu0 %vm504_vm2, %v15586_v52  ;;  %v2593_v52 = vrot.slane %v16025_v19, 1 }
 0x1ef   : > { %12875 = vmatprep.mubr.msk.f32.mxu0 %vm504_vm2, %v15588_v43  ;;  %v16143_v43 = vld [vmem:[#allocation6 + $0x18] sm:$0xf] }
 0x1f0   : > { %v16169_v4 = vsel %vm663_vm4, %v2591_v50, %v2593_v52  ;;  %v16177_v16 = vsel %vm663_vm4, %v2593_v52, %v2595_v57  ;;  %v19962_v50 = vld [vmem:[#allocation13_spill] sm:$0xff]  ;;  %v19963_v52 = vld [vmem:[#allocation14_spill] sm:$0xff]  ;;  %v19965_v57 = vld [vmem:[#allocation16_spill] sm:$0xff] }
 0x1f2   : > { %12876 = vmatmul.mubr.msk.f32.gmra.mrb[42].mxu0 %vm504_vm2, %v15602_v35  ;;  %v2586_v35 = vsel %vm663_vm4, %v2583_v11, %v2585_v30  ;;  %v2609_v11 = vrot.slane %v16057_v22, 1 }
 0x1f3   : > { %12878 = vmatprep.mubr.msk.f32.mxu0 %vm504_vm2, %v15604_v34  ;;  %v2587_v34 = vrot.slane %v16009_v60, 1 }
 0x1f5   : > { %v16151_v51 = vsel %vm663_vm4, %v2585_v30, %v2587_v34  ;;  %v16155_v54 = vsel %vm663_vm4, %v2587_v34, %v2589_v40  ;;  %v16205_v30 = vsel %vm663_vm4, %v2603_v33, %v2605_v3  ;;  %v16215_v34 = vsel %vm663_vm4, %v2605_v3, %v2607_v28  ;;  %v19972_v33 = vld [vmem:[#allocation23_spill] sm:$0xff]  ;;  %v19973_v3 = vld [vmem:[#allocation24_spill] sm:$0xff] }
 0x1f6   : > { %12879 = vmatmul.mubr.msk.f32.gmra.mrb[44].mxu0 %vm504_vm2, %v16121_v12 }
 0x1f7   : > { %12881 = vmatprep.mubr.msk.f32.mxu0 %vm504_vm2, %v16124_v39 }
 0x1fa   : > { %12882 = vmatmul.mubr.msk.f32.gmra.mrb[46].mxu0 %vm504_vm2, %v16132_v18 }
 0x1fb   : > { %12886 = vmatprep.mubr.msk.f32.mxu0 %vm504_vm2, %v2582_v31  ;;  %v16210_v31 = vrot.slane %v16059_v15, 1 }
 0x1fd   : > { %v16226_v40 = vsel %vm663_vm4, %v2609_v11, %v16210_v31 }
 0x1fe   : > { %12887 = vmatmul.mubr.msk.f32.vlgmr.msra.gmra.mrb[0].mxu0 %vm504_vm2, %v2584_v38  ;;  %v16218_v38 = vsel %vm663_vm4, %v2607_v28, %v2609_v11  ;;  %v19974_v28 = vld [vmem:[#allocation25_spill] sm:$0xff]  ;;  %v19975_v11 = vld [vmem:[#allocation26_spill] sm:$0xff] }
 0x1ff   : > { %12959 = vmatpush3.msk.msra.mxu0 %vm857_vm0, %v15999_v13  ;;  %12889 = vmatprep.mubr.msk.f32.mxu0 %vm504_vm2, %v2586_v35  ;;  %v16193_v13 = vsel %vm663_vm4, %v2599_v14, %v2601_v7  ;;  %v2614_v35 = vsel %vm663_vm4, %v16210_v31, %v15370_v26  ;;  %v19964_v26 = vld [vmem:[#allocation15_spill] sm:$0xff]  ;;  %v19970_v14 = vld [vmem:[#allocation21_spill] sm:$0xff]  ;;  %v19971_v7 = vld [vmem:[#allocation22_spill] sm:$0xff] }
 0x200   : > { %13032 = vmatprep.subr.msk.mxu0 %vm857_vm0, %v16143_v43 }
 0x202   : > { %12890 = vmatmul.mubr.msk.f32.gmra.mrb[2].mxu0 %vm504_vm2, %v16151_v51 }
 0x203   : > { %12892 = vmatprep.mubr.msk.f32.mxu0 %vm504_vm2, %v16155_v54 }
 0x206   : > { %12893 = vmatmul.mubr.msk.f32.gmra.mrb[4].mxu0 %vm504_vm2, %v16165_v58 }
 0x207   : > { %12895 = vmatprep.mubr.msk.f32.mxu0 %vm504_vm2, %v16169_v4 }
 0x20a   : > { %12896 = vmatmul.mubr.msk.f32.gmra.mrb[6].mxu0 %vm504_vm2, %v16177_v16 }
 0x20b   : > { %12898 = vmatprep.mubr.msk.f32.mxu0 %vm504_vm2, %v16181_v29 }
 0x20e   : > { %12899 = vmatmul.mubr.msk.f32.gmra.mrb[8].mxu0 %vm504_vm2, %v16189_v55 }
 0x20f   : > { %12901 = vmatprep.mubr.msk.f32.mxu0 %vm504_vm2, %v16193_v13 }
 0x212   : > { %12902 = vmatmul.mubr.msk.f32.gmra.mrb[10].mxu0 %vm504_vm2, %v16201_v41 }
 0x213   : > { %12904 = vmatprep.mubr.msk.f32.mxu0 %vm504_vm2, %v16205_v30 }
 0x216   : > { %12905 = vmatmul.mubr.msk.f32.gmra.mrb[12].mxu0 %vm504_vm2, %v16215_v34 }
 0x217   : > { %12907 = vmatprep.mubr.msk.f32.mxu0 %vm504_vm2, %v16218_v38 }
 0x21a   : > { %12908 = vmatmul.mubr.msk.f32.gmra.mrb[14].mxu0 %vm504_vm2, %v16226_v40 }
 0x21b   : > { %12910 = vmatprep.mubr.msk.f32.mxu0 %vm504_vm2, %v2614_v35  ;;  %v19976_v35 = vld [vmem:[#allocation27_spill] sm:$0xff] }
 0x21e   : > { %12911 = vmatmul.mubr.msk.f32.gmra.mrb[16].mxu0 %vm504_vm2, %v15409_v10  ;;  %v19967_v10 = vld [vmem:[#allocation18_spill] sm:$0xff] }
 0x21f   : > { %12913 = vmatprep.mubr.msk.f32.mxu0 %vm504_vm2, %v15433_v23  ;;  %v19968_v23 = vld [vmem:[#allocation19_spill] sm:$0xff] }
 0x222   : > { %12914 = vmatmul.mubr.msk.f32.gmra.mrb[18].mxu0 %vm504_vm2, %v15439_v25  ;;  %v19969_v25 = vld [vmem:[#allocation20_spill] sm:$0xff] }
 0x223   : > { %12916 = vmatprep.mubr.msk.f32.mxu0 %vm504_vm2, %v19962_v50  ;;  %v19977_v50 = vld [vmem:[#allocation28_spill] sm:$0xff] }
 0x226   : > { %12917 = vmatmul.mubr.msk.f32.gmra.mrb[20].mxu0 %vm504_vm2, %v19963_v52  ;;  %v19978_v52 = vld [vmem:[#allocation29_spill] sm:$0xff] }
 0x227   : > { %12919 = vmatprep.mubr.msk.f32.mxu0 %vm504_vm2, %v19964_v26  ;;  %v19979_v26 = vld [vmem:[#allocation30_spill] sm:$0xff] }
 0x22a   : > { %12920 = vmatmul.mubr.msk.f32.gmra.mrb[22].mxu0 %vm504_vm2, %v19965_v57  ;;  %v19980_v57 = vld [vmem:[#allocation31_spill] sm:$0xff] }
 0x22b   : > { %12922 = vmatprep.mubr.msk.f32.mxu0 %vm504_vm2, %v19966_v2  ;;  %v19981_v2 = vld [vmem:[#allocation32_spill] sm:$0xff] }
 0x22e   : > { %12923 = vmatmul.mubr.msk.f32.gmra.mrb[24].mxu0 %vm504_vm2, %v19967_v10  ;;  %v16283_v10 = vrot.slane %v16121_v12, 1 }
 0x22f   : > { %12925 = vmatprep.mubr.msk.f32.mxu0 %vm504_vm2, %v19968_v23  ;;  %v19982_v23 = vld [vmem:[#allocation33_spill] sm:$0xff] }
 0x232   : > { %12926 = vmatmul.mubr.msk.f32.gmra.mrb[26].mxu0 %vm504_vm2, %v19969_v25  ;;  %v2671_v25 = vrot.slane %v16124_v39, 1 }
 0x233   : > { %12928 = vmatprep.mubr.msk.f32.mxu0 %vm504_vm2, %v19970_v14  ;;  %v19983_v14 = vld [vmem:[#allocation35_spill] sm:$0xff] }
 0x236   : > { %12929 = vmatmul.mubr.msk.f32.gmra.mrb[28].mxu0 %vm504_vm2, %v19971_v7  ;;  %v16291_v7 = vrot.slane %v16132_v18, 1 }
 0x237   : > { %12931 = vmatprep.mubr.msk.f32.mxu0 %vm504_vm2, %v19972_v33 }
 0x23a   : > { %12932 = vmatmul.mubr.msk.f32.gmra.mrb[30].mxu0 %vm504_vm2, %v19973_v3  ;;  %v16296_v3 = vld [vmem:[#allocation2 + $0x198] sm:$0x3] }
 0x23b   : > { %12934 = vmatprep.mubr.msk.f32.mxu0 %vm504_vm2, %v19974_v28  ;;  %v19985_v28 = vld [vmem:[#allocation36_spill] sm:$0xff] }
 0x23e   : > { %12935 = vmatmul.mubr.msk.f32.gmra.mrb[32].mxu0 %vm504_vm2, %v19975_v11  ;;  %v16303_v11 = vsel %vm663_vm4, %v16283_v10, %v2671_v25 }
 0x23f   : > { %12937 = vmatprep.mubr.msk.f32.mxu0 %vm504_vm2, %v19976_v35  ;;  %v2675_v35 = vrot.slane %v16296_v3, 1 }
 0x242   : > { %12938 = vmatmul.mubr.msk.f32.gmra.mrb[34].mxu0 %vm504_vm2, %v19977_v50  ;;  %v3099_v50 = vrot.slane %v15990_v5, 2 }
 0x243   : > { %12940 = vmatprep.mubr.msk.f32.mxu0 %vm504_vm2, %v19978_v52  ;;  %v16309_v52 = vsel %vm663_vm4, %v2671_v25, %v16291_v7  ;;  %v3106_v25 = vrot.slane %v16009_v60, 2 }
 0x246   : > { %12941 = vmatmul.mubr.msk.f32.gmra.mrb[36].mxu0 %vm504_vm2, %v19979_v26  ;;  %v3100_v26 = vrot.slane %v15995_v32, 2 }
 0x247   : > { %12943 = vmatprep.mubr.msk.f32.mxu0 %vm504_vm2, %v15595_v20  ;;  %v19984_v20 = vld [vmem:[#allocation34_spill] sm:$0xff] }
 0x248   : > { %v2670_v33 = vsel %vm663_vm4, %v19984_v20, %v16283_v10  ;;  %v3101_v5 = vsel %vm1540_vm5, %v3099_v50, %v3100_v26  ;;  %v16327_v20 = vld [vmem:[#allocation6 + $0x1c] sm:$0xf] }
 0x24a   : > { %12944 = vmatmul.mubr.msk.f32.gmra.mrb[38].mxu0 %vm504_vm2, %v19980_v57  ;;  %v3102_v57 = vrot.slane %v15997_v24, 2  ;;  %v3108_v24 = vrot.slane %v16017_v63, 2 }
 0x24b   : > { %12946 = vmatprep.mubr.msk.f32.mxu0 %vm504_vm2, %v19981_v2  ;;  %v2676_v2 = vsel %vm663_vm4, %v16291_v7, %v2675_v35  ;;  %v3112_v35 = vrot.slane %v16025_v19, 2 }
 0x24c   : > { %v3103_v32 = vsel %vm1540_vm5, %v3100_v26, %v3102_v57  ;;  %v16339_v50 = vsel %vm1540_vm5, %v3106_v25, %v3108_v24  ;;  %v3114_v26 = vrot.slane %v16027_v36, 2 }
 0x24e   : > { %12947 = vmatmul.mubr.msk.f32.gmra.mrb[40].mxu0 %vm504_vm2, %v19982_v23  ;;  %v3104_v23 = vrot.slane %v16007_v49, 2 }
 0x24f   : > { %12949 = vmatprep.mubr.msk.f32.mxu0 %vm504_vm2, %v19983_v14 }
 0x250   : > { %v3105_v14 = vsel %vm1540_vm5, %v3102_v57, %v3104_v23  ;;  %v3116_v57 = vrot.slane %v16033_v47, 2 }
 0x252   : > { %12950 = vmatmul.mubr.msk.f32.gmra.mrb[42].mxu0 %vm504_vm2, %v19985_v28  ;;  %v16335_v28 = vsel %vm1540_vm5, %v3104_v23, %v3106_v25  ;;  %v3118_v23 = vrot.slane %v16035_v59, 2  ;;  %v3120_v25 = vrot.slane %v16041_v37, 2 }
 0x253   : > { %12952 = vmatprep.mubr.msk.f32.mxu0 %vm504_vm2, %v2670_v33  ;;  %v3110_v33 = vrot.slane %v16019_v42, 2 }
 0x256   : > { %12953 = vmatmul.mubr.msk.f32.gmra.mrb[44].mxu0 %vm504_vm2, %v16303_v11 }
 0x257   : > { %12955 = vmatprep.mubr.msk.f32.mxu0 %vm504_vm2, %v16309_v52 }
 0x25a   : > { %12956 = vmatmul.mubr.msk.f32.gmra.mrb[46].mxu0 %vm504_vm2, %v2676_v2  ;;  %v16353_v2 = vsel %vm1540_vm5, %v3110_v33, %v3112_v35 }
 0x25b   : > { %12960 = vmatprep.mubr.msk.f32.mxu0 %vm504_vm2, %v3101_v5  ;;  %v16361_v5 = vsel %vm1540_vm5, %v3112_v35, %v3114_v26  ;;  %v16377_v35 = vsel %vm1540_vm5, %v3118_v23, %v3120_v25 }
 0x25c   : > { %19986 = vst [vmem:[#allocation13_spill] sm:$0xff] %v16361_v5 }
 0x25e   : > { %12961 = vmatmul.mubr.msk.f32.vlgmr.msra.gmra.mrb[0].mxu0 %vm504_vm2, %v3103_v32  ;;  %v16365_v32 = vsel %vm1540_vm5, %v3114_v26, %v3116_v57  ;;  %v3126_v26 = vrot.slane %v16051_v46, 2 }
 0x25f   : > { %13033 = vmatpush3.msk.msra.mxu0 %vm857_vm0, %v16143_v43  ;;  %12963 = vmatprep.mubr.msk.f32.mxu0 %vm504_vm2, %v3105_v14  ;;  %v16349_v43 = vsel %vm1540_vm5, %v3108_v24, %v3110_v33  ;;  %19987 = vst [vmem:[#allocation14_spill] sm:$0xff] %v16365_v32  ;;  %v3122_v24 = vrot.slane %v16043_v17, 2  ;;  %v16373_v14 = vsel %vm1540_vm5, %v3116_v57, %v3118_v23  ;;  %v3124_v33 = vrot.slane %v16049_v56, 2 }
 0x260   : > { %13106 = vmatprep.subr.msk.mxu0 %vm857_vm0, %v16327_v20  ;;  %19988 = vst [vmem:[#allocation15_spill] sm:$0xff] %v16373_v14  ;;  %v16394_v23 = vrot.slane %v16059_v15, 2 }
 0x261   : > { %v16389_v57 = vsel %vm1540_vm5, %v3122_v24, %v3124_v33 }
 0x262   : > { %12964 = vmatmul.mubr.msk.f32.gmra.mrb[2].mxu0 %vm504_vm2, %v16335_v28  ;;  %19989 = vst [vmem:[#allocation16_spill] sm:$0xff] %v16389_v57 }
 0x263   : > { %12966 = vmatprep.mubr.msk.f32.mxu0 %vm504_vm2, %v16339_v50 }
 0x266   : > { %12967 = vmatmul.mubr.msk.f32.gmra.mrb[4].mxu0 %vm504_vm2, %v16349_v43 }
 0x267   : > { %12969 = vmatprep.mubr.msk.f32.mxu0 %vm504_vm2, %v16353_v2 }
 0x26a   : > { %12970 = vmatmul.mubr.msk.f32.gmra.mrb[6].mxu0 %vm504_vm2, %v16361_v5  ;;  %v16385_v5 = vsel %vm1540_vm5, %v3120_v25, %v3122_v24 }
 0x26b   : > { %12972 = vmatprep.mubr.msk.f32.mxu0 %vm504_vm2, %v16365_v32  ;;  %v3128_v32 = vrot.slane %v16057_v22, 2 }
 0x26d   : > { %v16402_v25 = vsel %vm1540_vm5, %v3126_v26, %v3128_v32  ;;  %v16410_v24 = vsel %vm1540_vm5, %v3128_v32, %v16394_v23  ;;  %v20003_v32 = vld [vmem:[#allocation49_spill] sm:$0xff] }
 0x26e   : > { %12973 = vmatmul.mubr.msk.f32.gmra.mrb[8].mxu0 %vm504_vm2, %v16373_v14  ;;  %v16399_v14 = vsel %vm1540_vm5, %v3124_v33, %v3126_v26  ;;  %v3190_v33 = vrot.slane %v16124_v39, 2  ;;  %v20004_v26 = vld [vmem:[#allocation51_spill] sm:$0xff] }
 0x26f   : > { %12975 = vmatprep.mubr.msk.f32.mxu0 %vm504_vm2, %v16377_v35 }
 0x272   : > { %12976 = vmatmul.mubr.msk.f32.gmra.mrb[10].mxu0 %vm504_vm2, %v16385_v5 }
 0x273   : > { %12978 = vmatprep.mubr.msk.f32.mxu0 %vm504_vm2, %v16389_v57  ;;  %v3133_v57 = vsel %vm1540_vm5, %v16394_v23, %v15805_v45  ;;  %v19990_v45 = vld [vmem:[#allocation37_spill] sm:$0xff] }
 0x276   : > { %12979 = vmatmul.mubr.msk.f32.gmra.mrb[12].mxu0 %vm504_vm2, %v16399_v14 }
 0x277   : > { %12981 = vmatprep.mubr.msk.f32.mxu0 %vm504_vm2, %v16402_v25 }
 0x27a   : > { %12982 = vmatmul.mubr.msk.f32.gmra.mrb[14].mxu0 %vm504_vm2, %v16410_v24 }
 0x27b   : > { %12984 = vmatprep.mubr.msk.f32.mxu0 %vm504_vm2, %v3133_v57  ;;  %v16475_v57 = vrot.slane %v16132_v18, 2 }
 0x27d   : > { %20005 = vst [vmem:[#allocation18_spill] sm:$0xff] %v16475_v57 }
 0x27e   : > { %12985 = vmatmul.mubr.msk.f32.gmra.mrb[16].mxu0 %vm504_vm2, %v15816_v53  ;;  %v19991_v53 = vld [vmem:[#allocation38_spill] sm:$0xff] }
 0x27f   : > { %12987 = vmatprep.mubr.msk.f32.mxu0 %vm504_vm2, %v15823_v0  ;;  %v19992_v0 = vld [vmem:[#allocation39_spill] sm:$0xff] }
 0x282   : > { %12988 = vmatmul.mubr.msk.f32.gmra.mrb[18].mxu0 %vm504_vm2, %v15827_v9  ;;  %v19993_v9 = vld [vmem:[#allocation40_spill] sm:$0xff] }
 0x283   : > { %12990 = vmatprep.mubr.msk.f32.mxu0 %vm504_vm2, %v15835_v8  ;;  %v19994_v8 = vld [vmem:[#allocation41_spill] sm:$0xff] }
 0x286   : > { %12991 = vmatmul.mubr.msk.f32.gmra.mrb[20].mxu0 %vm504_vm2, %v15839_v44  ;;  %v19995_v44 = vld [vmem:[#allocation42_spill] sm:$0xff] }
 0x287   : > { %12993 = vmatprep.mubr.msk.f32.mxu0 %vm504_vm2, %v15847_v21  ;;  %v19996_v21 = vld [vmem:[#allocation43_spill] sm:$0xff] }
 0x28a   : > { %12994 = vmatmul.mubr.msk.f32.gmra.mrb[22].mxu0 %vm504_vm2, %v15851_v48  ;;  %v19997_v48 = vld [vmem:[#allocation44_spill] sm:$0xff] }
 0x28b   : > { %12996 = vmatprep.mubr.msk.f32.mxu0 %vm504_vm2, %v15860_v62  ;;  %v19998_v62 = vld [vmem:[#allocation45_spill] sm:$0xff] }
 0x28e   : > { %12997 = vmatmul.mubr.msk.f32.gmra.mrb[24].mxu0 %vm504_vm2, %v15864_v27  ;;  %v19999_v27 = vld [vmem:[#allocation46_spill] sm:$0xff] }
 0x28f   : > { %12999 = vmatprep.mubr.msk.f32.mxu0 %vm504_vm2, %v15879_v61  ;;  %v20000_v61 = vld [vmem:[#allocation47_spill] sm:$0xff] }
 0x292   : > { %13000 = vmatmul.mubr.msk.f32.gmra.mrb[26].mxu0 %vm504_vm2, %v15883_v1  ;;  %v20001_v1 = vld [vmem:[#allocation48_spill] sm:$0xff] }
 0x293   : > { %13002 = vmatprep.mubr.msk.f32.mxu0 %vm504_vm2, %v15891_v6  ;;  %v16467_v6 = vrot.slane %v16121_v12, 2 }
 0x295   : > { %20002 = vst [vmem:[#allocation17_spill] sm:$0xff] %v16467_v6 }
 0x296   : > { %13003 = vmatmul.mubr.msk.f32.gmra.mrb[28].mxu0 %vm504_vm2, %v19990_v45  ;;  %v20006_v45 = vld [vmem:[#allocation50_spill] sm:$0xff] }
 0x297   : > { %13005 = vmatprep.mubr.msk.f32.mxu0 %vm504_vm2, %v19991_v53  ;;  %v3189_v53 = vsel %vm1540_vm5, %v20006_v45, %v16467_v6  ;;  %v16608_v45 = vld [vmem:[#allocation2 + $0x130] sm:$0xff] }
 0x29a   : > { %13006 = vmatmul.mubr.msk.f32.gmra.mrb[30].mxu0 %vm504_vm2, %v19992_v0  ;;  %v20007_v0 = vld [vmem:[#allocation52_spill] sm:$0xff] }
 0x29b   : > { %13008 = vmatprep.mubr.msk.f32.mxu0 %vm504_vm2, %v19993_v9  ;;  %v16485_v9 = vsel %vm1540_vm5, %v16467_v6, %v3190_v33  ;;  %v16664_v6 = vld [vmem:[#allocation2 + $0x1a8] sm:$0xff] }
 0x29c   : > { %20008 = vst [vmem:[#allocation19_spill] sm:$0xff] %v16485_v9 }
 0x29e   : > { %13009 = vmatmul.mubr.msk.f32.gmra.mrb[32].mxu0 %vm504_vm2, %v19994_v8  ;;  %v3194_v8 = vrot.slane %v16296_v3, 2 }
 0x29f   : > { %13011 = vmatprep.mubr.msk.f32.mxu0 %vm504_vm2, %v19995_v44  ;;  %v16490_v44 = vsel %vm1540_vm5, %v3190_v33, %v16475_v57 }
 0x2a0   : > { %20009 = vst [vmem:[#allocation20_spill] sm:$0xff] %v16490_v44 }
 0x2a2   : > { %13012 = vmatmul.mubr.msk.f32.gmra.mrb[34].mxu0 %vm504_vm2, %v19996_v21  ;;  %v3195_v21 = vsel %vm1540_vm5, %v16475_v57, %v3194_v8  ;;  %v16622_v8 = vld [vmem:[#allocation2 + $0x148] sm:$0xff]  ;;  %v16656_v57 = vld [vmem:[#allocation2 + $0x198] sm:$0xff] }
 0x2a3   : > { %13014 = vmatprep.mubr.msk.f32.mxu0 %vm504_vm2, %v19997_v48  ;;  %v16501_v48 = vld [vmem:[#allocation6 + $0x20] sm:$0xf] }
 0x2a6   : > { %13015 = vmatmul.mubr.msk.f32.gmra.mrb[36].mxu0 %vm504_vm2, %v19998_v62 }
 0x2a7   : > { %13017 = vmatprep.mubr.msk.f32.mxu0 %vm504_vm2, %v19999_v27  ;;  %v16586_v27 = vld [vmem:[#allocation2 + $0x108] sm:$0xff] }
 0x2aa   : > { %13018 = vmatmul.mubr.msk.f32.gmra.mrb[38].mxu0 %vm504_vm2, %v20000_v61  ;;  %v16589_v61 = vld [vmem:[#allocation2 + $0x110] sm:$0xff] }
 0x2ab   : > { %13020 = vmatprep.mubr.msk.f32.mxu0 %vm504_vm2, %v20001_v1  ;;  %v16595_v1 = vld [vmem:[#allocation2 + $0x118] sm:$0xff] }
 0x2ae   : > { %13021 = vmatmul.mubr.msk.f32.gmra.mrb[40].mxu0 %vm504_vm2, %v20003_v32  ;;  %v16597_v32 = vld [vmem:[#allocation2 + $0x120] sm:$0xff] }
 0x2af   : > { %13023 = vmatprep.mubr.msk.f32.mxu0 %vm504_vm2, %v20004_v26  ;;  %v16605_v26 = vld [vmem:[#allocation2 + $0x128] sm:$0xff] }
 0x2b2   : > { %13024 = vmatmul.mubr.msk.f32.gmra.mrb[42].mxu0 %vm504_vm2, %v20007_v0  ;;  %v16616_v0 = vld [vmem:[#allocation2 + $0x140] sm:$0xff] }
 0x2b3   : > { %13026 = vmatprep.mubr.msk.f32.mxu0 %vm504_vm2, %v3189_v53  ;;  %v16614_v53 = vld [vmem:[#allocation2 + $0x138] sm:$0xff] }
 0x2b6   : > { %13027 = vmatmul.mubr.msk.f32.gmra.mrb[44].mxu0 %vm504_vm2, %v16485_v9  ;;  %v16658_v9 = vld [vmem:[#allocation2 + $0x1a0] sm:$0xff] }
 0x2b7   : > { %13029 = vmatprep.mubr.msk.f32.mxu0 %vm504_vm2, %v16490_v44  ;;  %v16646_v44 = vld [vmem:[#allocation2 + $0x178] sm:$0xff] }
 0x2ba   : > { %13030 = vmatmul.mubr.msk.f32.gmra.mrb[46].mxu0 %vm504_vm2, %v3195_v21  ;;  %v16624_v21 = vld [vmem:[#allocation2 + $0x150] sm:$0xff] }
 0x2bb   : > { %13034 = vmatprep.mubr.msk.f32.mxu0 %vm504_vm2, %v16007_v49  ;;  %v16577_v49 = vld [vmem:[#allocation2 + $0xf8] sm:$0xff] }
 0x2be   : > { %13035 = vmatmul.mubr.msk.f32.vlgmr.msra.gmra.mrb[0].mxu0 %vm504_vm2, %v16009_v60  ;;  %v16579_v60 = vld [vmem:[#allocation2 + $0x100] sm:$0xff] }
 0x2bf   : > { %13107 = vmatpush3.msk.msra.mxu0 %vm857_vm0, %v16327_v20  ;;  %13037 = vmatprep.mubr.msk.f32.mxu0 %vm504_vm2, %v16017_v63  ;;  %v16563_v63 = vld [vmem:[#allocation2 + $0xe0] sm:$0xff] }
 0x2c0   : > { %13180 = vmatprep.subr.msk.mxu0 %vm857_vm0, %v16501_v48 }
 0x2c2   : > { %13038 = vmatmul.mubr.msk.f32.gmra.mrb[2].mxu0 %vm504_vm2, %v16019_v42  ;;  %v16531_v42 = vld [vmem:[#allocation2 + $0xa0] sm:$0xff] }
 0x2c3   : > { %13040 = vmatprep.mubr.msk.f32.mxu0 %vm504_vm2, %v16025_v19  ;;  %v14931_v19 = vmov 0.0  }
 0x2c4   : > { %v283_v3 = vrot.slane %v14931_v19, 1  ;;  %v366_v20 = vrot.slane %v14931_v19, 7  ;;  %v16630_v19 = vld [vmem:[#allocation2 + $0x158] sm:$0xff] }
 0x2c6   : > { %13041 = vmatmul.mubr.msk.f32.gmra.mrb[4].mxu0 %vm504_vm2, %v16027_v36  ;;  %v16571_v36 = vld [vmem:[#allocation2 + $0xf0] sm:$0xff]  ;;  %v468_v62 = vsel %vm317_vm1, %v283_v3, %v366_v20  ;;  %v16632_v3 = vld [vmem:[#allocation2 + $0x160] sm:$0xff]  ;;  %v16638_v20 = vld [vmem:[#allocation2 + $0x168] sm:$0xff] }
 0x2c7   : > { %13043 = vmatprep.mubr.msk.f32.mxu0 %vm504_vm2, %v16033_v47  ;;  %v16569_v47 = vld [vmem:[#allocation2 + $0xe8] sm:$0xff]  ;;  %559 = vst.msk [vmem:[#allocation2 + $0x1b0] sm:$0xff] %vm504_vm2, %v468_v62 }
 0x2ca   : > { %13044 = vmatmul.mubr.msk.f32.gmra.mrb[6].mxu0 %vm504_vm2, %v16035_v59  ;;  %v16561_v59 = vld [vmem:[#allocation2 + $0xd8] sm:$0xff] }
 0x2cb   : > { %13046 = vmatprep.mubr.msk.f32.mxu0 %vm504_vm2, %v16041_v37  ;;  %v16537_v37 = vld [vmem:[#allocation2 + $0xa8] sm:$0xff] }
 0x2ce   : > { %13047 = vmatmul.mubr.msk.f32.gmra.mrb[8].mxu0 %vm504_vm2, %v16043_v17  ;;  %v16539_v17 = vld [vmem:[#allocation2 + $0xb0] sm:$0xff] }
 0x2cf   : > { %13049 = vmatprep.mubr.msk.f32.mxu0 %vm504_vm2, %v16049_v56  ;;  %v16555_v56 = vld [vmem:[#allocation2 + $0xd0] sm:$0xff] }
 0x2d0   : > { %v16601_v33 = vld [vmem:[#allocation2 + $0x1b0] sm:$0x3] }
 0x2d1   : > { %5745 = vst.msk [vmem:[#allocation2 + $0x1b0] sm:$0xff] %vm504_vm2, %v468_v62  ;;  %v16640_v62 = vld [vmem:[#allocation2 + $0x170] sm:$0xff] }
 0x2d2   : > { %13050 = vmatmul.mubr.msk.f32.gmra.mrb[10].mxu0 %vm504_vm2, %v16051_v46  ;;  %v16545_v46 = vld [vmem:[#allocation2 + $0xb8] sm:$0xff] }
 0x2d3   : > { %13052 = vmatprep.mubr.msk.f32.mxu0 %vm504_vm2, %v16057_v22  ;;  %v16547_v22 = vld [vmem:[#allocation2 + $0xc0] sm:$0xff] }
 0x2d6   : > { %13053 = vmatmul.mubr.msk.f32.gmra.mrb[12].mxu0 %vm504_vm2, %v16059_v15  ;;  %v16553_v15 = vld [vmem:[#allocation2 + $0xc8] sm:$0xff] }
 0x2d7   : > { %13055 = vmatprep.mubr.msk.f32.mxu0 %vm504_vm2, %v16531_v42 }
 0x2da   : > { %13056 = vmatmul.mubr.msk.f32.gmra.mrb[14].mxu0 %vm504_vm2, %v16537_v37 }
 0x2db   : > { %13058 = vmatprep.mubr.msk.f32.mxu0 %vm504_vm2, %v16539_v17 }
 0x2de   : > { %13059 = vmatmul.mubr.msk.f32.gmra.mrb[16].mxu0 %vm504_vm2, %v16545_v46 }
 0x2df   : > { %13061 = vmatprep.mubr.msk.f32.mxu0 %vm504_vm2, %v16547_v22 }
 0x2e2   : > { %13062 = vmatmul.mubr.msk.f32.gmra.mrb[18].mxu0 %vm504_vm2, %v16553_v15 }
 0x2e3   : > { %13064 = vmatprep.mubr.msk.f32.mxu0 %vm504_vm2, %v16555_v56 }
 0x2e6   : > { %13065 = vmatmul.mubr.msk.f32.gmra.mrb[20].mxu0 %vm504_vm2, %v16561_v59 }
 0x2e7   : > { %13067 = vmatprep.mubr.msk.f32.mxu0 %vm504_vm2, %v16563_v63 }
 0x2ea   : > { %13068 = vmatmul.mubr.msk.f32.gmra.mrb[22].mxu0 %vm504_vm2, %v16569_v47 }
 0x2eb   : > { %13070 = vmatprep.mubr.msk.f32.mxu0 %vm504_vm2, %v16571_v36 }
 0x2ee   : > { %13071 = vmatmul.mubr.msk.f32.gmra.mrb[24].mxu0 %vm504_vm2, %v16577_v49 }
 0x2ef   : > { %13073 = vmatprep.mubr.msk.f32.mxu0 %vm504_vm2, %v16579_v60 }
 0x2f2   : > { %13074 = vmatmul.mubr.msk.f32.gmra.mrb[26].mxu0 %vm504_vm2, %v16586_v27 }
 0x2f3   : > { %13076 = vmatprep.mubr.msk.f32.mxu0 %vm504_vm2, %v16589_v61 }
 0x2f6   : > { %13077 = vmatmul.mubr.msk.f32.gmra.mrb[28].mxu0 %vm504_vm2, %v16595_v1 }
 0x2f7   : > { %13079 = vmatprep.mubr.msk.f32.mxu0 %vm504_vm2, %v16597_v32 }
 0x2fa   : > { %13080 = vmatmul.mubr.msk.f32.gmra.mrb[30].mxu0 %vm504_vm2, %v16605_v26 }
 0x2fb   : > { %13082 = vmatprep.mubr.msk.f32.mxu0 %vm504_vm2, %v16608_v45 }
 0x2fe   : > { %13083 = vmatmul.mubr.msk.f32.gmra.mrb[32].mxu0 %vm504_vm2, %v16614_v53 }
 0x2ff   : > { %13085 = vmatprep.mubr.msk.f32.mxu0 %vm504_vm2, %v16616_v0 }
 0x302   : > { %13086 = vmatmul.mubr.msk.f32.gmra.mrb[34].mxu0 %vm504_vm2, %v16622_v8 }
 0x303   : > { %13088 = vmatprep.mubr.msk.f32.mxu0 %vm504_vm2, %v16624_v21 }
 0x306   : > { %13089 = vmatmul.mubr.msk.f32.gmra.mrb[36].mxu0 %vm504_vm2, %v16630_v19 }
 0x307   : > { %13091 = vmatprep.mubr.msk.f32.mxu0 %vm504_vm2, %v16632_v3 }
 0x30a   : > { %13092 = vmatmul.mubr.msk.f32.gmra.mrb[38].mxu0 %vm504_vm2, %v16638_v20 }
 0x30b   : > { %13094 = vmatprep.mubr.msk.f32.mxu0 %vm504_vm2, %v16640_v62 }
 0x30e   : > { %13095 = vmatmul.mubr.msk.f32.gmra.mrb[40].mxu0 %vm504_vm2, %v16646_v44 }
 0x30f   : > { %13097 = vmatprep.mubr.msk.f32.mxu0 %vm504_vm2, %v16121_v12  ;;  %v4165_v12 = vrot.slane %v16531_v42, 1 }
 0x312   : > { %13098 = vmatmul.mubr.msk.f32.gmra.mrb[42].mxu0 %vm504_vm2, %v16124_v39  ;;  %v4167_v39 = vrot.slane %v16537_v37, 1 }
 0x313   : > { %13100 = vmatprep.mubr.msk.f32.mxu0 %vm504_vm2, %v16132_v18  ;;  %v4169_v18 = vrot.slane %v16539_v17, 1 }
 0x316   : > { %13101 = vmatmul.mubr.msk.f32.gmra.mrb[44].mxu0 %vm504_vm2, %v16656_v57 }
 0x317   : > { %13103 = vmatprep.mubr.msk.f32.mxu0 %vm504_vm2, %v16658_v9 }
 0x31a   : > { %13104 = vmatmul.mubr.msk.f32.gmra.mrb[46].mxu0 %vm504_vm2, %v16664_v6 }
 0x31b   : > { %13108 = vmatprep.mubr.msk.f32.mxu0 %vm504_vm2, %v16151_v51  ;;  %v4166_v51 = vsel %vm663_vm4, %v16210_v31, %v4165_v12 }
 0x31e   : > { %13109 = vmatmul.mubr.msk.f32.vlgmr.msra.gmra.mrb[0].mxu0 %vm504_vm2, %v16155_v54  ;;  %v4171_v54 = vrot.slane %v16545_v46, 1 }
 0x31f   : > { %13181 = vmatpush3.msk.msra.mxu0 %vm857_vm0, %v16501_v48  ;;  %13111 = vmatprep.mubr.msk.f32.mxu0 %vm504_vm2, %v16165_v58  ;;  %v4168_v58 = vsel %vm663_vm4, %v4165_v12, %v4167_v39  ;;  %v4185_v12 = vrot.slane %v16571_v36, 1 }
 0x322   : > { %13112 = vmatmul.mubr.msk.f32.gmra.mrb[2].mxu0 %vm504_vm2, %v16169_v4  ;;  %v4173_v4 = vrot.slane %v16547_v22, 1 }
 0x323   : > { %13114 = vmatprep.mubr.msk.f32.mxu0 %vm504_vm2, %v16177_v16  ;;  %v4170_v16 = vsel %vm663_vm4, %v4167_v39, %v4169_v18 }
 0x326   : > { %13115 = vmatmul.mubr.msk.f32.gmra.mrb[4].mxu0 %vm504_vm2, %v16181_v29  ;;  %v4175_v29 = vrot.slane %v16553_v15, 1 }
 0x327   : > { %13117 = vmatprep.mubr.msk.f32.mxu0 %vm504_vm2, %v16189_v55  ;;  %v4172_v55 = vsel %vm663_vm4, %v4169_v18, %v4171_v54  ;;  %v4187_v18 = vrot.slane %v16577_v49, 1 }
 0x328   : > { %v4176_v31 = vsel %vm663_vm4, %v4173_v4, %v4175_v29 }
 0x32a   : > { %13118 = vmatmul.mubr.msk.f32.gmra.mrb[6].mxu0 %vm504_vm2, %v16193_v13  ;;  %v4177_v13 = vrot.slane %v16555_v56, 1 }
 0x32b   : > { %13120 = vmatprep.mubr.msk.f32.mxu0 %vm504_vm2, %v16201_v41  ;;  %v4174_v41 = vsel %vm663_vm4, %v4171_v54, %v4173_v4  ;;  %v4189_v54 = vrot.slane %v16579_v60, 1  ;;  %v4191_v4 = vrot.slane %v16586_v27, 1 }
 0x32e   : > { %13121 = vmatmul.mubr.msk.f32.gmra.mrb[8].mxu0 %vm504_vm2, %v16205_v30  ;;  %v4179_v30 = vrot.slane %v16561_v59, 1 }
 0x32f   : > { %13123 = vmatprep.mubr.msk.f32.mxu0 %vm504_vm2, %v16215_v34  ;;  %v4181_v34 = vrot.slane %v16563_v63, 1 }
 0x330   : > { %v4180_v48 = vsel %vm663_vm4, %v4177_v13, %v4179_v30 }
 0x331   : > { %v4182_v39 = vsel %vm663_vm4, %v4179_v30, %v4181_v34  ;;  %v4197_v30 = vrot.slane %v16597_v32, 1 }
 0x332   : > { %13124 = vmatmul.mubr.msk.f32.gmra.mrb[10].mxu0 %vm504_vm2, %v16218_v38  ;;  %v4178_v38 = vsel %vm663_vm4, %v4175_v29, %v4177_v13  ;;  %v4193_v29 = vrot.slane %v16589_v61, 1  ;;  %v4195_v13 = vrot.slane %v16595_v1, 1 }
 0x333   : > { %13126 = vmatprep.mubr.msk.f32.mxu0 %vm504_vm2, %v16226_v40  ;;  %v4183_v40 = vrot.slane %v16569_v47, 1 }
 0x336   : > { %13127 = vmatmul.mubr.msk.f32.gmra.mrb[12].mxu0 %vm504_vm2, %v4166_v51  ;;  %v4184_v51 = vsel %vm663_vm4, %v4181_v34, %v4183_v40  ;;  %v4199_v34 = vrot.slane %v16605_v26, 1 }
 0x337   : > { %13129 = vmatprep.mubr.msk.f32.mxu0 %vm504_vm2, %v4168_v58  ;;  %v4186_v58 = vsel %vm663_vm4, %v4183_v40, %v4185_v12  ;;  %v4201_v40 = vrot.slane %v16608_v45, 1 }
 0x33a   : > { %13130 = vmatmul.mubr.msk.f32.gmra.mrb[14].mxu0 %vm504_vm2, %v4170_v16  ;;  %v4188_v16 = vsel %vm663_vm4, %v4185_v12, %v4187_v18  ;;  %v4203_v12 = vrot.slane %v16614_v53, 1 }
 0x33b   : > { %13132 = vmatprep.mubr.msk.f32.mxu0 %vm504_vm2, %v4172_v55  ;;  %v4190_v55 = vsel %vm663_vm4, %v4187_v18, %v4189_v54  ;;  %v4205_v18 = vrot.slane %v16616_v0, 1 }
 0x33e   : > { %13133 = vmatmul.mubr.msk.f32.gmra.mrb[16].mxu0 %vm504_vm2, %v4174_v41  ;;  %v4192_v41 = vsel %vm663_vm4, %v4189_v54, %v4191_v4  ;;  %v4207_v54 = vrot.slane %v16622_v8, 1 }
 0x33f   : > { %13135 = vmatprep.mubr.msk.f32.mxu0 %vm504_vm2, %v4176_v31  ;;  %v4194_v31 = vsel %vm663_vm4, %v4191_v4, %v4193_v29  ;;  %v4209_v4 = vrot.slane %v16624_v21, 1 }
 0x342   : > { %13136 = vmatmul.mubr.msk.f32.gmra.mrb[18].mxu0 %vm504_vm2, %v4178_v38  ;;  %v4196_v38 = vsel %vm663_vm4, %v4193_v29, %v4195_v13  ;;  %v4211_v29 = vrot.slane %v16630_v19, 1 }
 0x343   : > { %13138 = vmatprep.mubr.msk.f32.mxu0 %vm504_vm2, %v4180_v48  ;;  %v4198_v48 = vsel %vm663_vm4, %v4195_v13, %v4197_v30  ;;  %v4213_v13 = vrot.slane %v16632_v3, 1 }
 0x346   : > { %13139 = vmatmul.mubr.msk.f32.gmra.mrb[20].mxu0 %vm504_vm2, %v4182_v39  ;;  %v4200_v39 = vsel %vm663_vm4, %v4197_v30, %v4199_v34  ;;  %v4215_v30 = vrot.slane %v16638_v20, 1 }
 0x347   : > { %13141 = vmatprep.mubr.msk.f32.mxu0 %vm504_vm2, %v4184_v51  ;;  %v4202_v51 = vsel %vm663_vm4, %v4199_v34, %v4201_v40  ;;  %v4217_v34 = vrot.slane %v16640_v62, 1 }
 0x34a   : > { %13142 = vmatmul.mubr.msk.f32.gmra.mrb[22].mxu0 %vm504_vm2, %v4186_v58  ;;  %v4204_v58 = vsel %vm663_vm4, %v4201_v40, %v4203_v12  ;;  %v4219_v40 = vrot.slane %v16646_v44, 1 }
 0x34b   : > { %13144 = vmatprep.mubr.msk.f32.mxu0 %vm504_vm2, %v4188_v16  ;;  %v4206_v16 = vsel %vm663_vm4, %v4203_v12, %v4205_v18  ;;  %v4218_v12 = vsel %vm663_vm4, %v4215_v30, %v4217_v34 }
 0x34e   : > { %13145 = vmatmul.mubr.msk.f32.gmra.mrb[24].mxu0 %vm504_vm2, %v4190_v55  ;;  %v4208_v55 = vsel %vm663_vm4, %v4205_v18, %v4207_v54  ;;  %v4222_v18 = vsel %vm663_vm4, %v4219_v40, %v16283_v10 }
 0x34f   : > { %13147 = vmatprep.mubr.msk.f32.mxu0 %vm504_vm2, %v4192_v41  ;;  %v4210_v41 = vsel %vm663_vm4, %v4207_v54, %v4209_v4  ;;  %v4229_v54 = vrot.slane %v16658_v9, 1 }
 0x352   : > { %13148 = vmatmul.mubr.msk.f32.gmra.mrb[26].mxu0 %vm504_vm2, %v4194_v31  ;;  %v4212_v31 = vsel %vm663_vm4, %v4209_v4, %v4211_v29 }
 0x353   : > { %13150 = vmatprep.mubr.msk.f32.mxu0 %vm504_vm2, %v4196_v38  ;;  %v4214_v38 = vsel %vm663_vm4, %v4211_v29, %v4213_v13 }
 0x356   : > { %13151 = vmatmul.mubr.msk.f32.gmra.mrb[28].mxu0 %vm504_vm2, %v4198_v48  ;;  %v4216_v48 = vsel %vm663_vm4, %v4213_v13, %v4215_v30  ;;  %v4700_v13 = vrot.slane %v16563_v63, 2  ;;  %v4704_v30 = vrot.slane %v16571_v36, 2 }
 0x357   : > { %13153 = vmatprep.mubr.msk.f32.mxu0 %vm504_vm2, %v4200_v39  ;;  %v4220_v39 = vsel %vm663_vm4, %v4217_v34, %v4219_v40  ;;  %v4708_v34 = vrot.slane %v16579_v60, 2  ;;  %v4712_v40 = vrot.slane %v16589_v61, 2 }
 0x35a   : > { %13154 = vmatmul.mubr.msk.f32.gmra.mrb[30].mxu0 %vm504_vm2, %v4202_v51  ;;  %v4227_v51 = vrot.slane %v16656_v57, 1 }
 0x35b   : > { %13156 = vmatprep.mubr.msk.f32.mxu0 %vm504_vm2, %v4204_v58  ;;  %v4231_v58 = vrot.slane %v16664_v6, 1 }
 0x35c   : > { %v4228_v4 = vsel %vm663_vm4, %v16291_v7, %v4227_v51  ;;  %v4230_v10 = vsel %vm663_vm4, %v4227_v51, %v4229_v54  ;;  %v20010_v7 = vld [vmem:[#allocation13_spill] sm:$0xff]  ;;  %v4722_v51 = vrot.slane %v16614_v53, 2 }
 0x35d   : > { %v4232_v29 = vsel %vm663_vm4, %v4229_v54, %v4231_v58  ;;  %v4724_v54 = vrot.slane %v16616_v0, 2 }
 0x35e   : > { %13157 = vmatmul.mubr.msk.f32.gmra.mrb[32].mxu0 %vm504_vm2, %v4206_v16  ;;  %v4233_v16 = vrot.slane %v16601_v33, 1 }
 0x35f   : > { %13159 = vmatprep.mubr.msk.f32.mxu0 %vm504_vm2, %v4208_v55  ;;  %v20012_v55 = vld [vmem:[#allocation15_spill] sm:$0xff]  ;;  %v4725_v53 = vsel %vm1540_vm5, %v4722_v51, %v4724_v54 }
 0x362   : > { %13160 = vmatmul.mubr.msk.f32.gmra.mrb[34].mxu0 %vm504_vm2, %v4210_v41  ;;  %v4702_v41 = vrot.slane %v16569_v47, 2 }
 0x363   : > { %13162 = vmatprep.mubr.msk.f32.mxu0 %vm504_vm2, %v4212_v31  ;;  %v4706_v31 = vrot.slane %v16577_v49, 2 }
 0x364   : > { %v4703_v63 = vsel %vm1540_vm5, %v4700_v13, %v4702_v41  ;;  %v4705_v47 = vsel %vm1540_vm5, %v4702_v41, %v4704_v30 }
 0x365   : > { %v4707_v36 = vsel %vm1540_vm5, %v4704_v30, %v4706_v31  ;;  %v4709_v49 = vsel %vm1540_vm5, %v4706_v31, %v4708_v34 }
 0x366   : > { %13163 = vmatmul.mubr.msk.f32.gmra.mrb[36].mxu0 %vm504_vm2, %v4214_v38  ;;  %v4710_v38 = vrot.slane %v16586_v27, 2 }
 0x367   : > { %13165 = vmatprep.mubr.msk.f32.mxu0 %vm504_vm2, %v4216_v48  ;;  %v4714_v48 = vrot.slane %v16595_v1, 2 }
 0x368   : > { %v4711_v60 = vsel %vm1540_vm5, %v4708_v34, %v4710_v38  ;;  %v4713_v27 = vsel %vm1540_vm5, %v4710_v38, %v4712_v40 }
 0x369   : > { %v4715_v61 = vsel %vm1540_vm5, %v4712_v40, %v4714_v48 }
 0x36a   : > { %13166 = vmatmul.mubr.msk.f32.gmra.mrb[38].mxu0 %vm504_vm2, %v4218_v12  ;;  %v4716_v12 = vrot.slane %v16597_v32, 2 }
 0x36b   : > { %13168 = vmatprep.mubr.msk.f32.mxu0 %vm504_vm2, %v4220_v39  ;;  %v4718_v39 = vrot.slane %v16605_v26, 2 }
 0x36c   : > { %v4717_v1 = vsel %vm1540_vm5, %v4714_v48, %v4716_v12 }
 0x36d   : > { %v4719_v32 = vsel %vm1540_vm5, %v4716_v12, %v4718_v39 }
 0x36e   : > { %13169 = vmatmul.mubr.msk.f32.gmra.mrb[40].mxu0 %vm504_vm2, %v4222_v18  ;;  %v4720_v18 = vrot.slane %v16608_v45, 2 }
 0x36f   : > { %13171 = vmatprep.mubr.msk.f32.mxu0 %vm504_vm2, %v16303_v11  ;;  %v4234_v11 = vsel %vm663_vm4, %v4231_v58, %v4233_v16  ;;  %v4726_v58 = vrot.slane %v16622_v8, 2  ;;  %v4732_v16 = vrot.slane %v16632_v3, 2 }
 0x370   : > { %v4721_v26 = vsel %vm1540_vm5, %v4718_v39, %v4720_v18  ;;  %v4723_v45 = vsel %vm1540_vm5, %v4720_v18, %v4722_v51 }
 0x371   : > { %v4727_v0 = vsel %vm1540_vm5, %v4724_v54, %v4726_v58 }
 0x372   : > { %13172 = vmatmul.mubr.msk.f32.gmra.mrb[42].mxu0 %vm504_vm2, %v16309_v52  ;;  %v20011_v52 = vld [vmem:[#allocation14_spill] sm:$0xff] }
 0x373   : > { %13174 = vmatprep.mubr.msk.f32.mxu0 %vm504_vm2, %v4228_v4  ;;  %v4728_v4 = vrot.slane %v16624_v21, 2 }
 0x375   : > { %v4729_v8 = vsel %vm1540_vm5, %v4726_v58, %v4728_v4 }
 0x376   : > { %13175 = vmatmul.mubr.msk.f32.gmra.mrb[44].mxu0 %vm504_vm2, %v4230_v10  ;;  %v4730_v10 = vrot.slane %v16630_v19, 2 }
 0x377   : > { %13177 = vmatprep.mubr.msk.f32.mxu0 %vm504_vm2, %v4232_v29  ;;  %v4734_v29 = vrot.slane %v16638_v20, 2 }
 0x378   : > { %v4731_v21 = vsel %vm1540_vm5, %v4728_v4, %v4730_v10  ;;  %v4733_v19 = vsel %vm1540_vm5, %v4730_v10, %v4732_v16 }
 0x379   : > { %v4735_v3 = vsel %vm1540_vm5, %v4732_v16, %v4734_v29 }
 0x37a   : > { %13178 = vmatmul.mubr.msk.f32.gmra.mrb[46].mxu0 %vm504_vm2, %v4234_v11  ;;  %v4736_v11 = vrot.slane %v16640_v62, 2  ;;  %v20014_v62 = vld [vmem:[#allocation17_spill] sm:$0xff] }
 0x37b   : > { %13182 = vmatprep.mubr.msk.f32.mxu0 %vm504_vm2, %v16335_v28  ;;  %v20013_v28 = vld [vmem:[#allocation16_spill] sm:$0xff] }
 0x37c   : > { %v4737_v20 = vsel %vm1540_vm5, %v4734_v29, %v4736_v11 }
 0x37e   : > { %13183 = vmatmul.mubr.msk.f32.vlgmr.msra.gmra.mrb[0].mxu0 %vm504_vm2, %v16339_v50  ;;  %v4684_v50 = vrot.slane %v16531_v42, 2 }
 0x37f   : > { %13185 = vmatprep.mubr.msk.f32.mxu0 %vm504_vm2, %v16349_v43  ;;  %v4686_v43 = vrot.slane %v16537_v37, 2  ;;  %v4694_v37 = vrot.slane %v16553_v15, 2 }
 0x381   : > { %v4687_v42 = vsel %vm1540_vm5, %v4684_v50, %v4686_v43 }
 0x382   : > { %13186 = vmatmul.mubr.msk.f32.gmra.mrb[2].mxu0 %vm504_vm2, %v16353_v2  ;;  %v4688_v2 = vrot.slane %v16539_v17, 2 }
 0x383   : > { %13188 = vmatprep.mubr.msk.f32.mxu0 %vm504_vm2, %v20010_v7  ;;  %v4738_v7 = vrot.slane %v16646_v44, 2  ;;  %v4748_v44 = vrot.slane %v16658_v9, 2 }
 0x386   : > { %13189 = vmatmul.mubr.msk.f32.gmra.mrb[4].mxu0 %vm504_vm2, %v20011_v52  ;;  %v4739_v52 = vsel %vm1540_vm5, %v4736_v11, %v4738_v7 }
 0x387   : > { %13191 = vmatprep.mubr.msk.f32.mxu0 %vm504_vm2, %v20012_v55  ;;  %v4741_v55 = vsel %vm1540_vm5, %v4738_v7, %v20014_v62 }
 0x38a   : > { %13192 = vmatmul.mubr.msk.f32.gmra.mrb[6].mxu0 %vm504_vm2, %v16377_v35  ;;  %v4690_v35 = vrot.slane %v16545_v46, 2  ;;  %v4698_v46 = vrot.slane %v16561_v59, 2 }
 0x38b   : > { %13194 = vmatprep.mubr.msk.f32.mxu0 %vm504_vm2, %v16385_v5  ;;  %v4685_v5 = vsel %vm1540_vm5, %v16394_v23, %v4684_v50  ;;  %v4696_v23 = vrot.slane %v16555_v56, 2  ;;  %v20015_v50 = vld [vmem:[#allocation19_spill] sm:$0xff] }
 0x38c   : > { %v4691_v17 = vsel %vm1540_vm5, %v4688_v2, %v4690_v35  ;;  %v4701_v59 = vsel %vm1540_vm5, %v4698_v46, %v4700_v13 }
 0x38d   : > { %v4697_v15 = vsel %vm1540_vm5, %v4694_v37, %v4696_v23  ;;  %v4699_v56 = vsel %vm1540_vm5, %v4696_v23, %v4698_v46 }
 0x38e   : > { %13195 = vmatmul.mubr.msk.f32.gmra.mrb[8].mxu0 %vm504_vm2, %v20013_v28  ;;  %v4746_v28 = vrot.slane %v16656_v57, 2  ;;  %v4752_v57 = vrot.slane %v16601_v33, 2 }
 0x38f   : > { %13197 = vmatprep.mubr.msk.f32.mxu0 %vm504_vm2, %v16399_v14  ;;  %v4692_v14 = vrot.slane %v16547_v22, 2 }
 0x391   : > { %v4695_v22 = vsel %vm1540_vm5, %v4692_v14, %v4694_v37 }
 0x392   : > { %13198 = vmatmul.mubr.msk.f32.gmra.mrb[10].mxu0 %vm504_vm2, %v16402_v25  ;;  %v4689_v25 = vsel %vm1540_vm5, %v4686_v43, %v4688_v2  ;;  %v4750_v43 = vrot.slane %v16664_v6, 2  ;;  %v20016_v2 = vld [vmem:[#allocation18_spill] sm:$0xff] }
 0x393   : > { %13200 = vmatprep.mubr.msk.f32.mxu0 %vm504_vm2, %v16410_v24  ;;  %v4693_v24 = vsel %vm1540_vm5, %v4690_v35, %v4692_v14  ;;  %v20017_v35 = vld [vmem:[#allocation20_spill] sm:$0xff] }
 0x394   : > { %v4751_v14 = vsel %vm1540_vm5, %v4748_v44, %v4750_v43  ;;  %v4753_v6 = vsel %vm1540_vm5, %v4750_v43, %v4752_v57 }
 0x396   : > { %13201 = vmatmul.mubr.msk.f32.gmra.mrb[12].mxu0 %vm504_vm2, %v4685_v5  ;;  %v4747_v5 = vsel %vm1540_vm5, %v20016_v2, %v4746_v28 }
 0x397   : > { %13203 = vmatprep.mubr.msk.f32.mxu0 %vm504_vm2, %v4687_v42  ;;  %v4749_v42 = vsel %vm1540_vm5, %v4746_v28, %v4748_v44 }
 0x39a   : > { %13204 = vmatmul.mubr.msk.f32.gmra.mrb[14].mxu0 %vm504_vm2, %v4689_v25 }
 0x39b   : > { %13206 = vmatprep.mubr.msk.f32.mxu0 %vm504_vm2, %v4691_v17 }
 0x39e   : > { %13207 = vmatmul.mubr.msk.f32.gmra.mrb[16].mxu0 %vm504_vm2, %v4693_v24 }
 0x39f   : > { %13209 = vmatprep.mubr.msk.f32.mxu0 %vm504_vm2, %v4695_v22 }
 0x3a2   : > { %13210 = vmatmul.mubr.msk.f32.gmra.mrb[18].mxu0 %vm504_vm2, %v4697_v15 }
 0x3a3   : > { %13212 = vmatprep.mubr.msk.f32.mxu0 %vm504_vm2, %v4699_v56 }
 0x3a6   : > { %13213 = vmatmul.mubr.msk.f32.gmra.mrb[20].mxu0 %vm504_vm2, %v4701_v59 }
 0x3a7   : > { %13215 = vmatprep.mubr.msk.f32.mxu0 %vm504_vm2, %v4703_v63 }
 0x3aa   : > { %13216 = vmatmul.mubr.msk.f32.gmra.mrb[22].mxu0 %vm504_vm2, %v4705_v47 }
 0x3ab   : > { %13218 = vmatprep.mubr.msk.f32.mxu0 %vm504_vm2, %v4707_v36 }
 0x3ae   : > { %13219 = vmatmul.mubr.msk.f32.gmra.mrb[24].mxu0 %vm504_vm2, %v4709_v49 }
 0x3af   : > { %13221 = vmatprep.mubr.msk.f32.mxu0 %vm504_vm2, %v4711_v60 }
 0x3b2   : > { %13222 = vmatmul.mubr.msk.f32.gmra.mrb[26].mxu0 %vm504_vm2, %v4713_v27 }
 0x3b3   : > { %13224 = vmatprep.mubr.msk.f32.mxu0 %vm504_vm2, %v4715_v61 }
 0x3b6   : > { %13225 = vmatmul.mubr.msk.f32.gmra.mrb[28].mxu0 %vm504_vm2, %v4717_v1 }
 0x3b7   : > { %13227 = vmatprep.mubr.msk.f32.mxu0 %vm504_vm2, %v4719_v32 }
 0x3ba   : > { %13228 = vmatmul.mubr.msk.f32.gmra.mrb[30].mxu0 %vm504_vm2, %v4721_v26 }
 0x3bb   : > { %13230 = vmatprep.mubr.msk.f32.mxu0 %vm504_vm2, %v4723_v45 }
 0x3be   : > { %13231 = vmatmul.mubr.msk.f32.gmra.mrb[32].mxu0 %vm504_vm2, %v4725_v53 }
 0x3bf   : > { %13233 = vmatprep.mubr.msk.f32.mxu0 %vm504_vm2, %v4727_v0 }
 0x3c2   : > { %13234 = vmatmul.mubr.msk.f32.gmra.mrb[34].mxu0 %vm504_vm2, %v4729_v8 }
 0x3c3   : > { %13236 = vmatprep.mubr.msk.f32.mxu0 %vm504_vm2, %v4731_v21 }
 0x3c6   : > { %13237 = vmatmul.mubr.msk.f32.gmra.mrb[36].mxu0 %vm504_vm2, %v4733_v19 }
 0x3c7   : > { %13239 = vmatprep.mubr.msk.f32.mxu0 %vm504_vm2, %v4735_v3 }
 0x3ca   : > { %13240 = vmatmul.mubr.msk.f32.gmra.mrb[38].mxu0 %vm504_vm2, %v4737_v20 }
 0x3cb   : > { %13242 = vmatprep.mubr.msk.f32.mxu0 %vm504_vm2, %v4739_v52 }
 0x3ce   : > { %13243 = vmatmul.mubr.msk.f32.gmra.mrb[40].mxu0 %vm504_vm2, %v4741_v55 }
 0x3cf   : > { %13245 = vmatprep.mubr.msk.f32.mxu0 %vm504_vm2, %v20015_v50 }
 0x3d2   : > { %13246 = vmatmul.mubr.msk.f32.gmra.mrb[42].mxu0 %vm504_vm2, %v20017_v35 }
 0x3d3   : > { %13248 = vmatprep.mubr.msk.f32.mxu0 %vm504_vm2, %v4747_v5 }
 0x3d6   : > { %13249 = vmatmul.mubr.msk.f32.gmra.mrb[44].mxu0 %vm504_vm2, %v4749_v42 }
 0x3d7   : > { %13251 = vmatprep.mubr.msk.f32.mxu0 %vm504_vm2, %v4751_v14 }
 0x3da   : > { %13252 = vmatmul.mubr.msk.f32.gmra.mrb[46].mxu0 %vm504_vm2, %v4753_v6 }
 0x451   : > { %v16932_v9 = vpop.f32.mrb[0].mxu0 }
 0x452   : > { %v16934_v25 = vpop.f32.mrb[1].mxu0  ;;  %v5246_v41 = vmul.f32 %v16932_v9, %v16932_v9  ;;  %v5205_v31 = vsel %vm504_vm2, %v16932_v9, 0.0 }
 0x453   : > { %v5245_v37 = vmul.f32 %v16934_v25, %v16934_v25  ;;  %v5174_v33 = vsel %vm504_vm2, %v16934_v25, 0.0 }
 0x454   : > { %v5308_v38 = vsel %vm504_vm2, %v5246_v41, 0.0 }
 0x455   : > { %v16938_v17 = vpop.f32.mrb[2].mxu0  ;;  %v5277_v13 = vsel %vm504_vm2, %v5245_v37, 0.0 }
 0x456   : > { %v5175_v23 = vsel %vm504_vm2, %v16938_v17, 0.0  ;;  %v5247_v24 = vmul.f32 %v16938_v17, %v16938_v17  ;;  %v4929_v46 = vpop.f32.mrb[3].mxu0 }
 0x457   : > { %v5176_v22 = vadd.f32 %v5175_v23, %v5174_v33 }
 0x458   : > { %v5278_v15 = vsel %vm504_vm2, %v5247_v24, 0.0 }
 0x459   : > { %v5279_v56 = vadd.f32 %v5278_v15, %v5277_v13  ;;  %v13190_v30 = vpop.f32.mrb[4].mxu0 }
 0x45a   : > { %v16950_v59 = vpop.f32.mrb[5].mxu0 }
 0x45b   : > { %v5206_v63 = vsel %vm504_vm2, %v16950_v59, 0.0  ;;  %v5248_v34 = vmul.f32 %v16950_v59, %v16950_v59 }
 0x45c   : > { %v5207_v47 = vadd.f32 %v5206_v63, %v5205_v31 }
 0x45d   : > { %v5309_v36 = vsel %vm504_vm2, %v5248_v34, 0.0  ;;  %v16960_v40 = vpop.f32.mrb[6].mxu0 }
 0x45e   : > { %v5310_v49 = vadd.f32 %v5309_v36, %v5308_v38  ;;  %v5208_v48 = vsel %vm504_vm2, %v16960_v40, 0.0  ;;  %v5250_v60 = vmul.f32 %v16960_v40, %v16960_v40  ;;  %v16966_v12 = vpop.f32.mrb[7].mxu0 }
 0x45f   : > { %v5209_v27 = vadd.f32 %v5208_v48, %v5207_v47  ;;  %v5177_v39 = vsel %vm504_vm2, %v16966_v12, 0.0  ;;  %v5249_v61 = vmul.f32 %v16966_v12, %v16966_v12 }
 0x460   : > { %v5311_v18 = vsel %vm504_vm2, %v5250_v60, 0.0  ;;  %v5178_v1 = vadd.f32 %v5177_v39, %v5176_v22 }
 0x461   : > { %v5312_v51 = vadd.f32 %v5311_v18, %v5310_v49  ;;  %v5280_v32 = vsel %vm504_vm2, %v5249_v61, 0.0  ;;  %v16974_v54 = vpop.f32.mrb[8].mxu0 }
 0x462   : > { %v5281_v26 = vadd.f32 %v5280_v32, %v5279_v56  ;;  %v5179_v58 = vsel %vm504_vm2, %v16974_v54, 0.0  ;;  %v5251_v45 = vmul.f32 %v16974_v54, %v16974_v54  ;;  %v4957_v4 = vpop.f32.mrb[9].mxu0 }
 0x463   : > { %v5180_v53 = vadd.f32 %v5179_v58, %v5178_v1 }
 0x464   : > { %v5282_v10 = vsel %vm504_vm2, %v5251_v45, 0.0 }
 0x465   : > { %v5283_v0 = vadd.f32 %v5282_v10, %v5281_v26  ;;  %v13199_v16 = vpop.f32.mrb[10].mxu0 }
 0x466   : > { %v16981_v8 = vpop.f32.mrb[11].mxu0 }
 0x467   : > { %v5210_v29 = vsel %vm504_vm2, %v16981_v8, 0.0  ;;  %v5252_v21 = vmul.f32 %v16981_v8, %v16981_v8 }
 0x468   : > { %v5211_v11 = vadd.f32 %v5210_v29, %v5209_v27 }
 0x469   : > { %v5313_v19 = vsel %vm504_vm2, %v5252_v21, 0.0  ;;  %v16988_v7 = vpop.f32.mrb[12].mxu0 }
 0x46a   : > { %v5314_v3 = vadd.f32 %v5313_v19, %v5312_v51  ;;  %v5212_v20 = vsel %vm504_vm2, %v16988_v7, 0.0  ;;  %v5254_v52 = vmul.f32 %v16988_v7, %v16988_v7  ;;  %v16994_v62 = vpop.f32.mrb[13].mxu0 }
 0x46b   : > { %v5213_v55 = vadd.f32 %v5212_v20, %v5211_v11  ;;  %v5181_v28 = vsel %vm504_vm2, %v16994_v62, 0.0  ;;  %v5253_v44 = vmul.f32 %v16994_v62, %v16994_v62 }
 0x46c   : > { %v5315_v50 = vsel %vm504_vm2, %v5254_v52, 0.0  ;;  %v5182_v43 = vadd.f32 %v5181_v28, %v5180_v53 }
 0x46d   : > { %v5316_v2 = vadd.f32 %v5315_v50, %v5314_v3  ;;  %v5284_v5 = vsel %vm504_vm2, %v5253_v44, 0.0  ;;  %v17002_v35 = vpop.f32.mrb[14].mxu0 }
 0x46e   : > { %v5285_v42 = vadd.f32 %v5284_v5, %v5283_v0  ;;  %v5183_v57 = vsel %vm504_vm2, %v17002_v35, 0.0  ;;  %v5255_v14 = vmul.f32 %v17002_v35, %v17002_v35  ;;  %v4985_v6 = vpop.f32.mrb[15].mxu0 }
 0x46f   : > { %v5184_v37 = vadd.f32 %v5183_v57, %v5182_v43  ;;  %v5799_v6 = vld [vmem:[#allocation8 + $0x4] sm:$0xf] }
 0x470   : > { %v5286_v33 = vsel %vm504_vm2, %v5255_v14, 0.0  ;;  %13254 = vmatprep.subr.msk.mxu1 %vm857_vm0, %v5799_v6 }
 0x471   : > { %v5287_v23 = vadd.f32 %v5286_v33, %v5285_v42  ;;  %v13208_v24 = vpop.f32.mrb[16].mxu0  ;;  %13255 = vmatpush3.msk.msra.mxu1 %vm857_vm0, %v5799_v6 }
 0x472   : > { %v17009_v46 = vpop.f32.mrb[17].mxu0 }
 0x473   : > { %v5214_v22 = vsel %vm504_vm2, %v17009_v46, 0.0  ;;  %v5256_v13 = vmul.f32 %v17009_v46, %v17009_v46 }
 0x474   : > { %v5215_v15 = vadd.f32 %v5214_v22, %v5213_v55  ;;  %v17067_v22 = vld [vmem:[#allocation8] sm:$0xf] }
 0x475   : > { %v5317_v41 = vsel %vm504_vm2, %v5256_v13, 0.0  ;;  %v17016_v56 = vpop.f32.mrb[18].mxu0  ;;  %20018 = vst [vmem:[#allocation21_spill] sm:$0xff] %v17067_v22  ;;  %13328 = vmatprep.subr.msk.mxu1 %vm857_vm0, %v17067_v22 }
 0x476   : > { %v5318_v30 = vadd.f32 %v5317_v41, %v5316_v2  ;;  %v5216_v31 = vsel %vm504_vm2, %v17016_v56, 0.0  ;;  %v5258_v63 = vmul.f32 %v17016_v56, %v17016_v56  ;;  %v17022_v34 = vpop.f32.mrb[19].mxu0 }
 0x477   : > { %v5217_v47 = vadd.f32 %v5216_v31, %v5215_v15  ;;  %v5185_v38 = vsel %vm504_vm2, %v17022_v34, 0.0  ;;  %v5257_v36 = vmul.f32 %v17022_v34, %v17022_v34 }
 0x478   : > { %v5319_v49 = vsel %vm504_vm2, %v5258_v63, 0.0  ;;  %v5186_v48 = vadd.f32 %v5185_v38, %v5184_v37 }
 0x479   : > { %v5320_v60 = vadd.f32 %v5319_v49, %v5318_v30  ;;  %v5288_v27 = vsel %vm504_vm2, %v5257_v36, 0.0  ;;  %v17030_v39 = vpop.f32.mrb[20].mxu0 }
 0x47a   : > { %v5289_v61 = vadd.f32 %v5288_v27, %v5287_v23  ;;  %v5187_v18 = vsel %vm504_vm2, %v17030_v39, 0.0  ;;  %v5259_v1 = vmul.f32 %v17030_v39, %v17030_v39  ;;  %v5013_v51 = vpop.f32.mrb[21].mxu0 }
 0x47b   : > { %v5188_v32 = vadd.f32 %v5187_v18, %v5186_v48 }
 0x47c   : > { %v5290_v26 = vsel %vm504_vm2, %v5259_v1, 0.0 }
 0x47d   : > { %v5291_v58 = vadd.f32 %v5290_v26, %v5289_v61  ;;  %v13217_v45 = vpop.f32.mrb[22].mxu0 }
 0x47e   : > { %v17037_v4 = vpop.f32.mrb[23].mxu0 }
 0x47f   : > { %v5218_v53 = vsel %vm504_vm2, %v17037_v4, 0.0  ;;  %v5260_v10 = vmul.f32 %v17037_v4, %v17037_v4 }
 0x480   : > { %v5219_v0 = vadd.f32 %v5218_v53, %v5217_v47 }
 0x481   : > { %v5321_v16 = vsel %vm504_vm2, %v5260_v10, 0.0  ;;  %v17044_v29 = vpop.f32.mrb[24].mxu0 }
 0x482   : > { %v5322_v21 = vadd.f32 %v5321_v16, %v5320_v60  ;;  %v5220_v11 = vsel %vm504_vm2, %v17044_v29, 0.0  ;;  %v5262_v19 = vmul.f32 %v17044_v29, %v17044_v29  ;;  %v17050_v3 = vpop.f32.mrb[25].mxu0 }
 0x483   : > { %v5221_v20 = vadd.f32 %v5220_v11, %v5219_v0  ;;  %v5189_v52 = vsel %vm504_vm2, %v17050_v3, 0.0  ;;  %v5261_v55 = vmul.f32 %v17050_v3, %v17050_v3 }
 0x484   : > { %v5323_v28 = vsel %vm504_vm2, %v5262_v19, 0.0  ;;  %v5190_v44 = vadd.f32 %v5189_v52, %v5188_v32 }
 0x485   : > { %v5324_v50 = vadd.f32 %v5323_v28, %v5322_v21  ;;  %v5292_v43 = vsel %vm504_vm2, %v5261_v55, 0.0  ;;  %v17058_v2 = vpop.f32.mrb[26].mxu0 }
 0x486   : > { %v5293_v5 = vadd.f32 %v5292_v43, %v5291_v58  ;;  %v5191_v42 = vsel %vm504_vm2, %v17058_v2, 0.0  ;;  %v5263_v57 = vmul.f32 %v17058_v2, %v17058_v2  ;;  %v5041_v14 = vpop.f32.mrb[27].mxu0 }
 0x487   : > { %v5192_v37 = vadd.f32 %v5191_v42, %v5190_v44 }
 0x488   : > { %v5294_v33 = vsel %vm504_vm2, %v5263_v57, 0.0 }
 0x489   : > { %v5295_v23 = vadd.f32 %v5294_v33, %v5293_v5  ;;  %v13226_v24 = vpop.f32.mrb[28].mxu0 }
 0x48a   : > { %v17069_v13 = vpop.f32.mrb[29].mxu0 }
 0x48b   : > { %v5222_v15 = vsel %vm504_vm2, %v17069_v13, 0.0  ;;  %v5264_v41 = vmul.f32 %v17069_v13, %v17069_v13 }
 0x48c   : > { %v5223_v30 = vadd.f32 %v5222_v15, %v5221_v20 }
 0x48d   : > { %v5325_v31 = vsel %vm504_vm2, %v5264_v41, 0.0  ;;  %v17078_v63 = vpop.f32.mrb[30].mxu0 }
 0x48e   : > { %v5326_v47 = vadd.f32 %v5325_v31, %v5324_v50  ;;  %v5224_v38 = vsel %vm504_vm2, %v17078_v63, 0.0  ;;  %v5266_v36 = vmul.f32 %v17078_v63, %v17078_v63  ;;  %v17084_v49 = vpop.f32.mrb[31].mxu0 }
 0x48f   : > { %v5225_v48 = vadd.f32 %v5224_v38, %v5223_v30  ;;  %v5193_v60 = vsel %vm504_vm2, %v17084_v49, 0.0  ;;  %v5265_v27 = vmul.f32 %v17084_v49, %v17084_v49 }
 0x490   : > { %v5327_v61 = vsel %vm504_vm2, %v5266_v36, 0.0  ;;  %v5194_v18 = vadd.f32 %v5193_v60, %v5192_v37 }
 0x491   : > { %v5328_v1 = vadd.f32 %v5327_v61, %v5326_v47  ;;  %v5296_v51 = vsel %vm504_vm2, %v5265_v27, 0.0  ;;  %v17092_v32 = vpop.f32.mrb[32].mxu0 }
 0x492   : > { %v5297_v26 = vadd.f32 %v5296_v51, %v5295_v23  ;;  %v5195_v58 = vsel %vm504_vm2, %v17092_v32, 0.0  ;;  %v5267_v45 = vmul.f32 %v17092_v32, %v17092_v32  ;;  %v5069_v53 = vpop.f32.mrb[33].mxu0 }
 0x493   : > { %v5196_v10 = vadd.f32 %v5195_v58, %v5194_v18 }
 0x494   : > { %v5298_v0 = vsel %vm504_vm2, %v5267_v45, 0.0 }
 0x495   : > { %v5299_v16 = vadd.f32 %v5298_v0, %v5297_v26  ;;  %v13235_v21 = vpop.f32.mrb[34].mxu0 }
 0x496   : > { %v17099_v11 = vpop.f32.mrb[35].mxu0 }
 0x497   : > { %v5226_v19 = vsel %vm504_vm2, %v17099_v11, 0.0  ;;  %v5268_v20 = vmul.f32 %v17099_v11, %v17099_v11 }
 0x498   : > { %v5227_v52 = vadd.f32 %v5226_v19, %v5225_v48 }
 0x499   : > { %v5329_v55 = vsel %vm504_vm2, %v5268_v20, 0.0  ;;  %v17106_v28 = vpop.f32.mrb[36].mxu0 }
 0x49a   : > { %v5330_v44 = vadd.f32 %v5329_v55, %v5328_v1  ;;  %v5228_v50 = vsel %vm504_vm2, %v17106_v28, 0.0  ;;  %v5270_v43 = vmul.f32 %v17106_v28, %v17106_v28  ;;  %v17112_v5 = vpop.f32.mrb[37].mxu0 }
 0x49b   : > { %v5229_v42 = vadd.f32 %v5228_v50, %v5227_v52  ;;  %v5197_v57 = vsel %vm504_vm2, %v17112_v5, 0.0  ;;  %v5269_v14 = vmul.f32 %v17112_v5, %v17112_v5 }
 0x49c   : > { %v5331_v6 = vsel %vm504_vm2, %v5270_v43, 0.0  ;;  %v5198_v37 = vadd.f32 %v5197_v57, %v5196_v10 }
 0x49d   : > { %v5332_v33 = vadd.f32 %v5331_v6, %v5330_v44  ;;  %v5300_v23 = vsel %vm504_vm2, %v5269_v14, 0.0  ;;  %v17120_v24 = vpop.f32.mrb[38].mxu0 }
 0x49e   : > { %v5301_v15 = vadd.f32 %v5300_v23, %v5299_v16  ;;  %v5199_v41 = vsel %vm504_vm2, %v17120_v24, 0.0  ;;  %v5271_v30 = vmul.f32 %v17120_v24, %v17120_v24  ;;  %v5097_v31 = vpop.f32.mrb[39].mxu0 }
 0x49f   : > { %v5200_v47 = vadd.f32 %v5199_v41, %v5198_v37 }
 0x4a0   : > { %v5302_v38 = vsel %vm504_vm2, %v5271_v30, 0.0 }
 0x4a1   : > { %v5303_v36 = vadd.f32 %v5302_v38, %v5301_v15  ;;  %v13244_v48 = vpop.f32.mrb[40].mxu0 }
 0x4a2   : > { %v17127_v60 = vpop.f32.mrb[41].mxu0 }
 0x4a3   : > { %v5230_v27 = vsel %vm504_vm2, %v17127_v60, 0.0  ;;  %v5272_v61 = vmul.f32 %v17127_v60, %v17127_v60 }
 0x4a4   : > { %v5231_v18 = vadd.f32 %v5230_v27, %v5229_v42 }
 0x4a5   : > { %v5333_v1 = vsel %vm504_vm2, %v5272_v61, 0.0  ;;  %v17134_v51 = vpop.f32.mrb[42].mxu0 }
 0x4a6   : > { %v5334_v26 = vadd.f32 %v5333_v1, %v5332_v33  ;;  %v5232_v58 = vsel %vm504_vm2, %v17134_v51, 0.0  ;;  %v5274_v45 = vmul.f32 %v17134_v51, %v17134_v51  ;;  %v17140_v53 = vpop.f32.mrb[43].mxu0 }
 0x4a7   : > { %v5233_v10 = vadd.f32 %v5232_v58, %v5231_v18  ;;  %v5201_v0 = vsel %vm504_vm2, %v17140_v53, 0.0  ;;  %v5273_v16 = vmul.f32 %v17140_v53, %v17140_v53 }
 0x4a8   : > { %v5335_v21 = vsel %vm504_vm2, %v5274_v45, 0.0  ;;  %v5202_v19 = vadd.f32 %v5201_v0, %v5200_v47 }
 0x4a9   : > { %v5336_v20 = vadd.f32 %v5335_v21, %v5334_v26  ;;  %v5304_v52 = vsel %vm504_vm2, %v5273_v16, 0.0  ;;  %v17148_v55 = vpop.f32.mrb[44].mxu0 }
 0x4aa   : > { %v5305_v44 = vadd.f32 %v5304_v52, %v5303_v36  ;;  %v5203_v50 = vsel %vm504_vm2, %v17148_v55, 0.0  ;;  %v5275_v43 = vmul.f32 %v17148_v55, %v17148_v55  ;;  %v5125_v42 = vpop.f32.mrb[45].mxu0 }
 0x4ab   : > { %v5204_v57 = vadd.f32 %v5203_v50, %v5202_v19 }
 0x4ac   : > { %v5306_v14 = vsel %vm504_vm2, %v5275_v43, 0.0 }
 0x4ad   : > { %v5307_v6 = vadd.f32 %v5306_v14, %v5305_v44  ;;  %v13253_v37 = vpop.f32.mrb[46].mxu0  ;;  %v5236_v31 = vsel %vm504_vm2, %v5204_v57, 0.0 }
 0x4ae   : > { %v17155_v33 = vpop.f32.mrb[47].mxu0 }
 0x4af   : > { %v5234_v23 = vsel %vm504_vm2, %v17155_v33, 0.0  ;;  %v5276_v15 = vmul.f32 %v17155_v33, %v17155_v33  ;;  %v5339_v48 = vsel %vm504_vm2, %v5307_v6, 0.0 }
 0x4b0   : > { %v5235_v41 = vadd.f32 %v5234_v23, %v5233_v10 }
 0x4b1   : > { %v5337_v30 = vsel %vm504_vm2, %v5276_v15, 0.0 }
 0x4b2   : > { %v5237_v47 = vsel %vm504_vm2, %v5235_v41, 0.0  ;;  %v5338_v38 = vadd.f32 %v5337_v30, %v5336_v20 }
 0x4b3   : > { %v5238_v36 = vadd.f32 %v5237_v47, %v5236_v31 }
 0x4b4   : > { %v5340_v27 = vsel %vm504_vm2, %v5338_v38, 0.0 }
 0x4b5   : > { %v5239_v61 = vrot.slane %v5238_v36, 4  ;;  %v5341_v18 = vadd.f32 %v5340_v27, %v5339_v48 }
 0x4b7   : > { %v5240_v1 = vadd.f32 %v5239_v61, %v5238_v36  ;;  %v5342_v26 = vrot.slane %v5341_v18, 4 }
 0x4b9   : > { %v5241_v58 = vrot.slane %v5240_v1, 2  ;;  %v5343_v45 = vadd.f32 %v5342_v26, %v5341_v18 }
 0x4bb   : > { %v5242_v0 = vadd.f32 %v5241_v58, %v5240_v1  ;;  %v5344_v10 = vrot.slane %v5343_v45, 2 }
 0x4bd   : > { %v5243_v16 = vrot.slane %v5242_v0, 1  ;;  %v5345_v21 = vadd.f32 %v5344_v10, %v5343_v45 }
 0x4bf   : > { %v5244_v19 = vadd.f32 %v5243_v16, %v5242_v0  ;;  %v5346_v52 = vrot.slane %v5345_v21, 1 }
 0x4c1   : > { %v5347_v44 = vadd.f32 %v5346_v52, %v5345_v21  ;;  %v17166_v50 = vmul.f32 0.00390625, %v5244_v19 }
 0x4c3   : > { %v5349_v20 = vmul.f32 0.00390625, %v5347_v44  ;;  %v5350_v43 = vmul.f32 %v17166_v50, %v17166_v50  ;;  %v5383_v42 = vsub.f32 %v17148_v55, %v17166_v50  ;;  %v5384_v57 = vsub.f32 %v17155_v33, %v17166_v50 }
 0x4c4   : > { %v5353_v14 = vsub.f32 %v16934_v25, %v17166_v50  ;;  %v5354_v6 = vsub.f32 %v16932_v9, %v17166_v50  ;;  %v5355_v37 = vsub.f32 %v16938_v17, %v17166_v50  ;;  %v5356_v23 = vsub.f32 %v16950_v59, %v17166_v50 }
 0x4c5   : > { %v5351_v15 = vsub.f32 %v5349_v20, %v5350_v43  ;;  %v5357_v41 = vsub.f32 %v16966_v12, %v17166_v50  ;;  %v5358_v55 = vsub.f32 %v16960_v40, %v17166_v50  ;;  %v5359_v33 = vsub.f32 %v16974_v54, %v17166_v50 }
 0x4c6   : > { %v5360_v25 = vsub.f32 %v16981_v8, %v17166_v50  ;;  %v5361_v9 = vsub.f32 %v16994_v62, %v17166_v50  ;;  %v5362_v17 = vsub.f32 %v16988_v7, %v17166_v50  ;;  %v5363_v59 = vsub.f32 %v17002_v35, %v17166_v50 }
 0x4c7   : > { %v5352_v30 = vmax.f32 %v5351_v15, 0.0  ;;  %v5364_v12 = vsub.f32 %v17009_v46, %v17166_v50  ;;  %v5365_v40 = vsub.f32 %v17022_v34, %v17166_v50  ;;  %v5366_v54 = vsub.f32 %v17016_v56, %v17166_v50 }
 0x4c8   : > { %v5367_v8 = vsub.f32 %v17030_v39, %v17166_v50  ;;  %v5368_v62 = vsub.f32 %v17037_v4, %v17166_v50  ;;  %v5369_v7 = vsub.f32 %v17050_v3, %v17166_v50  ;;  %v5370_v35 = vsub.f32 %v17044_v29, %v17166_v50 }
 0x4c9   : > { %v5385_v31 = vadd.f32 1e-05, %v5352_v30  ;;  %v5371_v46 = vsub.f32 %v17058_v2, %v17166_v50  ;;  %v5372_v34 = vsub.f32 %v17069_v13, %v17166_v50  ;;  %v5373_v56 = vsub.f32 %v17084_v49, %v17166_v50 }
 0x4ca   : > { %v5374_v39 = vsub.f32 %v17078_v63, %v17166_v50  ;;  %v5375_v4 = vsub.f32 %v17092_v32, %v17166_v50  ;;  %v5376_v3 = vsub.f32 %v17099_v11, %v17166_v50  ;;  %v5377_v29 = vsub.f32 %v17112_v5, %v17166_v50 }
 0x4cb   : > { %14762 = vrsqrt.f32 %v5385_v31  ;;  %v5378_v2 = vsub.f32 %v17106_v28, %v17166_v50  ;;  %v5379_v13 = vsub.f32 %v17120_v24, %v17166_v50  ;;  %v5380_v49 = vsub.f32 %v17127_v60, %v17166_v50 }
 0x4cc   : > { %v5381_v63 = vsub.f32 %v17140_v53, %v17166_v50  ;;  %v5382_v32 = vsub.f32 %v17134_v51, %v17166_v50 }
 0x4d5   : > { %v14763_v11 = vpop.eup %14762 }
 0x4d6   : > { %v5417_v47 = vmul.f32 %v14763_v11, %v5383_v42  ;;  %v5418_v38 = vmul.f32 %v14763_v11, %v5384_v57  ;;  %v17234_v5 = vmul.f32 %v14763_v11, %v5353_v14  ;;  %v17236_v36 = vmul.f32 %v14763_v11, %v5354_v6 }
 0x4d7   : > { %v17238_v28 = vmul.f32 %v14763_v11, %v5355_v37  ;;  %v17240_v48 = vmul.f32 %v14763_v11, %v5356_v23  ;;  %v17242_v24 = vmul.f32 %v14763_v11, %v5357_v41  ;;  %v17244_v60 = vmul.f32 %v14763_v11, %v5358_v55 }
 0x4d8   : > { %v5449_v27 = vmax.f32 %v5417_v47, 0.0  ;;  %v5450_v53 = vmax.f32 %v5418_v38, 0.0  ;;  %v17246_v61 = vmul.f32 %v14763_v11, %v5359_v33  ;;  %v17248_v51 = vmul.f32 %v14763_v11, %v5360_v25 }
 0x4d9   : > { %v17250_v18 = vmul.f32 %v14763_v11, %v5361_v9  ;;  %v17252_v1 = vmul.f32 %v14763_v11, %v5362_v17  ;;  %v17254_v26 = vmul.f32 %v14763_v11, %v5363_v59  ;;  %v17256_v58 = vmul.f32 %v14763_v11, %v5364_v12 }
 0x4da   : > { %v17258_v45 = vrot.slane %v5449_v27, 7  ;;  %v5561_v0 = vrot.slane %v5450_v53, 7  ;;  %v5626_v10 = vrot.slane %v5450_v53, 5  ;;  %v17260_v16 = vrot.slane %v5449_v27, 1 }
 0x4db   : > { %v17262_v21 = vmul.f32 %v14763_v11, %v5365_v40  ;;  %v17264_v19 = vmul.f32 %v14763_v11, %v5366_v54  ;;  %v17266_v52 = vmul.f32 %v14763_v11, %v5367_v8  ;;  %v17268_v44 = vmul.f32 %v14763_v11, %v5368_v62 }
 0x4dc   : > { %v5562_v50 = vsel %vm317_vm1, %v17258_v45, %v5561_v0  ;;  %v5674_v20 = vsel %vm317_vm1, %v5561_v0, %v5626_v10  ;;  %v17273_v43 = vmul.f32 %v14763_v11, %v5369_v7  ;;  %v17275_v42 = vmul.f32 %v14763_v11, %v5370_v35 }
 0x4dd   : > { %v5690_v57 = vsel %vm486_vm3, %v5674_v20, 0.0  ;;  %5740 = vst.msk [vmem:[#allocation2 + $0x188] sm:$0xff] %vm504_vm2, %v5562_v50  ;;  %v17279_v14 = vmul.f32 %v14763_v11, %v5371_v46  ;;  %v17281_v6 = vmul.f32 %v14763_v11, %v5372_v34  ;;  %v17283_v37 = vmul.f32 %v14763_v11, %v5373_v56 }
 0x4de   : > { %5741 = vst.msk [vmem:[#allocation2 + $0x190] sm:$0xff] %vm504_vm2, %v5690_v57  ;;  %v17286_v23 = vmul.f32 %v14763_v11, %v5374_v39  ;;  %v17288_v15 = vmul.f32 %v14763_v11, %v5375_v4  ;;  %v17290_v41 = vmul.f32 %v14763_v11, %v5376_v3  ;;  %v17292_v55 = vmul.f32 %v14763_v11, %v5377_v29 }
 0x4df   : > { %v17294_v33 = vmul.f32 %v14763_v11, %v5378_v2  ;;  %v17296_v25 = vmul.f32 %v14763_v11, %v5379_v13  ;;  %v17298_v9 = vmul.f32 %v14763_v11, %v5380_v49  ;;  %v17300_v17 = vmul.f32 %v14763_v11, %v5381_v63 }
 0x4e0   : > { %v17302_v59 = vmul.f32 %v14763_v11, %v5382_v32  ;;  %v5419_v30 = vmax.f32 %v17234_v5, 0.0  ;;  %v19814_v12 = vmax.f32 %v17236_v36, 0.0  ;;  %v5421_v40 = vmax.f32 %v17238_v28, 0.0 }
 0x4e1   : > { %v19812_v54 = vmax.f32 %v17240_v48, 0.0  ;;  %v5423_v8 = vmax.f32 %v17242_v24, 0.0  ;;  %v19813_v62 = vmax.f32 %v17244_v60, 0.0  ;;  %v5425_v7 = vmax.f32 %v17246_v61, 0.0 }
 0x4e2   : > { %v19815_v35 = vmax.f32 %v17248_v51, 0.0  ;;  %v5427_v31 = vmax.f32 %v17250_v18, 0.0  ;;  %v19816_v46 = vmax.f32 %v17252_v1, 0.0  ;;  %v5429_v34 = vmax.f32 %v17254_v26, 0.0 }
 0x4e3   : > { %v19817_v56 = vmax.f32 %v17256_v58, 0.0  ;;  %v5431_v39 = vmax.f32 %v17262_v21, 0.0  ;;  %v19818_v4 = vmax.f32 %v17264_v19, 0.0  ;;  %v5433_v3 = vmax.f32 %v17266_v52, 0.0 }
 0x4e4   : > { %v19820_v29 = vmax.f32 %v17268_v44, 0.0  ;;  %v5435_v2 = vmax.f32 %v17273_v43, 0.0  ;;  %v5437_v49 = vmax.f32 %v17279_v14, 0.0  ;;  %v5439_v32 = vmax.f32 %v17283_v37, 0.0 }
 0x4e5   : > { %v19809_v47 = vmax.f32 %v17288_v15, 0.0  ;;  %v5443_v5 = vmax.f32 %v17292_v55, 0.0  ;;  %v19810_v24 = vmax.f32 %v17296_v25, 0.0  ;;  %v19811_v53 = vmax.f32 %v17300_v17, 0.0 }
 0x4e6   : > { %v17334_v18 = vrot.slane %v5421_v40, 1  ;;  %v17336_v26 = vrot.slane %v5419_v30, 1  ;;  %v17338_v0 = vrot.slane %v5423_v8, 1  ;;  %v17340_v10 = vrot.slane %v5425_v7, 1 }
 0x4e7   : > { %v17342_v21 = vrot.slane %v5427_v31, 1  ;;  %v17344_v52 = vrot.slane %v5429_v34, 1  ;;  %v17346_v50 = vrot.slane %v5431_v39, 1  ;;  %v17348_v20 = vrot.slane %v5433_v3, 1 }
 0x4e8   : > { %v17350_v43 = vrot.slane %v5435_v2, 1  ;;  %v17352_v57 = vrot.slane %v5437_v49, 1  ;;  %v17354_v14 = vrot.slane %v5439_v32, 1  ;;  %v17358_v37 = vrot.slane %v19809_v47, 1 }
 0x4e9   : > { %v17360_v55 = vrot.slane %v5443_v5, 1  ;;  %v17364_v61 = vrot.slane %v19810_v24, 1  ;;  %v17368_v27 = vrot.slane %v19811_v53, 1  ;;  %v17370_v28 = vrot.slane %v5421_v40, 7 }
 0x4ea   : > { %v17374_v38 = vrot.slane %v19812_v54, 7  ;;  %v17376_v11 = vrot.slane %v5419_v30, 7  ;;  %v17380_v47 = vrot.slane %v19814_v12, 7  ;;  %v17382_v63 = vrot.slane %v5423_v8, 7 }
 0x4eb   : > { %v17386_v24 = vrot.slane %v19813_v62, 7  ;;  %v17391_v53 = vrot.slane %v5425_v7, 7  ;;  %v17395_v30 = vrot.slane %v19815_v35, 7  ;;  %v17397_v54 = vrot.slane %v5427_v31, 7 }
 0x4ec   : > { %v5517_v40 = vsel %vm317_vm1, %v17370_v28, %v17374_v38  ;;  %v5520_v8 = vsel %vm317_vm1, %v17376_v11, %v17380_v47  ;;  %v17407_v12 = vrot.slane %v19816_v46, 7  ;;  %v17409_v7 = vrot.slane %v5429_v34, 7 }
 0x4ed   : > { %20019 = vst [vmem:[#allocation22_spill] sm:$0xff] %v17386_v24  ;;  %20020 = vst [vmem:[#allocation23_spill] sm:$0xff] %v17395_v30  ;;  %v5523_v62 = vsel %vm317_vm1, %v17382_v63, %v17386_v24  ;;  %v5526_v31 = vsel %vm317_vm1, %v17391_v53, %v17395_v30  ;;  %v17418_v35 = vrot.slane %v19817_v56, 7  ;;  %v17420_v13 = vrot.slane %v5431_v39, 7 }
 0x4ee   : > { %20021 = vst [vmem:[#allocation24_spill] sm:$0xff] %v17407_v12  ;;  %5692 = vst.msk [vmem:[#allocation2 + $0x8] sm:$0xff] %vm504_vm2, %v5517_v40  ;;  %v17424_v46 = vrot.slane %v19818_v4, 7  ;;  %v5529_v34 = vsel %vm317_vm1, %v17397_v54, %v17407_v12  ;;  %v17435_v56 = vrot.slane %v19820_v29, 7  ;;  %v17437_v39 = vrot.slane %v5435_v2, 7 }
 0x4ef   : > { %5698 = vst.msk [vmem:[#allocation2 + $0x38] sm:$0xff] %vm504_vm2, %v5517_v40  ;;  %20022 = vst [vmem:[#allocation25_spill] sm:$0xff] %v17418_v35  ;;  %v17431_v40 = vrot.slane %v5433_v3, 7  ;;  %v20025_v4 = vmax.f32 %v17275_v42, 0.0  ;;  %v5542_v22 = vrot.slane %v5437_v49, 7  ;;  %v20029_v12 = vmax.f32 %v17286_v23, 0.0 }
 0x4f0   : > { %20023 = vst [vmem:[#allocation26_spill] sm:$0xff] %v17424_v46  ;;  %5695 = vst.msk [vmem:[#allocation2 + $0x20] sm:$0xff] %vm504_vm2, %v5520_v8  ;;  %v5532_v8 = vsel %vm317_vm1, %v17409_v7, %v17418_v35  ;;  %v5545_v35 = vrot.slane %v5439_v32, 7  ;;  %v20031_v49 = vmax.f32 %v17288_v15, 0.0  ;;  %v5551_v32 = vrot.slane %v5443_v5, 7 }
 0x4f1   : > { %5701 = vst.msk [vmem:[#allocation2 + $0x50] sm:$0xff] %vm504_vm2, %v5523_v62  ;;  %20024 = vst [vmem:[#allocation27_spill] sm:$0xff] %v17435_v56  ;;  %v5535_v62 = vsel %vm317_vm1, %v17420_v13, %v17424_v46  ;;  %v17448_v3 = vrot.slane %v20025_v4, 7  ;;  %v5538_v2 = vsel %vm317_vm1, %v17431_v40, %v17435_v56  ;;  %v17460_v30 = vrot.slane %v20029_v12, 7 }
 0x4f2   : > { %5704 = vst.msk [vmem:[#allocation2 + $0x68] sm:$0xff] %vm504_vm2, %v5526_v31  ;;  %5707 = vst.msk [vmem:[#allocation2 + $0x80] sm:$0xff] %vm504_vm2, %v5529_v34  ;;  %v20027_v31 = vmax.f32 %v17281_v6, 0.0  ;;  %v5548_v34 = vrot.slane %v20031_v49, 7  ;;  %v20032_v56 = vmax.f32 %v17290_v41, 0.0  ;;  %v20036_v15 = vmax.f32 %v17296_v25, 0.0 }
 0x4f3   : > { %20026 = vst [vmem:[#allocation28_spill] sm:$0xff] %v17448_v3  ;;  %20030 = vst [vmem:[#allocation30_spill] sm:$0xff] %v17460_v30  ;;  %v5541_v4 = vsel %vm317_vm1, %v17437_v39, %v17448_v3  ;;  %v20037_v5 = vmax.f32 %v17298_v9, 0.0 }
 0x4f4   : > { %v17456_v29 = vrot.slane %v20027_v31, 7  ;;  %5710 = vst.msk [vmem:[#allocation2 + $0x98] sm:$0xff] %vm504_vm2, %v5532_v8  ;;  %5713 = vst.msk [vmem:[#allocation2 + $0xb0] sm:$0xff] %vm504_vm2, %v5535_v62  ;;  %v17471_v31 = vrot.slane %v20032_v56, 7  ;;  %v5547_v8 = vsel %vm317_vm1, %v5545_v35, %v17460_v30  ;;  %v20034_v62 = vmax.f32 %v17294_v33, 0.0 }
 0x4f5   : > { %5716 = vst.msk [vmem:[#allocation2 + $0xc8] sm:$0xff] %vm504_vm2, %v5538_v2  ;;  %v5554_v49 = vrot.slane %v20036_v15, 7  ;;  %5719 = vst.msk [vmem:[#allocation2 + $0xe0] sm:$0xff] %vm504_vm2, %v5541_v4  ;;  %v17489_v2 = vrot.slane %v20037_v5, 7  ;;  %v20040_v30 = vmax.f32 %v17302_v59, 0.0  ;;  %v20042_v4 = vmax.f32 %v17240_v48, 0.0 }
 0x4f6   : > { %20028 = vst [vmem:[#allocation29_spill] sm:$0xff] %v17456_v29  ;;  %20033 = vst [vmem:[#allocation31_spill] sm:$0xff] %v17471_v31  ;;  %v5544_v12 = vsel %vm317_vm1, %v5542_v22, %v17456_v29  ;;  %v17480_v46 = vrot.slane %v20034_v62, 7  ;;  %v5550_v56 = vsel %vm317_vm1, %v5548_v34, %v17471_v31  ;;  %v20039_v29 = vmax.f32 %v17300_v17, 0.0 }
 0x4f7   : > { %20038 = vst [vmem:[#allocation33_spill] sm:$0xff] %v17489_v2  ;;  %v17495_v24 = vrot.slane %v20040_v30, 7  ;;  %5722 = vst.msk [vmem:[#allocation2 + $0xf8] sm:$0xff] %vm504_vm2, %v5544_v12  ;;  %v5611_v62 = vrot.slane %v20042_v4, 5  ;;  %v20043_v15 = vmax.f32 %v17236_v36, 0.0  ;;  %v20044_v17 = vmax.f32 %v17244_v60, 0.0 }
 0x4f8   : > { %20035 = vst [vmem:[#allocation32_spill] sm:$0xff] %v17480_v46  ;;  %v5557_v3 = vrot.slane %v20039_v29, 7  ;;  %5725 = vst.msk [vmem:[#allocation2 + $0x110] sm:$0xff] %vm504_vm2, %v5547_v8  ;;  %v5553_v25 = vsel %vm317_vm1, %v5551_v32, %v17480_v46  ;;  %v5556_v30 = vsel %vm317_vm1, %v5554_v49, %v17489_v2  ;;  %v20045_v8 = vmax.f32 %v17248_v51, 0.0 }
 0x4f9   : > { %20041 = vst [vmem:[#allocation35_spill] sm:$0xff] %v17495_v24  ;;  %v5612_v5 = vrot.slane %v20043_v15, 5  ;;  %v5613_v29 = vrot.slane %v20044_v17, 5  ;;  %5728 = vst.msk [vmem:[#allocation2 + $0x128] sm:$0xff] %vm504_vm2, %v5550_v56  ;;  %v20046_v48 = vmax.f32 %v17252_v1, 0.0  ;;  %v20047_v36 = vmax.f32 %v17256_v58, 0.0 }
 0x4fa   : > { %v5559_v12 = vsel %vm317_vm1, %v5557_v3, %v17495_v24  ;;  %v5614_v46 = vrot.slane %v20045_v8, 5  ;;  %5731 = vst.msk [vmem:[#allocation2 + $0x140] sm:$0xff] %vm504_vm2, %v5553_v25  ;;  %v20048_v15 = vmax.f32 %v17264_v19, 0.0  ;;  %v20049_v17 = vmax.f32 %v17268_v44, 0.0  ;;  %5734 = vst.msk [vmem:[#allocation2 + $0x158] sm:$0xff] %vm504_vm2, %v5556_v30 }
 0x4fb   : > { %v5615_v4 = vrot.slane %v20046_v48, 5  ;;  %v5616_v60 = vrot.slane %v20047_v36, 5  ;;  %v20050_v31 = vmax.f32 %v17275_v42, 0.0  ;;  %5737 = vst.msk [vmem:[#allocation2 + $0x170] sm:$0xff] %vm504_vm2, %v5559_v12  ;;  %5743 = vst.msk [vmem:[#allocation2 + $0x1a0] sm:$0xff] %vm504_vm2, %v5559_v12  ;;  %v20051_v51 = vmax.f32 %v17281_v6, 0.0 }
 0x4fc   : > { %v5617_v56 = vrot.slane %v20048_v15, 5  ;;  %v5618_v2 = vrot.slane %v20049_v17, 5  ;;  %v20052_v58 = vmax.f32 %v17286_v23, 0.0  ;;  %v20053_v19 = vmax.f32 %v17290_v41, 0.0 }
 0x4fd   : > { %v5619_v24 = vrot.slane %v20050_v31, 5  ;;  %v5620_v1 = vrot.slane %v20051_v51, 5  ;;  %v20054_v44 = vmax.f32 %v17294_v33, 0.0  ;;  %v20055_v42 = vmax.f32 %v17298_v9, 0.0  ;;  %v17643_v51 = vld [vmem:[#allocation2 + $0x8] sm:$0xff] }
 0x4fe   : > { %v5621_v25 = vrot.slane %v20052_v58, 5  ;;  %v5622_v8 = vrot.slane %v20053_v19, 5  ;;  %v20056_v30 = vmax.f32 %v17302_v59, 0.0  ;;  %v5643_v6 = vsel %vm317_vm1, %v17334_v18, %v17370_v28 }
 0x4ff   : > { %v5623_v48 = vrot.slane %v20054_v44, 5  ;;  %v5624_v31 = vrot.slane %v20055_v42, 5  ;;  %v5644_v23 = vsel %vm317_vm1, %v17336_v26, %v17376_v11  ;;  %v5645_v41 = vsel %vm317_vm1, %v17338_v0, %v17382_v63  ;;  %5691 = vst.msk [vmem:[#allocation2] sm:$0xff] %vm504_vm2, %v5643_v6  ;;  %5697 = vst.msk [vmem:[#allocation2 + $0x30] sm:$0xff] %vm504_vm2, %v5643_v6 }
 0x500   : > { %v5625_v36 = vrot.slane %v20056_v30, 5  ;;  %v5646_v33 = vsel %vm317_vm1, %v17340_v10, %v17391_v53  ;;  %v5647_v9 = vsel %vm317_vm1, %v17342_v21, %v17397_v54  ;;  %v5648_v59 = vsel %vm317_vm1, %v17344_v52, %v17409_v7  ;;  %5694 = vst.msk [vmem:[#allocation2 + $0x18] sm:$0xff] %vm504_vm2, %v5644_v23  ;;  %5700 = vst.msk [vmem:[#allocation2 + $0x48] sm:$0xff] %vm504_vm2, %v5645_v41  ;;  %v20057_v10 = vld [vmem:[#allocation22_spill] sm:$0xff]  ;;  %v20058_v21 = vld [vmem:[#allocation23_spill] sm:$0xff] }
 0x501   : > { %v5649_v63 = vsel %vm317_vm1, %v17346_v50, %v17420_v13  ;;  %v5650_v11 = vsel %vm317_vm1, %v17348_v20, %v17431_v40  ;;  %v5651_v54 = vsel %vm317_vm1, %v17350_v43, %v17437_v39  ;;  %v5652_v28 = vsel %vm317_vm1, %v17352_v57, %v5542_v22  ;;  %5703 = vst.msk [vmem:[#allocation2 + $0x60] sm:$0xff] %vm504_vm2, %v5646_v33  ;;  %v20060_v52 = vld [vmem:[#allocation25_spill] sm:$0xff]  ;;  %v20061_v50 = vld [vmem:[#allocation26_spill] sm:$0xff]  ;;  %v20062_v43 = vld [vmem:[#allocation27_spill] sm:$0xff] }
 0x502   : > { %5706 = vst.msk [vmem:[#allocation2 + $0x78] sm:$0xff] %vm504_vm2, %v5647_v9  ;;  %5709 = vst.msk [vmem:[#allocation2 + $0x90] sm:$0xff] %vm504_vm2, %v5648_v59  ;;  %v5653_v13 = vsel %vm317_vm1, %v17354_v14, %v5545_v35  ;;  %v5654_v53 = vsel %vm317_vm1, %v17358_v37, %v5548_v34  ;;  %v5655_v18 = vsel %vm317_vm1, %v17360_v55, %v5551_v32  ;;  %v20063_v14 = vld [vmem:[#allocation28_spill] sm:$0xff]  ;;  %v20064_v37 = vld [vmem:[#allocation29_spill] sm:$0xff]  ;;  %v5850_v30 = vrot.slane %v17643_v51, 1 }
 0x503   : > { %v5656_v22 = vsel %vm317_vm1, %v17364_v61, %v5554_v49  ;;  %5712 = vst.msk [vmem:[#allocation2 + $0xa8] sm:$0xff] %vm504_vm2, %v5649_v63  ;;  %5715 = vst.msk [vmem:[#allocation2 + $0xc0] sm:$0xff] %vm504_vm2, %v5650_v11  ;;  %v5657_v35 = vsel %vm317_vm1, %v17368_v27, %v5557_v3  ;;  %v5658_v26 = vsel %vm317_vm1, %v17260_v16, %v17258_v45  ;;  %v20059_v16 = vld [vmem:[#allocation24_spill] sm:$0xff]  ;;  %v20065_v7 = vld [vmem:[#allocation30_spill] sm:$0xff] }
 0x504   : > { %5718 = vst.msk [vmem:[#allocation2 + $0xd8] sm:$0xff] %vm504_vm2, %v5651_v54  ;;  %5721 = vst.msk [vmem:[#allocation2 + $0xf0] sm:$0xff] %vm504_vm2, %v5652_v28  ;;  %v5659_v0 = vsel %vm317_vm1, %v17374_v38, %v5611_v62  ;;  %v5660_v61 = vsel %vm317_vm1, %v17380_v47, %v5612_v5  ;;  %v5661_v27 = vsel %vm317_vm1, %v20057_v10, %v5613_v29  ;;  %v20066_v39 = vld [vmem:[#allocation31_spill] sm:$0xff]  ;;  %v20067_v34 = vld [vmem:[#allocation32_spill] sm:$0xff] }
 0x505   : > { %5724 = vst.msk [vmem:[#allocation2 + $0x108] sm:$0xff] %vm504_vm2, %v5653_v13  ;;  %5727 = vst.msk [vmem:[#allocation2 + $0x120] sm:$0xff] %vm504_vm2, %v5654_v53  ;;  %v5662_v45 = vsel %vm317_vm1, %v20058_v21, %v5614_v46  ;;  %v5663_v38 = vsel %vm317_vm1, %v20059_v16, %v5615_v4  ;;  %v5664_v47 = vsel %vm317_vm1, %v20060_v52, %v5616_v60  ;;  %v20068_v49 = vld [vmem:[#allocation33_spill] sm:$0xff]  ;;  %v20069_v5 = vld [vmem:[#allocation35_spill] sm:$0xff]  ;;  %v5676_v29 = vsel %vm486_vm3, %v5660_v61, 0.0 }
 0x506   : > { %5730 = vst.msk [vmem:[#allocation2 + $0x138] sm:$0xff] %vm504_vm2, %v5655_v18  ;;  %5733 = vst.msk [vmem:[#allocation2 + $0x150] sm:$0xff] %vm504_vm2, %v5656_v22  ;;  %v5665_v20 = vsel %vm317_vm1, %v20061_v50, %v5617_v56  ;;  %v5666_v57 = vsel %vm317_vm1, %v20062_v43, %v5618_v2  ;;  %v5667_v46 = vsel %vm317_vm1, %v20063_v14, %v5619_v24  ;;  %v5675_v24 = vsel %vm486_vm3, %v5659_v0, 0.0  ;;  %v17641_v17 = vld [vmem:[#allocation2] sm:$0xff]  ;;  %v17683_v28 = vld [vmem:[#allocation8 + $0x8] sm:$0xf] }
 0x507   : > { %5736 = vst.msk [vmem:[#allocation2 + $0x168] sm:$0xff] %vm504_vm2, %v5657_v35  ;;  %5739 = vst.msk [vmem:[#allocation2 + $0x180] sm:$0xff] %vm504_vm2, %v5658_v26  ;;  %v5668_v55 = vsel %vm317_vm1, %v20064_v37, %v5620_v1  ;;  %v5669_v40 = vsel %vm317_vm1, %v20065_v7, %v5621_v25  ;;  %v5670_v3 = vsel %vm317_vm1, %v20066_v39, %v5622_v8  ;;  %v5677_v12 = vsel %vm486_vm3, %v5661_v27, 0.0  ;;  %v17675_v33 = vld [vmem:[#allocation2 + $0x20] sm:$0xff]  ;;  %v17687_v53 = vld [vmem:[#allocation2 + $0x30] sm:$0xff] }
 0x508   : > { %5742 = vst.msk [vmem:[#allocation2 + $0x198] sm:$0xff] %vm504_vm2, %v5657_v35  ;;  %v5671_v32 = vsel %vm317_vm1, %v20067_v34, %v5623_v48  ;;  %v5672_v62 = vsel %vm317_vm1, %v20068_v49, %v5624_v31  ;;  %v5673_v2 = vsel %vm317_vm1, %v20069_v5, %v5625_v36  ;;  %v5678_v4 = vsel %vm486_vm3, %v5662_v45, 0.0  ;;  %5693 = vst.msk [vmem:[#allocation2 + $0x10] sm:$0xff] %vm504_vm2, %v5675_v24  ;;  %v17668_v36 = vld [vmem:[#allocation2 + $0x18] sm:$0xff]  ;;  %v20070_v18 = vld [vmem:[#allocation21_spill] sm:$0xff] }
 0x509   : > { %v5679_v60 = vsel %vm486_vm3, %v5663_v38, 0.0  ;;  %v5680_v15 = vsel %vm486_vm3, %v5664_v47, 0.0  ;;  %v5681_v56 = vsel %vm486_vm3, %v5665_v20, 0.0  ;;  %5696 = vst.msk [vmem:[#allocation2 + $0x28] sm:$0xff] %vm504_vm2, %v5676_v29  ;;  %5699 = vst.msk [vmem:[#allocation2 + $0x40] sm:$0xff] %vm504_vm2, %v5675_v24  ;;  %v5682_v1 = vsel %vm486_vm3, %v5666_v57, 0.0 }
 0x50a   : > { %5702 = vst.msk [vmem:[#allocation2 + $0x58] sm:$0xff] %vm504_vm2, %v5677_v12  ;;  %v5683_v58 = vsel %vm486_vm3, %v5667_v46, 0.0  ;;  %v5684_v25 = vsel %vm486_vm3, %v5668_v55, 0.0  ;;  %v5685_v19 = vsel %vm486_vm3, %v5669_v40, 0.0  ;;  %5705 = vst.msk [vmem:[#allocation2 + $0x70] sm:$0xff] %vm504_vm2, %v5678_v4  ;;  %v5686_v8 = vsel %vm486_vm3, %v5670_v3, 0.0 }
 0x50b   : > { %5708 = vst.msk [vmem:[#allocation2 + $0x88] sm:$0xff] %vm504_vm2, %v5679_v60  ;;  %5711 = vst.msk [vmem:[#allocation2 + $0xa0] sm:$0xff] %vm504_vm2, %v5680_v15  ;;  %v5687_v44 = vsel %vm486_vm3, %v5671_v32, 0.0  ;;  %v5688_v48 = vsel %vm486_vm3, %v5672_v62, 0.0  ;;  %v5689_v42 = vsel %vm486_vm3, %v5673_v2, 0.0  ;;  %v5849_v31 = vrot.slane %v17641_v17, 1 }
 0x50c   : > { %5714 = vst.msk [vmem:[#allocation2 + $0xb8] sm:$0xff] %vm504_vm2, %v5681_v56  ;;  %5717 = vst.msk [vmem:[#allocation2 + $0xd0] sm:$0xff] %vm504_vm2, %v5682_v1  ;;  %v5854_v23 = vrot.slane %v17668_v36, 1  ;;  %v5856_v54 = vrot.slane %v17675_v33, 1  ;;  %v17692_v22 = vld [vmem:[#allocation2 + $0x38] sm:$0xff]  ;;  %v5860_v26 = vrot.slane %v17687_v53, 1 }
 0x50d   : > { %5720 = vst.msk [vmem:[#allocation2 + $0xe8] sm:$0xff] %vm504_vm2, %v5683_v58  ;;  %5723 = vst.msk [vmem:[#allocation2 + $0x100] sm:$0xff] %vm504_vm2, %v5684_v25  ;;  %v5851_v6 = vsel %vm663_vm4, %v5849_v31, %v5850_v30  ;;  %v5862_v61 = vrot.slane %v17692_v22, 1  ;;  %v17710_v27 = vld [vmem:[#allocation2 + $0x48] sm:$0xff]  ;;  %v17722_v52 = vld [vmem:[#allocation2 + $0x50] sm:$0xff] }
 0x50e   : > { %5726 = vst.msk [vmem:[#allocation2 + $0x118] sm:$0xff] %vm504_vm2, %v5685_v19  ;;  %5729 = vst.msk [vmem:[#allocation2 + $0x130] sm:$0xff] %vm504_vm2, %v5686_v8  ;;  %13256 = vmatprep.mubr.msk.f32.mxu1 %vm504_vm2, %v5851_v6  ;;  %v17697_v35 = vsel %vm663_vm4, %v5854_v23, %v5856_v54  ;;  %v5866_v38 = vrot.slane %v17710_v27, 1  ;;  %v5868_v20 = vrot.slane %v17722_v52, 1  ;;  %v17738_v14 = vld [vmem:[#allocation2 + $0x60] sm:$0xff]  ;;  %v17742_v46 = vld [vmem:[#allocation2 + $0x68] sm:$0xff] }
 0x50f   : > { %5732 = vst.msk [vmem:[#allocation2 + $0x148] sm:$0xff] %vm504_vm2, %v5687_v44  ;;  %5735 = vst.msk [vmem:[#allocation2 + $0x160] sm:$0xff] %vm504_vm2, %v5688_v48  ;;  %v17673_v41 = vld [vmem:[#allocation2 + $0x10] sm:$0xff]  ;;  %v17719_v16 = vsel %vm663_vm4, %v5860_v26, %v5862_v61  ;;  %v5872_v55 = vrot.slane %v17738_v14, 1  ;;  %v5874_v40 = vrot.slane %v17742_v46, 1  ;;  %v17758_v3 = vld [vmem:[#allocation2 + $0x78] sm:$0xff] }
 0x510   : > { %5738 = vst.msk [vmem:[#allocation2 + $0x178] sm:$0xff] %vm504_vm2, %v5689_v42  ;;  %5744 = vst.msk [vmem:[#allocation2 + $0x1a8] sm:$0xff] %vm504_vm2, %v5689_v42  ;;  %v5852_v9 = vrot.slane %v17673_v41, 1  ;;  %v17678_v59 = vld [vmem:[#allocation2 + $0x28] sm:$0xff]  ;;  %v17706_v10 = vld [vmem:[#allocation2 + $0x40] sm:$0xff]  ;;  %v17745_v37 = vsel %vm663_vm4, %v5866_v38, %v5868_v20  ;;  %v5878_v62 = vrot.slane %v17758_v3, 1 }
 0x511   : > { %v5858_v13 = vrot.slane %v17678_v59, 1  ;;  %v5864_v45 = vrot.slane %v17706_v10, 1  ;;  %v17726_v47 = vld [vmem:[#allocation2 + $0x58] sm:$0xff]  ;;  %20071 = vst [vmem:[#allocation34_spill] sm:$0xff] %v17745_v37  ;;  %v17754_v39 = vld [vmem:[#allocation2 + $0x70] sm:$0xff]  ;;  %v17767_v49 = vsel %vm663_vm4, %v5872_v55, %v5874_v40  ;;  %v17770_v5 = vld [vmem:[#allocation2 + $0x80] sm:$0xff] }
 0x512   : > { %v5853_v63 = vsel %vm663_vm4, %v5850_v30, %v5852_v9  ;;  %v5855_v11 = vsel %vm663_vm4, %v5852_v9, %v5854_v23  ;;  %v5870_v57 = vrot.slane %v17726_v47, 1  ;;  %v5876_v32 = vrot.slane %v17754_v39, 1  ;;  %20074 = vst [vmem:[#allocation38_spill] sm:$0xff] %v17767_v49  ;;  %v17774_v2 = vld [vmem:[#allocation2 + $0x88] sm:$0xff]  ;;  %v17786_v60 = vld [vmem:[#allocation2 + $0x90] sm:$0xff]  ;;  %v17790_v15 = vld [vmem:[#allocation2 + $0x98] sm:$0xff] }
 0x513   : > { %13257 = vmatmul.mubr.msk.f32.vlgmr.msra.gmra.mrb[0].mxu1 %vm504_vm2, %v5853_v63  ;;  %v17703_v0 = vsel %vm663_vm4, %v5856_v54, %v5858_v13  ;;  %v17713_v21 = vsel %vm663_vm4, %v5858_v13, %v5860_v26  ;;  %v17729_v50 = vsel %vm663_vm4, %v5862_v61, %v5864_v45  ;;  %v17735_v43 = vsel %vm663_vm4, %v5864_v45, %v5866_v38  ;;  %v17802_v19 = vld [vmem:[#allocation2 + $0xa0] sm:$0xff]  ;;  %v17806_v8 = vld [vmem:[#allocation2 + $0xa8] sm:$0xff]  ;;  %v17818_v30 = vld [vmem:[#allocation2 + $0xb0] sm:$0xff] }
 0x514   : > { %13329 = vmatpush3.msk.msra.mxu1 %vm857_vm0, %v20070_v18  ;;  %13259 = vmatprep.mubr.msk.f32.mxu1 %vm504_vm2, %v5855_v11  ;;  %v17751_v7 = vsel %vm663_vm4, %v5868_v20, %v5870_v57  ;;  %v17761_v34 = vsel %vm663_vm4, %v5870_v57, %v5872_v55  ;;  %v17777_v24 = vsel %vm663_vm4, %v5874_v40, %v5876_v32  ;;  %v5880_v29 = vrot.slane %v17770_v5, 1  ;;  %v17820_v6 = vld [vmem:[#allocation2 + $0xb8] sm:$0xff]  ;;  %v17822_v23 = vld [vmem:[#allocation2 + $0xc0] sm:$0xff]  ;;  %v17826_v9 = vld [vmem:[#allocation2 + $0xc8] sm:$0xff] }
 0x515   : > { %13402 = vmatprep.subr.msk.mxu1 %vm857_vm0, %v17683_v28  ;;  %20072 = vst [vmem:[#allocation36_spill] sm:$0xff] %v17751_v7  ;;  %20073 = vst [vmem:[#allocation37_spill] sm:$0xff] %v17761_v34  ;;  %v17783_v12 = vsel %vm663_vm4, %v5876_v32, %v5878_v62  ;;  %v5882_v4 = vrot.slane %v17774_v2, 1  ;;  %v5884_v1 = vrot.slane %v17786_v60, 1  ;;  %v5886_v25 = vrot.slane %v17790_v15, 1  ;;  %v17834_v18 = vld [vmem:[#allocation2 + $0xd0] sm:$0xff] }
 0x516   : > { %20075 = vst [vmem:[#allocation39_spill] sm:$0xff] %v17777_v24  ;;  %20076 = vst [vmem:[#allocation40_spill] sm:$0xff] %v17783_v12  ;;  %v17793_v56 = vsel %vm663_vm4, %v5878_v62, %v5880_v29  ;;  %v5888_v48 = vrot.slane %v17802_v19, 1  ;;  %v5890_v31 = vrot.slane %v17806_v8, 1  ;;  %v5892_v11 = vrot.slane %v17818_v30, 1  ;;  %v17842_v45 = vld [vmem:[#allocation2 + $0xe0] sm:$0xff] }
 0x517   : > { %13260 = vmatmul.mubr.msk.f32.gmra.mrb[2].mxu1 %vm504_vm2, %v17697_v35  ;;  %20077 = vst [vmem:[#allocation41_spill] sm:$0xff] %v17793_v56  ;;  %v17799_v58 = vsel %vm663_vm4, %v5880_v29, %v5882_v4  ;;  %v17809_v44 = vsel %vm663_vm4, %v5882_v4, %v5884_v1  ;;  %v17815_v42 = vsel %vm663_vm4, %v5884_v1, %v5886_v25  ;;  %v5894_v54 = vrot.slane %v17820_v6, 1  ;;  %v17846_v38 = vld [vmem:[#allocation2 + $0xd8] sm:$0xff]  ;;  %v17848_v20 = vld [vmem:[#allocation2 + $0xe8] sm:$0xff]  ;;  %v17853_v40 = vld [vmem:[#allocation2 + $0xf0] sm:$0xff] }
 0x518   : > { %13262 = vmatprep.mubr.msk.f32.mxu1 %vm504_vm2, %v17703_v0  ;;  %20078 = vst [vmem:[#allocation42_spill] sm:$0xff] %v17799_v58  ;;  %20079 = vst [vmem:[#allocation43_spill] sm:$0xff] %v17809_v44  ;;  %v17829_v63 = vsel %vm663_vm4, %v5886_v25, %v5888_v48  ;;  %v5896_v13 = vrot.slane %v17822_v23, 1  ;;  %v17839_v26 = vsel %vm663_vm4, %v5888_v48, %v5890_v31  ;;  %v5898_v61 = vrot.slane %v17826_v9, 1  ;;  %v17850_v57 = vld [vmem:[#allocation2 + $0xf8] sm:$0xff]  ;;  %v17855_v32 = vld [vmem:[#allocation2 + $0x100] sm:$0xff] }
 0x519   : > { %20080 = vst [vmem:[#allocation44_spill] sm:$0xff] %v17815_v42  ;;  %20081 = vst [vmem:[#allocation45_spill] sm:$0xff] %v17829_v63  ;;  %v5900_v55 = vrot.slane %v17834_v18, 1  ;;  %v17857_v62 = vld [vmem:[#allocation2 + $0x108] sm:$0xff]  ;;  %v17860_v29 = vsel %vm663_vm4, %v5890_v31, %v5892_v11  ;;  %v17863_v4 = vsel %vm663_vm4, %v5892_v11, %v5894_v54  ;;  %v5902_v48 = vrot.slane %v17846_v38, 1 }
 0x51a   : > { %20082 = vst [vmem:[#allocation46_spill] sm:$0xff] %v17839_v26  ;;  %20083 = vst [vmem:[#allocation47_spill] sm:$0xff] %v17860_v29  ;;  %v17866_v1 = vsel %vm663_vm4, %v5894_v54, %v5896_v13  ;;  %v17871_v25 = vsel %vm663_vm4, %v5896_v13, %v5898_v61  ;;  %v5908_v31 = vrot.slane %v17853_v40, 1  ;;  %v5910_v11 = vrot.slane %v17850_v57, 1 }
 0x51b   : > { %13263 = vmatmul.mubr.msk.f32.gmra.mrb[4].mxu1 %vm504_vm2, %v17713_v21  ;;  %20084 = vst [vmem:[#allocation48_spill] sm:$0xff] %v17863_v4  ;;  %20085 = vst [vmem:[#allocation49_spill] sm:$0xff] %v17866_v1  ;;  %v5912_v54 = vrot.slane %v17855_v32, 1  ;;  %v17885_v13 = vsel %vm663_vm4, %v5898_v61, %v5900_v55 }
 0x51c   : > { %13265 = vmatprep.mubr.msk.f32.mxu1 %vm504_vm2, %v17719_v16  ;;  %20086 = vst [vmem:[#allocation51_spill] sm:$0xff] %v17871_v25  ;;  %20087 = vst [vmem:[#allocation50_spill] sm:$0xff] %v17885_v13 }
 0x51f   : > { %13266 = vmatmul.mubr.msk.f32.gmra.mrb[6].mxu1 %vm504_vm2, %v17729_v50 }
 0x520   : > { %13268 = vmatprep.mubr.msk.f32.mxu1 %vm504_vm2, %v17735_v43 }
 0x523   : > { %13269 = vmatmul.mubr.msk.f32.gmra.mrb[8].mxu1 %vm504_vm2, %v17745_v37  ;;  %v18028_v37 = vld [vmem:[#allocation2 + $0x180] sm:$0x3] }
 0x524   : > { %13271 = vmatprep.mubr.msk.f32.mxu1 %vm504_vm2, %v17751_v7 }
 0x527   : > { %13272 = vmatmul.mubr.msk.f32.gmra.mrb[10].mxu1 %vm504_vm2, %v17761_v34  ;;  %v18010_v34 = vld [vmem:[#allocation2 + $0x170] sm:$0xff] }
 0x528   : > { %13274 = vmatprep.mubr.msk.f32.mxu1 %vm504_vm2, %v17767_v49  ;;  %v5940_v7 = vrot.slane %v18010_v34, 1 }
 0x52b   : > { %13275 = vmatmul.mubr.msk.f32.gmra.mrb[12].mxu1 %vm504_vm2, %v17777_v24  ;;  %v17994_v24 = vld [vmem:[#allocation2 + $0x160] sm:$0xff] }
 0x52c   : > { %13277 = vmatprep.mubr.msk.f32.mxu1 %vm504_vm2, %v17783_v12  ;;  %v5936_v49 = vrot.slane %v17994_v24, 1 }
 0x52f   : > { %13278 = vmatmul.mubr.msk.f32.gmra.mrb[14].mxu1 %vm504_vm2, %v17793_v56 }
 0x530   : > { %13280 = vmatprep.mubr.msk.f32.mxu1 %vm504_vm2, %v17799_v58 }
 0x533   : > { %13281 = vmatmul.mubr.msk.f32.gmra.mrb[16].mxu1 %vm504_vm2, %v17809_v44  ;;  %v17890_v44 = vsel %vm663_vm4, %v5900_v55, %v5902_v48  ;;  %v17909_v55 = vsel %vm663_vm4, %v5908_v31, %v5910_v11 }
 0x534   : > { %13283 = vmatprep.mubr.msk.f32.mxu1 %vm504_vm2, %v17815_v42  ;;  %v17882_v42 = vld [vmem:[#allocation2 + $0x110] sm:$0xff]  ;;  %20088 = vst [vmem:[#allocation52_spill] sm:$0xff] %v17890_v44  ;;  %20092 = vst [vmem:[#allocation16_spill] sm:$0xff] %v17909_v55 }
 0x537   : > { %13284 = vmatmul.mubr.msk.f32.gmra.mrb[18].mxu1 %vm504_vm2, %v17829_v63  ;;  %v5906_v63 = vrot.slane %v17848_v20, 1 }
 0x538   : > { %13286 = vmatprep.mubr.msk.f32.mxu1 %vm504_vm2, %v17839_v26  ;;  %v5904_v26 = vrot.slane %v17842_v45, 1 }
 0x539   : > { %v17904_v56 = vsel %vm663_vm4, %v5906_v63, %v5908_v31  ;;  %v17937_v31 = vld [vmem:[#allocation2 + $0x128] sm:$0xff] }
 0x53a   : > { %v17898_v58 = vsel %vm663_vm4, %v5902_v48, %v5904_v26  ;;  %v17901_v61 = vsel %vm663_vm4, %v5904_v26, %v5906_v63  ;;  %20091 = vst [vmem:[#allocation15_spill] sm:$0xff] %v17904_v56  ;;  %v17928_v63 = vld [vmem:[#allocation2 + $0x118] sm:$0xff] }
 0x53b   : > { %13287 = vmatmul.mubr.msk.f32.gmra.mrb[20].mxu1 %vm504_vm2, %v17860_v29  ;;  %v5914_v29 = vrot.slane %v17857_v62, 1  ;;  %20089 = vst [vmem:[#allocation13_spill] sm:$0xff] %v17898_v58  ;;  %20090 = vst [vmem:[#allocation14_spill] sm:$0xff] %v17901_v61  ;;  %v5918_v26 = vrot.slane %v17928_v63, 1 }
 0x53c   : > { %13289 = vmatprep.mubr.msk.f32.mxu1 %vm504_vm2, %v17863_v4  ;;  %v5916_v4 = vrot.slane %v17882_v42, 1 }
 0x53e   : > { %v17918_v48 = vsel %vm663_vm4, %v5914_v29, %v5916_v4 }
 0x53f   : > { %13290 = vmatmul.mubr.msk.f32.gmra.mrb[22].mxu1 %vm504_vm2, %v17866_v1  ;;  %20095 = vst [vmem:[#allocation18_spill] sm:$0xff] %v17918_v48  ;;  %v17978_v1 = vld [vmem:[#allocation2 + $0x150] sm:$0xff] }
 0x540   : > { %13292 = vmatprep.mubr.msk.f32.mxu1 %vm504_vm2, %v17871_v25  ;;  %v17912_v25 = vsel %vm663_vm4, %v5910_v11, %v5912_v54  ;;  %v5932_v12 = vrot.slane %v17978_v1, 1 }
 0x541   : > { %20093 = vst [vmem:[#allocation17_spill] sm:$0xff] %v17912_v25 }
 0x543   : > { %13293 = vmatmul.mubr.msk.f32.gmra.mrb[24].mxu1 %vm504_vm2, %v17885_v13  ;;  %v17915_v13 = vsel %vm663_vm4, %v5912_v54, %v5914_v29  ;;  %v17933_v29 = vld [vmem:[#allocation2 + $0x120] sm:$0xff]  ;;  %v17943_v54 = vsel %vm663_vm4, %v5916_v4, %v5918_v26 }
 0x544   : > { %13295 = vmatprep.mubr.msk.f32.mxu1 %vm504_vm2, %v17890_v44  ;;  %20094 = vst [vmem:[#allocation19_spill] sm:$0xff] %v17915_v13  ;;  %v5920_v11 = vrot.slane %v17933_v29, 1  ;;  %20096 = vst [vmem:[#allocation20_spill] sm:$0xff] %v17943_v54 }
 0x547   : > { %13296 = vmatmul.mubr.msk.f32.gmra.mrb[26].mxu1 %vm504_vm2, %v17898_v58  ;;  %v17962_v58 = vld [vmem:[#allocation2 + $0x140] sm:$0xff] }
 0x548   : > { %13298 = vmatprep.mubr.msk.f32.mxu1 %vm504_vm2, %v17901_v61  ;;  %v5928_v44 = vrot.slane %v17962_v58, 1 }
 0x54b   : > { %13299 = vmatmul.mubr.msk.f32.gmra.mrb[28].mxu1 %vm504_vm2, %v17904_v56  ;;  %v17950_v56 = vld [vmem:[#allocation2 + $0x138] sm:$0xff] }
 0x54c   : > { %13301 = vmatprep.mubr.msk.f32.mxu1 %vm504_vm2, %v17909_v55  ;;  %v5922_v55 = vrot.slane %v17937_v31, 1 }
 0x54e   : > { %v17959_v4 = vsel %vm663_vm4, %v5920_v11, %v5922_v55 }
 0x54f   : > { %13302 = vmatmul.mubr.msk.f32.gmra.mrb[30].mxu1 %vm504_vm2, %v17912_v25  ;;  %v17946_v25 = vld [vmem:[#allocation2 + $0x130] sm:$0xff]  ;;  %20098 = vst [vmem:[#allocation23_spill] sm:$0xff] %v17959_v4 }
 0x550   : > { %13304 = vmatprep.mubr.msk.f32.mxu1 %vm504_vm2, %v17915_v13  ;;  %v17953_v13 = vsel %vm663_vm4, %v5918_v26, %v5920_v11  ;;  %v5924_v61 = vrot.slane %v17946_v25, 1 }
 0x551   : > { %20097 = vst [vmem:[#allocation22_spill] sm:$0xff] %v17953_v13 }
 0x552   : > { %v17969_v26 = vsel %vm663_vm4, %v5922_v55, %v5924_v61 }
 0x553   : > { %13305 = vmatmul.mubr.msk.f32.gmra.mrb[32].mxu1 %vm504_vm2, %v17918_v48  ;;  %v5926_v48 = vrot.slane %v17950_v56, 1  ;;  %20099 = vst [vmem:[#allocation24_spill] sm:$0xff] %v17969_v26 }
 0x554   : > { %13307 = vmatprep.mubr.msk.f32.mxu1 %vm504_vm2, %v17943_v54  ;;  %v17966_v54 = vld [vmem:[#allocation2 + $0x148] sm:$0xff] }
 0x555   : > { %v17975_v11 = vsel %vm663_vm4, %v5924_v61, %v5926_v48  ;;  %v17985_v55 = vsel %vm663_vm4, %v5926_v48, %v5928_v44 }
 0x556   : > { %20100 = vst [vmem:[#allocation25_spill] sm:$0xff] %v17975_v11  ;;  %20101 = vst [vmem:[#allocation26_spill] sm:$0xff] %v17985_v55 }
 0x557   : > { %13308 = vmatmul.mubr.msk.f32.gmra.mrb[34].mxu1 %vm504_vm2, %v17953_v13  ;;  %v5930_v13 = vrot.slane %v17966_v54, 1 }
 0x558   : > { %13310 = vmatprep.mubr.msk.f32.mxu1 %vm504_vm2, %v17959_v4  ;;  %v17982_v4 = vld [vmem:[#allocation2 + $0x158] sm:$0xff] }
 0x559   : > { %v17991_v61 = vsel %vm663_vm4, %v5928_v44, %v5930_v13  ;;  %v18001_v48 = vsel %vm663_vm4, %v5930_v13, %v5932_v12 }
 0x55a   : > { %20102 = vst [vmem:[#allocation27_spill] sm:$0xff] %v17991_v61  ;;  %20103 = vst [vmem:[#allocation28_spill] sm:$0xff] %v18001_v48 }
 0x55b   : > { %13311 = vmatmul.mubr.msk.f32.gmra.mrb[36].mxu1 %vm504_vm2, %v17969_v26  ;;  %v5934_v26 = vrot.slane %v17982_v4, 1 }
 0x55c   : > { %13313 = vmatprep.mubr.msk.f32.mxu1 %vm504_vm2, %v17975_v11  ;;  %v17998_v11 = vld [vmem:[#allocation2 + $0x168] sm:$0xff] }
 0x55d   : > { %v18007_v44 = vsel %vm663_vm4, %v5932_v12, %v5934_v26  ;;  %v18017_v13 = vsel %vm663_vm4, %v5934_v26, %v5936_v49  ;;  %v5944_v26 = vrot.slane %v18028_v37, 1 }
 0x55e   : > { %20104 = vst [vmem:[#allocation29_spill] sm:$0xff] %v18007_v44  ;;  %20105 = vst [vmem:[#allocation30_spill] sm:$0xff] %v18017_v13 }
 0x55f   : > { %13314 = vmatmul.mubr.msk.f32.gmra.mrb[38].mxu1 %vm504_vm2, %v17985_v55  ;;  %v5938_v55 = vrot.slane %v17998_v11, 1 }
 0x560   : > { %13316 = vmatprep.mubr.msk.f32.mxu1 %vm504_vm2, %v17991_v61  ;;  %v18014_v61 = vld [vmem:[#allocation2 + $0x178] sm:$0xff] }
 0x561   : > { %v18023_v12 = vsel %vm663_vm4, %v5936_v49, %v5938_v55 }
 0x563   : > { %13317 = vmatmul.mubr.msk.f32.gmra.mrb[40].mxu1 %vm504_vm2, %v18001_v48  ;;  %v18026_v48 = vrot.slane %v18014_v61, 1 }
 0x564   : > { %13319 = vmatprep.mubr.msk.f32.mxu1 %vm504_vm2, %v18007_v44  ;;  %v18033_v44 = vsel %vm663_vm4, %v5938_v55, %v5940_v7  ;;  %v7291_v55 = vld [vmem:[#allocation8 + $0xc] sm:$0xf] }
 0x565   : > { %20106 = vst [vmem:[#allocation31_spill] sm:$0xff] %v18026_v48  ;;  %20107 = vst [vmem:[#allocation32_spill] sm:$0xff] %v18033_v44  ;;  %v18040_v49 = vsel %vm663_vm4, %v5940_v7, %v18026_v48  ;;  %v6725_v7 = vrot.slane %v17643_v51, 2 }
 0x566   : > { %20108 = vst [vmem:[#allocation33_spill] sm:$0xff] %v18040_v49 }
 0x567   : > { %13320 = vmatmul.mubr.msk.f32.gmra.mrb[42].mxu1 %vm504_vm2, %v18017_v13  ;;  %v5945_v13 = vsel %vm663_vm4, %v18026_v48, %v5944_v26  ;;  %v6729_v48 = vrot.slane %v17668_v36, 2 }
 0x568   : > { %13322 = vmatprep.mubr.msk.f32.mxu1 %vm504_vm2, %v18023_v12 }
 0x56b   : > { %13323 = vmatmul.mubr.msk.f32.gmra.mrb[44].mxu1 %vm504_vm2, %v18033_v44  ;;  %v18154_v44 = vld [vmem:[#allocation8 + $0x10] sm:$0xf] }
 0x56c   : > { %13325 = vmatprep.mubr.msk.f32.mxu1 %vm504_vm2, %v18040_v49 }
 0x56f   : > { %13326 = vmatmul.mubr.msk.f32.gmra.mrb[46].mxu1 %vm504_vm2, %v5945_v13  ;;  %v6727_v13 = vrot.slane %v17673_v41, 2 }
 0x570   : > { %13330 = vmatprep.mubr.msk.f32.mxu1 %vm504_vm2, %v17641_v17 }
 0x571   : > { %v6728_v49 = vsel %vm1540_vm5, %v6725_v7, %v6727_v13 }
 0x573   : > { %13331 = vmatmul.mubr.msk.f32.vlgmr.msra.gmra.mrb[0].mxu1 %vm504_vm2, %v17643_v51  ;;  %v6730_v51 = vsel %vm1540_vm5, %v6727_v13, %v6729_v48  ;;  %v6737_v13 = vrot.slane %v17692_v22, 2 }
 0x574   : > { %13403 = vmatpush3.msk.msra.mxu1 %vm857_vm0, %v17683_v28  ;;  %13333 = vmatprep.mubr.msk.f32.mxu1 %vm504_vm2, %v17673_v41  ;;  %v6724_v28 = vrot.slane %v17641_v17, 2  ;;  %v6731_v17 = vrot.slane %v17675_v33, 2  ;;  %v6733_v41 = vrot.slane %v17678_v59, 2 }
 0x575   : > { %13476 = vmatprep.subr.msk.mxu1 %vm857_vm0, %v7291_v55 }
 0x576   : > { %v6726_v26 = vsel %vm1540_vm5, %v6724_v28, %v6725_v7  ;;  %v18164_v28 = vsel %vm1540_vm5, %v6729_v48, %v6731_v17  ;;  %v6735_v7 = vrot.slane %v17687_v53, 2 }
 0x577   : > { %13334 = vmatmul.mubr.msk.f32.gmra.mrb[2].mxu1 %vm504_vm2, %v17668_v36 }
 0x578   : > { %13336 = vmatprep.mubr.msk.f32.mxu1 %vm504_vm2, %v17675_v33  ;;  %v18182_v48 = vsel %vm1540_vm5, %v6735_v7, %v6737_v13 }
 0x579   : > { %20111 = vst [vmem:[#allocation53_spill] sm:$0xff] %v18182_v48 }
 0x57b   : > { %13337 = vmatmul.mubr.msk.f32.gmra.mrb[4].mxu1 %vm504_vm2, %v17678_v59 }
 0x57c   : > { %13339 = vmatprep.mubr.msk.f32.mxu1 %vm504_vm2, %v17687_v53 }
 0x57f   : > { %13340 = vmatmul.mubr.msk.f32.gmra.mrb[6].mxu1 %vm504_vm2, %v17692_v22 }
 0x580   : > { %13342 = vmatprep.mubr.msk.f32.mxu1 %vm504_vm2, %v17706_v10 }
 0x583   : > { %13343 = vmatmul.mubr.msk.f32.gmra.mrb[8].mxu1 %vm504_vm2, %v17710_v27 }
 0x584   : > { %13345 = vmatprep.mubr.msk.f32.mxu1 %vm504_vm2, %v17722_v52 }
 0x587   : > { %13346 = vmatmul.mubr.msk.f32.gmra.mrb[10].mxu1 %vm504_vm2, %v17726_v47 }
 0x588   : > { %13348 = vmatprep.mubr.msk.f32.mxu1 %vm504_vm2, %v17738_v14 }
 0x58b   : > { %13349 = vmatmul.mubr.msk.f32.gmra.mrb[12].mxu1 %vm504_vm2, %v17742_v46 }
 0x58c   : > { %13351 = vmatprep.mubr.msk.f32.mxu1 %vm504_vm2, %v17754_v39 }
 0x58f   : > { %13352 = vmatmul.mubr.msk.f32.gmra.mrb[14].mxu1 %vm504_vm2, %v17758_v3 }
 0x590   : > { %13354 = vmatprep.mubr.msk.f32.mxu1 %vm504_vm2, %v17770_v5 }
 0x593   : > { %13355 = vmatmul.mubr.msk.f32.gmra.mrb[16].mxu1 %vm504_vm2, %v17774_v2 }
 0x594   : > { %13357 = vmatprep.mubr.msk.f32.mxu1 %vm504_vm2, %v17786_v60 }
 0x597   : > { %13358 = vmatmul.mubr.msk.f32.gmra.mrb[18].mxu1 %vm504_vm2, %v17790_v15 }
 0x598   : > { %13360 = vmatprep.mubr.msk.f32.mxu1 %vm504_vm2, %v17802_v19 }
 0x59b   : > { %13361 = vmatmul.mubr.msk.f32.gmra.mrb[20].mxu1 %vm504_vm2, %v17806_v8 }
 0x59c   : > { %13363 = vmatprep.mubr.msk.f32.mxu1 %vm504_vm2, %v17818_v30 }
 0x59f   : > { %13364 = vmatmul.mubr.msk.f32.gmra.mrb[22].mxu1 %vm504_vm2, %v17820_v6 }
 0x5a0   : > { %13366 = vmatprep.mubr.msk.f32.mxu1 %vm504_vm2, %v17822_v23 }
 0x5a3   : > { %13367 = vmatmul.mubr.msk.f32.gmra.mrb[24].mxu1 %vm504_vm2, %v17826_v9 }
 0x5a4   : > { %13369 = vmatprep.mubr.msk.f32.mxu1 %vm504_vm2, %v17834_v18 }
 0x5a7   : > { %13370 = vmatmul.mubr.msk.f32.gmra.mrb[26].mxu1 %vm504_vm2, %v17846_v38 }
 0x5a8   : > { %13372 = vmatprep.mubr.msk.f32.mxu1 %vm504_vm2, %v17842_v45 }
 0x5ab   : > { %13373 = vmatmul.mubr.msk.f32.gmra.mrb[28].mxu1 %vm504_vm2, %v17848_v20 }
 0x5ac   : > { %13375 = vmatprep.mubr.msk.f32.mxu1 %vm504_vm2, %v17853_v40 }
 0x5af   : > { %13376 = vmatmul.mubr.msk.f32.gmra.mrb[30].mxu1 %vm504_vm2, %v17850_v57 }
 0x5b0   : > { %13378 = vmatprep.mubr.msk.f32.mxu1 %vm504_vm2, %v17855_v32 }
 0x5b3   : > { %13379 = vmatmul.mubr.msk.f32.gmra.mrb[32].mxu1 %vm504_vm2, %v17857_v62 }
 0x5b4   : > { %13381 = vmatprep.mubr.msk.f32.mxu1 %vm504_vm2, %v17882_v42 }
 0x5b7   : > { %13382 = vmatmul.mubr.msk.f32.gmra.mrb[34].mxu1 %vm504_vm2, %v17928_v63 }
 0x5b8   : > { %13384 = vmatprep.mubr.msk.f32.mxu1 %vm504_vm2, %v17933_v29 }
 0x5bb   : > { %13385 = vmatmul.mubr.msk.f32.gmra.mrb[36].mxu1 %vm504_vm2, %v17937_v31 }
 0x5bc   : > { %13387 = vmatprep.mubr.msk.f32.mxu1 %vm504_vm2, %v17946_v25 }
 0x5bf   : > { %13388 = vmatmul.mubr.msk.f32.gmra.mrb[38].mxu1 %vm504_vm2, %v17950_v56 }
 0x5c0   : > { %13390 = vmatprep.mubr.msk.f32.mxu1 %vm504_vm2, %v17962_v58 }
 0x5c3   : > { %13391 = vmatmul.mubr.msk.f32.gmra.mrb[40].mxu1 %vm504_vm2, %v17966_v54 }
 0x5c4   : > { %13393 = vmatprep.mubr.msk.f32.mxu1 %vm504_vm2, %v17978_v1 }
 0x5c7   : > { %13394 = vmatmul.mubr.msk.f32.gmra.mrb[42].mxu1 %vm504_vm2, %v17982_v4 }
 0x5c8   : > { %13396 = vmatprep.mubr.msk.f32.mxu1 %vm504_vm2, %v17994_v24 }
 0x5cb   : > { %13397 = vmatmul.mubr.msk.f32.gmra.mrb[44].mxu1 %vm504_vm2, %v17998_v11 }
 0x5cc   : > { %13399 = vmatprep.mubr.msk.f32.mxu1 %vm504_vm2, %v18010_v34 }
 0x5cf   : > { %13400 = vmatmul.mubr.msk.f32.gmra.mrb[46].mxu1 %vm504_vm2, %v18014_v61 }
 0x5d0   : > { %13404 = vmatprep.mubr.msk.f32.mxu1 %vm504_vm2, %v6726_v26  ;;  %v6739_v26 = vrot.slane %v17706_v10, 2 }
 0x5d3   : > { %13405 = vmatmul.mubr.msk.f32.vlgmr.msra.gmra.mrb[0].mxu1 %vm504_vm2, %v6728_v49  ;;  %v18170_v49 = vsel %vm1540_vm5, %v6731_v17, %v6733_v41  ;;  %v18188_v17 = vsel %vm1540_vm5, %v6737_v13, %v6739_v26 }
 0x5d4   : > { %13477 = vmatpush3.msk.msra.mxu1 %vm857_vm0, %v7291_v55  ;;  %13407 = vmatprep.mubr.msk.f32.mxu1 %vm504_vm2, %v6730_v51  ;;  %20109 = vst [vmem:[#allocation35_spill] sm:$0xff] %v18170_v49  ;;  %v18176_v55 = vsel %vm1540_vm5, %v6733_v41, %v6735_v7  ;;  %v6741_v51 = vrot.slane %v17710_v27, 2  ;;  %20112 = vst [vmem:[#allocation54_spill] sm:$0xff] %v18188_v17 }
 0x5d5   : > { %13550 = vmatprep.subr.msk.mxu1 %vm857_vm0, %v18154_v44  ;;  %20110 = vst [vmem:[#allocation21_spill] sm:$0xff] %v18176_v55 }
 0x5d6   : > { %v18194_v41 = vsel %vm1540_vm5, %v6739_v26, %v6741_v51 }
 0x5d7   : > { %13408 = vmatmul.mubr.msk.f32.gmra.mrb[2].mxu1 %vm504_vm2, %v18164_v28  ;;  %20113 = vst [vmem:[#allocation55_spill] sm:$0xff] %v18194_v41 }
 0x5d8   : > { %13410 = vmatprep.mubr.msk.f32.mxu1 %vm504_vm2, %v18170_v49  ;;  %v6743_v49 = vrot.slane %v17722_v52, 2 }
 0x5da   : > { %v18200_v7 = vsel %vm1540_vm5, %v6741_v51, %v6743_v49 }
 0x5db   : > { %13411 = vmatmul.mubr.msk.f32.gmra.mrb[4].mxu1 %vm504_vm2, %v18176_v55  ;;  %v6745_v55 = vrot.slane %v17726_v47, 2  ;;  %20114 = vst [vmem:[#allocation56_spill] sm:$0xff] %v18200_v7 }
 0x5dc   : > { %13413 = vmatprep.mubr.msk.f32.mxu1 %vm504_vm2, %v18182_v48  ;;  %v6747_v48 = vrot.slane %v17738_v14, 2 }
 0x5dd   : > { %v18206_v13 = vsel %vm1540_vm5, %v6743_v49, %v6745_v55 }
 0x5de   : > { %20115 = vst [vmem:[#allocation57_spill] sm:$0xff] %v18206_v13  ;;  %v18212_v26 = vsel %vm1540_vm5, %v6745_v55, %v6747_v48 }
 0x5df   : > { %13414 = vmatmul.mubr.msk.f32.gmra.mrb[6].mxu1 %vm504_vm2, %v18188_v17  ;;  %v6749_v17 = vrot.slane %v17742_v46, 2  ;;  %20116 = vst [vmem:[#allocation58_spill] sm:$0xff] %v18212_v26 }
 0x5e0   : > { %13416 = vmatprep.mubr.msk.f32.mxu1 %vm504_vm2, %v18194_v41  ;;  %v6751_v41 = vrot.slane %v17754_v39, 2 }
 0x5e1   : > { %v18218_v51 = vsel %vm1540_vm5, %v6747_v48, %v6749_v17 }
 0x5e2   : > { %20117 = vst [vmem:[#allocation59_spill] sm:$0xff] %v18218_v51  ;;  %v18224_v49 = vsel %vm1540_vm5, %v6749_v17, %v6751_v41 }
 0x5e3   : > { %13417 = vmatmul.mubr.msk.f32.gmra.mrb[8].mxu1 %vm504_vm2, %v18200_v7  ;;  %v6753_v7 = vrot.slane %v17758_v3, 2  ;;  %20118 = vst [vmem:[#allocation60_spill] sm:$0xff] %v18224_v49 }
 0x5e4   : > { %13419 = vmatprep.mubr.msk.f32.mxu1 %vm504_vm2, %v18206_v13  ;;  %v6755_v13 = vrot.slane %v17770_v5, 2 }
 0x5e5   : > { %v18230_v55 = vsel %vm1540_vm5, %v6751_v41, %v6753_v7 }
 0x5e6   : > { %20119 = vst [vmem:[#allocation61_spill] sm:$0xff] %v18230_v55  ;;  %v18236_v48 = vsel %vm1540_vm5, %v6753_v7, %v6755_v13 }
 0x5e7   : > { %13420 = vmatmul.mubr.msk.f32.gmra.mrb[10].mxu1 %vm504_vm2, %v18212_v26  ;;  %v6757_v26 = vrot.slane %v17774_v2, 2  ;;  %20120 = vst [vmem:[#allocation62_spill] sm:$0xff] %v18236_v48 }
 0x5e8   : > { %13422 = vmatprep.mubr.msk.f32.mxu1 %vm504_vm2, %v18218_v51  ;;  %v6759_v51 = vrot.slane %v17786_v60, 2 }
 0x5e9   : > { %v18242_v17 = vsel %vm1540_vm5, %v6755_v13, %v6757_v26 }
 0x5ea   : > { %20121 = vst [vmem:[#allocation63_spill] sm:$0xff] %v18242_v17  ;;  %v18248_v41 = vsel %vm1540_vm5, %v6757_v26, %v6759_v51 }
 0x5eb   : > { %13423 = vmatmul.mubr.msk.f32.gmra.mrb[12].mxu1 %vm504_vm2, %v18224_v49  ;;  %v6761_v49 = vrot.slane %v17790_v15, 2  ;;  %20122 = vst [vmem:[#allocation64_spill] sm:$0xff] %v18248_v41 }
 0x5ec   : > { %13425 = vmatprep.mubr.msk.f32.mxu1 %vm504_vm2, %v18230_v55  ;;  %v6763_v55 = vrot.slane %v17802_v19, 2 }
 0x5ed   : > { %v18254_v7 = vsel %vm1540_vm5, %v6759_v51, %v6761_v49 }
 0x5ee   : > { %20123 = vst [vmem:[#allocation65_spill] sm:$0xff] %v18254_v7  ;;  %v18260_v13 = vsel %vm1540_vm5, %v6761_v49, %v6763_v55 }
 0x5ef   : > { %13426 = vmatmul.mubr.msk.f32.gmra.mrb[14].mxu1 %vm504_vm2, %v18236_v48  ;;  %v6765_v48 = vrot.slane %v17806_v8, 2  ;;  %20124 = vst [vmem:[#allocation66_spill] sm:$0xff] %v18260_v13 }
 0x5f0   : > { %13428 = vmatprep.mubr.msk.f32.mxu1 %vm504_vm2, %v18242_v17  ;;  %v6767_v17 = vrot.slane %v17818_v30, 2 }
 0x5f1   : > { %v18266_v26 = vsel %vm1540_vm5, %v6763_v55, %v6765_v48 }
 0x5f2   : > { %20125 = vst [vmem:[#allocation67_spill] sm:$0xff] %v18266_v26  ;;  %v18272_v51 = vsel %vm1540_vm5, %v6765_v48, %v6767_v17 }
 0x5f3   : > { %13429 = vmatmul.mubr.msk.f32.gmra.mrb[16].mxu1 %vm504_vm2, %v18248_v41  ;;  %v6769_v41 = vrot.slane %v17820_v6, 2  ;;  %20126 = vst [vmem:[#allocation68_spill] sm:$0xff] %v18272_v51 }
 0x5f4   : > { %13431 = vmatprep.mubr.msk.f32.mxu1 %vm504_vm2, %v18254_v7  ;;  %v6771_v7 = vrot.slane %v17822_v23, 2 }
 0x5f5   : > { %v18278_v49 = vsel %vm1540_vm5, %v6767_v17, %v6769_v41 }
 0x5f6   : > { %20127 = vst [vmem:[#allocation69_spill] sm:$0xff] %v18278_v49  ;;  %v18284_v55 = vsel %vm1540_vm5, %v6769_v41, %v6771_v7 }
 0x5f7   : > { %13432 = vmatmul.mubr.msk.f32.gmra.mrb[18].mxu1 %vm504_vm2, %v18260_v13  ;;  %v6773_v13 = vrot.slane %v17826_v9, 2  ;;  %20128 = vst [vmem:[#allocation70_spill] sm:$0xff] %v18284_v55 }
 0x5f8   : > { %13434 = vmatprep.mubr.msk.f32.mxu1 %vm504_vm2, %v18266_v26  ;;  %v6775_v26 = vrot.slane %v17834_v18, 2 }
 0x5f9   : > { %v18290_v48 = vsel %vm1540_vm5, %v6771_v7, %v6773_v13 }
 0x5fa   : > { %20129 = vst [vmem:[#allocation71_spill] sm:$0xff] %v18290_v48  ;;  %v18296_v17 = vsel %vm1540_vm5, %v6773_v13, %v6775_v26 }
 0x5fb   : > { %13435 = vmatmul.mubr.msk.f32.gmra.mrb[20].mxu1 %vm504_vm2, %v18272_v51  ;;  %v6777_v51 = vrot.slane %v17846_v38, 2  ;;  %20130 = vst [vmem:[#allocation72_spill] sm:$0xff] %v18296_v17 }
 0x5fc   : > { %13437 = vmatprep.mubr.msk.f32.mxu1 %vm504_vm2, %v18278_v49  ;;  %v6779_v49 = vrot.slane %v17842_v45, 2 }
 0x5fd   : > { %v18302_v41 = vsel %vm1540_vm5, %v6775_v26, %v6777_v51 }
 0x5fe   : > { %20131 = vst [vmem:[#allocation73_spill] sm:$0xff] %v18302_v41  ;;  %v18308_v7 = vsel %vm1540_vm5, %v6777_v51, %v6779_v49 }
 0x5ff   : > { %13438 = vmatmul.mubr.msk.f32.gmra.mrb[22].mxu1 %vm504_vm2, %v18284_v55  ;;  %v6781_v55 = vrot.slane %v17848_v20, 2  ;;  %20132 = vst [vmem:[#allocation74_spill] sm:$0xff] %v18308_v7 }
 0x600   : > { %13440 = vmatprep.mubr.msk.f32.mxu1 %vm504_vm2, %v18290_v48  ;;  %v6783_v48 = vrot.slane %v17853_v40, 2 }
 0x601   : > { %v18314_v13 = vsel %vm1540_vm5, %v6779_v49, %v6781_v55 }
 0x602   : > { %20133 = vst [vmem:[#allocation75_spill] sm:$0xff] %v18314_v13  ;;  %v18320_v26 = vsel %vm1540_vm5, %v6781_v55, %v6783_v48 }
 0x603   : > { %13441 = vmatmul.mubr.msk.f32.gmra.mrb[24].mxu1 %vm504_vm2, %v18296_v17  ;;  %v6785_v17 = vrot.slane %v17850_v57, 2  ;;  %20134 = vst [vmem:[#allocation76_spill] sm:$0xff] %v18320_v26 }
 0x604   : > { %13443 = vmatprep.mubr.msk.f32.mxu1 %vm504_vm2, %v18302_v41  ;;  %v6787_v41 = vrot.slane %v17855_v32, 2 }
 0x605   : > { %v18326_v51 = vsel %vm1540_vm5, %v6783_v48, %v6785_v17 }
 0x606   : > { %20135 = vst [vmem:[#allocation77_spill] sm:$0xff] %v18326_v51  ;;  %v18332_v49 = vsel %vm1540_vm5, %v6785_v17, %v6787_v41 }
 0x607   : > { %13444 = vmatmul.mubr.msk.f32.gmra.mrb[26].mxu1 %vm504_vm2, %v18308_v7  ;;  %v6789_v7 = vrot.slane %v17857_v62, 2  ;;  %20136 = vst [vmem:[#allocation78_spill] sm:$0xff] %v18332_v49 }
 0x608   : > { %13446 = vmatprep.mubr.msk.f32.mxu1 %vm504_vm2, %v18314_v13  ;;  %v6791_v13 = vrot.slane %v17882_v42, 2 }
 0x609   : > { %v18338_v55 = vsel %vm1540_vm5, %v6787_v41, %v6789_v7 }
 0x60a   : > { %20137 = vst [vmem:[#allocation79_spill] sm:$0xff] %v18338_v55  ;;  %v18344_v48 = vsel %vm1540_vm5, %v6789_v7, %v6791_v13 }
 0x60b   : > { %13447 = vmatmul.mubr.msk.f32.gmra.mrb[28].mxu1 %vm504_vm2, %v18320_v26  ;;  %v6793_v26 = vrot.slane %v17928_v63, 2  ;;  %20138 = vst [vmem:[#allocation80_spill] sm:$0xff] %v18344_v48 }
 0x60c   : > { %13449 = vmatprep.mubr.msk.f32.mxu1 %vm504_vm2, %v18326_v51  ;;  %v6795_v51 = vrot.slane %v17933_v29, 2 }
 0x60d   : > { %v18350_v17 = vsel %vm1540_vm5, %v6791_v13, %v6793_v26 }
 0x60e   : > { %20139 = vst [vmem:[#allocation81_spill] sm:$0xff] %v18350_v17  ;;  %v18356_v41 = vsel %vm1540_vm5, %v6793_v26, %v6795_v51 }
 0x60f   : > { %13450 = vmatmul.mubr.msk.f32.gmra.mrb[30].mxu1 %vm504_vm2, %v18332_v49  ;;  %v6797_v49 = vrot.slane %v17937_v31, 2  ;;  %20140 = vst [vmem:[#allocation82_spill] sm:$0xff] %v18356_v41 }
 0x610   : > { %13452 = vmatprep.mubr.msk.f32.mxu1 %vm504_vm2, %v18338_v55  ;;  %v6799_v55 = vrot.slane %v17946_v25, 2 }
 0x611   : > { %v18362_v7 = vsel %vm1540_vm5, %v6795_v51, %v6797_v49 }
 0x612   : > { %20141 = vst [vmem:[#allocation83_spill] sm:$0xff] %v18362_v7  ;;  %v18368_v13 = vsel %vm1540_vm5, %v6797_v49, %v6799_v55 }
 0x613   : > { %13453 = vmatmul.mubr.msk.f32.gmra.mrb[32].mxu1 %vm504_vm2, %v18344_v48  ;;  %v6801_v48 = vrot.slane %v17950_v56, 2  ;;  %20142 = vst [vmem:[#allocation84_spill] sm:$0xff] %v18368_v13 }
 0x614   : > { %13455 = vmatprep.mubr.msk.f32.mxu1 %vm504_vm2, %v18350_v17  ;;  %v6803_v17 = vrot.slane %v17962_v58, 2 }
 0x615   : > { %v18374_v26 = vsel %vm1540_vm5, %v6799_v55, %v6801_v48 }
 0x616   : > { %20143 = vst [vmem:[#allocation85_spill] sm:$0xff] %v18374_v26  ;;  %v18380_v51 = vsel %vm1540_vm5, %v6801_v48, %v6803_v17 }
 0x617   : > { %13456 = vmatmul.mubr.msk.f32.gmra.mrb[34].mxu1 %vm504_vm2, %v18356_v41  ;;  %v6805_v41 = vrot.slane %v17966_v54, 2  ;;  %20144 = vst [vmem:[#allocation86_spill] sm:$0xff] %v18380_v51 }
 0x618   : > { %13458 = vmatprep.mubr.msk.f32.mxu1 %vm504_vm2, %v18362_v7  ;;  %v6807_v7 = vrot.slane %v17978_v1, 2 }
 0x619   : > { %v18386_v49 = vsel %vm1540_vm5, %v6803_v17, %v6805_v41 }
 0x61a   : > { %20145 = vst [vmem:[#allocation87_spill] sm:$0xff] %v18386_v49  ;;  %v18392_v55 = vsel %vm1540_vm5, %v6805_v41, %v6807_v7 }
 0x61b   : > { %13459 = vmatmul.mubr.msk.f32.gmra.mrb[36].mxu1 %vm504_vm2, %v18368_v13  ;;  %v6809_v13 = vrot.slane %v17982_v4, 2  ;;  %20146 = vst [vmem:[#allocation88_spill] sm:$0xff] %v18392_v55 }
 0x61c   : > { %13461 = vmatprep.mubr.msk.f32.mxu1 %vm504_vm2, %v18374_v26  ;;  %v6811_v26 = vrot.slane %v17994_v24, 2 }
 0x61d   : > { %v18398_v48 = vsel %vm1540_vm5, %v6807_v7, %v6809_v13 }
 0x61e   : > { %v18404_v17 = vsel %vm1540_vm5, %v6809_v13, %v6811_v26  ;;  %v6819_v13 = vrot.slane %v18028_v37, 2  ;;  %v20161_v37 = vld [vmem:[#allocation48_spill] sm:$0xff] }
 0x61f   : > { %13462 = vmatmul.mubr.msk.f32.gmra.mrb[38].mxu1 %vm504_vm2, %v18380_v51  ;;  %v6813_v51 = vrot.slane %v17998_v11, 2  ;;  %20147 = vst [vmem:[#allocation89_spill] sm:$0xff] %v18404_v17 }
 0x620   : > { %13464 = vmatprep.mubr.msk.f32.mxu1 %vm504_vm2, %v18386_v49  ;;  %v6815_v49 = vrot.slane %v18010_v34, 2 }
 0x621   : > { %v18410_v41 = vsel %vm1540_vm5, %v6811_v26, %v6813_v51 }
 0x622   : > { %v18418_v7 = vsel %vm1540_vm5, %v6813_v51, %v6815_v49  ;;  %v8281_v51 = vld [vmem:[#allocation8 + $0x14] sm:$0xf] }
 0x623   : > { %13465 = vmatmul.mubr.msk.f32.gmra.mrb[40].mxu1 %vm504_vm2, %v18392_v55  ;;  %v18413_v55 = vrot.slane %v18014_v61, 2 }
 0x624   : > { %13467 = vmatprep.mubr.msk.f32.mxu1 %vm504_vm2, %v18398_v48 }
 0x625   : > { %v6820_v26 = vsel %vm1540_vm5, %v18413_v55, %v6819_v13  ;;  %v20189_v13 = vld [vmem:[#allocation54_spill] sm:$0xff] }
 0x627   : > { %13468 = vmatmul.mubr.msk.f32.gmra.mrb[42].mxu1 %vm504_vm2, %v18404_v17  ;;  %v18425_v17 = vsel %vm1540_vm5, %v6815_v49, %v18413_v55  ;;  %v20188_v49 = vld [vmem:[#allocation53_spill] sm:$0xff] }
 0x628   : > { %13470 = vmatprep.mubr.msk.f32.mxu1 %vm504_vm2, %v18410_v41 }
 0x62b   : > { %13471 = vmatmul.mubr.msk.f32.gmra.mrb[44].mxu1 %vm504_vm2, %v18418_v7 }
 0x62c   : > { %13473 = vmatprep.mubr.msk.f32.mxu1 %vm504_vm2, %v18425_v17 }
 0x62f   : > { %13474 = vmatmul.mubr.msk.f32.gmra.mrb[46].mxu1 %vm504_vm2, %v6820_v26  ;;  %v20191_v26 = vld [vmem:[#allocation56_spill] sm:$0xff] }
 0x630   : > { %13478 = vmatprep.mubr.msk.f32.mxu1 %vm504_vm2, %v17668_v36  ;;  %v18525_v36 = vld [vmem:[#allocation2 + $0x180] sm:$0xff] }
 0x633   : > { %13479 = vmatmul.mubr.msk.f32.vlgmr.msra.gmra.mrb[0].mxu1 %vm504_vm2, %v17675_v33  ;;  %v18529_v33 = vld [vmem:[#allocation2 + $0x188] sm:$0xff] }
 0x634   : > { %13551 = vmatpush3.msk.msra.mxu1 %vm857_vm0, %v18154_v44  ;;  %13481 = vmatprep.mubr.msk.f32.mxu1 %vm504_vm2, %v17678_v59  ;;  %v18533_v59 = vld [vmem:[#allocation2 + $0x190] sm:$0xff]  ;;  %v20186_v44 = vld [vmem:[#allocation35_spill] sm:$0xff] }
 0x635   : > { %13624 = vmatprep.subr.msk.mxu1 %vm857_vm0, %v8281_v51 }
 0x637   : > { %13482 = vmatmul.mubr.msk.f32.gmra.mrb[2].mxu1 %vm504_vm2, %v17687_v53  ;;  %v8849_v53 = vld [vmem:[#allocation8 + $0x18] sm:$0xf] }
 0x638   : > { %13484 = vmatprep.mubr.msk.f32.mxu1 %vm504_vm2, %v17692_v22  ;;  %v20148_v22 = vld [vmem:[#allocation34_spill] sm:$0xff] }
 0x63b   : > { %13485 = vmatmul.mubr.msk.f32.gmra.mrb[4].mxu1 %vm504_vm2, %v17706_v10  ;;  %v20151_v10 = vld [vmem:[#allocation38_spill] sm:$0xff] }
 0x63c   : > { %13487 = vmatprep.mubr.msk.f32.mxu1 %vm504_vm2, %v17710_v27  ;;  %v20152_v27 = vld [vmem:[#allocation39_spill] sm:$0xff] }
 0x63f   : > { %13488 = vmatmul.mubr.msk.f32.gmra.mrb[6].mxu1 %vm504_vm2, %v17722_v52  ;;  %v20155_v52 = vld [vmem:[#allocation42_spill] sm:$0xff] }
 0x640   : > { %13490 = vmatprep.mubr.msk.f32.mxu1 %vm504_vm2, %v17726_v47  ;;  %v20156_v47 = vld [vmem:[#allocation43_spill] sm:$0xff] }
 0x643   : > { %13491 = vmatmul.mubr.msk.f32.gmra.mrb[8].mxu1 %vm504_vm2, %v17738_v14  ;;  %v20159_v14 = vld [vmem:[#allocation46_spill] sm:$0xff] }
 0x644   : > { %13493 = vmatprep.mubr.msk.f32.mxu1 %vm504_vm2, %v17742_v46  ;;  %v20160_v46 = vld [vmem:[#allocation47_spill] sm:$0xff] }
 0x647   : > { %13494 = vmatmul.mubr.msk.f32.gmra.mrb[10].mxu1 %vm504_vm2, %v17754_v39  ;;  %v20162_v39 = vld [vmem:[#allocation49_spill] sm:$0xff] }
 0x648   : > { %13496 = vmatprep.mubr.msk.f32.mxu1 %vm504_vm2, %v17758_v3  ;;  %v20163_v3 = vld [vmem:[#allocation51_spill] sm:$0xff] }
 0x64b   : > { %13497 = vmatmul.mubr.msk.f32.gmra.mrb[12].mxu1 %vm504_vm2, %v17770_v5  ;;  %v20165_v5 = vld [vmem:[#allocation52_spill] sm:$0xff] }
 0x64c   : > { %13499 = vmatprep.mubr.msk.f32.mxu1 %vm504_vm2, %v17774_v2  ;;  %v20166_v2 = vld [vmem:[#allocation13_spill] sm:$0xff] }
 0x64f   : > { %13500 = vmatmul.mubr.msk.f32.gmra.mrb[14].mxu1 %vm504_vm2, %v17786_v60  ;;  %v20168_v60 = vld [vmem:[#allocation15_spill] sm:$0xff] }
 0x650   : > { %13502 = vmatprep.mubr.msk.f32.mxu1 %vm504_vm2, %v17790_v15  ;;  %v20169_v15 = vld [vmem:[#allocation16_spill] sm:$0xff] }
 0x653   : > { %13503 = vmatmul.mubr.msk.f32.gmra.mrb[16].mxu1 %vm504_vm2, %v17802_v19  ;;  %v20172_v19 = vld [vmem:[#allocation18_spill] sm:$0xff] }
 0x654   : > { %13505 = vmatprep.mubr.msk.f32.mxu1 %vm504_vm2, %v17806_v8  ;;  %v20173_v8 = vld [vmem:[#allocation20_spill] sm:$0xff] }
 0x657   : > { %13506 = vmatmul.mubr.msk.f32.gmra.mrb[18].mxu1 %vm504_vm2, %v17818_v30  ;;  %v20175_v30 = vld [vmem:[#allocation23_spill] sm:$0xff] }
 0x658   : > { %13508 = vmatprep.mubr.msk.f32.mxu1 %vm504_vm2, %v17820_v6  ;;  %v20176_v6 = vld [vmem:[#allocation24_spill] sm:$0xff] }
 0x65b   : > { %13509 = vmatmul.mubr.msk.f32.gmra.mrb[20].mxu1 %vm504_vm2, %v17822_v23  ;;  %v20177_v23 = vld [vmem:[#allocation25_spill] sm:$0xff] }
 0x65c   : > { %13511 = vmatprep.mubr.msk.f32.mxu1 %vm504_vm2, %v17826_v9  ;;  %v20178_v9 = vld [vmem:[#allocation26_spill] sm:$0xff] }
 0x65f   : > { %13512 = vmatmul.mubr.msk.f32.gmra.mrb[22].mxu1 %vm504_vm2, %v17834_v18  ;;  %v20179_v18 = vld [vmem:[#allocation27_spill] sm:$0xff] }
 0x660   : > { %13514 = vmatprep.mubr.msk.f32.mxu1 %vm504_vm2, %v17846_v38  ;;  %v20181_v38 = vld [vmem:[#allocation29_spill] sm:$0xff] }
 0x663   : > { %13515 = vmatmul.mubr.msk.f32.gmra.mrb[24].mxu1 %vm504_vm2, %v17842_v45  ;;  %v20180_v45 = vld [vmem:[#allocation28_spill] sm:$0xff] }
 0x664   : > { %13517 = vmatprep.mubr.msk.f32.mxu1 %vm504_vm2, %v17848_v20  ;;  %v20182_v20 = vld [vmem:[#allocation30_spill] sm:$0xff] }
 0x667   : > { %13518 = vmatmul.mubr.msk.f32.gmra.mrb[26].mxu1 %vm504_vm2, %v17853_v40  ;;  %v20183_v40 = vld [vmem:[#allocation32_spill] sm:$0xff] }
 0x668   : > { %13520 = vmatprep.mubr.msk.f32.mxu1 %vm504_vm2, %v17850_v57  ;;  %v18622_v57 = vrot.slane %v18525_v36, 1 }
 0x66b   : > { %13521 = vmatmul.mubr.msk.f32.gmra.mrb[28].mxu1 %vm504_vm2, %v17855_v32  ;;  %v7854_v32 = vrot.slane %v18529_v33, 1 }
 0x66c   : > { %13523 = vmatprep.mubr.msk.f32.mxu1 %vm504_vm2, %v17857_v62  ;;  %v18630_v62 = vrot.slane %v18533_v59, 1 }
 0x66f   : > { %13524 = vmatmul.mubr.msk.f32.gmra.mrb[30].mxu1 %vm504_vm2, %v17882_v42  ;;  %v20174_v42 = vld [vmem:[#allocation22_spill] sm:$0xff] }
 0x670   : > { %13526 = vmatprep.mubr.msk.f32.mxu1 %vm504_vm2, %v17928_v63 }
 0x673   : > { %13527 = vmatmul.mubr.msk.f32.gmra.mrb[32].mxu1 %vm504_vm2, %v17933_v29  ;;  %v18637_v29 = vld [vmem:[#allocation2 + $0x198] sm:$0x3] }
 0x674   : > { %13529 = vmatprep.mubr.msk.f32.mxu1 %vm504_vm2, %v17937_v31  ;;  %v18642_v31 = vsel %vm663_vm4, %v18622_v57, %v7854_v32 }
 0x677   : > { %13530 = vmatmul.mubr.msk.f32.gmra.mrb[34].mxu1 %vm504_vm2, %v17946_v25  ;;  %v20185_v25 = vld [vmem:[#allocation31_spill] sm:$0xff] }
 0x678   : > { %13532 = vmatprep.mubr.msk.f32.mxu1 %vm504_vm2, %v17950_v56  ;;  %v20170_v56 = vld [vmem:[#allocation17_spill] sm:$0xff]  ;;  %v7853_v63 = vsel %vm663_vm4, %v20185_v25, %v18622_v57  ;;  %v18794_v25 = vld [vmem:[#allocation2 + $0x48] sm:$0xff] }
 0x67b   : > { %13533 = vmatmul.mubr.msk.f32.gmra.mrb[36].mxu1 %vm504_vm2, %v17962_v58  ;;  %v20171_v58 = vld [vmem:[#allocation19_spill] sm:$0xff] }
 0x67c   : > { %13535 = vmatprep.mubr.msk.f32.mxu1 %vm504_vm2, %v17966_v54  ;;  %v7858_v54 = vrot.slane %v18637_v29, 1 }
 0x67f   : > { %13536 = vmatmul.mubr.msk.f32.gmra.mrb[38].mxu1 %vm504_vm2, %v17978_v1  ;;  %v20184_v1 = vld [vmem:[#allocation33_spill] sm:$0xff] }
 0x680   : > { %13538 = vmatprep.mubr.msk.f32.mxu1 %vm504_vm2, %v17982_v4  ;;  %v18649_v4 = vsel %vm663_vm4, %v7854_v32, %v18630_v62  ;;  %v18782_v32 = vld [vmem:[#allocation8 + $0x20] sm:$0xf] }
 0x683   : > { %13539 = vmatmul.mubr.msk.f32.gmra.mrb[40].mxu1 %vm504_vm2, %v17994_v24  ;;  %v20167_v24 = vld [vmem:[#allocation14_spill] sm:$0xff] }
 0x684   : > { %13541 = vmatprep.mubr.msk.f32.mxu1 %vm504_vm2, %v17998_v11  ;;  %v7859_v11 = vsel %vm663_vm4, %v18630_v62, %v7858_v54  ;;  %v18806_v54 = vld [vmem:[#allocation2 + $0x60] sm:$0xff] }
 0x687   : > { %13542 = vmatmul.mubr.msk.f32.gmra.mrb[42].mxu1 %vm504_vm2, %v18010_v34  ;;  %v20164_v34 = vld [vmem:[#allocation50_spill] sm:$0xff] }
 0x688   : > { %13544 = vmatprep.mubr.msk.f32.mxu1 %vm504_vm2, %v18014_v61  ;;  %v18658_v61 = vld [vmem:[#allocation8 + $0x1c] sm:$0xf] }
 0x68b   : > { %13545 = vmatmul.mubr.msk.f32.gmra.mrb[44].mxu1 %vm504_vm2, %v18525_v36 }
 0x68c   : > { %13547 = vmatprep.mubr.msk.f32.mxu1 %vm504_vm2, %v18529_v33 }
 0x68f   : > { %13548 = vmatmul.mubr.msk.f32.gmra.mrb[46].mxu1 %vm504_vm2, %v18533_v59 }
 0x690   : > { %13552 = vmatprep.mubr.msk.f32.mxu1 %vm504_vm2, %v17697_v35  ;;  %v20149_v35 = vld [vmem:[#allocation36_spill] sm:$0xff] }
 0x693   : > { %13553 = vmatmul.mubr.msk.f32.vlgmr.msra.gmra.mrb[0].mxu1 %vm504_vm2, %v17703_v0  ;;  %v20150_v0 = vld [vmem:[#allocation37_spill] sm:$0xff] }
 0x694   : > { %13625 = vmatpush3.msk.msra.mxu1 %vm857_vm0, %v8281_v51  ;;  %13555 = vmatprep.mubr.msk.f32.mxu1 %vm504_vm2, %v17713_v21  ;;  %v20153_v21 = vld [vmem:[#allocation40_spill] sm:$0xff]  ;;  %v20192_v51 = vld [vmem:[#allocation57_spill] sm:$0xff] }
 0x695   : > { %13698 = vmatprep.subr.msk.mxu1 %vm857_vm0, %v8849_v53 }
 0x697   : > { %13556 = vmatmul.mubr.msk.f32.gmra.mrb[2].mxu1 %vm504_vm2, %v17719_v16  ;;  %v20154_v16 = vld [vmem:[#allocation41_spill] sm:$0xff] }
 0x698   : > { %13558 = vmatprep.mubr.msk.f32.mxu1 %vm504_vm2, %v17729_v50  ;;  %v20157_v50 = vld [vmem:[#allocation44_spill] sm:$0xff] }
 0x69b   : > { %13559 = vmatmul.mubr.msk.f32.gmra.mrb[4].mxu1 %vm504_vm2, %v17735_v43  ;;  %v20158_v43 = vld [vmem:[#allocation45_spill] sm:$0xff] }
 0x69c   : > { %13561 = vmatprep.mubr.msk.f32.mxu1 %vm504_vm2, %v20148_v22  ;;  %v20194_v22 = vld [vmem:[#allocation59_spill] sm:$0xff] }
 0x69f   : > { %13562 = vmatmul.mubr.msk.f32.gmra.mrb[6].mxu1 %vm504_vm2, %v20149_v35  ;;  %v20195_v35 = vld [vmem:[#allocation60_spill] sm:$0xff] }
 0x6a0   : > { %13564 = vmatprep.mubr.msk.f32.mxu1 %vm504_vm2, %v20150_v0  ;;  %v20196_v0 = vld [vmem:[#allocation61_spill] sm:$0xff] }
 0x6a3   : > { %13565 = vmatmul.mubr.msk.f32.gmra.mrb[8].mxu1 %vm504_vm2, %v20151_v10  ;;  %v20197_v10 = vld [vmem:[#allocation62_spill] sm:$0xff] }
 0x6a4   : > { %13567 = vmatprep.mubr.msk.f32.mxu1 %vm504_vm2, %v20152_v27  ;;  %v20198_v27 = vld [vmem:[#allocation63_spill] sm:$0xff] }
 0x6a7   : > { %13568 = vmatmul.mubr.msk.f32.gmra.mrb[10].mxu1 %vm504_vm2, %v20153_v21  ;;  %v20199_v21 = vld [vmem:[#allocation64_spill] sm:$0xff] }
 0x6a8   : > { %13570 = vmatprep.mubr.msk.f32.mxu1 %vm504_vm2, %v20154_v16  ;;  %v20200_v16 = vld [vmem:[#allocation65_spill] sm:$0xff] }
 0x6ab   : > { %13571 = vmatmul.mubr.msk.f32.gmra.mrb[12].mxu1 %vm504_vm2, %v20155_v52  ;;  %v20201_v52 = vld [vmem:[#allocation66_spill] sm:$0xff] }
 0x6ac   : > { %13573 = vmatprep.mubr.msk.f32.mxu1 %vm504_vm2, %v20156_v47  ;;  %v20202_v47 = vld [vmem:[#allocation67_spill] sm:$0xff] }
 0x6af   : > { %13574 = vmatmul.mubr.msk.f32.gmra.mrb[14].mxu1 %vm504_vm2, %v20157_v50  ;;  %v20203_v50 = vld [vmem:[#allocation68_spill] sm:$0xff] }
 0x6b0   : > { %13576 = vmatprep.mubr.msk.f32.mxu1 %vm504_vm2, %v20158_v43  ;;  %v20204_v43 = vld [vmem:[#allocation69_spill] sm:$0xff] }
 0x6b3   : > { %13577 = vmatmul.mubr.msk.f32.gmra.mrb[16].mxu1 %vm504_vm2, %v20159_v14  ;;  %v20205_v14 = vld [vmem:[#allocation70_spill] sm:$0xff] }
 0x6b4   : > { %13579 = vmatprep.mubr.msk.f32.mxu1 %vm504_vm2, %v20160_v46  ;;  %v20206_v46 = vld [vmem:[#allocation71_spill] sm:$0xff] }
 0x6b7   : > { %13580 = vmatmul.mubr.msk.f32.gmra.mrb[18].mxu1 %vm504_vm2, %v20161_v37  ;;  %v20207_v37 = vld [vmem:[#allocation72_spill] sm:$0xff] }
 0x6b8   : > { %13582 = vmatprep.mubr.msk.f32.mxu1 %vm504_vm2, %v20162_v39  ;;  %v20208_v39 = vld [vmem:[#allocation73_spill] sm:$0xff] }
 0x6bb   : > { %13583 = vmatmul.mubr.msk.f32.gmra.mrb[20].mxu1 %vm504_vm2, %v20163_v3  ;;  %v20209_v3 = vld [vmem:[#allocation74_spill] sm:$0xff] }
 0x6bc   : > { %13585 = vmatprep.mubr.msk.f32.mxu1 %vm504_vm2, %v20164_v34  ;;  %v20210_v34 = vld [vmem:[#allocation75_spill] sm:$0xff] }
 0x6bf   : > { %13586 = vmatmul.mubr.msk.f32.gmra.mrb[22].mxu1 %vm504_vm2, %v20165_v5  ;;  %v20211_v5 = vld [vmem:[#allocation76_spill] sm:$0xff] }
 0x6c0   : > { %13588 = vmatprep.mubr.msk.f32.mxu1 %vm504_vm2, %v20166_v2  ;;  %v20212_v2 = vld [vmem:[#allocation77_spill] sm:$0xff] }
 0x6c3   : > { %13589 = vmatmul.mubr.msk.f32.gmra.mrb[24].mxu1 %vm504_vm2, %v20167_v24  ;;  %v20213_v24 = vld [vmem:[#allocation78_spill] sm:$0xff] }
 0x6c4   : > { %13591 = vmatprep.mubr.msk.f32.mxu1 %vm504_vm2, %v20168_v60  ;;  %v20214_v60 = vld [vmem:[#allocation79_spill] sm:$0xff] }
 0x6c7   : > { %13592 = vmatmul.mubr.msk.f32.gmra.mrb[26].mxu1 %vm504_vm2, %v20169_v15  ;;  %v20215_v15 = vld [vmem:[#allocation80_spill] sm:$0xff] }
 0x6c8   : > { %13594 = vmatprep.mubr.msk.f32.mxu1 %vm504_vm2, %v20170_v56  ;;  %v20216_v56 = vld [vmem:[#allocation81_spill] sm:$0xff] }
 0x6cb   : > { %13595 = vmatmul.mubr.msk.f32.gmra.mrb[28].mxu1 %vm504_vm2, %v20171_v58  ;;  %v20217_v58 = vld [vmem:[#allocation82_spill] sm:$0xff] }
 0x6cc   : > { %13597 = vmatprep.mubr.msk.f32.mxu1 %vm504_vm2, %v20172_v19  ;;  %v20218_v19 = vld [vmem:[#allocation83_spill] sm:$0xff] }
 0x6cf   : > { %13598 = vmatmul.mubr.msk.f32.gmra.mrb[30].mxu1 %vm504_vm2, %v20173_v8  ;;  %v20219_v8 = vld [vmem:[#allocation84_spill] sm:$0xff] }
 0x6d0   : > { %13600 = vmatprep.mubr.msk.f32.mxu1 %vm504_vm2, %v20174_v42  ;;  %v20220_v42 = vld [vmem:[#allocation85_spill] sm:$0xff] }
 0x6d3   : > { %13601 = vmatmul.mubr.msk.f32.gmra.mrb[32].mxu1 %vm504_vm2, %v20175_v30  ;;  %v20221_v30 = vld [vmem:[#allocation86_spill] sm:$0xff] }
 0x6d4   : > { %13603 = vmatprep.mubr.msk.f32.mxu1 %vm504_vm2, %v20176_v6  ;;  %v20222_v6 = vld [vmem:[#allocation87_spill] sm:$0xff] }
 0x6d7   : > { %13604 = vmatmul.mubr.msk.f32.gmra.mrb[34].mxu1 %vm504_vm2, %v20177_v23  ;;  %v20223_v23 = vld [vmem:[#allocation88_spill] sm:$0xff] }
 0x6d8   : > { %13606 = vmatprep.mubr.msk.f32.mxu1 %vm504_vm2, %v20178_v9  ;;  %v20224_v9 = vld [vmem:[#allocation89_spill] sm:$0xff] }
 0x6db   : > { %13607 = vmatmul.mubr.msk.f32.gmra.mrb[36].mxu1 %vm504_vm2, %v20179_v18  ;;  %v18744_v18 = vrot.slane %v18525_v36, 2 }
 0x6dc   : > { %13609 = vmatprep.mubr.msk.f32.mxu1 %vm504_vm2, %v20180_v45  ;;  %v8373_v45 = vrot.slane %v18529_v33, 2 }
 0x6df   : > { %13610 = vmatmul.mubr.msk.f32.gmra.mrb[38].mxu1 %vm504_vm2, %v20181_v38  ;;  %v18752_v38 = vrot.slane %v18533_v59, 2 }
 0x6e0   : > { %13612 = vmatprep.mubr.msk.f32.mxu1 %vm504_vm2, %v20182_v20 }
 0x6e1   : > { %v18769_v20 = vsel %vm1540_vm5, %v8373_v45, %v18752_v38 }
 0x6e3   : > { %13613 = vmatmul.mubr.msk.f32.gmra.mrb[40].mxu1 %vm504_vm2, %v18023_v12  ;;  %v20187_v12 = vld [vmem:[#allocation21_spill] sm:$0xff] }
 0x6e4   : > { %13615 = vmatprep.mubr.msk.f32.mxu1 %vm504_vm2, %v20183_v40  ;;  %v18780_v40 = vld [vmem:[#allocation2 + $0x38] sm:$0xff] }
 0x6e7   : > { %13616 = vmatmul.mubr.msk.f32.gmra.mrb[42].mxu1 %vm504_vm2, %v20184_v1  ;;  %v18786_v1 = vld [vmem:[#allocation2 + $0x40] sm:$0xff] }
 0x6e8   : > { %13618 = vmatprep.mubr.msk.f32.mxu1 %vm504_vm2, %v7853_v63  ;;  %v18798_v63 = vld [vmem:[#allocation2 + $0x50] sm:$0xff] }
 0x6eb   : > { %13619 = vmatmul.mubr.msk.f32.gmra.mrb[44].mxu1 %vm504_vm2, %v18642_v31 }
 0x6ec   : > { %13621 = vmatprep.mubr.msk.f32.mxu1 %vm504_vm2, %v18649_v4 }
 0x6ef   : > { %13622 = vmatmul.mubr.msk.f32.gmra.mrb[46].mxu1 %vm504_vm2, %v7859_v11  ;;  %v18810_v11 = vld [vmem:[#allocation2 + $0x68] sm:$0xff] }
 0x6f0   : > { %13626 = vmatprep.mubr.msk.f32.mxu1 %vm504_vm2, %v18164_v28  ;;  %v20190_v28 = vld [vmem:[#allocation55_spill] sm:$0xff] }
 0x6f3   : > { %13627 = vmatmul.mubr.msk.f32.vlgmr.msra.gmra.mrb[0].mxu1 %vm504_vm2, %v20186_v44  ;;  %v18818_v44 = vld [vmem:[#allocation2 + $0x78] sm:$0xff] }
 0x6f4   : > { %13699 = vmatpush3.msk.msra.mxu1 %vm857_vm0, %v8849_v53  ;;  %13629 = vmatprep.mubr.msk.f32.mxu1 %vm504_vm2, %v20187_v12  ;;  %v20193_v53 = vld [vmem:[#allocation58_spill] sm:$0xff]  ;;  %v18822_v12 = vld [vmem:[#allocation2 + $0x80] sm:$0xff] }
 0x6f5   : > { %13772 = vmatprep.subr.msk.mxu1 %vm857_vm0, %v18658_v61 }
 0x6f7   : > { %13630 = vmatmul.mubr.msk.f32.gmra.mrb[2].mxu1 %vm504_vm2, %v20188_v49  ;;  %v18826_v49 = vld [vmem:[#allocation2 + $0x88] sm:$0xff] }
 0x6f8   : > { %13632 = vmatprep.mubr.msk.f32.mxu1 %vm504_vm2, %v20189_v13  ;;  %v18830_v13 = vld [vmem:[#allocation2 + $0x90] sm:$0xff] }
 0x6fb   : > { %13633 = vmatmul.mubr.msk.f32.gmra.mrb[4].mxu1 %vm504_vm2, %v20190_v28  ;;  %v18834_v28 = vld [vmem:[#allocation2 + $0x98] sm:$0xff] }
 0x6fc   : > { %13635 = vmatprep.mubr.msk.f32.mxu1 %vm504_vm2, %v20191_v26  ;;  %v18838_v26 = vld [vmem:[#allocation2 + $0xa0] sm:$0xff] }
 0x6ff   : > { %13636 = vmatmul.mubr.msk.f32.gmra.mrb[6].mxu1 %vm504_vm2, %v20192_v51  ;;  %v18842_v51 = vld [vmem:[#allocation2 + $0xa8] sm:$0xff] }
 0x700   : > { %13638 = vmatprep.mubr.msk.f32.mxu1 %vm504_vm2, %v20193_v53  ;;  %v18846_v53 = vld [vmem:[#allocation2 + $0xb0] sm:$0xff] }
 0x703   : > { %13639 = vmatmul.mubr.msk.f32.gmra.mrb[8].mxu1 %vm504_vm2, %v20194_v22  ;;  %v18850_v22 = vld [vmem:[#allocation2 + $0xb8] sm:$0xff] }
 0x704   : > { %13641 = vmatprep.mubr.msk.f32.mxu1 %vm504_vm2, %v20195_v35  ;;  %v18854_v35 = vld [vmem:[#allocation2 + $0xc0] sm:$0xff] }
 0x707   : > { %13642 = vmatmul.mubr.msk.f32.gmra.mrb[10].mxu1 %vm504_vm2, %v20196_v0  ;;  %v18858_v0 = vld [vmem:[#allocation2 + $0xc8] sm:$0xff] }
 0x708   : > { %13644 = vmatprep.mubr.msk.f32.mxu1 %vm504_vm2, %v20197_v10  ;;  %v18862_v10 = vld [vmem:[#allocation2 + $0xd0] sm:$0xff] }
 0x70b   : > { %13645 = vmatmul.mubr.msk.f32.gmra.mrb[12].mxu1 %vm504_vm2, %v20198_v27  ;;  %v18866_v27 = vld [vmem:[#allocation2 + $0xd8] sm:$0xff] }
 0x70c   : > { %13647 = vmatprep.mubr.msk.f32.mxu1 %vm504_vm2, %v20199_v21  ;;  %v18870_v21 = vld [vmem:[#allocation2 + $0xe0] sm:$0xff] }
 0x70f   : > { %13648 = vmatmul.mubr.msk.f32.gmra.mrb[14].mxu1 %vm504_vm2, %v20200_v16  ;;  %v18874_v16 = vld [vmem:[#allocation2 + $0xe8] sm:$0xff] }
 0x710   : > { %13650 = vmatprep.mubr.msk.f32.mxu1 %vm504_vm2, %v20201_v52  ;;  %v18878_v52 = vld [vmem:[#allocation2 + $0xf0] sm:$0xff] }
 0x713   : > { %13651 = vmatmul.mubr.msk.f32.gmra.mrb[16].mxu1 %vm504_vm2, %v20202_v47  ;;  %v18882_v47 = vld [vmem:[#allocation2 + $0xf8] sm:$0xff] }
 0x714   : > { %13653 = vmatprep.mubr.msk.f32.mxu1 %vm504_vm2, %v20203_v50  ;;  %v18886_v50 = vld [vmem:[#allocation2 + $0x100] sm:$0xff] }
 0x717   : > { %13654 = vmatmul.mubr.msk.f32.gmra.mrb[18].mxu1 %vm504_vm2, %v20204_v43  ;;  %v18890_v43 = vld [vmem:[#allocation2 + $0x108] sm:$0xff] }
 0x718   : > { %13656 = vmatprep.mubr.msk.f32.mxu1 %vm504_vm2, %v20205_v14  ;;  %v18894_v14 = vld [vmem:[#allocation2 + $0x110] sm:$0xff] }
 0x71b   : > { %13657 = vmatmul.mubr.msk.f32.gmra.mrb[20].mxu1 %vm504_vm2, %v20206_v46  ;;  %v18898_v46 = vld [vmem:[#allocation2 + $0x118] sm:$0xff] }
 0x71c   : > { %13659 = vmatprep.mubr.msk.f32.mxu1 %vm504_vm2, %v20207_v37  ;;  %v18902_v37 = vld [vmem:[#allocation2 + $0x120] sm:$0xff] }
 0x71f   : > { %13660 = vmatmul.mubr.msk.f32.gmra.mrb[22].mxu1 %vm504_vm2, %v20208_v39  ;;  %v18906_v39 = vld [vmem:[#allocation2 + $0x128] sm:$0xff] }
 0x720   : > { %13662 = vmatprep.mubr.msk.f32.mxu1 %vm504_vm2, %v20209_v3  ;;  %v18910_v3 = vld [vmem:[#allocation2 + $0x130] sm:$0xff] }
 0x723   : > { %13663 = vmatmul.mubr.msk.f32.gmra.mrb[24].mxu1 %vm504_vm2, %v20210_v34  ;;  %v18914_v34 = vld [vmem:[#allocation2 + $0x138] sm:$0xff] }
 0x724   : > { %13665 = vmatprep.mubr.msk.f32.mxu1 %vm504_vm2, %v20211_v5  ;;  %v18918_v5 = vld [vmem:[#allocation2 + $0x140] sm:$0xff] }
 0x727   : > { %13666 = vmatmul.mubr.msk.f32.gmra.mrb[26].mxu1 %vm504_vm2, %v20212_v2  ;;  %v18922_v2 = vld [vmem:[#allocation2 + $0x148] sm:$0xff] }
 0x728   : > { %13668 = vmatprep.mubr.msk.f32.mxu1 %vm504_vm2, %v20213_v24  ;;  %v18926_v24 = vld [vmem:[#allocation2 + $0x150] sm:$0xff] }
 0x72b   : > { %13669 = vmatmul.mubr.msk.f32.gmra.mrb[28].mxu1 %vm504_vm2, %v20214_v60  ;;  %v18930_v60 = vld [vmem:[#allocation2 + $0x158] sm:$0xff] }
 0x72c   : > { %13671 = vmatprep.mubr.msk.f32.mxu1 %vm504_vm2, %v20215_v15  ;;  %v18934_v15 = vld [vmem:[#allocation2 + $0x160] sm:$0xff] }
 0x72f   : > { %13672 = vmatmul.mubr.msk.f32.gmra.mrb[30].mxu1 %vm504_vm2, %v20216_v56  ;;  %v18938_v56 = vld [vmem:[#allocation2 + $0x168] sm:$0xff] }
 0x730   : > { %13674 = vmatprep.mubr.msk.f32.mxu1 %vm504_vm2, %v20217_v58  ;;  %v18942_v58 = vld [vmem:[#allocation2 + $0x170] sm:$0xff] }
 0x733   : > { %13675 = vmatmul.mubr.msk.f32.gmra.mrb[32].mxu1 %vm504_vm2, %v20218_v19  ;;  %v18946_v19 = vld [vmem:[#allocation2 + $0x178] sm:$0xff] }
 0x734   : > { %13677 = vmatprep.mubr.msk.f32.mxu1 %vm504_vm2, %v20219_v8  ;;  %v18956_v8 = vld [vmem:[#allocation2 + $0x198] sm:$0xff] }
 0x737   : > { %13678 = vmatmul.mubr.msk.f32.gmra.mrb[34].mxu1 %vm504_vm2, %v20220_v42 }
 0x738   : > { %13680 = vmatprep.mubr.msk.f32.mxu1 %vm504_vm2, %v20221_v30  ;;  %v18961_v30 = vld [vmem:[#allocation2 + $0x1a0] sm:$0xff] }
 0x73b   : > { %13681 = vmatmul.mubr.msk.f32.gmra.mrb[36].mxu1 %vm504_vm2, %v20222_v6  ;;  %v9322_v6 = vrot.slane %v18780_v40, 1 }
 0x73c   : > { %13683 = vmatprep.mubr.msk.f32.mxu1 %vm504_vm2, %v20223_v23 }
 0x73f   : > { %13684 = vmatmul.mubr.msk.f32.gmra.mrb[38].mxu1 %vm504_vm2, %v18398_v48  ;;  %v8372_v48 = vsel %vm1540_vm5, %v18413_v55, %v18744_v18 }
 0x740   : > { %13686 = vmatprep.mubr.msk.f32.mxu1 %vm504_vm2, %v20224_v9  ;;  %v9328_v9 = vrot.slane %v18798_v63, 1 }
 0x743   : > { %13687 = vmatmul.mubr.msk.f32.gmra.mrb[40].mxu1 %vm504_vm2, %v18410_v41  ;;  %v18762_v41 = vsel %vm1540_vm5, %v18744_v18, %v8373_v45 }
 0x744   : > { %13689 = vmatprep.mubr.msk.f32.mxu1 %vm504_vm2, %v18418_v7  ;;  %v8377_v7 = vrot.slane %v18637_v29, 2  ;;  %v18802_v29 = vld [vmem:[#allocation2 + $0x58] sm:$0xff] }
 0x746   : > { %v8378_v55 = vsel %vm1540_vm5, %v18752_v38, %v8377_v7 }
 0x747   : > { %13690 = vmatmul.mubr.msk.f32.gmra.mrb[42].mxu1 %vm504_vm2, %v18425_v17  ;;  %v18776_v17 = vld [vmem:[#allocation2 + $0x30] sm:$0xff] }
 0x748   : > { %13692 = vmatprep.mubr.msk.f32.mxu1 %vm504_vm2, %v8372_v48  ;;  %v9321_v42 = vrot.slane %v18776_v17, 1  ;;  %v9330_v48 = vrot.slane %v18802_v29, 1 }
 0x74a   : > { %v9323_v23 = vsel %vm663_vm4, %v9321_v42, %v9322_v6 }
 0x74b   : > { %13693 = vmatmul.mubr.msk.f32.gmra.mrb[44].mxu1 %vm504_vm2, %v18762_v41 }
 0x74c   : > { %13695 = vmatprep.mubr.msk.f32.mxu1 %vm504_vm2, %v18769_v20 }
 0x74f   : > { %13696 = vmatmul.mubr.msk.f32.gmra.mrb[46].mxu1 %vm504_vm2, %v8378_v55  ;;  %v9332_v55 = vrot.slane %v18806_v54, 1 }
 0x750   : > { %13700 = vmatprep.mubr.msk.f32.mxu1 %vm504_vm2, %v18776_v17 }
 0x753   : > { %13701 = vmatmul.mubr.msk.f32.vlgmr.msra.gmra.mrb[0].mxu1 %vm504_vm2, %v18780_v40 }
 0x754   : > { %13773 = vmatpush3.msk.msra.mxu1 %vm857_vm0, %v18658_v61  ;;  %13703 = vmatprep.mubr.msk.f32.mxu1 %vm504_vm2, %v18786_v1  ;;  %v18814_v61 = vld [vmem:[#allocation2 + $0x70] sm:$0xff] }
 0x755   : > { %13846 = vmatprep.subr.msk.mxu1 %vm857_vm0, %v18782_v32 }
 0x757   : > { %13704 = vmatmul.mubr.msk.f32.gmra.mrb[2].mxu1 %vm504_vm2, %v18794_v25 }
 0x758   : > { %13706 = vmatprep.mubr.msk.f32.mxu1 %vm504_vm2, %v18798_v63 }
 0x75b   : > { %13707 = vmatmul.mubr.msk.f32.gmra.mrb[4].mxu1 %vm504_vm2, %v18802_v29 }
 0x75c   : > { %13709 = vmatprep.mubr.msk.f32.mxu1 %vm504_vm2, %v18806_v54 }
 0x75f   : > { %13710 = vmatmul.mubr.msk.f32.gmra.mrb[6].mxu1 %vm504_vm2, %v18810_v11 }
 0x760   : > { %13712 = vmatprep.mubr.msk.f32.mxu1 %vm504_vm2, %v18814_v61 }
 0x763   : > { %13713 = vmatmul.mubr.msk.f32.gmra.mrb[8].mxu1 %vm504_vm2, %v18818_v44 }
 0x764   : > { %13715 = vmatprep.mubr.msk.f32.mxu1 %vm504_vm2, %v18822_v12 }
 0x767   : > { %13716 = vmatmul.mubr.msk.f32.gmra.mrb[10].mxu1 %vm504_vm2, %v18826_v49 }
 0x768   : > { %13718 = vmatprep.mubr.msk.f32.mxu1 %vm504_vm2, %v18830_v13 }
 0x76b   : > { %13719 = vmatmul.mubr.msk.f32.gmra.mrb[12].mxu1 %vm504_vm2, %v18834_v28 }
 0x76c   : > { %13721 = vmatprep.mubr.msk.f32.mxu1 %vm504_vm2, %v18838_v26 }
 0x76f   : > { %13722 = vmatmul.mubr.msk.f32.gmra.mrb[14].mxu1 %vm504_vm2, %v18842_v51 }
 0x770   : > { %13724 = vmatprep.mubr.msk.f32.mxu1 %vm504_vm2, %v18846_v53 }
 0x773   : > { %13725 = vmatmul.mubr.msk.f32.gmra.mrb[16].mxu1 %vm504_vm2, %v18850_v22 }
 0x774   : > { %13727 = vmatprep.mubr.msk.f32.mxu1 %vm504_vm2, %v18854_v35 }
 0x777   : > { %13728 = vmatmul.mubr.msk.f32.gmra.mrb[18].mxu1 %vm504_vm2, %v18858_v0 }
 0x778   : > { %13730 = vmatprep.mubr.msk.f32.mxu1 %vm504_vm2, %v18862_v10 }
 0x77b   : > { %13731 = vmatmul.mubr.msk.f32.gmra.mrb[20].mxu1 %vm504_vm2, %v18866_v27 }
 0x77c   : > { %13733 = vmatprep.mubr.msk.f32.mxu1 %vm504_vm2, %v18870_v21 }
 0x77f   : > { %13734 = vmatmul.mubr.msk.f32.gmra.mrb[22].mxu1 %vm504_vm2, %v18874_v16 }
 0x780   : > { %13736 = vmatprep.mubr.msk.f32.mxu1 %vm504_vm2, %v18878_v52 }
 0x783   : > { %13737 = vmatmul.mubr.msk.f32.gmra.mrb[24].mxu1 %vm504_vm2, %v18882_v47 }
 0x784   : > { %13739 = vmatprep.mubr.msk.f32.mxu1 %vm504_vm2, %v18886_v50 }
 0x787   : > { %13740 = vmatmul.mubr.msk.f32.gmra.mrb[26].mxu1 %vm504_vm2, %v18890_v43 }
 0x788   : > { %13742 = vmatprep.mubr.msk.f32.mxu1 %vm504_vm2, %v18894_v14 }
 0x78b   : > { %13743 = vmatmul.mubr.msk.f32.gmra.mrb[28].mxu1 %vm504_vm2, %v18898_v46 }
 0x78c   : > { %13745 = vmatprep.mubr.msk.f32.mxu1 %vm504_vm2, %v18902_v37 }
 0x78f   : > { %13746 = vmatmul.mubr.msk.f32.gmra.mrb[30].mxu1 %vm504_vm2, %v18906_v39 }
 0x790   : > { %13748 = vmatprep.mubr.msk.f32.mxu1 %vm504_vm2, %v18910_v3 }
 0x793   : > { %13749 = vmatmul.mubr.msk.f32.gmra.mrb[32].mxu1 %vm504_vm2, %v18914_v34 }
 0x794   : > { %13751 = vmatprep.mubr.msk.f32.mxu1 %vm504_vm2, %v18918_v5 }
 0x797   : > { %13752 = vmatmul.mubr.msk.f32.gmra.mrb[34].mxu1 %vm504_vm2, %v18922_v2 }
 0x798   : > { %13754 = vmatprep.mubr.msk.f32.mxu1 %vm504_vm2, %v18926_v24 }
 0x79b   : > { %13755 = vmatmul.mubr.msk.f32.gmra.mrb[36].mxu1 %vm504_vm2, %v18930_v60 }
 0x79c   : > { %13757 = vmatprep.mubr.msk.f32.mxu1 %vm504_vm2, %v18934_v15 }
 0x79f   : > { %13758 = vmatmul.mubr.msk.f32.gmra.mrb[38].mxu1 %vm504_vm2, %v18938_v56 }
 0x7a0   : > { %13760 = vmatprep.mubr.msk.f32.mxu1 %vm504_vm2, %v18942_v58 }
 0x7a3   : > { %13761 = vmatmul.mubr.msk.f32.gmra.mrb[40].mxu1 %vm504_vm2, %v18946_v19 }
 0x7a4   : > { %13763 = vmatprep.mubr.msk.f32.mxu1 %vm504_vm2, %v18525_v36  ;;  %v9324_v36 = vrot.slane %v18786_v1, 1 }
 0x7a6   : > { %v9325_v45 = vsel %vm663_vm4, %v9322_v6, %v9324_v36  ;;  %v9331_v6 = vsel %vm663_vm4, %v9328_v9, %v9330_v48 }
 0x7a7   : > { %13764 = vmatmul.mubr.msk.f32.gmra.mrb[42].mxu1 %vm504_vm2, %v18529_v33  ;;  %v18967_v33 = vld [vmem:[#allocation2 + $0x1a8] sm:$0xff] }
 0x7a8   : > { %13766 = vmatprep.mubr.msk.f32.mxu1 %vm504_vm2, %v18533_v59  ;;  %v9326_v59 = vrot.slane %v18794_v25, 1 }
 0x7aa   : > { %v9327_v7 = vsel %vm663_vm4, %v9324_v36, %v9326_v59  ;;  %v9329_v42 = vsel %vm663_vm4, %v9326_v59, %v9328_v9  ;;  %v9333_v36 = vsel %vm663_vm4, %v9330_v48, %v9332_v55  ;;  %v9340_v59 = vrot.slane %v18822_v12, 1 }
 0x7ab   : > { %13767 = vmatmul.mubr.msk.f32.gmra.mrb[44].mxu1 %vm504_vm2, %v18956_v8  ;;  %v9342_v9 = vrot.slane %v18826_v49, 1  ;;  %v9344_v48 = vrot.slane %v18830_v13, 1 }
 0x7ac   : > { %13769 = vmatprep.mubr.msk.f32.mxu1 %vm504_vm2, %v18961_v30 }
 0x7af   : > { %13770 = vmatmul.mubr.msk.f32.gmra.mrb[46].mxu1 %vm504_vm2, %v18967_v33 }
 0x7b0   : > { %13774 = vmatprep.mubr.msk.f32.mxu1 %vm504_vm2, %v9323_v23  ;;  %v9334_v23 = vrot.slane %v18810_v11, 1 }
 0x7b3   : > { %13775 = vmatmul.mubr.msk.f32.vlgmr.msra.gmra.mrb[0].mxu1 %vm504_vm2, %v9325_v45  ;;  %v9336_v45 = vrot.slane %v18814_v61, 1 }
 0x7b4   : > { %13847 = vmatpush3.msk.msra.mxu1 %vm857_vm0, %v18782_v32  ;;  %13777 = vmatprep.mubr.msk.f32.mxu1 %vm504_vm2, %v9327_v7  ;;  %v9338_v32 = vrot.slane %v18818_v44, 1  ;;  %v9335_v7 = vsel %vm663_vm4, %v9332_v55, %v9334_v23  ;;  %v9346_v55 = vrot.slane %v18834_v28, 1 }
 0x7b7   : > { %13778 = vmatmul.mubr.msk.f32.gmra.mrb[2].mxu1 %vm504_vm2, %v9329_v42  ;;  %v9337_v42 = vsel %vm663_vm4, %v9334_v23, %v9336_v45  ;;  %v9348_v23 = vrot.slane %v18838_v26, 1 }
 0x7b8   : > { %13780 = vmatprep.mubr.msk.f32.mxu1 %vm504_vm2, %v9331_v6  ;;  %v9339_v6 = vsel %vm663_vm4, %v9336_v45, %v9338_v32  ;;  %v9350_v45 = vrot.slane %v18842_v51, 1 }
 0x7bb   : > { %13781 = vmatmul.mubr.msk.f32.gmra.mrb[4].mxu1 %vm504_vm2, %v9333_v36  ;;  %v9341_v36 = vsel %vm663_vm4, %v9338_v32, %v9340_v59  ;;  %v9352_v32 = vrot.slane %v18846_v53, 1 }
 0x7bc   : > { %13783 = vmatprep.mubr.msk.f32.mxu1 %vm504_vm2, %v9335_v7  ;;  %v9343_v7 = vsel %vm663_vm4, %v9340_v59, %v9342_v9  ;;  %v9354_v59 = vrot.slane %v18850_v22, 1 }
 0x7bf   : > { %13784 = vmatmul.mubr.msk.f32.gmra.mrb[6].mxu1 %vm504_vm2, %v9337_v42  ;;  %v9345_v42 = vsel %vm663_vm4, %v9342_v9, %v9344_v48  ;;  %v9356_v9 = vrot.slane %v18854_v35, 1 }
 0x7c0   : > { %13786 = vmatprep.mubr.msk.f32.mxu1 %vm504_vm2, %v9339_v6  ;;  %v9347_v6 = vsel %vm663_vm4, %v9344_v48, %v9346_v55  ;;  %v9358_v48 = vrot.slane %v18858_v0, 1 }
 0x7c3   : > { %13787 = vmatmul.mubr.msk.f32.gmra.mrb[8].mxu1 %vm504_vm2, %v9341_v36  ;;  %v9349_v36 = vsel %vm663_vm4, %v9346_v55, %v9348_v23  ;;  %v9360_v55 = vrot.slane %v18862_v10, 1 }
 0x7c4   : > { %13789 = vmatprep.mubr.msk.f32.mxu1 %vm504_vm2, %v9343_v7  ;;  %v9351_v7 = vsel %vm663_vm4, %v9348_v23, %v9350_v45  ;;  %v9362_v23 = vrot.slane %v18866_v27, 1 }
 0x7c7   : > { %13790 = vmatmul.mubr.msk.f32.gmra.mrb[10].mxu1 %vm504_vm2, %v9345_v42  ;;  %v9353_v42 = vsel %vm663_vm4, %v9350_v45, %v9352_v32  ;;  %v9364_v45 = vrot.slane %v18870_v21, 1 }
 0x7c8   : > { %13792 = vmatprep.mubr.msk.f32.mxu1 %vm504_vm2, %v9347_v6  ;;  %v9355_v6 = vsel %vm663_vm4, %v9352_v32, %v9354_v59  ;;  %v9366_v32 = vrot.slane %v18874_v16, 1 }
 0x7cb   : > { %13793 = vmatmul.mubr.msk.f32.gmra.mrb[12].mxu1 %vm504_vm2, %v9349_v36  ;;  %v9357_v36 = vsel %vm663_vm4, %v9354_v59, %v9356_v9  ;;  %v9368_v59 = vrot.slane %v18878_v52, 1 }
 0x7cc   : > { %13795 = vmatprep.mubr.msk.f32.mxu1 %vm504_vm2, %v9351_v7  ;;  %v9359_v7 = vsel %vm663_vm4, %v9356_v9, %v9358_v48  ;;  %v9370_v9 = vrot.slane %v18882_v47, 1 }
 0x7cf   : > { %13796 = vmatmul.mubr.msk.f32.gmra.mrb[14].mxu1 %vm504_vm2, %v9353_v42  ;;  %v9361_v42 = vsel %vm663_vm4, %v9358_v48, %v9360_v55  ;;  %v9372_v48 = vrot.slane %v18886_v50, 1 }
 0x7d0   : > { %13798 = vmatprep.mubr.msk.f32.mxu1 %vm504_vm2, %v9355_v6  ;;  %v9363_v6 = vsel %vm663_vm4, %v9360_v55, %v9362_v23  ;;  %v9374_v55 = vrot.slane %v18890_v43, 1 }
 0x7d3   : > { %13799 = vmatmul.mubr.msk.f32.gmra.mrb[16].mxu1 %vm504_vm2, %v9357_v36  ;;  %v9365_v36 = vsel %vm663_vm4, %v9362_v23, %v9364_v45  ;;  %v9376_v23 = vrot.slane %v18894_v14, 1 }
 0x7d4   : > { %13801 = vmatprep.mubr.msk.f32.mxu1 %vm504_vm2, %v9359_v7  ;;  %v9367_v7 = vsel %vm663_vm4, %v9364_v45, %v9366_v32  ;;  %v9378_v45 = vrot.slane %v18898_v46, 1 }
 0x7d7   : > { %13802 = vmatmul.mubr.msk.f32.gmra.mrb[18].mxu1 %vm504_vm2, %v9361_v42  ;;  %v9369_v42 = vsel %vm663_vm4, %v9366_v32, %v9368_v59  ;;  %v9380_v32 = vrot.slane %v18902_v37, 1 }
 0x7d8   : > { %13804 = vmatprep.mubr.msk.f32.mxu1 %vm504_vm2, %v9363_v6  ;;  %v9371_v6 = vsel %vm663_vm4, %v9368_v59, %v9370_v9  ;;  %v9382_v59 = vrot.slane %v18906_v39, 1 }
 0x7db   : > { %13805 = vmatmul.mubr.msk.f32.gmra.mrb[20].mxu1 %vm504_vm2, %v9365_v36  ;;  %v9373_v36 = vsel %vm663_vm4, %v9370_v9, %v9372_v48  ;;  %v9384_v9 = vrot.slane %v18910_v3, 1 }
 0x7dc   : > { %13807 = vmatprep.mubr.msk.f32.mxu1 %vm504_vm2, %v9367_v7  ;;  %v9375_v7 = vsel %vm663_vm4, %v9372_v48, %v9374_v55  ;;  %v9386_v48 = vrot.slane %v18914_v34, 1 }
 0x7df   : > { %13808 = vmatmul.mubr.msk.f32.gmra.mrb[22].mxu1 %vm504_vm2, %v9369_v42  ;;  %v9377_v42 = vsel %vm663_vm4, %v9374_v55, %v9376_v23  ;;  %v9388_v55 = vrot.slane %v18918_v5, 1 }
 0x7e0   : > { %13810 = vmatprep.mubr.msk.f32.mxu1 %vm504_vm2, %v9371_v6  ;;  %v9379_v6 = vsel %vm663_vm4, %v9376_v23, %v9378_v45  ;;  %v9390_v23 = vrot.slane %v18922_v2, 1 }
 0x7e3   : > { %13811 = vmatmul.mubr.msk.f32.gmra.mrb[24].mxu1 %vm504_vm2, %v9373_v36  ;;  %v9381_v36 = vsel %vm663_vm4, %v9378_v45, %v9380_v32  ;;  %v9392_v45 = vrot.slane %v18926_v24, 1 }
 0x7e4   : > { %13813 = vmatprep.mubr.msk.f32.mxu1 %vm504_vm2, %v9375_v7  ;;  %v9383_v7 = vsel %vm663_vm4, %v9380_v32, %v9382_v59  ;;  %v9394_v32 = vrot.slane %v18930_v60, 1 }
 0x7e7   : > { %13814 = vmatmul.mubr.msk.f32.gmra.mrb[26].mxu1 %vm504_vm2, %v9377_v42  ;;  %v9385_v42 = vsel %vm663_vm4, %v9382_v59, %v9384_v9  ;;  %v9396_v59 = vrot.slane %v18934_v15, 1 }
 0x7e8   : > { %13816 = vmatprep.mubr.msk.f32.mxu1 %vm504_vm2, %v9379_v6  ;;  %v9387_v6 = vsel %vm663_vm4, %v9384_v9, %v9386_v48  ;;  %v9398_v9 = vrot.slane %v18938_v56, 1 }
 0x7eb   : > { %13817 = vmatmul.mubr.msk.f32.gmra.mrb[28].mxu1 %vm504_vm2, %v9381_v36  ;;  %v9389_v36 = vsel %vm663_vm4, %v9386_v48, %v9388_v55  ;;  %v9400_v48 = vrot.slane %v18942_v58, 1 }
 0x7ec   : > { %13819 = vmatprep.mubr.msk.f32.mxu1 %vm504_vm2, %v9383_v7  ;;  %v9391_v7 = vsel %vm663_vm4, %v9388_v55, %v9390_v23  ;;  %v9402_v55 = vrot.slane %v18946_v19, 1 }
 0x7ef   : > { %13820 = vmatmul.mubr.msk.f32.gmra.mrb[30].mxu1 %vm504_vm2, %v9385_v42  ;;  %v9393_v42 = vsel %vm663_vm4, %v9390_v23, %v9392_v45  ;;  %v9401_v23 = vsel %vm663_vm4, %v9398_v9, %v9400_v48 }
 0x7f0   : > { %13822 = vmatprep.mubr.msk.f32.mxu1 %vm504_vm2, %v9387_v6  ;;  %v9395_v6 = vsel %vm663_vm4, %v9392_v45, %v9394_v32  ;;  %v9403_v45 = vsel %vm663_vm4, %v9400_v48, %v9402_v55  ;;  %v19106_v48 = vld [vmem:[#allocation2 + $0x1b0] sm:$0x3] }
 0x7f3   : > { %13823 = vmatmul.mubr.msk.f32.gmra.mrb[32].mxu1 %vm504_vm2, %v9389_v36  ;;  %v9397_v36 = vsel %vm663_vm4, %v9394_v32, %v9396_v59  ;;  %v9410_v32 = vrot.slane %v18956_v8, 1 }
 0x7f4   : > { %13825 = vmatprep.mubr.msk.f32.mxu1 %vm504_vm2, %v9391_v7  ;;  %v9399_v7 = vsel %vm663_vm4, %v9396_v59, %v9398_v9  ;;  %v9412_v59 = vrot.slane %v18961_v30, 1  ;;  %v9414_v9 = vrot.slane %v18967_v33, 1 }
 0x7f7   : > { %13826 = vmatmul.mubr.msk.f32.gmra.mrb[34].mxu1 %vm504_vm2, %v9393_v42  ;;  %v9405_v42 = vsel %vm663_vm4, %v9402_v55, %v18622_v57  ;;  %v9413_v57 = vsel %vm663_vm4, %v9410_v32, %v9412_v59  ;;  %v9415_v55 = vsel %vm663_vm4, %v9412_v59, %v9414_v9  ;;  %v9853_v59 = vrot.slane %v18810_v11, 2 }
 0x7f8   : > { %13828 = vmatprep.mubr.msk.f32.mxu1 %vm504_vm2, %v9395_v6  ;;  %v9411_v6 = vsel %vm663_vm4, %v18630_v62, %v9410_v32  ;;  %v9843_v62 = vrot.slane %v18786_v1, 2  ;;  %v9859_v11 = vrot.slane %v18822_v12, 2 }
 0x7fb   : > { %13829 = vmatmul.mubr.msk.f32.gmra.mrb[36].mxu1 %vm504_vm2, %v9397_v36  ;;  %v9416_v36 = vrot.slane %v19106_v48, 1 }
 0x7fc   : > { %13831 = vmatprep.mubr.msk.f32.mxu1 %vm504_vm2, %v9399_v7  ;;  %v9841_v7 = vrot.slane %v18780_v40, 2  ;;  %v9849_v40 = vrot.slane %v18802_v29, 2  ;;  %v9855_v29 = vrot.slane %v18814_v61, 2 }
 0x7ff   : > { %13832 = vmatmul.mubr.msk.f32.gmra.mrb[38].mxu1 %vm504_vm2, %v9401_v23  ;;  %v9845_v23 = vrot.slane %v18794_v25, 2  ;;  %v9851_v25 = vrot.slane %v18806_v54, 2 }
 0x800   : > { %13834 = vmatprep.mubr.msk.f32.mxu1 %vm504_vm2, %v9403_v45 }
 0x801   : > { %v9846_v1 = vsel %vm1540_vm5, %v9843_v62, %v9845_v23  ;;  %v9854_v54 = vsel %vm1540_vm5, %v9851_v25, %v9853_v59 }
 0x803   : > { %13835 = vmatmul.mubr.msk.f32.gmra.mrb[40].mxu1 %vm504_vm2, %v9405_v42  ;;  %v9844_v42 = vsel %vm1540_vm5, %v9841_v7, %v9843_v62  ;;  %v9869_v62 = vrot.slane %v18842_v51, 2  ;;  %v9875_v51 = vrot.slane %v18854_v35, 2 }
 0x804   : > { %13837 = vmatprep.mubr.msk.f32.mxu1 %vm504_vm2, %v18642_v31  ;;  %v9840_v31 = vrot.slane %v18776_v17, 2  ;;  %v9847_v17 = vrot.slane %v18798_v63, 2 }
 0x806   : > { %v9842_v45 = vsel %vm1540_vm5, %v9840_v31, %v9841_v7  ;;  %v9848_v32 = vsel %vm1540_vm5, %v9845_v23, %v9847_v17  ;;  %v9850_v63 = vsel %vm1540_vm5, %v9847_v17, %v9849_v40  ;;  %v9873_v23 = vrot.slane %v18850_v22, 2 }
 0x807   : > { %13838 = vmatmul.mubr.msk.f32.gmra.mrb[42].mxu1 %vm504_vm2, %v18649_v4  ;;  %v9417_v4 = vsel %vm663_vm4, %v9414_v9, %v9416_v36  ;;  %v9852_v9 = vsel %vm1540_vm5, %v9849_v40, %v9851_v25  ;;  %v9861_v36 = vrot.slane %v18826_v49, 2  ;;  %v9867_v49 = vrot.slane %v18838_v26, 2 }
 0x808   : > { %13840 = vmatprep.mubr.msk.f32.mxu1 %vm504_vm2, %v9411_v6  ;;  %v9857_v6 = vrot.slane %v18818_v44, 2  ;;  %v9863_v44 = vrot.slane %v18830_v13, 2  ;;  %v9877_v17 = vrot.slane %v18858_v0, 2  ;;  %v9879_v22 = vrot.slane %v18862_v10, 2 }
 0x809   : > { %v9862_v12 = vsel %vm1540_vm5, %v9859_v11, %v9861_v36  ;;  %v9870_v26 = vsel %vm1540_vm5, %v9867_v49, %v9869_v62  ;;  %v9881_v40 = vrot.slane %v18866_v27, 2  ;;  %v9883_v0 = vrot.slane %v18870_v21, 2 }
 0x80a   : > { %v9858_v61 = vsel %vm1540_vm5, %v9855_v29, %v9857_v6  ;;  %v9860_v31 = vsel %vm1540_vm5, %v9857_v6, %v9859_v11  ;;  %v9864_v7 = vsel %vm1540_vm5, %v9861_v36, %v9863_v44  ;;  %v9878_v35 = vsel %vm1540_vm5, %v9875_v51, %v9877_v17 }
 0x80b   : > { %13841 = vmatmul.mubr.msk.f32.gmra.mrb[44].mxu1 %vm504_vm2, %v9413_v57  ;;  %v9856_v57 = vsel %vm1540_vm5, %v9853_v59, %v9855_v29  ;;  %v9885_v25 = vrot.slane %v18874_v16, 2  ;;  %v9882_v10 = vsel %vm1540_vm5, %v9879_v22, %v9881_v40  ;;  %v9887_v27 = vrot.slane %v18878_v52, 2 }
 0x80c   : > { %13843 = vmatprep.mubr.msk.f32.mxu1 %vm504_vm2, %v9415_v55  ;;  %v9865_v55 = vrot.slane %v18834_v28, 2  ;;  %v9871_v28 = vrot.slane %v18846_v53, 2  ;;  %v9889_v59 = vrot.slane %v18882_v47, 2  ;;  %v9891_v16 = vrot.slane %v18886_v50, 2 }
 0x80d   : > { %v9886_v21 = vsel %vm1540_vm5, %v9883_v0, %v9885_v25  ;;  %v9893_v29 = vrot.slane %v18890_v43, 2  ;;  %v9895_v47 = vrot.slane %v18894_v14, 2  ;;  %v9897_v6 = vrot.slane %v18898_v46, 2 }
 0x80e   : > { %v9866_v13 = vsel %vm1540_vm5, %v9863_v44, %v9865_v55  ;;  %v9874_v53 = vsel %vm1540_vm5, %v9871_v28, %v9873_v23  ;;  %v9890_v52 = vsel %vm1540_vm5, %v9887_v27, %v9889_v59  ;;  %v9899_v43 = vrot.slane %v18902_v37, 2 }
 0x80f   : > { %13844 = vmatmul.mubr.msk.f32.gmra.mrb[46].mxu1 %vm504_vm2, %v9417_v4  ;;  %v9868_v4 = vsel %vm1540_vm5, %v9865_v55, %v9867_v49  ;;  %v9894_v50 = vsel %vm1540_vm5, %v9891_v16, %v9893_v29  ;;  %v9901_v11 = vrot.slane %v18906_v39, 2  ;;  %v9898_v14 = vsel %vm1540_vm5, %v9895_v47, %v9897_v6 }
 0x810   : > { %13848 = vmatprep.mubr.msk.f32.mxu1 %vm504_vm2, %v9842_v45  ;;  %v9872_v45 = vsel %vm1540_vm5, %v9869_v62, %v9871_v28  ;;  %v9903_v46 = vrot.slane %v18910_v3, 2  ;;  %v9905_v36 = vrot.slane %v18914_v34, 2  ;;  %v9907_v39 = vrot.slane %v18918_v5, 2 }
 0x811   : > { %v9902_v37 = vsel %vm1540_vm5, %v9899_v43, %v9901_v11  ;;  %v9909_v44 = vrot.slane %v18922_v2, 2  ;;  %v9911_v34 = vrot.slane %v18926_v24, 2  ;;  %v9913_v55 = vrot.slane %v18930_v60, 2 }
 0x812   : > { %v9906_v3 = vsel %vm1540_vm5, %v9903_v46, %v9905_v36  ;;  %v9915_v2 = vrot.slane %v18934_v15, 2  ;;  %v9917_v49 = vrot.slane %v18938_v56, 2  ;;  %v9919_v60 = vrot.slane %v18942_v58, 2 }
 0x813   : > { %13849 = vmatmul.mubr.msk.f32.vlgmr.msra.gmra.mrb[0].mxu1 %vm504_vm2, %v9844_v42  ;;  %v9876_v42 = vsel %vm1540_vm5, %v9873_v23, %v9875_v51  ;;  %v9910_v5 = vsel %vm1540_vm5, %v9907_v39, %v9909_v44  ;;  %v9914_v24 = vsel %vm1540_vm5, %v9911_v34, %v9913_v55  ;;  %v9921_v62 = vrot.slane %v18946_v19, 2 }
 0x814   : > { %13851 = vmatprep.mubr.msk.f32.mxu1 %vm504_vm2, %v9846_v1  ;;  %v9880_v1 = vsel %vm1540_vm5, %v9877_v17, %v9879_v22  ;;  %v9918_v15 = vsel %vm1540_vm5, %v9915_v2, %v9917_v49  ;;  %v9920_v56 = vsel %vm1540_vm5, %v9917_v49, %v9919_v60  ;;  %v9929_v28 = vrot.slane %v18956_v8, 2 }
 0x815   : > { %v9924_v58 = vsel %vm1540_vm5, %v9921_v62, %v18744_v18  ;;  %v9931_v19 = vrot.slane %v18961_v30, 2  ;;  %v9935_v8 = vrot.slane %v19106_v48, 2 }
 0x816   : > { %v9930_v23 = vsel %vm1540_vm5, %v18752_v38, %v9929_v28 }
 0x817   : > { %13852 = vmatmul.mubr.msk.f32.gmra.mrb[2].mxu1 %vm504_vm2, %v9848_v32  ;;  %v9884_v32 = vsel %vm1540_vm5, %v9881_v40, %v9883_v0  ;;  %v9932_v18 = vsel %vm1540_vm5, %v9929_v28, %v9931_v19 }
 0x818   : > { %13854 = vmatprep.mubr.msk.f32.mxu1 %vm504_vm2, %v9850_v63  ;;  %v9888_v63 = vsel %vm1540_vm5, %v9885_v25, %v9887_v27 }
 0x81b   : > { %13855 = vmatmul.mubr.msk.f32.gmra.mrb[4].mxu1 %vm504_vm2, %v9852_v9  ;;  %v9892_v9 = vsel %vm1540_vm5, %v9889_v59, %v9891_v16 }
 0x81c   : > { %13857 = vmatprep.mubr.msk.f32.mxu1 %vm504_vm2, %v9854_v54  ;;  %v9896_v54 = vsel %vm1540_vm5, %v9893_v29, %v9895_v47 }
 0x81f   : > { %13858 = vmatmul.mubr.msk.f32.gmra.mrb[6].mxu1 %vm504_vm2, %v9856_v57  ;;  %v9900_v57 = vsel %vm1540_vm5, %v9897_v6, %v9899_v43 }
 0x820   : > { %13860 = vmatprep.mubr.msk.f32.mxu1 %vm504_vm2, %v9858_v61  ;;  %v9904_v61 = vsel %vm1540_vm5, %v9901_v11, %v9903_v46 }
 0x823   : > { %13861 = vmatmul.mubr.msk.f32.gmra.mrb[8].mxu1 %vm504_vm2, %v9860_v31  ;;  %v9908_v31 = vsel %vm1540_vm5, %v9905_v36, %v9907_v39 }
 0x824   : > { %13863 = vmatprep.mubr.msk.f32.mxu1 %vm504_vm2, %v9862_v12  ;;  %v9912_v12 = vsel %vm1540_vm5, %v9909_v44, %v9911_v34 }
 0x827   : > { %13864 = vmatmul.mubr.msk.f32.gmra.mrb[10].mxu1 %vm504_vm2, %v9864_v7  ;;  %v9916_v7 = vsel %vm1540_vm5, %v9913_v55, %v9915_v2 }
 0x828   : > { %13866 = vmatprep.mubr.msk.f32.mxu1 %vm504_vm2, %v9866_v13  ;;  %v9922_v13 = vsel %vm1540_vm5, %v9919_v60, %v9921_v62 }
 0x82b   : > { %13867 = vmatmul.mubr.msk.f32.gmra.mrb[12].mxu1 %vm504_vm2, %v9868_v4  ;;  %v9933_v4 = vrot.slane %v18967_v33, 2 }
 0x82c   : > { %13869 = vmatprep.mubr.msk.f32.mxu1 %vm504_vm2, %v9870_v26 }
 0x82d   : > { %v9936_v30 = vsel %vm1540_vm5, %v9933_v4, %v9935_v8 }
 0x82f   : > { %13870 = vmatmul.mubr.msk.f32.gmra.mrb[14].mxu1 %vm504_vm2, %v9872_v45 }
 0x830   : > { %13872 = vmatprep.mubr.msk.f32.mxu1 %vm504_vm2, %v9874_v53 }
 0x833   : > { %13873 = vmatmul.mubr.msk.f32.gmra.mrb[16].mxu1 %vm504_vm2, %v9876_v42 }
 0x834   : > { %13875 = vmatprep.mubr.msk.f32.mxu1 %vm504_vm2, %v9878_v35 }
 0x837   : > { %13876 = vmatmul.mubr.msk.f32.gmra.mrb[18].mxu1 %vm504_vm2, %v9880_v1 }
 0x838   : > { %13878 = vmatprep.mubr.msk.f32.mxu1 %vm504_vm2, %v9882_v10 }
 0x83b   : > { %13879 = vmatmul.mubr.msk.f32.gmra.mrb[20].mxu1 %vm504_vm2, %v9884_v32 }
 0x83c   : > { %13881 = vmatprep.mubr.msk.f32.mxu1 %vm504_vm2, %v9886_v21 }
 0x83f   : > { %13882 = vmatmul.mubr.msk.f32.gmra.mrb[22].mxu1 %vm504_vm2, %v9888_v63 }
 0x840   : > { %13884 = vmatprep.mubr.msk.f32.mxu1 %vm504_vm2, %v9890_v52 }
 0x843   : > { %13885 = vmatmul.mubr.msk.f32.gmra.mrb[24].mxu1 %vm504_vm2, %v9892_v9 }
 0x844   : > { %13887 = vmatprep.mubr.msk.f32.mxu1 %vm504_vm2, %v9894_v50 }
 0x847   : > { %13888 = vmatmul.mubr.msk.f32.gmra.mrb[26].mxu1 %vm504_vm2, %v9896_v54 }
 0x848   : > { %13890 = vmatprep.mubr.msk.f32.mxu1 %vm504_vm2, %v9898_v14 }
 0x84b   : > { %13891 = vmatmul.mubr.msk.f32.gmra.mrb[28].mxu1 %vm504_vm2, %v9900_v57 }
 0x84c   : > { %13893 = vmatprep.mubr.msk.f32.mxu1 %vm504_vm2, %v9902_v37 }
 0x84f   : > { %13894 = vmatmul.mubr.msk.f32.gmra.mrb[30].mxu1 %vm504_vm2, %v9904_v61 }
 0x850   : > { %13896 = vmatprep.mubr.msk.f32.mxu1 %vm504_vm2, %v9906_v3 }
 0x853   : > { %13897 = vmatmul.mubr.msk.f32.gmra.mrb[32].mxu1 %vm504_vm2, %v9908_v31 }
 0x854   : > { %13899 = vmatprep.mubr.msk.f32.mxu1 %vm504_vm2, %v9910_v5 }
 0x857   : > { %13900 = vmatmul.mubr.msk.f32.gmra.mrb[34].mxu1 %vm504_vm2, %v9912_v12 }
 0x858   : > { %13902 = vmatprep.mubr.msk.f32.mxu1 %vm504_vm2, %v9914_v24 }
 0x85b   : > { %13903 = vmatmul.mubr.msk.f32.gmra.mrb[36].mxu1 %vm504_vm2, %v9916_v7 }
 0x85c   : > { %13905 = vmatprep.mubr.msk.f32.mxu1 %vm504_vm2, %v9918_v15 }
 0x85f   : > { %13906 = vmatmul.mubr.msk.f32.gmra.mrb[38].mxu1 %vm504_vm2, %v9920_v56 }
 0x860   : > { %13908 = vmatprep.mubr.msk.f32.mxu1 %vm504_vm2, %v9922_v13 }
 0x863   : > { %13909 = vmatmul.mubr.msk.f32.gmra.mrb[40].mxu1 %vm504_vm2, %v9924_v58 }
 0x864   : > { %13911 = vmatprep.mubr.msk.f32.mxu1 %vm504_vm2, %v18762_v41  ;;  %v9934_v41 = vsel %vm1540_vm5, %v9931_v19, %v9933_v4 }
 0x867   : > { %13912 = vmatmul.mubr.msk.f32.gmra.mrb[42].mxu1 %vm504_vm2, %v18769_v20 }
 0x868   : > { %13914 = vmatprep.mubr.msk.f32.mxu1 %vm504_vm2, %v9930_v23 }
 0x86b   : > { %13915 = vmatmul.mubr.msk.f32.gmra.mrb[44].mxu1 %vm504_vm2, %v9932_v18 }
 0x86c   : > { %13917 = vmatprep.mubr.msk.f32.mxu1 %vm504_vm2, %v9934_v41 }
 0x86f   : > { %13918 = vmatmul.mubr.msk.f32.gmra.mrb[46].mxu1 %vm504_vm2, %v9936_v30 }
 0x8e6   : > { %v19260_v20 = vpop.f32.mrb[0].mxu1 }
 0x8e7   : > { %v19262_v33 = vpop.f32.mrb[1].mxu1  ;;  %v10429_v40 = vmul.f32 %v19260_v20, %v19260_v20  ;;  %v10388_v25 = vsel %vm504_vm2, %v19260_v20, 0.0 }
 0x8e8   : > { %v10428_v38 = vmul.f32 %v19262_v33, %v19262_v33  ;;  %v10357_v48 = vsel %vm504_vm2, %v19262_v33, 0.0 }
 0x8e9   : > { %v10491_v59 = vsel %vm504_vm2, %v10429_v40, 0.0 }
 0x8ea   : > { %v19266_v26 = vpop.f32.mrb[2].mxu1  ;;  %v10460_v22 = vsel %vm504_vm2, %v10428_v38, 0.0 }
 0x8eb   : > { %v10358_v51 = vsel %vm504_vm2, %v19266_v26, 0.0  ;;  %v10430_v45 = vmul.f32 %v19266_v26, %v19266_v26  ;;  %v10112_v17 = vpop.f32.mrb[3].mxu1 }
 0x8ec   : > { %v10359_v53 = vadd.f32 %v10358_v51, %v10357_v48 }
 0x8ed   : > { %v10461_v42 = vsel %vm504_vm2, %v10430_v45, 0.0 }
 0x8ee   : > { %v10462_v35 = vadd.f32 %v10461_v42, %v10460_v22  ;;  %v13856_v0 = vpop.f32.mrb[4].mxu1 }
 0x8ef   : > { %v19278_v1 = vpop.f32.mrb[5].mxu1 }
 0x8f0   : > { %v10389_v10 = vsel %vm504_vm2, %v19278_v1, 0.0  ;;  %v10431_v27 = vmul.f32 %v19278_v1, %v19278_v1 }
 0x8f1   : > { %v10390_v32 = vadd.f32 %v10389_v10, %v10388_v25 }
 0x8f2   : > { %v10492_v21 = vsel %vm504_vm2, %v10431_v27, 0.0  ;;  %v19288_v16 = vpop.f32.mrb[6].mxu1 }
 0x8f3   : > { %v10493_v63 = vadd.f32 %v10492_v21, %v10491_v59  ;;  %v10391_v29 = vsel %vm504_vm2, %v19288_v16, 0.0  ;;  %v10433_v52 = vmul.f32 %v19288_v16, %v19288_v16  ;;  %v19294_v47 = vpop.f32.mrb[7].mxu1 }
 0x8f4   : > { %v10392_v9 = vadd.f32 %v10391_v29, %v10390_v32  ;;  %v10360_v6 = vsel %vm504_vm2, %v19294_v47, 0.0  ;;  %v10432_v50 = vmul.f32 %v19294_v47, %v19294_v47 }
 0x8f5   : > { %v10494_v43 = vsel %vm504_vm2, %v10433_v52, 0.0  ;;  %v10361_v54 = vadd.f32 %v10360_v6, %v10359_v53 }
 0x8f6   : > { %v10495_v11 = vadd.f32 %v10494_v43, %v10493_v63  ;;  %v10463_v14 = vsel %vm504_vm2, %v10432_v50, 0.0  ;;  %v19302_v46 = vpop.f32.mrb[8].mxu1 }
 0x8f7   : > { %v10464_v57 = vadd.f32 %v10463_v14, %v10462_v35  ;;  %v10362_v36 = vsel %vm504_vm2, %v19302_v46, 0.0  ;;  %v10434_v37 = vmul.f32 %v19302_v46, %v19302_v46  ;;  %v10140_v39 = vpop.f32.mrb[9].mxu1 }
 0x8f8   : > { %v10363_v61 = vadd.f32 %v10362_v36, %v10361_v54 }
 0x8f9   : > { %v10465_v44 = vsel %vm504_vm2, %v10434_v37, 0.0 }
 0x8fa   : > { %v10466_v3 = vadd.f32 %v10465_v44, %v10464_v57  ;;  %v13865_v34 = vpop.f32.mrb[10].mxu1 }
 0x8fb   : > { %v19309_v31 = vpop.f32.mrb[11].mxu1 }
 0x8fc   : > { %v10393_v55 = vsel %vm504_vm2, %v19309_v31, 0.0  ;;  %v10435_v5 = vmul.f32 %v19309_v31, %v19309_v31 }
 0x8fd   : > { %v10394_v2 = vadd.f32 %v10393_v55, %v10392_v9 }
 0x8fe   : > { %v10496_v12 = vsel %vm504_vm2, %v10435_v5, 0.0  ;;  %v19316_v49 = vpop.f32.mrb[12].mxu1 }
 0x8ff   : > { %v10497_v24 = vadd.f32 %v10496_v12, %v10495_v11  ;;  %v10395_v60 = vsel %vm504_vm2, %v19316_v49, 0.0  ;;  %v10437_v7 = vmul.f32 %v19316_v49, %v19316_v49  ;;  %v19322_v62 = vpop.f32.mrb[13].mxu1 }
 0x900   : > { %v10396_v15 = vadd.f32 %v10395_v60, %v10394_v2  ;;  %v10364_v56 = vsel %vm504_vm2, %v19322_v62, 0.0  ;;  %v10436_v13 = vmul.f32 %v19322_v62, %v19322_v62 }
 0x901   : > { %v10498_v58 = vsel %vm504_vm2, %v10437_v7, 0.0  ;;  %v10365_v28 = vadd.f32 %v10364_v56, %v10363_v61 }
 0x902   : > { %v10499_v19 = vadd.f32 %v10498_v58, %v10497_v24  ;;  %v10467_v4 = vsel %vm504_vm2, %v10436_v13, 0.0  ;;  %v19330_v23 = vpop.f32.mrb[14].mxu1 }
 0x903   : > { %v10468_v18 = vadd.f32 %v10467_v4, %v10466_v3  ;;  %v10366_v8 = vsel %vm504_vm2, %v19330_v23, 0.0  ;;  %v10438_v41 = vmul.f32 %v19330_v23, %v19330_v23  ;;  %v10168_v30 = vpop.f32.mrb[15].mxu1 }
 0x904   : > { %v10367_v38 = vadd.f32 %v10366_v8, %v10365_v28 }
 0x905   : > { %v10469_v48 = vsel %vm504_vm2, %v10438_v41, 0.0 }
 0x906   : > { %v10470_v51 = vadd.f32 %v10469_v48, %v10468_v18  ;;  %v13874_v45 = vpop.f32.mrb[16].mxu1 }
 0x907   : > { %v19337_v17 = vpop.f32.mrb[17].mxu1 }
 0x908   : > { %v10397_v53 = vsel %vm504_vm2, %v19337_v17, 0.0  ;;  %v10439_v22 = vmul.f32 %v19337_v17, %v19337_v17 }
 0x909   : > { %v10398_v42 = vadd.f32 %v10397_v53, %v10396_v15 }
 0x90a   : > { %v10500_v40 = vsel %vm504_vm2, %v10439_v22, 0.0  ;;  %v19344_v35 = vpop.f32.mrb[18].mxu1 }
 0x90b   : > { %v10501_v0 = vadd.f32 %v10500_v40, %v10499_v19  ;;  %v10399_v25 = vsel %vm504_vm2, %v19344_v35, 0.0  ;;  %v10441_v10 = vmul.f32 %v19344_v35, %v19344_v35  ;;  %v19350_v27 = vpop.f32.mrb[19].mxu1 }
 0x90c   : > { %v10400_v32 = vadd.f32 %v10399_v25, %v10398_v42  ;;  %v10368_v59 = vsel %vm504_vm2, %v19350_v27, 0.0  ;;  %v10440_v21 = vmul.f32 %v19350_v27, %v19350_v27 }
 0x90d   : > { %v10502_v63 = vsel %vm504_vm2, %v10441_v10, 0.0  ;;  %v10369_v29 = vadd.f32 %v10368_v59, %v10367_v38 }
 0x90e   : > { %v10503_v52 = vadd.f32 %v10502_v63, %v10501_v0  ;;  %v10471_v9 = vsel %vm504_vm2, %v10440_v21, 0.0  ;;  %v19358_v6 = vpop.f32.mrb[20].mxu1 }
 0x90f   : > { %v10472_v50 = vadd.f32 %v10471_v9, %v10470_v51  ;;  %v10370_v43 = vsel %vm504_vm2, %v19358_v6, 0.0  ;;  %v10442_v54 = vmul.f32 %v19358_v6, %v19358_v6  ;;  %v10196_v11 = vpop.f32.mrb[21].mxu1 }
 0x910   : > { %v10371_v14 = vadd.f32 %v10370_v43, %v10369_v29 }
 0x911   : > { %v10473_v57 = vsel %vm504_vm2, %v10442_v54, 0.0 }
 0x912   : > { %v10474_v36 = vadd.f32 %v10473_v57, %v10472_v50  ;;  %v13883_v37 = vpop.f32.mrb[22].mxu1 }
 0x913   : > { %v19365_v39 = vpop.f32.mrb[23].mxu1 }
 0x914   : > { %v10401_v61 = vsel %vm504_vm2, %v19365_v39, 0.0  ;;  %v10443_v44 = vmul.f32 %v19365_v39, %v19365_v39 }
 0x915   : > { %v10402_v3 = vadd.f32 %v10401_v61, %v10400_v32 }
 0x916   : > { %v10504_v34 = vsel %vm504_vm2, %v10443_v44, 0.0  ;;  %v19372_v55 = vpop.f32.mrb[24].mxu1 }
 0x917   : > { %v10505_v5 = vadd.f32 %v10504_v34, %v10503_v52  ;;  %v10403_v2 = vsel %vm504_vm2, %v19372_v55, 0.0  ;;  %v10445_v12 = vmul.f32 %v19372_v55, %v19372_v55  ;;  %v19378_v24 = vpop.f32.mrb[25].mxu1 }
 0x918   : > { %v10404_v60 = vadd.f32 %v10403_v2, %v10402_v3  ;;  %v10372_v7 = vsel %vm504_vm2, %v19378_v24, 0.0  ;;  %v10444_v15 = vmul.f32 %v19378_v24, %v19378_v24 }
 0x919   : > { %v10506_v56 = vsel %vm504_vm2, %v10445_v12, 0.0  ;;  %v10373_v13 = vadd.f32 %v10372_v7, %v10371_v14 }
 0x91a   : > { %v10507_v58 = vadd.f32 %v10506_v56, %v10505_v5  ;;  %v10475_v28 = vsel %vm504_vm2, %v10444_v15, 0.0  ;;  %v19386_v19 = vpop.f32.mrb[26].mxu1 }
 0x91b   : > { %v10476_v4 = vadd.f32 %v10475_v28, %v10474_v36  ;;  %v10374_v18 = vsel %vm504_vm2, %v19386_v19, 0.0  ;;  %v10446_v8 = vmul.f32 %v19386_v19, %v19386_v19  ;;  %v10224_v41 = vpop.f32.mrb[27].mxu1 }
 0x91c   : > { %v10375_v30 = vadd.f32 %v10374_v18, %v10373_v13 }
 0x91d   : > { %v10477_v38 = vsel %vm504_vm2, %v10446_v8, 0.0 }
 0x91e   : > { %v10478_v48 = vadd.f32 %v10477_v38, %v10476_v4  ;;  %v13892_v51 = vpop.f32.mrb[28].mxu1 }
 0x91f   : > { %v19393_v45 = vpop.f32.mrb[29].mxu1 }
 0x920   : > { %v10405_v53 = vsel %vm504_vm2, %v19393_v45, 0.0  ;;  %v10447_v22 = vmul.f32 %v19393_v45, %v19393_v45 }
 0x921   : > { %v10406_v42 = vadd.f32 %v10405_v53, %v10404_v60 }
 0x922   : > { %v10508_v40 = vsel %vm504_vm2, %v10447_v22, 0.0  ;;  %v19400_v0 = vpop.f32.mrb[30].mxu1 }
 0x923   : > { %v10509_v25 = vadd.f32 %v10508_v40, %v10507_v58  ;;  %v10407_v10 = vsel %vm504_vm2, %v19400_v0, 0.0  ;;  %v10449_v32 = vmul.f32 %v19400_v0, %v19400_v0  ;;  %v19406_v59 = vpop.f32.mrb[31].mxu1 }
 0x924   : > { %v10408_v21 = vadd.f32 %v10407_v10, %v10406_v42  ;;  %v10376_v63 = vsel %vm504_vm2, %v19406_v59, 0.0  ;;  %v10448_v29 = vmul.f32 %v19406_v59, %v19406_v59 }
 0x925   : > { %v10510_v52 = vsel %vm504_vm2, %v10449_v32, 0.0  ;;  %v10377_v9 = vadd.f32 %v10376_v63, %v10375_v30 }
 0x926   : > { %v10511_v50 = vadd.f32 %v10510_v52, %v10509_v25  ;;  %v10479_v43 = vsel %vm504_vm2, %v10448_v29, 0.0  ;;  %v19414_v54 = vpop.f32.mrb[32].mxu1 }
 0x927   : > { %v10480_v11 = vadd.f32 %v10479_v43, %v10478_v48  ;;  %v10378_v14 = vsel %vm504_vm2, %v19414_v54, 0.0  ;;  %v10450_v57 = vmul.f32 %v19414_v54, %v19414_v54  ;;  %v10252_v36 = vpop.f32.mrb[33].mxu1 }
 0x928   : > { %v10379_v37 = vadd.f32 %v10378_v14, %v10377_v9 }
 0x929   : > { %v10481_v61 = vsel %vm504_vm2, %v10450_v57, 0.0 }
 0x92a   : > { %v10482_v44 = vadd.f32 %v10481_v61, %v10480_v11  ;;  %v13901_v3 = vpop.f32.mrb[34].mxu1 }
 0x92b   : > { %v19421_v34 = vpop.f32.mrb[35].mxu1 }
 0x92c   : > { %v10409_v5 = vsel %vm504_vm2, %v19421_v34, 0.0  ;;  %v10451_v2 = vmul.f32 %v19421_v34, %v19421_v34 }
 0x92d   : > { %v10410_v12 = vadd.f32 %v10409_v5, %v10408_v21 }
 0x92e   : > { %v10512_v60 = vsel %vm504_vm2, %v10451_v2, 0.0  ;;  %v19428_v7 = vpop.f32.mrb[36].mxu1 }
 0x92f   : > { %v10513_v15 = vadd.f32 %v10512_v60, %v10511_v50  ;;  %v10411_v56 = vsel %vm504_vm2, %v19428_v7, 0.0  ;;  %v10453_v13 = vmul.f32 %v19428_v7, %v19428_v7  ;;  %v19434_v58 = vpop.f32.mrb[37].mxu1 }
 0x930   : > { %v10412_v28 = vadd.f32 %v10411_v56, %v10410_v12  ;;  %v10380_v4 = vsel %vm504_vm2, %v19434_v58, 0.0  ;;  %v10452_v18 = vmul.f32 %v19434_v58, %v19434_v58 }
 0x931   : > { %v10514_v8 = vsel %vm504_vm2, %v10453_v13, 0.0  ;;  %v10381_v41 = vadd.f32 %v10380_v4, %v10379_v37 }
 0x932   : > { %v10515_v30 = vadd.f32 %v10514_v8, %v10513_v15  ;;  %v10483_v38 = vsel %vm504_vm2, %v10452_v18, 0.0  ;;  %v19442_v48 = vpop.f32.mrb[38].mxu1 }
 0x933   : > { %v10484_v51 = vadd.f32 %v10483_v38, %v10482_v44  ;;  %v10382_v53 = vsel %vm504_vm2, %v19442_v48, 0.0  ;;  %v10454_v22 = vmul.f32 %v19442_v48, %v19442_v48  ;;  %v10280_v42 = vpop.f32.mrb[39].mxu1 }
 0x934   : > { %v10383_v40 = vadd.f32 %v10382_v53, %v10381_v41 }
 0x935   : > { %v10485_v25 = vsel %vm504_vm2, %v10454_v22, 0.0 }
 0x936   : > { %v10486_v10 = vadd.f32 %v10485_v25, %v10484_v51  ;;  %v13910_v32 = vpop.f32.mrb[40].mxu1 }
 0x937   : > { %v19449_v21 = vpop.f32.mrb[41].mxu1 }
 0x938   : > { %v10413_v63 = vsel %vm504_vm2, %v19449_v21, 0.0  ;;  %v10455_v29 = vmul.f32 %v19449_v21, %v19449_v21 }
 0x939   : > { %v10414_v52 = vadd.f32 %v10413_v63, %v10412_v28 }
 0x93a   : > { %v10516_v9 = vsel %vm504_vm2, %v10455_v29, 0.0  ;;  %v19456_v50 = vpop.f32.mrb[42].mxu1 }
 0x93b   : > { %v10517_v43 = vadd.f32 %v10516_v9, %v10515_v30  ;;  %v10415_v11 = vsel %vm504_vm2, %v19456_v50, 0.0  ;;  %v10457_v14 = vmul.f32 %v19456_v50, %v19456_v50  ;;  %v19462_v57 = vpop.f32.mrb[43].mxu1 }
 0x93c   : > { %v10416_v36 = vadd.f32 %v10415_v11, %v10414_v52  ;;  %v10384_v37 = vsel %vm504_vm2, %v19462_v57, 0.0  ;;  %v10456_v61 = vmul.f32 %v19462_v57, %v19462_v57 }
 0x93d   : > { %v10518_v44 = vsel %vm504_vm2, %v10457_v14, 0.0  ;;  %v10385_v3 = vadd.f32 %v10384_v37, %v10383_v40 }
 0x93e   : > { %v10519_v5 = vadd.f32 %v10518_v44, %v10517_v43  ;;  %v10487_v2 = vsel %vm504_vm2, %v10456_v61, 0.0  ;;  %v19470_v12 = vpop.f32.mrb[44].mxu1 }
 0x93f   : > { %v10488_v60 = vadd.f32 %v10487_v2, %v10486_v10  ;;  %v10386_v15 = vsel %vm504_vm2, %v19470_v12, 0.0  ;;  %v10458_v56 = vmul.f32 %v19470_v12, %v19470_v12  ;;  %v10308_v13 = vpop.f32.mrb[45].mxu1 }
 0x940   : > { %v10387_v28 = vadd.f32 %v10386_v15, %v10385_v3 }
 0x941   : > { %v10489_v4 = vsel %vm504_vm2, %v10458_v56, 0.0 }
 0x942   : > { %v10490_v18 = vadd.f32 %v10489_v4, %v10488_v60  ;;  %v13919_v8 = vpop.f32.mrb[46].mxu1  ;;  %v10419_v22 = vsel %vm504_vm2, %v10387_v28, 0.0 }
 0x943   : > { %v19477_v41 = vpop.f32.mrb[47].mxu1 }
 0x944   : > { %v10417_v30 = vsel %vm504_vm2, %v19477_v41, 0.0  ;;  %v10459_v38 = vmul.f32 %v19477_v41, %v19477_v41  ;;  %v10522_v10 = vsel %vm504_vm2, %v10490_v18, 0.0 }
 0x945   : > { %v10418_v51 = vadd.f32 %v10417_v30, %v10416_v36 }
 0x946   : > { %v10520_v53 = vsel %vm504_vm2, %v10459_v38, 0.0 }
 0x947   : > { %v10420_v42 = vsel %vm504_vm2, %v10418_v51, 0.0  ;;  %v10521_v40 = vadd.f32 %v10520_v53, %v10519_v5 }
 0x948   : > { %v10421_v25 = vadd.f32 %v10420_v42, %v10419_v22 }
 0x949   : > { %v10523_v32 = vsel %vm504_vm2, %v10521_v40, 0.0 }
 0x94a   : > { %v10422_v63 = vrot.slane %v10421_v25, 4  ;;  %v10524_v29 = vadd.f32 %v10523_v32, %v10522_v10 }
 0x94c   : > { %v10423_v52 = vadd.f32 %v10422_v63, %v10421_v25  ;;  %v10525_v9 = vrot.slane %v10524_v29, 4 }
 0x94e   : > { %v10424_v43 = vrot.slane %v10423_v52, 2  ;;  %v10526_v11 = vadd.f32 %v10525_v9, %v10524_v29  ;;  %v10603_v29 = vld [vmem:[%s15133_s30 + $0x8] sm:$0xff]  ;;  %v10604_v9 = vld [vmem:[%s15133_s30 + $0x10] sm:$0xff] }
 0x950   : > { %v10425_v14 = vadd.f32 %v10424_v43, %v10423_v52  ;;  %v10527_v36 = vrot.slane %v10526_v11, 2  ;;  %v10602_v52 = vld [vmem:[%s15133_s30] sm:$0xff] }
 0x952   : > { %v10426_v37 = vrot.slane %v10425_v14, 1  ;;  %v10528_v61 = vadd.f32 %v10527_v36, %v10526_v11 }
 0x954   : > { %v10427_v44 = vadd.f32 %v10426_v37, %v10425_v14  ;;  %v10529_v3 = vrot.slane %v10528_v61, 1  ;;  %v10605_v37 = vld [vmem:[%s15133_s30 + $0x18] sm:$0xff] }
 0x956   : > { %v10530_v2 = vadd.f32 %v10529_v3, %v10528_v61  ;;  %v19488_v60 = vmul.f32 0.00390625, %v10427_v44  ;;  %v10607_v61 = vld [vmem:[%s15133_s30 + $0x28] sm:$0xff]  ;;  %v10606_v44 = vld [vmem:[%s15133_s30 + $0x20] sm:$0xff]  ;;  %v10608_v3 = vld [vmem:[%s15133_s30 + $0x30] sm:$0xff] }
 0x958   : > { %v10532_v5 = vmul.f32 0.00390625, %v10530_v2  ;;  %v10533_v15 = vmul.f32 %v19488_v60, %v19488_v60  ;;  %v10567_v56 = vsub.f32 %v19477_v41, %v19488_v60  ;;  %v10536_v13 = vsub.f32 %v19262_v33, %v19488_v60 }
 0x959   : > { %v10537_v28 = vsub.f32 %v19260_v20, %v19488_v60  ;;  %v10538_v4 = vsub.f32 %v19266_v26, %v19488_v60  ;;  %v10539_v18 = vsub.f32 %v19278_v1, %v19488_v60  ;;  %v10540_v8 = vsub.f32 %v19294_v47, %v19488_v60 }
 0x95a   : > { %v10534_v30 = vsub.f32 %v10532_v5, %v10533_v15  ;;  %v10541_v38 = vsub.f32 %v19288_v16, %v19488_v60  ;;  %v10542_v41 = vsub.f32 %v19302_v46, %v19488_v60  ;;  %v10543_v33 = vsub.f32 %v19309_v31, %v19488_v60 }
 0x95b   : > { %v10544_v20 = vsub.f32 %v19322_v62, %v19488_v60  ;;  %v10545_v26 = vsub.f32 %v19316_v49, %v19488_v60  ;;  %v10546_v1 = vsub.f32 %v19330_v23, %v19488_v60  ;;  %v10547_v47 = vsub.f32 %v19337_v17, %v19488_v60 }
 0x95c   : > { %v10535_v51 = vmax.f32 %v10534_v30, 0.0  ;;  %v10548_v16 = vsub.f32 %v19350_v27, %v19488_v60  ;;  %v10549_v46 = vsub.f32 %v19344_v35, %v19488_v60  ;;  %v10550_v31 = vsub.f32 %v19358_v6, %v19488_v60 }
 0x95d   : > { %v10551_v62 = vsub.f32 %v19365_v39, %v19488_v60  ;;  %v10552_v49 = vsub.f32 %v19378_v24, %v19488_v60  ;;  %v10553_v23 = vsub.f32 %v19372_v55, %v19488_v60  ;;  %v10554_v17 = vsub.f32 %v19386_v19, %v19488_v60 }
 0x95e   : > { %v10568_v27 = vadd.f32 1e-05, %v10535_v51  ;;  %v10555_v35 = vsub.f32 %v19393_v45, %v19488_v60  ;;  %v10556_v6 = vsub.f32 %v19406_v59, %v19488_v60  ;;  %v10557_v39 = vsub.f32 %v19400_v0, %v19488_v60  ;;  %v10614_v51 = vld [vmem:[%s15133_s30 + $0x60] sm:$0xff] }
 0x95f   : > { %v10558_v24 = vsub.f32 %v19414_v54, %v19488_v60  ;;  %v10559_v55 = vsub.f32 %v19421_v34, %v19488_v60  ;;  %v10560_v19 = vsub.f32 %v19434_v58, %v19488_v60  ;;  %v10561_v53 = vsub.f32 %v19428_v7, %v19488_v60  ;;  %v10633_v7 = vld [vmem:[%s15133_s30 + $0xf8] sm:$0xff] }
 0x960   : > { %14764 = vrsqrt.f32 %v10568_v27  ;;  %v10562_v45 = vsub.f32 %v19442_v48, %v19488_v60  ;;  %v10563_v59 = vsub.f32 %v19449_v21, %v19488_v60  ;;  %v10564_v0 = vsub.f32 %v19462_v57, %v19488_v60  ;;  %v10618_v27 = vld [vmem:[%s15133_s30 + $0x80] sm:$0xff] }
 0x961   : > { %v10565_v54 = vsub.f32 %v19456_v50, %v19488_v60  ;;  %v10566_v34 = vsub.f32 %v19470_v12, %v19488_v60 }
 0x96a   : > { %v14765_v58 = vpop.eup %14764 }
 0x96b   : > { %v10601_v22 = vmul.f32 %v14765_v58, %v10567_v56  ;;  %v10570_v42 = vmul.f32 %v14765_v58, %v10536_v13  ;;  %v10571_v48 = vmul.f32 %v14765_v58, %v10537_v28  ;;  %v10572_v40 = vmul.f32 %v14765_v58, %v10538_v4  ;;  %v10609_v56 = vld [vmem:[%s15133_s30 + $0x38] sm:$0xff]  ;;  %v10611_v13 = vld [vmem:[%s15133_s30 + $0x48] sm:$0xff]  ;;  %v10610_v28 = vld [vmem:[%s15133_s30 + $0x40] sm:$0xff] }
 0x96c   : > { %v10573_v21 = vmul.f32 %v14765_v58, %v10539_v18  ;;  %v10574_v25 = vmul.f32 %v14765_v58, %v10540_v8  ;;  %v10575_v57 = vmul.f32 %v14765_v58, %v10541_v38  ;;  %v10576_v50 = vmul.f32 %v14765_v58, %v10542_v41  ;;  %v10612_v38 = vld [vmem:[%s15133_s30 + $0x50] sm:$0xff]  ;;  %v10613_v41 = vld [vmem:[%s15133_s30 + $0x58] sm:$0xff] }
 0x96d   : > { %v10665_v10 = vadd.f32 %v10633_v7, %v10601_v22  ;;  %v10577_v32 = vmul.f32 %v14765_v58, %v10543_v33  ;;  %v10578_v12 = vmul.f32 %v14765_v58, %v10544_v20  ;;  %v10579_v63 = vmul.f32 %v14765_v58, %v10545_v26  ;;  %v10615_v33 = vld [vmem:[%s15133_s30 + $0x68] sm:$0xff]  ;;  %v10624_v22 = vld [vmem:[%s15133_s30 + $0xb0] sm:$0xff] }
 0x96e   : > { %v10580_v43 = vmul.f32 %v14765_v58, %v10546_v1  ;;  %v10581_v11 = vmul.f32 %v14765_v58, %v10547_v47  ;;  %v10582_v14 = vmul.f32 %v14765_v58, %v10548_v16  ;;  %v10583_v36 = vmul.f32 %v14765_v58, %v10549_v46  ;;  %v10616_v16 = vld [vmem:[%s15133_s30 + $0x70] sm:$0xff]  ;;  %v10617_v46 = vld [vmem:[%s15133_s30 + $0x78] sm:$0xff] }
 0x96f   : > { %10697 = vst.msk [vmem:[%s19566_s18 + $0xf8] sm:$0xff] %vm504_vm2, %v10665_v10  ;;  %v10584_v2 = vmul.f32 %v14765_v58, %v10550_v31  ;;  %v19570_v60 = vmul.f32 %v14765_v58, %v10551_v62  ;;  %v19572_v5 = vmul.f32 %v14765_v58, %v10552_v49  ;;  %v19574_v15 = vmul.f32 %v14765_v58, %v10553_v23  ;;  %v10625_v10 = vld [vmem:[%s15133_s30 + $0xb8] sm:$0xff] }
 0x970   : > { %v10588_v4 = vmul.f32 %v14765_v58, %v10554_v17  ;;  %v19579_v18 = vmul.f32 %v14765_v58, %v10555_v35  ;;  %v19581_v8 = vmul.f32 %v14765_v58, %v10556_v6  ;;  %v19583_v30 = vmul.f32 %v14765_v58, %v10557_v39  ;;  %v10619_v17 = vld [vmem:[%s15133_s30 + $0x88] sm:$0xff]  ;;  %v10620_v35 = vld [vmem:[%s15133_s30 + $0x90] sm:$0xff] }
 0x971   : > { %v10592_v20 = vmul.f32 %v14765_v58, %v10558_v24  ;;  %v19588_v26 = vmul.f32 %v14765_v58, %v10559_v55  ;;  %v19590_v1 = vmul.f32 %v14765_v58, %v10560_v19  ;;  %v19592_v47 = vmul.f32 %v14765_v58, %v10561_v53  ;;  %v10621_v19 = vld [vmem:[%s15133_s30 + $0x98] sm:$0xff]  ;;  %v10623_v53 = vld [vmem:[%s15133_s30 + $0xa8] sm:$0xff] }
 0x972   : > { %v19597_v31 = vmul.f32 %v14765_v58, %v10562_v45  ;;  %v19599_v62 = vmul.f32 %v14765_v58, %v10563_v59  ;;  %v19601_v49 = vmul.f32 %v14765_v58, %v10564_v0  ;;  %v19603_v23 = vmul.f32 %v14765_v58, %v10565_v54  ;;  %v10622_v45 = vld [vmem:[%s15133_s30 + $0xa0] sm:$0xff] }
 0x973   : > { %v19608_v6 = vmul.f32 %v14765_v58, %v10566_v34  ;;  %v10634_v39 = vadd.f32 %v10602_v52, %v10570_v42  ;;  %v10635_v24 = vadd.f32 %v10603_v29, %v10571_v48  ;;  %v10636_v55 = vadd.f32 %v10604_v9, %v10572_v40  ;;  %v10627_v34 = vld [vmem:[%s15133_s30 + $0xc8] sm:$0xff]  ;;  %v10630_v52 = vld [vmem:[%s15133_s30 + $0xe0] sm:$0xff]  ;;  %v10632_v9 = vld [vmem:[%s15133_s30 + $0xf0] sm:$0xff] }
 0x974   : > { %v10637_v59 = vadd.f32 %v10605_v37, %v10573_v21  ;;  %v10638_v0 = vadd.f32 %v10606_v44, %v10574_v25  ;;  %v10639_v54 = vadd.f32 %v10607_v61, %v10575_v57  ;;  %v10640_v7 = vadd.f32 %v10608_v3, %v10576_v50  ;;  %v10626_v21 = vld [vmem:[%s15133_s30 + $0xc0] sm:$0xff]  ;;  %v10628_v25 = vld [vmem:[%s15133_s30 + $0xd0] sm:$0xff]  ;;  %v10629_v57 = vld [vmem:[%s15133_s30 + $0xd8] sm:$0xff] }
 0x975   : > { %v10641_v58 = vadd.f32 %v10609_v56, %v10577_v32  ;;  %v10642_v42 = vadd.f32 %v10610_v28, %v10578_v12  ;;  %v10643_v48 = vadd.f32 %v10611_v13, %v10579_v63  ;;  %v10644_v40 = vadd.f32 %v10612_v38, %v10580_v43  ;;  %10666 = vst.msk [vmem:[%s19566_s18] sm:$0xff] %vm504_vm2, %v10634_v39  ;;  %v10631_v29 = vld [vmem:[%s15133_s30 + $0xe8] sm:$0xff] }
 0x976   : > { %10667 = vst.msk [vmem:[%s19566_s18 + $0x8] sm:$0xff] %vm504_vm2, %v10635_v24  ;;  %10668 = vst.msk [vmem:[%s19566_s18 + $0x10] sm:$0xff] %vm504_vm2, %v10636_v55  ;;  %v10645_v50 = vadd.f32 %v10613_v41, %v10581_v11  ;;  %v10646_v32 = vadd.f32 %v10614_v51, %v10582_v14  ;;  %v10647_v12 = vadd.f32 %v10615_v33, %v10583_v36 }
 0x977   : > { %v10648_v63 = vadd.f32 %v10616_v16, %v10584_v2  ;;  %10669 = vst.msk [vmem:[%s19566_s18 + $0x18] sm:$0xff] %vm504_vm2, %v10637_v59  ;;  %10670 = vst.msk [vmem:[%s19566_s18 + $0x20] sm:$0xff] %vm504_vm2, %v10638_v0  ;;  %v10649_v43 = vadd.f32 %v10617_v46, %v19570_v60  ;;  %v10650_v11 = vadd.f32 %v10618_v27, %v19572_v5 }
 0x978   : > { %10671 = vst.msk [vmem:[%s19566_s18 + $0x28] sm:$0xff] %vm504_vm2, %v10639_v54  ;;  %10672 = vst.msk [vmem:[%s19566_s18 + $0x30] sm:$0xff] %vm504_vm2, %v10640_v7  ;;  %v10651_v14 = vadd.f32 %v10619_v17, %v19574_v15  ;;  %v10652_v36 = vadd.f32 %v10620_v35, %v10588_v4  ;;  %v10653_v37 = vadd.f32 %v10621_v19, %v19579_v18 }
 0x979   : > { %10673 = vst.msk [vmem:[%s19566_s18 + $0x38] sm:$0xff] %vm504_vm2, %v10641_v58  ;;  %10674 = vst.msk [vmem:[%s19566_s18 + $0x40] sm:$0xff] %vm504_vm2, %v10642_v42  ;;  %v10654_v61 = vadd.f32 %v10622_v45, %v19581_v8  ;;  %v10655_v44 = vadd.f32 %v10623_v53, %v19583_v30  ;;  %v10656_v3 = vadd.f32 %v10624_v22, %v10592_v20 }
 0x97a   : > { %10675 = vst.msk [vmem:[%s19566_s18 + $0x48] sm:$0xff] %vm504_vm2, %v10643_v48  ;;  %10676 = vst.msk [vmem:[%s19566_s18 + $0x50] sm:$0xff] %vm504_vm2, %v10644_v40  ;;  %v10657_v2 = vadd.f32 %v10625_v10, %v19588_v26  ;;  %v10658_v60 = vadd.f32 %v10626_v21, %v19590_v1  ;;  %v10659_v5 = vadd.f32 %v10627_v34, %v19592_v47 }
 0x97b   : > { %10677 = vst.msk [vmem:[%s19566_s18 + $0x58] sm:$0xff] %vm504_vm2, %v10645_v50  ;;  %10678 = vst.msk [vmem:[%s19566_s18 + $0x60] sm:$0xff] %vm504_vm2, %v10646_v32  ;;  %v10660_v15 = vadd.f32 %v10628_v25, %v19597_v31  ;;  %v10661_v56 = vadd.f32 %v10629_v57, %v19599_v62  ;;  %v10662_v13 = vadd.f32 %v10630_v52, %v19601_v49 }
 0x97c   : > { %10679 = vst.msk [vmem:[%s19566_s18 + $0x68] sm:$0xff] %vm504_vm2, %v10647_v12  ;;  %10680 = vst.msk [vmem:[%s19566_s18 + $0x70] sm:$0xff] %vm504_vm2, %v10648_v63  ;;  %v10663_v28 = vadd.f32 %v10631_v29, %v19603_v23  ;;  %v10664_v4 = vadd.f32 %v10632_v9, %v19608_v6 }
 0x97d   : > { %10681 = vst.msk [vmem:[%s19566_s18 + $0x78] sm:$0xff] %vm504_vm2, %v10649_v43  ;;  %10682 = vst.msk [vmem:[%s19566_s18 + $0x80] sm:$0xff] %vm504_vm2, %v10650_v11 }
 0x97e   : > { %10683 = vst.msk [vmem:[%s19566_s18 + $0x88] sm:$0xff] %vm504_vm2, %v10651_v14  ;;  %10684 = vst.msk [vmem:[%s19566_s18 + $0x90] sm:$0xff] %vm504_vm2, %v10652_v36 }
 0x97f   : > { %10685 = vst.msk [vmem:[%s19566_s18 + $0x98] sm:$0xff] %vm504_vm2, %v10653_v37  ;;  %10686 = vst.msk [vmem:[%s19566_s18 + $0xa0] sm:$0xff] %vm504_vm2, %v10654_v61 }
 0x980   : > { %10687 = vst.msk [vmem:[%s19566_s18 + $0xa8] sm:$0xff] %vm504_vm2, %v10655_v44  ;;  %10688 = vst.msk [vmem:[%s19566_s18 + $0xb0] sm:$0xff] %vm504_vm2, %v10656_v3 }
 0x981   : > { %10689 = vst.msk [vmem:[%s19566_s18 + $0xb8] sm:$0xff] %vm504_vm2, %v10657_v2  ;;  %10690 = vst.msk [vmem:[%s19566_s18 + $0xc0] sm:$0xff] %vm504_vm2, %v10658_v60 }
 0x982   : > { %10691 = vst.msk [vmem:[%s19566_s18 + $0xc8] sm:$0xff] %vm504_vm2, %v10659_v5  ;;  %10692 = vst.msk [vmem:[%s19566_s18 + $0xd0] sm:$0xff] %vm504_vm2, %v10660_v15 }
 0x983   : > { %10693 = vst.msk [vmem:[%s19566_s18 + $0xd8] sm:$0xff] %vm504_vm2, %v10661_v56  ;;  %10694 = vst.msk [vmem:[%s19566_s18 + $0xe0] sm:$0xff] %vm504_vm2, %v10662_v13 }
 0x984   : > { %10695 = vst.msk [vmem:[%s19566_s18 + $0xe8] sm:$0xff] %vm504_vm2, %v10663_v28  ;;  %10696 = vst.msk [vmem:[%s19566_s18 + $0xf0] sm:$0xff] %vm504_vm2, %v10664_v4 }
 0x985   : > { %14865 = shalt.err (!%p14862_p2)
}
 0x986   : > { %s14866_s25 = scalar_lea.hbm %s19677_s27, 4096  ;;  %s14870_s21 = scalar_lea.hbm %s19756_s3, 8192 }
 0x987   : > { %p14867_p13 = scmp.ne.s32.totalorder %s19677_s27, %s14866_s25  ;;  %p14871_p4 = scmp.lt.u32.totalorder %s19677_s27, %s19756_s3 }
 0x988   : > { %p14872_p5 = scmp.lt.u32.totalorder %s14870_s21, %s14866_s25  ;;  %p14874_p11 = scmp.lt.u32.totalorder %s14866_s25, %s19677_s27 }
 0x989   : > { %p14868_p6 = pnand %p14867_p13, %p20225_p0 }
 0x98a   : > { %p14873_p8 = por %p14872_p5, %p14871_p4 }
 0x98b   : > { %p14869_p10 = pneg %p14868_p6 }
 0x98c   : > { %p14875_p1 = por %p14874_p11, %p14873_p8 }
 0x98e   : > { %p14876_p3 = pnand %p14875_p1, %p14869_p10 }
 0x990   : > { %14879 = shalt.err (!%p14876_p3)
}
 0x991   : > { %s14933_s30 = smov 128   ;;  %s14934_s18 = smov 8  }
 0x992   : > { %14698 = dma.vmem_to_hbm [thread:$0]  (%p20225_p0), %s19681_s17, 4096, %s19677_s27, %s10699_s16, %s14933_s30, %s14933_s30, %s14934_s18  }
 0x993 PF: > { %s10727_s20 = sand.u32 1, %s14910_s12   ;;  %p20226_p7 = scmp.ne.s32.totalorder %s19912_s19, 0 }
 0x994   : > { %p20227_p9 = scmp.ge.s32.totalorder %s14922_s15, 2  ;;  %s10728_s24 = scalar_lea.sflag [#allocation5], %s10727_s20 }
 0x996   : > { %p14712_p12 = pnand %p20227_p9, %p20226_p7 }
 0x998   : > { %14905 = dma.done.wait (!%p14712_p12), %s10728_s24, 4096  }
 0x999   : > { %14907 = vsyncadd (!%p14712_p12), %s10728_s24, 4294963200  ;;  %p17_p2 = scmp.ge.s32.totalorder %s15065_s4, 4   ;;  %s20228_s12 = smov %s14914_s13 }
 0x99a   : > { %s20229_s13 = smov %s14918_s14  ;;  %s20230_s14 = smov %s15081_s9 }
 0x99b   : > { %s20231_s15 = smov %s15065_s4  ;;  %19 = sbr.rel (!%p17_p2) target bundleno = 6 (0x6), region = 101 }
 0x9a2   :  { %10733 = vsyncpa [#allocation4], 1 }
 0x9a3   :  { %10735 = vsyncpa [#allocation4 + $0x1], 1 }
 0x9a4   :  { %10736 = vsyncpa [#allocation7], 1 }
 0x9a5   :  { %10737 = vsyncpa [#allocation5], 1 }
 0x9a6   :  { %10739 = vsyncpa [#allocation5 + $0x1], 1 }

</bundles_post_ra>
